<compile_context>
chip_gen: v7x
topology: tpu7x:2x2x1
jax: 0.10.0
libtpu: 0.0.40
codegen_flags: <defaults>
</compile_context>

<pallas_src>
import numpy as np
import jax
import jax.numpy as jnp
from jax.experimental import pallas as pl
from jax.experimental.pallas import tpu as pltpu

PAD = 8  # sublane-aligned row-group size used for the bottleneck (C/4) channels


# -----------------------------------------------------------------------------
# Static spatial geometry
# -----------------------------------------------------------------------------
def _pad128(x):
    return ((x + 127) // 128) * 128


def _spatial_sizes(h, w):
    h1, w1 = (h - 1) // 2 + 1, (w - 1) // 2 + 1       # after maxpool1
    h2, w2 = (h1 - 1) // 2 + 1, (w1 - 1) // 2 + 1     # after maxpool2
    return ((h, w, _pad128(h * w)),
            (h1, w1, _pad128(h1 * w1)),
            (h2, w2, _pad128(h2 * w2)))


# -----------------------------------------------------------------------------
# The fused kernel (one image per grid step)
# -----------------------------------------------------------------------------
def _make_kernel(c, sizes):
    f32 = jnp.float32

    def tap_shifts(size_idx):
        # lane-roll amount (positive, < HWp) for each of the 9 conv/pool taps
        _, w, hwp = sizes[size_idx]
        return [(-((t // 3 - 1) * w + (t % 3 - 1))) % hwp for t in range(9)]

    def kernel(x_ref, rvec_ref, rw1_ref, rwc_ref, rw3_ref, mvec_ref, mw_ref,
               cm0_ref, cm1_ref, cm2_ref, psel1_ref, psel2_ref, u2_ref, u1_ref,
               o_ref):
        cmask = (cm0_ref, cm1_ref, cm2_ref)

        def bn_relu(v, s, b):
            return jnp.maximum(v * s + b, 0.0)

        def conv3x3(taps, size_idx):
            # taps: (9*PAD, HWp) tap-major.  Shift each tap block with an XLU roll,
            # zero out-of-image contributions with a (1, HWp) 0/1 mask, accumulate.
            shifts = tap_shifts(size_idx)
            cm_ref = cmask[size_idx]
            acc = None
            for t in range(9):
                blk = taps[t * PAD:(t + 1) * PAD, :]
                if shifts[t]:
                    blk = pltpu.roll(blk, shifts[t], axis=1)
                term = blk * cm_ref[t]
                acc = term if acc is None else acc + term
            return acc

        def res_block(v, blk, size_idx):
            vec = rvec_ref[blk]                             # (2c + 4*PAD, 1)
            o2 = 2 * c
            s1v, b1v = vec[0:c], vec[c:2 * c]
            s2v, b2v = vec[o2:o2 + PAD], vec[o2 + PAD:o2 + 2 * PAD]
            s3v = vec[o2 + 2 * PAD:o2 + 3 * PAD]
            b3v = vec[o2 + 3 * PAD:o2 + 4 * PAD]

            a1 = bn_relu(v, s1v, b1v)                                        # (c, HWp)
            h1 = jnp.dot(rw1_ref[blk], a1, preferred_element_type=f32)       # (PAD, HWp)
            a2 = bn_relu(h1, s2v, b2v)
            taps = jnp.dot(rwc_ref[blk], a2, preferred_element_type=f32)     # (9*PAD, HWp)
            a3 = bn_relu(conv3x3(taps, size_idx), s3v, b3v)                  # (PAD, HWp)
            return jnp.dot(rw3_ref[blk], a3, preferred_element_type=f32) + v  # (c, HWp)

        def maxpool(v, size_idx, psel_ref):
            # 3x3/stride2/pad1: neighborhood max at full resolution (rolls + masked
            # max, invalid taps forced to -1e30), then one stride-2 selection matmul.
            shifts = tap_shifts(size_idx)
            cm_ref = cmask[size_idx]
            neigh = None
            for t in range(9):
                r = v if shifts[t] == 0 else pltpu.roll(v, shifts[t], axis=1)
                m = cm_ref[t]
                term = r * m + (m - 1.0) * 1e30
                neigh = term if neigh is None else jnp.maximum(neigh, term)
            return jnp.dot(neigh, psel_ref[...], preferred_element_type=f32)

        x = x_ref[...]                                     # (c, HWp0)
        x = res_block(x, 0, 0)                             # first_residual_blocks
        trunk = res_block(res_block(x, 1, 0), 2, 0)        # trunk_branches

        mp1 = maxpool(x, 0, psel1_ref)                     # (c, HWp1)
        sm1 = res_block(mp1, 3, 1)                         # softmax1_blocks
        skip1 = res_block(sm1, 4, 1)                       # skip1 residual block
        mp2 = maxpool(sm1, 1, psel2_ref)                   # (c, HWp2)
        sm2 = res_block(res_block(mp2, 5, 2), 6, 2)        # softmax2_blocks

        up2 = jnp.dot(sm2, u2_ref[...], preferred_element_type=f32)    # (c, HWp1)
        sm3 = res_block(up2 + sm1 + skip1, 7, 1)           # softmax3_blocks
        up1 = jnp.dot(sm3, u1_ref[...], preferred_element_type=f32)    # (c, HWp0)
        interp1 = up1 + trunk

        # softmax4_blocks: BN-ReLU-1x1 - BN-ReLU-1x1 - Sigmoid, then (1 + mask) * trunk
        mv = mvec_ref[...]                                 # (4c, 1)
        hh = jnp.maximum(interp1 * mv[0:c] + mv[c:2 * c], 0.0)
        hh = jnp.dot(mw_ref[0], hh, preferred_element_type=f32)
        hh = jnp.maximum(hh * mv[2 * c:3 * c] + mv[3 * c:4 * c], 0.0)
        hh = jnp.dot(mw_ref[1], hh, preferred_element_type=f32)
        sig = pl.reciprocal(1.0 + jnp.exp(jnp.minimum(-hh, 80.0)), approx=True)
        gated = (1.0 + sig) * trunk

        o_ref[...] = res_block(gated, 8, 0)                # last_blocks

    return kernel


# -----------------------------------------------------------------------------
# Wrapper: NCHW <-> (N*C, HWp) lane-padded layout, single pallas_call, grid=(N,)
# -----------------------------------------------------------------------------
def attention_module_stage2(x_nchw, params, consts):
    n, c, h, w = x_nchw.shape
    sizes = _spatial_sizes(h, w)
    (_, _, hwp0), (_, _, hwp1), (_, _, hwp2) = sizes
    hw = h * w

    x_flat = x_nchw.astype(jnp.float32).reshape(n, c, hw)
    x_pad = jnp.pad(x_flat, ((0, 0), (0, 0), (0, hwp0 - hw))).reshape(n * c, hwp0)

    const_ops = (params["rvec"], params["rw1"], params["rwc"], params["rw3"],
                 params["mvec"], params["mw"],
                 consts["cm0"], consts["cm1"], consts["cm2"],
                 consts["psel1"], consts["psel2"], consts["u2"], consts["u1"])

    def _const_spec(a):
        zeros = (0,) * a.ndim
        return pl.BlockSpec(a.shape, lambda i, _z=zeros: _z)

    in_specs = [pl.BlockSpec((c, hwp0), lambda i: (i, 0))]
    in_specs += [_const_spec(a) for a in const_ops]
    out_specs = pl.BlockSpec((c, hwp0), lambda i: (i, 0))

    # Advisory cost estimate for XLA scheduling around the custom call.
    mm_flops = 0
    for nblk, hwp in ((4, hwp0), (3, hwp1), (2, hwp2)):       # res_blocks per size
        mm_flops += nblk * 2 * hwp * (PAD * c + 9 * PAD * PAD + c * PAD)
    mm_flops += 2 * c * (hwp0 * hwp1 + hwp1 * hwp2)           # maxpool selections
    mm_flops += 2 * c * (hwp2 * hwp1 + hwp1 * hwp0)           # bilinear upsampling
    mm_flops += 2 * 2 * c * c * hwp0                          # mask-branch 1x1 convs
    bytes_accessed = (int(x_pad.size) + sum(int(a.size) for a in const_ops)
                      + n * c * hwp0) * 4
    cost = pl.CostEstimate(flops=n * mm_flops,
                           transcendentals=n * c * hwp0,
                           bytes_accessed=bytes_accessed)

    out_flat = pl.pallas_call(
        _make_kernel(c, sizes),
        out_shape=jax.ShapeDtypeStruct((n * c, hwp0), jnp.float32),
        grid=(n,),
        in_specs=in_specs,
        out_specs=out_specs,
        compiler_params=pltpu.CompilerParams(
            dimension_semantics=("parallel",),
            vmem_limit_bytes=32 * 1024 * 1024),
        cost_estimate=cost,
    )(x_pad, *const_ops)

    return out_flat.reshape(n, c, hwp0)[:, :, :hw].reshape(n, c, h, w)


# -----------------------------------------------------------------------------
# Host-side constants: conv/pool boundary masks, stride-2 selection, bilinear
# -----------------------------------------------------------------------------
def _lin_mat(n_out, n_in):
    # align_corners=True 1-D bilinear interpolation matrix (n_out, n_in)
    m = np.zeros((n_out, n_in), np.float32)
    if n_out == 1 or n_in == 1:
        m[:, 0] = 1.0
        return m
    coords = np.arange(n_out) * (n_in - 1) / (n_out - 1)
    lo = np.minimum(np.floor(coords).astype(np.int64), n_in - 1)
    hi = np.minimum(lo + 1, n_in - 1)
    frac = (coords - lo).astype(np.float32)
    idx = np.arange(n_out)
    m[idx, lo] += 1.0 - frac
    m[idx, hi] += frac
    return m


def _upsample_mat(hin, win, hout, wout, hwp_in, hwp_out):
    r = np.kron(_lin_mat(hout, hin), _lin_mat(wout, win)).astype(np.float32)
    u = np.zeros((hwp_in, hwp_out), np.float32)
    u[:hin * win, :hout * wout] = r.T
    return jnp.asarray(u)


def _conv_masks(h, w, hwp):
    # mask[t, 0, y*w+x] = 1 iff neighbor (y + t//3 - 1, x + t%3 - 1) is inside the image
    m = np.zeros((9, 1, hwp), np.float32)
    for t in range(9):
        dy, dx = t // 3 - 1, t % 3 - 1
        for y in range(h):
            if not (0 <= y + dy < h):
                continue
            for x in range(w):
                if 0 <= x + dx < w:
                    m[t, 0, y * w + x] = 1.0
    return jnp.asarray(m)


def _pool_select(h, w, hwp_in, hwp_out):
    # stride-2 center selection: out (yo, xo) <- in (2*yo, 2*xo)
    ho, wo = (h - 1) // 2 + 1, (w - 1) // 2 + 1
    s = np.zeros((hwp_in, hwp_out), np.float32)
    for yo in range(ho):
        for xo in range(wo):
            s[(2 * yo) * w + 2 * xo, yo * wo + xo] = 1.0
    return jnp.asarray(s)


def make_spatial_consts(h, w):
    (h0, w0, hwp0), (h1, w1, hwp1), (h2, w2, hwp2) = _spatial_sizes(h, w)
    return dict(
        cm0=_conv_masks(h0, w0, hwp0),
        cm1=_conv_masks(h1, w1, hwp1),
        cm2=_conv_masks(h2, w2, hwp2),
        psel1=_pool_select(h0, w0, hwp0, hwp1),
        psel2=_pool_select(h1, w1, hwp1, hwp2),
        u2=_upsample_mat(h2, w2, h1, w1, hwp2, hwp1),
        u1=_upsample_mat(h1, w1, h0, w0, hwp1, hwp0),
    )


# -----------------------------------------------------------------------------
# Deterministic synthetic parameters (inference-mode BN folded to scale/shift)
# -----------------------------------------------------------------------------
def _make_bn(key, c):
    k1, k2, k3, k4 = jax.random.split(key, 4)
    gamma = 1.0 + 0.1 * jax.random.normal(k1, (c,), jnp.float32)
    beta = 0.1 * jax.random.normal(k2, (c,), jnp.float32)
    mean = 0.1 * jax.random.normal(k3, (c,), jnp.float32)
    var = jax.random.uniform(k4, (c,), jnp.float32, 0.5, 1.5)
    scale = gamma / jnp.sqrt(var + 1e-5)
    shift = beta - mean * scale
    return scale, shift


def make_params(key, c, n_blocks=9):
    cm = c // 4
    assert cm <= PAD and c % 8 == 0
    keys = jax.random.split(key, n_blocks + 1)
    rvec, rw1, rwc, rw3 = [], [], [], []
    for i in range(n_blocks):
        ks = jax.random.split(keys[i], 6)
        s1, b1 = _make_bn(ks[0], c)
        s2, b2 = _make_bn(ks[1], cm)
        s3, b3 = _make_bn(ks[2], cm)
        vec = jnp.zeros((2 * c + 4 * PAD,), jnp.float32)
        vec = vec.at[0:c].set(s1).at[c:2 * c].set(b1)
        vec = vec.at[2 * c:2 * c + cm].set(s2)
        vec = vec.at[2 * c + PAD:2 * c + PAD + cm].set(b2)
        vec = vec.at[2 * c + 2 * PAD:2 * c + 2 * PAD + cm].set(s3)
        vec = vec.at[2 * c + 3 * PAD:2 * c + 3 * PAD + cm].set(b3)
        rvec.append(vec.reshape(-1, 1))
        w1 = 0.2 * jax.random.normal(ks[3], (cm, c), jnp.float32)
        rw1.append(jnp.zeros((PAD, c), jnp.float32).at[:cm].set(w1))
        w2 = 0.2 * jax.random.normal(ks[4], (9, cm, cm), jnp.float32)
        w2p = jnp.zeros((9, PAD, PAD), jnp.float32).at[:, :cm, :cm].set(w2)
        rwc.append(w2p.reshape(9 * PAD, PAD))
        w3 = 0.2 * jax.random.normal(ks[5], (c, cm), jnp.float32)
        rw3.append(jnp.zeros((c, PAD), jnp.float32).at[:, :cm].set(w3))

    mk = jax.random.split(keys[-1], 4)
    ms1, mb1 = _make_bn(mk[0], c)
    ms2, mb2 = _make_bn(mk[1], c)
    mvec = jnp.concatenate([ms1, mb1, ms2, mb2]).reshape(-1, 1)
    mw = jnp.stack([0.2 * jax.random.normal(mk[2], (c, c), jnp.float32),
                    0.2 * jax.random.normal(mk[3], (c, c), jnp.float32)])

    return dict(rvec=jnp.stack(rvec), rw1=jnp.stack(rw1),
                rwc=jnp.stack(rwc), rw3=jnp.stack(rw3),
                mvec=mvec, mw=mw)


# -----------------------------------------------------------------------------
if __name__ == "__main__":
    key = jax.random.PRNGKey(0)
    kx, kp = jax.random.split(key)

    # Input spatial dims fixed by the module defaults size1=(9,15), size2=(5,8).
    N, C, H, W = 2, 16, 9, 15
    x = jax.random.normal(kx, (N, C, H, W), jnp.float32)

    params = make_params(kp, C)
    consts = make_spatial_consts(H, W)

    fwd = jax.jit(attention_module_stage2)
    out = jax.block_until_ready(fwd(x, params, consts))

    assert out.shape == (N, C, H, W), out.shape
    assert bool(jnp.all(jnp.isfinite(out)))
    print("KERNEL_OK")
</pallas_src>

<mosaic_0001>
module attributes {stable_mosaic.version = 11 : i64} {
  func.func @kernel(%arg0: i32, %arg1: memref<16x256xf32, #tpu.memory_space<vmem>>, %arg2: memref<9x64x1xf32, #tpu.memory_space<vmem>>, %arg3: memref<9x8x16xf32, #tpu.memory_space<vmem>>, %arg4: memref<9x72x8xf32, #tpu.memory_space<vmem>>, %arg5: memref<9x16x8xf32, #tpu.memory_space<vmem>>, %arg6: memref<64x1xf32, #tpu.memory_space<vmem>>, %arg7: memref<2x16x16xf32, #tpu.memory_space<vmem>>, %arg8: memref<9x1x256xf32, #tpu.memory_space<vmem>>, %arg9: memref<9x1x128xf32, #tpu.memory_space<vmem>>, %arg10: memref<9x1x128xf32, #tpu.memory_space<vmem>>, %arg11: memref<256x128xf32, #tpu.memory_space<vmem>>, %arg12: memref<128x128xf32, #tpu.memory_space<vmem>>, %arg13: memref<128x128xf32, #tpu.memory_space<vmem>>, %arg14: memref<128x256xf32, #tpu.memory_space<vmem>>, %arg15: memref<16x256xf32, #tpu.memory_space<vmem>>) attributes {dimension_semantics = [#tpu.dimension_semantics<parallel>], iteration_bounds = array<i64: 2>, scalar_prefetch = 0 : i64, scratch_operands = 0 : i64, tpu.core_type = #tpu.core_type<tc>, window_params = [{transform_indices = @transform_0, window_bounds = array<i64: 16, 256>}, {pipeline_mode = #tpu.pipeline_mode<synchronous>, transform_indices = @transform_1, window_bounds = array<i64: 9, 64, 1>}, {pipeline_mode = #tpu.pipeline_mode<synchronous>, transform_indices = @transform_2, window_bounds = array<i64: 9, 8, 16>}, {pipeline_mode = #tpu.pipeline_mode<synchronous>, transform_indices = @transform_3, window_bounds = array<i64: 9, 72, 8>}, {pipeline_mode = #tpu.pipeline_mode<synchronous>, transform_indices = @transform_4, window_bounds = array<i64: 9, 16, 8>}, {pipeline_mode = #tpu.pipeline_mode<synchronous>, transform_indices = @transform_5, window_bounds = array<i64: 64, 1>}, {pipeline_mode = #tpu.pipeline_mode<synchronous>, transform_indices = @transform_6, window_bounds = array<i64: 2, 16, 16>}, {pipeline_mode = #tpu.pipeline_mode<synchronous>, transform_indices = @transform_7, window_bounds = array<i64: 9, 1, 256>}, {pipeline_mode = #tpu.pipeline_mode<synchronous>, transform_indices = @transform_8, window_bounds = array<i64: 9, 1, 128>}, {pipeline_mode = #tpu.pipeline_mode<synchronous>, transform_indices = @transform_9, window_bounds = array<i64: 9, 1, 128>}, {pipeline_mode = #tpu.pipeline_mode<synchronous>, transform_indices = @transform_10, window_bounds = array<i64: 256, 128>}, {pipeline_mode = #tpu.pipeline_mode<synchronous>, transform_indices = @transform_11, window_bounds = array<i64: 128, 128>}, {pipeline_mode = #tpu.pipeline_mode<synchronous>, transform_indices = @transform_12, window_bounds = array<i64: 128, 128>}, {pipeline_mode = #tpu.pipeline_mode<synchronous>, transform_indices = @transform_13, window_bounds = array<i64: 128, 256>}, {transform_indices = @transform_14, window_bounds = array<i64: 16, 256>}]} {
    %c0 = arith.constant 0 : index
    %c0_0 = arith.constant 0 : index
    %0 = vector.load %arg1[%c0, %c0_0] : memref<16x256xf32, #tpu.memory_space<vmem>>, vector<16x256xf32>
    %c0_1 = arith.constant 0 : index
    %c0_2 = arith.constant 0 : index
    %c0_3 = arith.constant 0 : index
    %1 = vector.load %arg2[%c0_1, %c0_2, %c0_3] : memref<9x64x1xf32, #tpu.memory_space<vmem>>, vector<1x64x1xf32>
    %2 = vector.shape_cast %1 : vector<1x64x1xf32> to vector<64x1xf32>
    %3 = vector.extract_strided_slice %2 {offsets = [0, 0], sizes = [16, 1], strides = [1, 1]} : vector<64x1xf32> to vector<16x1xf32>
    %4 = vector.extract_strided_slice %2 {offsets = [16, 0], sizes = [16, 1], strides = [1, 1]} : vector<64x1xf32> to vector<16x1xf32>
    %5 = vector.extract_strided_slice %2 {offsets = [32, 0], sizes = [8, 1], strides = [1, 1]} : vector<64x1xf32> to vector<8x1xf32>
    %6 = vector.extract_strided_slice %2 {offsets = [40, 0], sizes = [8, 1], strides = [1, 1]} : vector<64x1xf32> to vector<8x1xf32>
    %7 = vector.extract_strided_slice %2 {offsets = [48, 0], sizes = [8, 1], strides = [1, 1]} : vector<64x1xf32> to vector<8x1xf32>
    %8 = vector.extract_strided_slice %2 {offsets = [56, 0], sizes = [8, 1], strides = [1, 1]} : vector<64x1xf32> to vector<8x1xf32>
    %9 = vector.broadcast %3 : vector<16x1xf32> to vector<16x256xf32>
    %10 = arith.mulf %0, %9 : vector<16x256xf32>
    %11 = vector.broadcast %4 : vector<16x1xf32> to vector<16x256xf32>
    %12 = arith.addf %10, %11 : vector<16x256xf32>
    %cst = arith.constant 0.000000e+00 : f32
    %13 = vector.broadcast %cst : f32 to vector<16x256xf32>
    %14 = arith.maximumf %12, %13 : vector<16x256xf32>
    %c0_4 = arith.constant 0 : index
    %c0_5 = arith.constant 0 : index
    %c0_6 = arith.constant 0 : index
    %15 = vector.load %arg3[%c0_4, %c0_5, %c0_6] : memref<9x8x16xf32, #tpu.memory_space<vmem>>, vector<1x8x16xf32>
    %16 = vector.shape_cast %15 : vector<1x8x16xf32> to vector<8x16xf32>
    %cst_7 = arith.constant dense<0.000000e+00> : vector<8x256xf32>
    %17 = tpu.matmul %16, %14, %cst_7 {dimension_numbers = #tpu.dot_dimension_numbers<[1], [0], [0], [1], [0, 0, 1, 1], [], []>} : vector<8x16xf32>, vector<16x256xf32>, vector<8x256xf32> -> vector<8x256xf32>
    %18 = vector.broadcast %5 : vector<8x1xf32> to vector<8x256xf32>
    %19 = arith.mulf %17, %18 : vector<8x256xf32>
    %20 = vector.broadcast %6 : vector<8x1xf32> to vector<8x256xf32>
    %21 = arith.addf %19, %20 : vector<8x256xf32>
    %cst_8 = arith.constant 0.000000e+00 : f32
    %22 = vector.broadcast %cst_8 : f32 to vector<8x256xf32>
    %23 = arith.maximumf %21, %22 : vector<8x256xf32>
    %c0_9 = arith.constant 0 : index
    %c0_10 = arith.constant 0 : index
    %c0_11 = arith.constant 0 : index
    %24 = vector.load %arg4[%c0_9, %c0_10, %c0_11] : memref<9x72x8xf32, #tpu.memory_space<vmem>>, vector<1x72x8xf32>
    %25 = vector.shape_cast %24 : vector<1x72x8xf32> to vector<72x8xf32>
    %cst_12 = arith.constant dense<0.000000e+00> : vector<72x256xf32>
    %26 = tpu.matmul %25, %23, %cst_12 {dimension_numbers = #tpu.dot_dimension_numbers<[1], [0], [0], [1], [0, 0, 1, 1], [], []>} : vector<72x8xf32>, vector<8x256xf32>, vector<72x256xf32> -> vector<72x256xf32>
    %27 = vector.extract_strided_slice %26 {offsets = [0, 0], sizes = [8, 256], strides = [1, 1]} : vector<72x256xf32> to vector<8x256xf32>
    %c16_i32 = arith.constant 16 : i32
    %28 = tpu.dynamic_rotate %27 by %c16_i32 dim 1 : vector<8x256xf32>, i32 -> vector<8x256xf32>
    %c0_13 = arith.constant 0 : index
    %c0_14 = arith.constant 0 : index
    %c0_15 = arith.constant 0 : index
    %29 = vector.load %arg8[%c0_13, %c0_14, %c0_15] : memref<9x1x256xf32, #tpu.memory_space<vmem>>, vector<1x1x256xf32>
    %30 = vector.shape_cast %29 : vector<1x1x256xf32> to vector<1x256xf32>
    %31 = vector.broadcast %30 : vector<1x256xf32> to vector<8x256xf32>
    %32 = arith.mulf %28, %31 : vector<8x256xf32>
    %33 = vector.extract_strided_slice %26 {offsets = [8, 0], sizes = [8, 256], strides = [1, 1]} : vector<72x256xf32> to vector<8x256xf32>
    %c15_i32 = arith.constant 15 : i32
    %34 = tpu.dynamic_rotate %33 by %c15_i32 dim 1 : vector<8x256xf32>, i32 -> vector<8x256xf32>
    %c1 = arith.constant 1 : index
    %c0_16 = arith.constant 0 : index
    %c0_17 = arith.constant 0 : index
    %35 = vector.load %arg8[%c1, %c0_16, %c0_17] : memref<9x1x256xf32, #tpu.memory_space<vmem>>, vector<1x1x256xf32>
    %36 = vector.shape_cast %35 : vector<1x1x256xf32> to vector<1x256xf32>
    %37 = vector.broadcast %36 : vector<1x256xf32> to vector<8x256xf32>
    %38 = arith.mulf %34, %37 : vector<8x256xf32>
    %39 = arith.addf %32, %38 : vector<8x256xf32>
    %40 = vector.extract_strided_slice %26 {offsets = [16, 0], sizes = [8, 256], strides = [1, 1]} : vector<72x256xf32> to vector<8x256xf32>
    %c14_i32 = arith.constant 14 : i32
    %41 = tpu.dynamic_rotate %40 by %c14_i32 dim 1 : vector<8x256xf32>, i32 -> vector<8x256xf32>
    %c2 = arith.constant 2 : index
    %c0_18 = arith.constant 0 : index
    %c0_19 = arith.constant 0 : index
    %42 = vector.load %arg8[%c2, %c0_18, %c0_19] : memref<9x1x256xf32, #tpu.memory_space<vmem>>, vector<1x1x256xf32>
    %43 = vector.shape_cast %42 : vector<1x1x256xf32> to vector<1x256xf32>
    %44 = vector.broadcast %43 : vector<1x256xf32> to vector<8x256xf32>
    %45 = arith.mulf %41, %44 : vector<8x256xf32>
    %46 = arith.addf %39, %45 : vector<8x256xf32>
    %47 = vector.extract_strided_slice %26 {offsets = [24, 0], sizes = [8, 256], strides = [1, 1]} : vector<72x256xf32> to vector<8x256xf32>
    %c1_i32 = arith.constant 1 : i32
    %48 = tpu.dynamic_rotate %47 by %c1_i32 dim 1 : vector<8x256xf32>, i32 -> vector<8x256xf32>
    %c3 = arith.constant 3 : index
    %c0_20 = arith.constant 0 : index
    %c0_21 = arith.constant 0 : index
    %49 = vector.load %arg8[%c3, %c0_20, %c0_21] : memref<9x1x256xf32, #tpu.memory_space<vmem>>, vector<1x1x256xf32>
    %50 = vector.shape_cast %49 : vector<1x1x256xf32> to vector<1x256xf32>
    %51 = vector.broadcast %50 : vector<1x256xf32> to vector<8x256xf32>
    %52 = arith.mulf %48, %51 : vector<8x256xf32>
    %53 = arith.addf %46, %52 : vector<8x256xf32>
    %54 = vector.extract_strided_slice %26 {offsets = [32, 0], sizes = [8, 256], strides = [1, 1]} : vector<72x256xf32> to vector<8x256xf32>
    %c4 = arith.constant 4 : index
    %c0_22 = arith.constant 0 : index
    %c0_23 = arith.constant 0 : index
    %55 = vector.load %arg8[%c4, %c0_22, %c0_23] : memref<9x1x256xf32, #tpu.memory_space<vmem>>, vector<1x1x256xf32>
    %56 = vector.shape_cast %55 : vector<1x1x256xf32> to vector<1x256xf32>
    %57 = vector.broadcast %56 : vector<1x256xf32> to vector<8x256xf32>
    %58 = arith.mulf %54, %57 : vector<8x256xf32>
    %59 = arith.addf %53, %58 : vector<8x256xf32>
    %60 = vector.extract_strided_slice %26 {offsets = [40, 0], sizes = [8, 256], strides = [1, 1]} : vector<72x256xf32> to vector<8x256xf32>
    %c255_i32 = arith.constant 255 : i32
    %61 = tpu.dynamic_rotate %60 by %c255_i32 dim 1 : vector<8x256xf32>, i32 -> vector<8x256xf32>
    %c5 = arith.constant 5 : index
    %c0_24 = arith.constant 0 : index
    %c0_25 = arith.constant 0 : index
    %62 = vector.load %arg8[%c5, %c0_24, %c0_25] : memref<9x1x256xf32, #tpu.memory_space<vmem>>, vector<1x1x256xf32>
    %63 = vector.shape_cast %62 : vector<1x1x256xf32> to vector<1x256xf32>
    %64 = vector.broadcast %63 : vector<1x256xf32> to vector<8x256xf32>
    %65 = arith.mulf %61, %64 : vector<8x256xf32>
    %66 = arith.addf %59, %65 : vector<8x256xf32>
    %67 = vector.extract_strided_slice %26 {offsets = [48, 0], sizes = [8, 256], strides = [1, 1]} : vector<72x256xf32> to vector<8x256xf32>
    %c242_i32 = arith.constant 242 : i32
    %68 = tpu.dynamic_rotate %67 by %c242_i32 dim 1 : vector<8x256xf32>, i32 -> vector<8x256xf32>
    %c6 = arith.constant 6 : index
    %c0_26 = arith.constant 0 : index
    %c0_27 = arith.constant 0 : index
    %69 = vector.load %arg8[%c6, %c0_26, %c0_27] : memref<9x1x256xf32, #tpu.memory_space<vmem>>, vector<1x1x256xf32>
    %70 = vector.shape_cast %69 : vector<1x1x256xf32> to vector<1x256xf32>
    %71 = vector.broadcast %70 : vector<1x256xf32> to vector<8x256xf32>
    %72 = arith.mulf %68, %71 : vector<8x256xf32>
    %73 = arith.addf %66, %72 : vector<8x256xf32>
    %74 = vector.extract_strided_slice %26 {offsets = [56, 0], sizes = [8, 256], strides = [1, 1]} : vector<72x256xf32> to vector<8x256xf32>
    %c241_i32 = arith.constant 241 : i32
    %75 = tpu.dynamic_rotate %74 by %c241_i32 dim 1 : vector<8x256xf32>, i32 -> vector<8x256xf32>
    %c7 = arith.constant 7 : index
    %c0_28 = arith.constant 0 : index
    %c0_29 = arith.constant 0 : index
    %76 = vector.load %arg8[%c7, %c0_28, %c0_29] : memref<9x1x256xf32, #tpu.memory_space<vmem>>, vector<1x1x256xf32>
    %77 = vector.shape_cast %76 : vector<1x1x256xf32> to vector<1x256xf32>
    %78 = vector.broadcast %77 : vector<1x256xf32> to vector<8x256xf32>
    %79 = arith.mulf %75, %78 : vector<8x256xf32>
    %80 = arith.addf %73, %79 : vector<8x256xf32>
    %81 = vector.extract_strided_slice %26 {offsets = [64, 0], sizes = [8, 256], strides = [1, 1]} : vector<72x256xf32> to vector<8x256xf32>
    %c240_i32 = arith.constant 240 : i32
    %82 = tpu.dynamic_rotate %81 by %c240_i32 dim 1 : vector<8x256xf32>, i32 -> vector<8x256xf32>
    %c8 = arith.constant 8 : index
    %c0_30 = arith.constant 0 : index
    %c0_31 = arith.constant 0 : index
    %83 = vector.load %arg8[%c8, %c0_30, %c0_31] : memref<9x1x256xf32, #tpu.memory_space<vmem>>, vector<1x1x256xf32>
    %84 = vector.shape_cast %83 : vector<1x1x256xf32> to vector<1x256xf32>
    %85 = vector.broadcast %84 : vector<1x256xf32> to vector<8x256xf32>
    %86 = arith.mulf %82, %85 : vector<8x256xf32>
    %87 = arith.addf %80, %86 : vector<8x256xf32>
    %88 = vector.broadcast %7 : vector<8x1xf32> to vector<8x256xf32>
    %89 = arith.mulf %87, %88 : vector<8x256xf32>
    %90 = vector.broadcast %8 : vector<8x1xf32> to vector<8x256xf32>
    %91 = arith.addf %89, %90 : vector<8x256xf32>
    %cst_32 = arith.constant 0.000000e+00 : f32
    %92 = vector.broadcast %cst_32 : f32 to vector<8x256xf32>
    %93 = arith.maximumf %91, %92 : vector<8x256xf32>
    %c0_33 = arith.constant 0 : index
    %c0_34 = arith.constant 0 : index
    %c0_35 = arith.constant 0 : index
    %94 = vector.load %arg5[%c0_33, %c0_34, %c0_35] : memref<9x16x8xf32, #tpu.memory_space<vmem>>, vector<1x16x8xf32>
    %95 = vector.shape_cast %94 : vector<1x16x8xf32> to vector<16x8xf32>
    %cst_36 = arith.constant dense<0.000000e+00> : vector<16x256xf32>
    %96 = tpu.matmul %95, %93, %cst_36 {dimension_numbers = #tpu.dot_dimension_numbers<[1], [0], [0], [1], [0, 0, 1, 1], [], []>} : vector<16x8xf32>, vector<8x256xf32>, vector<16x256xf32> -> vector<16x256xf32>
    %97 = arith.addf %96, %0 : vector<16x256xf32>
    %c1_37 = arith.constant 1 : index
    %c0_38 = arith.constant 0 : index
    %c0_39 = arith.constant 0 : index
    %98 = vector.load %arg2[%c1_37, %c0_38, %c0_39] : memref<9x64x1xf32, #tpu.memory_space<vmem>>, vector<1x64x1xf32>
    %99 = vector.shape_cast %98 : vector<1x64x1xf32> to vector<64x1xf32>
    %100 = vector.extract_strided_slice %99 {offsets = [0, 0], sizes = [16, 1], strides = [1, 1]} : vector<64x1xf32> to vector<16x1xf32>
    %101 = vector.extract_strided_slice %99 {offsets = [16, 0], sizes = [16, 1], strides = [1, 1]} : vector<64x1xf32> to vector<16x1xf32>
    %102 = vector.extract_strided_slice %99 {offsets = [32, 0], sizes = [8, 1], strides = [1, 1]} : vector<64x1xf32> to vector<8x1xf32>
    %103 = vector.extract_strided_slice %99 {offsets = [40, 0], sizes = [8, 1], strides = [1, 1]} : vector<64x1xf32> to vector<8x1xf32>
    %104 = vector.extract_strided_slice %99 {offsets = [48, 0], sizes = [8, 1], strides = [1, 1]} : vector<64x1xf32> to vector<8x1xf32>
    %105 = vector.extract_strided_slice %99 {offsets = [56, 0], sizes = [8, 1], strides = [1, 1]} : vector<64x1xf32> to vector<8x1xf32>
    %106 = vector.broadcast %100 : vector<16x1xf32> to vector<16x256xf32>
    %107 = arith.mulf %97, %106 : vector<16x256xf32>
    %108 = vector.broadcast %101 : vector<16x1xf32> to vector<16x256xf32>
    %109 = arith.addf %107, %108 : vector<16x256xf32>
    %cst_40 = arith.constant 0.000000e+00 : f32
    %110 = vector.broadcast %cst_40 : f32 to vector<16x256xf32>
    %111 = arith.maximumf %109, %110 : vector<16x256xf32>
    %c1_41 = arith.constant 1 : index
    %c0_42 = arith.constant 0 : index
    %c0_43 = arith.constant 0 : index
    %112 = vector.load %arg3[%c1_41, %c0_42, %c0_43] : memref<9x8x16xf32, #tpu.memory_space<vmem>>, vector<1x8x16xf32>
    %113 = vector.shape_cast %112 : vector<1x8x16xf32> to vector<8x16xf32>
    %cst_44 = arith.constant dense<0.000000e+00> : vector<8x256xf32>
    %114 = tpu.matmul %113, %111, %cst_44 {dimension_numbers = #tpu.dot_dimension_numbers<[1], [0], [0], [1], [0, 0, 1, 1], [], []>} : vector<8x16xf32>, vector<16x256xf32>, vector<8x256xf32> -> vector<8x256xf32>
    %115 = vector.broadcast %102 : vector<8x1xf32> to vector<8x256xf32>
    %116 = arith.mulf %114, %115 : vector<8x256xf32>
    %117 = vector.broadcast %103 : vector<8x1xf32> to vector<8x256xf32>
    %118 = arith.addf %116, %117 : vector<8x256xf32>
    %cst_45 = arith.constant 0.000000e+00 : f32
    %119 = vector.broadcast %cst_45 : f32 to vector<8x256xf32>
    %120 = arith.maximumf %118, %119 : vector<8x256xf32>
    %c1_46 = arith.constant 1 : index
    %c0_47 = arith.constant 0 : index
    %c0_48 = arith.constant 0 : index
    %121 = vector.load %arg4[%c1_46, %c0_47, %c0_48] : memref<9x72x8xf32, #tpu.memory_space<vmem>>, vector<1x72x8xf32>
    %122 = vector.shape_cast %121 : vector<1x72x8xf32> to vector<72x8xf32>
    %cst_49 = arith.constant dense<0.000000e+00> : vector<72x256xf32>
    %123 = tpu.matmul %122, %120, %cst_49 {dimension_numbers = #tpu.dot_dimension_numbers<[1], [0], [0], [1], [0, 0, 1, 1], [], []>} : vector<72x8xf32>, vector<8x256xf32>, vector<72x256xf32> -> vector<72x256xf32>
    %124 = vector.extract_strided_slice %123 {offsets = [0, 0], sizes = [8, 256], strides = [1, 1]} : vector<72x256xf32> to vector<8x256xf32>
    %c16_i32_50 = arith.constant 16 : i32
    %125 = tpu.dynamic_rotate %124 by %c16_i32_50 dim 1 : vector<8x256xf32>, i32 -> vector<8x256xf32>
    %c0_51 = arith.constant 0 : index
    %c0_52 = arith.constant 0 : index
    %c0_53 = arith.constant 0 : index
    %126 = vector.load %arg8[%c0_51, %c0_52, %c0_53] : memref<9x1x256xf32, #tpu.memory_space<vmem>>, vector<1x1x256xf32>
    %127 = vector.shape_cast %126 : vector<1x1x256xf32> to vector<1x256xf32>
    %128 = vector.broadcast %127 : vector<1x256xf32> to vector<8x256xf32>
    %129 = arith.mulf %125, %128 : vector<8x256xf32>
    %130 = vector.extract_strided_slice %123 {offsets = [8, 0], sizes = [8, 256], strides = [1, 1]} : vector<72x256xf32> to vector<8x256xf32>
    %c15_i32_54 = arith.constant 15 : i32
    %131 = tpu.dynamic_rotate %130 by %c15_i32_54 dim 1 : vector<8x256xf32>, i32 -> vector<8x256xf32>
    %c1_55 = arith.constant 1 : index
    %c0_56 = arith.constant 0 : index
    %c0_57 = arith.constant 0 : index
    %132 = vector.load %arg8[%c1_55, %c0_56, %c0_57] : memref<9x1x256xf32, #tpu.memory_space<vmem>>, vector<1x1x256xf32>
    %133 = vector.shape_cast %132 : vector<1x1x256xf32> to vector<1x256xf32>
    %134 = vector.broadcast %133 : vector<1x256xf32> to vector<8x256xf32>
    %135 = arith.mulf %131, %134 : vector<8x256xf32>
    %136 = arith.addf %129, %135 : vector<8x256xf32>
    %137 = vector.extract_strided_slice %123 {offsets = [16, 0], sizes = [8, 256], strides = [1, 1]} : vector<72x256xf32> to vector<8x256xf32>
    %c14_i32_58 = arith.constant 14 : i32
    %138 = tpu.dynamic_rotate %137 by %c14_i32_58 dim 1 : vector<8x256xf32>, i32 -> vector<8x256xf32>
    %c2_59 = arith.constant 2 : index
    %c0_60 = arith.constant 0 : index
    %c0_61 = arith.constant 0 : index
    %139 = vector.load %arg8[%c2_59, %c0_60, %c0_61] : memref<9x1x256xf32, #tpu.memory_space<vmem>>, vector<1x1x256xf32>
    %140 = vector.shape_cast %139 : vector<1x1x256xf32> to vector<1x256xf32>
    %141 = vector.broadcast %140 : vector<1x256xf32> to vector<8x256xf32>
    %142 = arith.mulf %138, %141 : vector<8x256xf32>
    %143 = arith.addf %136, %142 : vector<8x256xf32>
    %144 = vector.extract_strided_slice %123 {offsets = [24, 0], sizes = [8, 256], strides = [1, 1]} : vector<72x256xf32> to vector<8x256xf32>
    %c1_i32_62 = arith.constant 1 : i32
    %145 = tpu.dynamic_rotate %144 by %c1_i32_62 dim 1 : vector<8x256xf32>, i32 -> vector<8x256xf32>
    %c3_63 = arith.constant 3 : index
    %c0_64 = arith.constant 0 : index
    %c0_65 = arith.constant 0 : index
    %146 = vector.load %arg8[%c3_63, %c0_64, %c0_65] : memref<9x1x256xf32, #tpu.memory_space<vmem>>, vector<1x1x256xf32>
    %147 = vector.shape_cast %146 : vector<1x1x256xf32> to vector<1x256xf32>
    %148 = vector.broadcast %147 : vector<1x256xf32> to vector<8x256xf32>
    %149 = arith.mulf %145, %148 : vector<8x256xf32>
    %150 = arith.addf %143, %149 : vector<8x256xf32>
    %151 = vector.extract_strided_slice %123 {offsets = [32, 0], sizes = [8, 256], strides = [1, 1]} : vector<72x256xf32> to vector<8x256xf32>
    %c4_66 = arith.constant 4 : index
    %c0_67 = arith.constant 0 : index
    %c0_68 = arith.constant 0 : index
    %152 = vector.load %arg8[%c4_66, %c0_67, %c0_68] : memref<9x1x256xf32, #tpu.memory_space<vmem>>, vector<1x1x256xf32>
    %153 = vector.shape_cast %152 : vector<1x1x256xf32> to vector<1x256xf32>
    %154 = vector.broadcast %153 : vector<1x256xf32> to vector<8x256xf32>
    %155 = arith.mulf %151, %154 : vector<8x256xf32>
    %156 = arith.addf %150, %155 : vector<8x256xf32>
    %157 = vector.extract_strided_slice %123 {offsets = [40, 0], sizes = [8, 256], strides = [1, 1]} : vector<72x256xf32> to vector<8x256xf32>
    %c255_i32_69 = arith.constant 255 : i32
    %158 = tpu.dynamic_rotate %157 by %c255_i32_69 dim 1 : vector<8x256xf32>, i32 -> vector<8x256xf32>
    %c5_70 = arith.constant 5 : index
    %c0_71 = arith.constant 0 : index
    %c0_72 = arith.constant 0 : index
    %159 = vector.load %arg8[%c5_70, %c0_71, %c0_72] : memref<9x1x256xf32, #tpu.memory_space<vmem>>, vector<1x1x256xf32>
    %160 = vector.shape_cast %159 : vector<1x1x256xf32> to vector<1x256xf32>
    %161 = vector.broadcast %160 : vector<1x256xf32> to vector<8x256xf32>
    %162 = arith.mulf %158, %161 : vector<8x256xf32>
    %163 = arith.addf %156, %162 : vector<8x256xf32>
    %164 = vector.extract_strided_slice %123 {offsets = [48, 0], sizes = [8, 256], strides = [1, 1]} : vector<72x256xf32> to vector<8x256xf32>
    %c242_i32_73 = arith.constant 242 : i32
    %165 = tpu.dynamic_rotate %164 by %c242_i32_73 dim 1 : vector<8x256xf32>, i32 -> vector<8x256xf32>
    %c6_74 = arith.constant 6 : index
    %c0_75 = arith.constant 0 : index
    %c0_76 = arith.constant 0 : index
    %166 = vector.load %arg8[%c6_74, %c0_75, %c0_76] : memref<9x1x256xf32, #tpu.memory_space<vmem>>, vector<1x1x256xf32>
    %167 = vector.shape_cast %166 : vector<1x1x256xf32> to vector<1x256xf32>
    %168 = vector.broadcast %167 : vector<1x256xf32> to vector<8x256xf32>
    %169 = arith.mulf %165, %168 : vector<8x256xf32>
    %170 = arith.addf %163, %169 : vector<8x256xf32>
    %171 = vector.extract_strided_slice %123 {offsets = [56, 0], sizes = [8, 256], strides = [1, 1]} : vector<72x256xf32> to vector<8x256xf32>
    %c241_i32_77 = arith.constant 241 : i32
    %172 = tpu.dynamic_rotate %171 by %c241_i32_77 dim 1 : vector<8x256xf32>, i32 -> vector<8x256xf32>
    %c7_78 = arith.constant 7 : index
    %c0_79 = arith.constant 0 : index
    %c0_80 = arith.constant 0 : index
    %173 = vector.load %arg8[%c7_78, %c0_79, %c0_80] : memref<9x1x256xf32, #tpu.memory_space<vmem>>, vector<1x1x256xf32>
    %174 = vector.shape_cast %173 : vector<1x1x256xf32> to vector<1x256xf32>
    %175 = vector.broadcast %174 : vector<1x256xf32> to vector<8x256xf32>
    %176 = arith.mulf %172, %175 : vector<8x256xf32>
    %177 = arith.addf %170, %176 : vector<8x256xf32>
    %178 = vector.extract_strided_slice %123 {offsets = [64, 0], sizes = [8, 256], strides = [1, 1]} : vector<72x256xf32> to vector<8x256xf32>
    %c240_i32_81 = arith.constant 240 : i32
    %179 = tpu.dynamic_rotate %178 by %c240_i32_81 dim 1 : vector<8x256xf32>, i32 -> vector<8x256xf32>
    %c8_82 = arith.constant 8 : index
    %c0_83 = arith.constant 0 : index
    %c0_84 = arith.constant 0 : index
    %180 = vector.load %arg8[%c8_82, %c0_83, %c0_84] : memref<9x1x256xf32, #tpu.memory_space<vmem>>, vector<1x1x256xf32>
    %181 = vector.shape_cast %180 : vector<1x1x256xf32> to vector<1x256xf32>
    %182 = vector.broadcast %181 : vector<1x256xf32> to vector<8x256xf32>
    %183 = arith.mulf %179, %182 : vector<8x256xf32>
    %184 = arith.addf %177, %183 : vector<8x256xf32>
    %185 = vector.broadcast %104 : vector<8x1xf32> to vector<8x256xf32>
    %186 = arith.mulf %184, %185 : vector<8x256xf32>
    %187 = vector.broadcast %105 : vector<8x1xf32> to vector<8x256xf32>
    %188 = arith.addf %186, %187 : vector<8x256xf32>
    %cst_85 = arith.constant 0.000000e+00 : f32
    %189 = vector.broadcast %cst_85 : f32 to vector<8x256xf32>
    %190 = arith.maximumf %188, %189 : vector<8x256xf32>
    %c1_86 = arith.constant 1 : index
    %c0_87 = arith.constant 0 : index
    %c0_88 = arith.constant 0 : index
    %191 = vector.load %arg5[%c1_86, %c0_87, %c0_88] : memref<9x16x8xf32, #tpu.memory_space<vmem>>, vector<1x16x8xf32>
    %192 = vector.shape_cast %191 : vector<1x16x8xf32> to vector<16x8xf32>
    %cst_89 = arith.constant dense<0.000000e+00> : vector<16x256xf32>
    %193 = tpu.matmul %192, %190, %cst_89 {dimension_numbers = #tpu.dot_dimension_numbers<[1], [0], [0], [1], [0, 0, 1, 1], [], []>} : vector<16x8xf32>, vector<8x256xf32>, vector<16x256xf32> -> vector<16x256xf32>
    %194 = arith.addf %193, %97 : vector<16x256xf32>
    %c2_90 = arith.constant 2 : index
    %c0_91 = arith.constant 0 : index
    %c0_92 = arith.constant 0 : index
    %195 = vector.load %arg2[%c2_90, %c0_91, %c0_92] : memref<9x64x1xf32, #tpu.memory_space<vmem>>, vector<1x64x1xf32>
    %196 = vector.shape_cast %195 : vector<1x64x1xf32> to vector<64x1xf32>
    %197 = vector.extract_strided_slice %196 {offsets = [0, 0], sizes = [16, 1], strides = [1, 1]} : vector<64x1xf32> to vector<16x1xf32>
    %198 = vector.extract_strided_slice %196 {offsets = [16, 0], sizes = [16, 1], strides = [1, 1]} : vector<64x1xf32> to vector<16x1xf32>
    %199 = vector.extract_strided_slice %196 {offsets = [32, 0], sizes = [8, 1], strides = [1, 1]} : vector<64x1xf32> to vector<8x1xf32>
    %200 = vector.extract_strided_slice %196 {offsets = [40, 0], sizes = [8, 1], strides = [1, 1]} : vector<64x1xf32> to vector<8x1xf32>
    %201 = vector.extract_strided_slice %196 {offsets = [48, 0], sizes = [8, 1], strides = [1, 1]} : vector<64x1xf32> to vector<8x1xf32>
    %202 = vector.extract_strided_slice %196 {offsets = [56, 0], sizes = [8, 1], strides = [1, 1]} : vector<64x1xf32> to vector<8x1xf32>
    %203 = vector.broadcast %197 : vector<16x1xf32> to vector<16x256xf32>
    %204 = arith.mulf %194, %203 : vector<16x256xf32>
    %205 = vector.broadcast %198 : vector<16x1xf32> to vector<16x256xf32>
    %206 = arith.addf %204, %205 : vector<16x256xf32>
    %cst_93 = arith.constant 0.000000e+00 : f32
    %207 = vector.broadcast %cst_93 : f32 to vector<16x256xf32>
    %208 = arith.maximumf %206, %207 : vector<16x256xf32>
    %c2_94 = arith.constant 2 : index
    %c0_95 = arith.constant 0 : index
    %c0_96 = arith.constant 0 : index
    %209 = vector.load %arg3[%c2_94, %c0_95, %c0_96] : memref<9x8x16xf32, #tpu.memory_space<vmem>>, vector<1x8x16xf32>
    %210 = vector.shape_cast %209 : vector<1x8x16xf32> to vector<8x16xf32>
    %cst_97 = arith.constant dense<0.000000e+00> : vector<8x256xf32>
    %211 = tpu.matmul %210, %208, %cst_97 {dimension_numbers = #tpu.dot_dimension_numbers<[1], [0], [0], [1], [0, 0, 1, 1], [], []>} : vector<8x16xf32>, vector<16x256xf32>, vector<8x256xf32> -> vector<8x256xf32>
    %212 = vector.broadcast %199 : vector<8x1xf32> to vector<8x256xf32>
    %213 = arith.mulf %211, %212 : vector<8x256xf32>
    %214 = vector.broadcast %200 : vector<8x1xf32> to vector<8x256xf32>
    %215 = arith.addf %213, %214 : vector<8x256xf32>
    %cst_98 = arith.constant 0.000000e+00 : f32
    %216 = vector.broadcast %cst_98 : f32 to vector<8x256xf32>
    %217 = arith.maximumf %215, %216 : vector<8x256xf32>
    %c2_99 = arith.constant 2 : index
    %c0_100 = arith.constant 0 : index
    %c0_101 = arith.constant 0 : index
    %218 = vector.load %arg4[%c2_99, %c0_100, %c0_101] : memref<9x72x8xf32, #tpu.memory_space<vmem>>, vector<1x72x8xf32>
    %219 = vector.shape_cast %218 : vector<1x72x8xf32> to vector<72x8xf32>
    %cst_102 = arith.constant dense<0.000000e+00> : vector<72x256xf32>
    %220 = tpu.matmul %219, %217, %cst_102 {dimension_numbers = #tpu.dot_dimension_numbers<[1], [0], [0], [1], [0, 0, 1, 1], [], []>} : vector<72x8xf32>, vector<8x256xf32>, vector<72x256xf32> -> vector<72x256xf32>
    %221 = vector.extract_strided_slice %220 {offsets = [0, 0], sizes = [8, 256], strides = [1, 1]} : vector<72x256xf32> to vector<8x256xf32>
    %c16_i32_103 = arith.constant 16 : i32
    %222 = tpu.dynamic_rotate %221 by %c16_i32_103 dim 1 : vector<8x256xf32>, i32 -> vector<8x256xf32>
    %c0_104 = arith.constant 0 : index
    %c0_105 = arith.constant 0 : index
    %c0_106 = arith.constant 0 : index
    %223 = vector.load %arg8[%c0_104, %c0_105, %c0_106] : memref<9x1x256xf32, #tpu.memory_space<vmem>>, vector<1x1x256xf32>
    %224 = vector.shape_cast %223 : vector<1x1x256xf32> to vector<1x256xf32>
    %225 = vector.broadcast %224 : vector<1x256xf32> to vector<8x256xf32>
    %226 = arith.mulf %222, %225 : vector<8x256xf32>
    %227 = vector.extract_strided_slice %220 {offsets = [8, 0], sizes = [8, 256], strides = [1, 1]} : vector<72x256xf32> to vector<8x256xf32>
    %c15_i32_107 = arith.constant 15 : i32
    %228 = tpu.dynamic_rotate %227 by %c15_i32_107 dim 1 : vector<8x256xf32>, i32 -> vector<8x256xf32>
    %c1_108 = arith.constant 1 : index
    %c0_109 = arith.constant 0 : index
    %c0_110 = arith.constant 0 : index
    %229 = vector.load %arg8[%c1_108, %c0_109, %c0_110] : memref<9x1x256xf32, #tpu.memory_space<vmem>>, vector<1x1x256xf32>
    %230 = vector.shape_cast %229 : vector<1x1x256xf32> to vector<1x256xf32>
    %231 = vector.broadcast %230 : vector<1x256xf32> to vector<8x256xf32>
    %232 = arith.mulf %228, %231 : vector<8x256xf32>
    %233 = arith.addf %226, %232 : vector<8x256xf32>
    %234 = vector.extract_strided_slice %220 {offsets = [16, 0], sizes = [8, 256], strides = [1, 1]} : vector<72x256xf32> to vector<8x256xf32>
    %c14_i32_111 = arith.constant 14 : i32
    %235 = tpu.dynamic_rotate %234 by %c14_i32_111 dim 1 : vector<8x256xf32>, i32 -> vector<8x256xf32>
    %c2_112 = arith.constant 2 : index
    %c0_113 = arith.constant 0 : index
    %c0_114 = arith.constant 0 : index
    %236 = vector.load %arg8[%c2_112, %c0_113, %c0_114] : memref<9x1x256xf32, #tpu.memory_space<vmem>>, vector<1x1x256xf32>
    %237 = vector.shape_cast %236 : vector<1x1x256xf32> to vector<1x256xf32>
    %238 = vector.broadcast %237 : vector<1x256xf32> to vector<8x256xf32>
    %239 = arith.mulf %235, %238 : vector<8x256xf32>
    %240 = arith.addf %233, %239 : vector<8x256xf32>
    %241 = vector.extract_strided_slice %220 {offsets = [24, 0], sizes = [8, 256], strides = [1, 1]} : vector<72x256xf32> to vector<8x256xf32>
    %c1_i32_115 = arith.constant 1 : i32
    %242 = tpu.dynamic_rotate %241 by %c1_i32_115 dim 1 : vector<8x256xf32>, i32 -> vector<8x256xf32>
    %c3_116 = arith.constant 3 : index
    %c0_117 = arith.constant 0 : index
    %c0_118 = arith.constant 0 : index
    %243 = vector.load %arg8[%c3_116, %c0_117, %c0_118] : memref<9x1x256xf32, #tpu.memory_space<vmem>>, vector<1x1x256xf32>
    %244 = vector.shape_cast %243 : vector<1x1x256xf32> to vector<1x256xf32>
    %245 = vector.broadcast %244 : vector<1x256xf32> to vector<8x256xf32>
    %246 = arith.mulf %242, %245 : vector<8x256xf32>
    %247 = arith.addf %240, %246 : vector<8x256xf32>
    %248 = vector.extract_strided_slice %220 {offsets = [32, 0], sizes = [8, 256], strides = [1, 1]} : vector<72x256xf32> to vector<8x256xf32>
    %c4_119 = arith.constant 4 : index
    %c0_120 = arith.constant 0 : index
    %c0_121 = arith.constant 0 : index
    %249 = vector.load %arg8[%c4_119, %c0_120, %c0_121] : memref<9x1x256xf32, #tpu.memory_space<vmem>>, vector<1x1x256xf32>
    %250 = vector.shape_cast %249 : vector<1x1x256xf32> to vector<1x256xf32>
    %251 = vector.broadcast %250 : vector<1x256xf32> to vector<8x256xf32>
    %252 = arith.mulf %248, %251 : vector<8x256xf32>
    %253 = arith.addf %247, %252 : vector<8x256xf32>
    %254 = vector.extract_strided_slice %220 {offsets = [40, 0], sizes = [8, 256], strides = [1, 1]} : vector<72x256xf32> to vector<8x256xf32>
    %c255_i32_122 = arith.constant 255 : i32
    %255 = tpu.dynamic_rotate %254 by %c255_i32_122 dim 1 : vector<8x256xf32>, i32 -> vector<8x256xf32>
    %c5_123 = arith.constant 5 : index
    %c0_124 = arith.constant 0 : index
    %c0_125 = arith.constant 0 : index
    %256 = vector.load %arg8[%c5_123, %c0_124, %c0_125] : memref<9x1x256xf32, #tpu.memory_space<vmem>>, vector<1x1x256xf32>
    %257 = vector.shape_cast %256 : vector<1x1x256xf32> to vector<1x256xf32>
    %258 = vector.broadcast %257 : vector<1x256xf32> to vector<8x256xf32>
    %259 = arith.mulf %255, %258 : vector<8x256xf32>
    %260 = arith.addf %253, %259 : vector<8x256xf32>
    %261 = vector.extract_strided_slice %220 {offsets = [48, 0], sizes = [8, 256], strides = [1, 1]} : vector<72x256xf32> to vector<8x256xf32>
    %c242_i32_126 = arith.constant 242 : i32
    %262 = tpu.dynamic_rotate %261 by %c242_i32_126 dim 1 : vector<8x256xf32>, i32 -> vector<8x256xf32>
    %c6_127 = arith.constant 6 : index
    %c0_128 = arith.constant 0 : index
    %c0_129 = arith.constant 0 : index
    %263 = vector.load %arg8[%c6_127, %c0_128, %c0_129] : memref<9x1x256xf32, #tpu.memory_space<vmem>>, vector<1x1x256xf32>
    %264 = vector.shape_cast %263 : vector<1x1x256xf32> to vector<1x256xf32>
    %265 = vector.broadcast %264 : vector<1x256xf32> to vector<8x256xf32>
    %266 = arith.mulf %262, %265 : vector<8x256xf32>
    %267 = arith.addf %260, %266 : vector<8x256xf32>
    %268 = vector.extract_strided_slice %220 {offsets = [56, 0], sizes = [8, 256], strides = [1, 1]} : vector<72x256xf32> to vector<8x256xf32>
    %c241_i32_130 = arith.constant 241 : i32
    %269 = tpu.dynamic_rotate %268 by %c241_i32_130 dim 1 : vector<8x256xf32>, i32 -> vector<8x256xf32>
    %c7_131 = arith.constant 7 : index
    %c0_132 = arith.constant 0 : index
    %c0_133 = arith.constant 0 : index
    %270 = vector.load %arg8[%c7_131, %c0_132, %c0_133] : memref<9x1x256xf32, #tpu.memory_space<vmem>>, vector<1x1x256xf32>
    %271 = vector.shape_cast %270 : vector<1x1x256xf32> to vector<1x256xf32>
    %272 = vector.broadcast %271 : vector<1x256xf32> to vector<8x256xf32>
    %273 = arith.mulf %269, %272 : vector<8x256xf32>
    %274 = arith.addf %267, %273 : vector<8x256xf32>
    %275 = vector.extract_strided_slice %220 {offsets = [64, 0], sizes = [8, 256], strides = [1, 1]} : vector<72x256xf32> to vector<8x256xf32>
    %c240_i32_134 = arith.constant 240 : i32
    %276 = tpu.dynamic_rotate %275 by %c240_i32_134 dim 1 : vector<8x256xf32>, i32 -> vector<8x256xf32>
    %c8_135 = arith.constant 8 : index
    %c0_136 = arith.constant 0 : index
    %c0_137 = arith.constant 0 : index
    %277 = vector.load %arg8[%c8_135, %c0_136, %c0_137] : memref<9x1x256xf32, #tpu.memory_space<vmem>>, vector<1x1x256xf32>
    %278 = vector.shape_cast %277 : vector<1x1x256xf32> to vector<1x256xf32>
    %279 = vector.broadcast %278 : vector<1x256xf32> to vector<8x256xf32>
    %280 = arith.mulf %276, %279 : vector<8x256xf32>
    %281 = arith.addf %274, %280 : vector<8x256xf32>
    %282 = vector.broadcast %201 : vector<8x1xf32> to vector<8x256xf32>
    %283 = arith.mulf %281, %282 : vector<8x256xf32>
    %284 = vector.broadcast %202 : vector<8x1xf32> to vector<8x256xf32>
    %285 = arith.addf %283, %284 : vector<8x256xf32>
    %cst_138 = arith.constant 0.000000e+00 : f32
    %286 = vector.broadcast %cst_138 : f32 to vector<8x256xf32>
    %287 = arith.maximumf %285, %286 : vector<8x256xf32>
    %c2_139 = arith.constant 2 : index
    %c0_140 = arith.constant 0 : index
    %c0_141 = arith.constant 0 : index
    %288 = vector.load %arg5[%c2_139, %c0_140, %c0_141] : memref<9x16x8xf32, #tpu.memory_space<vmem>>, vector<1x16x8xf32>
    %289 = vector.shape_cast %288 : vector<1x16x8xf32> to vector<16x8xf32>
    %cst_142 = arith.constant dense<0.000000e+00> : vector<16x256xf32>
    %290 = tpu.matmul %289, %287, %cst_142 {dimension_numbers = #tpu.dot_dimension_numbers<[1], [0], [0], [1], [0, 0, 1, 1], [], []>} : vector<16x8xf32>, vector<8x256xf32>, vector<16x256xf32> -> vector<16x256xf32>
    %291 = arith.addf %290, %194 : vector<16x256xf32>
    %c16_i32_143 = arith.constant 16 : i32
    %292 = tpu.dynamic_rotate %97 by %c16_i32_143 dim 1 : vector<16x256xf32>, i32 -> vector<16x256xf32>
    %c0_144 = arith.constant 0 : index
    %c0_145 = arith.constant 0 : index
    %c0_146 = arith.constant 0 : index
    %293 = vector.load %arg8[%c0_144, %c0_145, %c0_146] : memref<9x1x256xf32, #tpu.memory_space<vmem>>, vector<1x1x256xf32>
    %294 = vector.shape_cast %293 : vector<1x1x256xf32> to vector<1x256xf32>
    %295 = vector.broadcast %294 : vector<1x256xf32> to vector<16x256xf32>
    %296 = arith.mulf %292, %295 : vector<16x256xf32>
    %cst_147 = arith.constant 1.000000e+00 : f32
    %297 = vector.broadcast %cst_147 : f32 to vector<1x256xf32>
    %298 = arith.subf %294, %297 : vector<1x256xf32>
    %cst_148 = arith.constant 1.000000e+30 : f32
    %299 = vector.broadcast %cst_148 : f32 to vector<1x256xf32>
    %300 = arith.mulf %298, %299 : vector<1x256xf32>
    %301 = vector.broadcast %300 : vector<1x256xf32> to vector<16x256xf32>
    %302 = arith.addf %296, %301 : vector<16x256xf32>
    %c15_i32_149 = arith.constant 15 : i32
    %303 = tpu.dynamic_rotate %97 by %c15_i32_149 dim 1 : vector<16x256xf32>, i32 -> vector<16x256xf32>
    %c1_150 = arith.constant 1 : index
    %c0_151 = arith.constant 0 : index
    %c0_152 = arith.constant 0 : index
    %304 = vector.load %arg8[%c1_150, %c0_151, %c0_152] : memref<9x1x256xf32, #tpu.memory_space<vmem>>, vector<1x1x256xf32>
    %305 = vector.shape_cast %304 : vector<1x1x256xf32> to vector<1x256xf32>
    %306 = vector.broadcast %305 : vector<1x256xf32> to vector<16x256xf32>
    %307 = arith.mulf %303, %306 : vector<16x256xf32>
    %cst_153 = arith.constant 1.000000e+00 : f32
    %308 = vector.broadcast %cst_153 : f32 to vector<1x256xf32>
    %309 = arith.subf %305, %308 : vector<1x256xf32>
    %cst_154 = arith.constant 1.000000e+30 : f32
    %310 = vector.broadcast %cst_154 : f32 to vector<1x256xf32>
    %311 = arith.mulf %309, %310 : vector<1x256xf32>
    %312 = vector.broadcast %311 : vector<1x256xf32> to vector<16x256xf32>
    %313 = arith.addf %307, %312 : vector<16x256xf32>
    %314 = arith.maximumf %302, %313 : vector<16x256xf32>
    %c14_i32_155 = arith.constant 14 : i32
    %315 = tpu.dynamic_rotate %97 by %c14_i32_155 dim 1 : vector<16x256xf32>, i32 -> vector<16x256xf32>
    %c2_156 = arith.constant 2 : index
    %c0_157 = arith.constant 0 : index
    %c0_158 = arith.constant 0 : index
    %316 = vector.load %arg8[%c2_156, %c0_157, %c0_158] : memref<9x1x256xf32, #tpu.memory_space<vmem>>, vector<1x1x256xf32>
    %317 = vector.shape_cast %316 : vector<1x1x256xf32> to vector<1x256xf32>
    %318 = vector.broadcast %317 : vector<1x256xf32> to vector<16x256xf32>
    %319 = arith.mulf %315, %318 : vector<16x256xf32>
    %cst_159 = arith.constant 1.000000e+00 : f32
    %320 = vector.broadcast %cst_159 : f32 to vector<1x256xf32>
    %321 = arith.subf %317, %320 : vector<1x256xf32>
    %cst_160 = arith.constant 1.000000e+30 : f32
    %322 = vector.broadcast %cst_160 : f32 to vector<1x256xf32>
    %323 = arith.mulf %321, %322 : vector<1x256xf32>
    %324 = vector.broadcast %323 : vector<1x256xf32> to vector<16x256xf32>
    %325 = arith.addf %319, %324 : vector<16x256xf32>
    %326 = arith.maximumf %314, %325 : vector<16x256xf32>
    %c1_i32_161 = arith.constant 1 : i32
    %327 = tpu.dynamic_rotate %97 by %c1_i32_161 dim 1 : vector<16x256xf32>, i32 -> vector<16x256xf32>
    %c3_162 = arith.constant 3 : index
    %c0_163 = arith.constant 0 : index
    %c0_164 = arith.constant 0 : index
    %328 = vector.load %arg8[%c3_162, %c0_163, %c0_164] : memref<9x1x256xf32, #tpu.memory_space<vmem>>, vector<1x1x256xf32>
    %329 = vector.shape_cast %328 : vector<1x1x256xf32> to vector<1x256xf32>
    %330 = vector.broadcast %329 : vector<1x256xf32> to vector<16x256xf32>
    %331 = arith.mulf %327, %330 : vector<16x256xf32>
    %cst_165 = arith.constant 1.000000e+00 : f32
    %332 = vector.broadcast %cst_165 : f32 to vector<1x256xf32>
    %333 = arith.subf %329, %332 : vector<1x256xf32>
    %cst_166 = arith.constant 1.000000e+30 : f32
    %334 = vector.broadcast %cst_166 : f32 to vector<1x256xf32>
    %335 = arith.mulf %333, %334 : vector<1x256xf32>
    %336 = vector.broadcast %335 : vector<1x256xf32> to vector<16x256xf32>
    %337 = arith.addf %331, %336 : vector<16x256xf32>
    %338 = arith.maximumf %326, %337 : vector<16x256xf32>
    %c4_167 = arith.constant 4 : index
    %c0_168 = arith.constant 0 : index
    %c0_169 = arith.constant 0 : index
    %339 = vector.load %arg8[%c4_167, %c0_168, %c0_169] : memref<9x1x256xf32, #tpu.memory_space<vmem>>, vector<1x1x256xf32>
    %340 = vector.shape_cast %339 : vector<1x1x256xf32> to vector<1x256xf32>
    %341 = vector.broadcast %340 : vector<1x256xf32> to vector<16x256xf32>
    %342 = arith.mulf %97, %341 : vector<16x256xf32>
    %cst_170 = arith.constant 1.000000e+00 : f32
    %343 = vector.broadcast %cst_170 : f32 to vector<1x256xf32>
    %344 = arith.subf %340, %343 : vector<1x256xf32>
    %cst_171 = arith.constant 1.000000e+30 : f32
    %345 = vector.broadcast %cst_171 : f32 to vector<1x256xf32>
    %346 = arith.mulf %344, %345 : vector<1x256xf32>
    %347 = vector.broadcast %346 : vector<1x256xf32> to vector<16x256xf32>
    %348 = arith.addf %342, %347 : vector<16x256xf32>
    %349 = arith.maximumf %338, %348 : vector<16x256xf32>
    %c255_i32_172 = arith.constant 255 : i32
    %350 = tpu.dynamic_rotate %97 by %c255_i32_172 dim 1 : vector<16x256xf32>, i32 -> vector<16x256xf32>
    %c5_173 = arith.constant 5 : index
    %c0_174 = arith.constant 0 : index
    %c0_175 = arith.constant 0 : index
    %351 = vector.load %arg8[%c5_173, %c0_174, %c0_175] : memref<9x1x256xf32, #tpu.memory_space<vmem>>, vector<1x1x256xf32>
    %352 = vector.shape_cast %351 : vector<1x1x256xf32> to vector<1x256xf32>
    %353 = vector.broadcast %352 : vector<1x256xf32> to vector<16x256xf32>
    %354 = arith.mulf %350, %353 : vector<16x256xf32>
    %cst_176 = arith.constant 1.000000e+00 : f32
    %355 = vector.broadcast %cst_176 : f32 to vector<1x256xf32>
    %356 = arith.subf %352, %355 : vector<1x256xf32>
    %cst_177 = arith.constant 1.000000e+30 : f32
    %357 = vector.broadcast %cst_177 : f32 to vector<1x256xf32>
    %358 = arith.mulf %356, %357 : vector<1x256xf32>
    %359 = vector.broadcast %358 : vector<1x256xf32> to vector<16x256xf32>
    %360 = arith.addf %354, %359 : vector<16x256xf32>
    %361 = arith.maximumf %349, %360 : vector<16x256xf32>
    %c242_i32_178 = arith.constant 242 : i32
    %362 = tpu.dynamic_rotate %97 by %c242_i32_178 dim 1 : vector<16x256xf32>, i32 -> vector<16x256xf32>
    %c6_179 = arith.constant 6 : index
    %c0_180 = arith.constant 0 : index
    %c0_181 = arith.constant 0 : index
    %363 = vector.load %arg8[%c6_179, %c0_180, %c0_181] : memref<9x1x256xf32, #tpu.memory_space<vmem>>, vector<1x1x256xf32>
    %364 = vector.shape_cast %363 : vector<1x1x256xf32> to vector<1x256xf32>
    %365 = vector.broadcast %364 : vector<1x256xf32> to vector<16x256xf32>
    %366 = arith.mulf %362, %365 : vector<16x256xf32>
    %cst_182 = arith.constant 1.000000e+00 : f32
    %367 = vector.broadcast %cst_182 : f32 to vector<1x256xf32>
    %368 = arith.subf %364, %367 : vector<1x256xf32>
    %cst_183 = arith.constant 1.000000e+30 : f32
    %369 = vector.broadcast %cst_183 : f32 to vector<1x256xf32>
    %370 = arith.mulf %368, %369 : vector<1x256xf32>
    %371 = vector.broadcast %370 : vector<1x256xf32> to vector<16x256xf32>
    %372 = arith.addf %366, %371 : vector<16x256xf32>
    %373 = arith.maximumf %361, %372 : vector<16x256xf32>
    %c241_i32_184 = arith.constant 241 : i32
    %374 = tpu.dynamic_rotate %97 by %c241_i32_184 dim 1 : vector<16x256xf32>, i32 -> vector<16x256xf32>
    %c7_185 = arith.constant 7 : index
    %c0_186 = arith.constant 0 : index
    %c0_187 = arith.constant 0 : index
    %375 = vector.load %arg8[%c7_185, %c0_186, %c0_187] : memref<9x1x256xf32, #tpu.memory_space<vmem>>, vector<1x1x256xf32>
    %376 = vector.shape_cast %375 : vector<1x1x256xf32> to vector<1x256xf32>
    %377 = vector.broadcast %376 : vector<1x256xf32> to vector<16x256xf32>
    %378 = arith.mulf %374, %377 : vector<16x256xf32>
    %cst_188 = arith.constant 1.000000e+00 : f32
    %379 = vector.broadcast %cst_188 : f32 to vector<1x256xf32>
    %380 = arith.subf %376, %379 : vector<1x256xf32>
    %cst_189 = arith.constant 1.000000e+30 : f32
    %381 = vector.broadcast %cst_189 : f32 to vector<1x256xf32>
    %382 = arith.mulf %380, %381 : vector<1x256xf32>
    %383 = vector.broadcast %382 : vector<1x256xf32> to vector<16x256xf32>
    %384 = arith.addf %378, %383 : vector<16x256xf32>
    %385 = arith.maximumf %373, %384 : vector<16x256xf32>
    %c240_i32_190 = arith.constant 240 : i32
    %386 = tpu.dynamic_rotate %97 by %c240_i32_190 dim 1 : vector<16x256xf32>, i32 -> vector<16x256xf32>
    %c8_191 = arith.constant 8 : index
    %c0_192 = arith.constant 0 : index
    %c0_193 = arith.constant 0 : index
    %387 = vector.load %arg8[%c8_191, %c0_192, %c0_193] : memref<9x1x256xf32, #tpu.memory_space<vmem>>, vector<1x1x256xf32>
    %388 = vector.shape_cast %387 : vector<1x1x256xf32> to vector<1x256xf32>
    %389 = vector.broadcast %388 : vector<1x256xf32> to vector<16x256xf32>
    %390 = arith.mulf %386, %389 : vector<16x256xf32>
    %cst_194 = arith.constant 1.000000e+00 : f32
    %391 = vector.broadcast %cst_194 : f32 to vector<1x256xf32>
    %392 = arith.subf %388, %391 : vector<1x256xf32>
    %cst_195 = arith.constant 1.000000e+30 : f32
    %393 = vector.broadcast %cst_195 : f32 to vector<1x256xf32>
    %394 = arith.mulf %392, %393 : vector<1x256xf32>
    %395 = vector.broadcast %394 : vector<1x256xf32> to vector<16x256xf32>
    %396 = arith.addf %390, %395 : vector<16x256xf32>
    %397 = arith.maximumf %385, %396 : vector<16x256xf32>
    %c0_196 = arith.constant 0 : index
    %c0_197 = arith.constant 0 : index
    %398 = vector.load %arg11[%c0_196, %c0_197] : memref<256x128xf32, #tpu.memory_space<vmem>>, vector<256x128xf32>
    %cst_198 = arith.constant dense<0.000000e+00> : vector<16x128xf32>
    %399 = tpu.matmul %397, %398, %cst_198 {dimension_numbers = #tpu.dot_dimension_numbers<[1], [0], [0], [1], [0, 0, 1, 1], [], []>} : vector<16x256xf32>, vector<256x128xf32>, vector<16x128xf32> -> vector<16x128xf32>
    %c3_199 = arith.constant 3 : index
    %c0_200 = arith.constant 0 : index
    %c0_201 = arith.constant 0 : index
    %400 = vector.load %arg2[%c3_199, %c0_200, %c0_201] : memref<9x64x1xf32, #tpu.memory_space<vmem>>, vector<1x64x1xf32>
    %401 = vector.shape_cast %400 : vector<1x64x1xf32> to vector<64x1xf32>
    %402 = vector.extract_strided_slice %401 {offsets = [0, 0], sizes = [16, 1], strides = [1, 1]} : vector<64x1xf32> to vector<16x1xf32>
    %403 = vector.extract_strided_slice %401 {offsets = [16, 0], sizes = [16, 1], strides = [1, 1]} : vector<64x1xf32> to vector<16x1xf32>
    %404 = vector.extract_strided_slice %401 {offsets = [32, 0], sizes = [8, 1], strides = [1, 1]} : vector<64x1xf32> to vector<8x1xf32>
    %405 = vector.extract_strided_slice %401 {offsets = [40, 0], sizes = [8, 1], strides = [1, 1]} : vector<64x1xf32> to vector<8x1xf32>
    %406 = vector.extract_strided_slice %401 {offsets = [48, 0], sizes = [8, 1], strides = [1, 1]} : vector<64x1xf32> to vector<8x1xf32>
    %407 = vector.extract_strided_slice %401 {offsets = [56, 0], sizes = [8, 1], strides = [1, 1]} : vector<64x1xf32> to vector<8x1xf32>
    %408 = vector.broadcast %402 : vector<16x1xf32> to vector<16x128xf32>
    %409 = arith.mulf %399, %408 : vector<16x128xf32>
    %410 = vector.broadcast %403 : vector<16x1xf32> to vector<16x128xf32>
    %411 = arith.addf %409, %410 : vector<16x128xf32>
    %cst_202 = arith.constant 0.000000e+00 : f32
    %412 = vector.broadcast %cst_202 : f32 to vector<16x128xf32>
    %413 = arith.maximumf %411, %412 : vector<16x128xf32>
    %c3_203 = arith.constant 3 : index
    %c0_204 = arith.constant 0 : index
    %c0_205 = arith.constant 0 : index
    %414 = vector.load %arg3[%c3_203, %c0_204, %c0_205] : memref<9x8x16xf32, #tpu.memory_space<vmem>>, vector<1x8x16xf32>
    %415 = vector.shape_cast %414 : vector<1x8x16xf32> to vector<8x16xf32>
    %cst_206 = arith.constant dense<0.000000e+00> : vector<8x128xf32>
    %416 = tpu.matmul %415, %413, %cst_206 {dimension_numbers = #tpu.dot_dimension_numbers<[1], [0], [0], [1], [0, 0, 1, 1], [], []>} : vector<8x16xf32>, vector<16x128xf32>, vector<8x128xf32> -> vector<8x128xf32>
    %417 = vector.broadcast %404 : vector<8x1xf32> to vector<8x128xf32>
    %418 = arith.mulf %416, %417 : vector<8x128xf32>
    %419 = vector.broadcast %405 : vector<8x1xf32> to vector<8x128xf32>
    %420 = arith.addf %418, %419 : vector<8x128xf32>
    %cst_207 = arith.constant 0.000000e+00 : f32
    %421 = vector.broadcast %cst_207 : f32 to vector<8x128xf32>
    %422 = arith.maximumf %420, %421 : vector<8x128xf32>
    %c3_208 = arith.constant 3 : index
    %c0_209 = arith.constant 0 : index
    %c0_210 = arith.constant 0 : index
    %423 = vector.load %arg4[%c3_208, %c0_209, %c0_210] : memref<9x72x8xf32, #tpu.memory_space<vmem>>, vector<1x72x8xf32>
    %424 = vector.shape_cast %423 : vector<1x72x8xf32> to vector<72x8xf32>
    %cst_211 = arith.constant dense<0.000000e+00> : vector<72x128xf32>
    %425 = tpu.matmul %424, %422, %cst_211 {dimension_numbers = #tpu.dot_dimension_numbers<[1], [0], [0], [1], [0, 0, 1, 1], [], []>} : vector<72x8xf32>, vector<8x128xf32>, vector<72x128xf32> -> vector<72x128xf32>
    %426 = vector.extract_strided_slice %425 {offsets = [0, 0], sizes = [8, 128], strides = [1, 1]} : vector<72x128xf32> to vector<8x128xf32>
    %c9_i32 = arith.constant 9 : i32
    %427 = tpu.dynamic_rotate %426 by %c9_i32 dim 1 : vector<8x128xf32>, i32 -> vector<8x128xf32>
    %c0_212 = arith.constant 0 : index
    %c0_213 = arith.constant 0 : index
    %c0_214 = arith.constant 0 : index
    %428 = vector.load %arg9[%c0_212, %c0_213, %c0_214] : memref<9x1x128xf32, #tpu.memory_space<vmem>>, vector<1x1x128xf32>
    %429 = vector.shape_cast %428 : vector<1x1x128xf32> to vector<1x128xf32>
    %430 = vector.broadcast %429 : vector<1x128xf32> to vector<8x128xf32>
    %431 = arith.mulf %427, %430 : vector<8x128xf32>
    %432 = vector.extract_strided_slice %425 {offsets = [8, 0], sizes = [8, 128], strides = [1, 1]} : vector<72x128xf32> to vector<8x128xf32>
    %c8_i32 = arith.constant 8 : i32
    %433 = tpu.dynamic_rotate %432 by %c8_i32 dim 1 : vector<8x128xf32>, i32 -> vector<8x128xf32>
    %c1_215 = arith.constant 1 : index
    %c0_216 = arith.constant 0 : index
    %c0_217 = arith.constant 0 : index
    %434 = vector.load %arg9[%c1_215, %c0_216, %c0_217] : memref<9x1x128xf32, #tpu.memory_space<vmem>>, vector<1x1x128xf32>
    %435 = vector.shape_cast %434 : vector<1x1x128xf32> to vector<1x128xf32>
    %436 = vector.broadcast %435 : vector<1x128xf32> to vector<8x128xf32>
    %437 = arith.mulf %433, %436 : vector<8x128xf32>
    %438 = arith.addf %431, %437 : vector<8x128xf32>
    %439 = vector.extract_strided_slice %425 {offsets = [16, 0], sizes = [8, 128], strides = [1, 1]} : vector<72x128xf32> to vector<8x128xf32>
    %c7_i32 = arith.constant 7 : i32
    %440 = tpu.dynamic_rotate %439 by %c7_i32 dim 1 : vector<8x128xf32>, i32 -> vector<8x128xf32>
    %c2_218 = arith.constant 2 : index
    %c0_219 = arith.constant 0 : index
    %c0_220 = arith.constant 0 : index
    %441 = vector.load %arg9[%c2_218, %c0_219, %c0_220] : memref<9x1x128xf32, #tpu.memory_space<vmem>>, vector<1x1x128xf32>
    %442 = vector.shape_cast %441 : vector<1x1x128xf32> to vector<1x128xf32>
    %443 = vector.broadcast %442 : vector<1x128xf32> to vector<8x128xf32>
    %444 = arith.mulf %440, %443 : vector<8x128xf32>
    %445 = arith.addf %438, %444 : vector<8x128xf32>
    %446 = vector.extract_strided_slice %425 {offsets = [24, 0], sizes = [8, 128], strides = [1, 1]} : vector<72x128xf32> to vector<8x128xf32>
    %c1_i32_221 = arith.constant 1 : i32
    %447 = tpu.dynamic_rotate %446 by %c1_i32_221 dim 1 : vector<8x128xf32>, i32 -> vector<8x128xf32>
    %c3_222 = arith.constant 3 : index
    %c0_223 = arith.constant 0 : index
    %c0_224 = arith.constant 0 : index
    %448 = vector.load %arg9[%c3_222, %c0_223, %c0_224] : memref<9x1x128xf32, #tpu.memory_space<vmem>>, vector<1x1x128xf32>
    %449 = vector.shape_cast %448 : vector<1x1x128xf32> to vector<1x128xf32>
    %450 = vector.broadcast %449 : vector<1x128xf32> to vector<8x128xf32>
    %451 = arith.mulf %447, %450 : vector<8x128xf32>
    %452 = arith.addf %445, %451 : vector<8x128xf32>
    %453 = vector.extract_strided_slice %425 {offsets = [32, 0], sizes = [8, 128], strides = [1, 1]} : vector<72x128xf32> to vector<8x128xf32>
    %c4_225 = arith.constant 4 : index
    %c0_226 = arith.constant 0 : index
    %c0_227 = arith.constant 0 : index
    %454 = vector.load %arg9[%c4_225, %c0_226, %c0_227] : memref<9x1x128xf32, #tpu.memory_space<vmem>>, vector<1x1x128xf32>
    %455 = vector.shape_cast %454 : vector<1x1x128xf32> to vector<1x128xf32>
    %456 = vector.broadcast %455 : vector<1x128xf32> to vector<8x128xf32>
    %457 = arith.mulf %453, %456 : vector<8x128xf32>
    %458 = arith.addf %452, %457 : vector<8x128xf32>
    %459 = vector.extract_strided_slice %425 {offsets = [40, 0], sizes = [8, 128], strides = [1, 1]} : vector<72x128xf32> to vector<8x128xf32>
    %c127_i32 = arith.constant 127 : i32
    %460 = tpu.dynamic_rotate %459 by %c127_i32 dim 1 : vector<8x128xf32>, i32 -> vector<8x128xf32>
    %c5_228 = arith.constant 5 : index
    %c0_229 = arith.constant 0 : index
    %c0_230 = arith.constant 0 : index
    %461 = vector.load %arg9[%c5_228, %c0_229, %c0_230] : memref<9x1x128xf32, #tpu.memory_space<vmem>>, vector<1x1x128xf32>
    %462 = vector.shape_cast %461 : vector<1x1x128xf32> to vector<1x128xf32>
    %463 = vector.broadcast %462 : vector<1x128xf32> to vector<8x128xf32>
    %464 = arith.mulf %460, %463 : vector<8x128xf32>
    %465 = arith.addf %458, %464 : vector<8x128xf32>
    %466 = vector.extract_strided_slice %425 {offsets = [48, 0], sizes = [8, 128], strides = [1, 1]} : vector<72x128xf32> to vector<8x128xf32>
    %c121_i32 = arith.constant 121 : i32
    %467 = tpu.dynamic_rotate %466 by %c121_i32 dim 1 : vector<8x128xf32>, i32 -> vector<8x128xf32>
    %c6_231 = arith.constant 6 : index
    %c0_232 = arith.constant 0 : index
    %c0_233 = arith.constant 0 : index
    %468 = vector.load %arg9[%c6_231, %c0_232, %c0_233] : memref<9x1x128xf32, #tpu.memory_space<vmem>>, vector<1x1x128xf32>
    %469 = vector.shape_cast %468 : vector<1x1x128xf32> to vector<1x128xf32>
    %470 = vector.broadcast %469 : vector<1x128xf32> to vector<8x128xf32>
    %471 = arith.mulf %467, %470 : vector<8x128xf32>
    %472 = arith.addf %465, %471 : vector<8x128xf32>
    %473 = vector.extract_strided_slice %425 {offsets = [56, 0], sizes = [8, 128], strides = [1, 1]} : vector<72x128xf32> to vector<8x128xf32>
    %c120_i32 = arith.constant 120 : i32
    %474 = tpu.dynamic_rotate %473 by %c120_i32 dim 1 : vector<8x128xf32>, i32 -> vector<8x128xf32>
    %c7_234 = arith.constant 7 : index
    %c0_235 = arith.constant 0 : index
    %c0_236 = arith.constant 0 : index
    %475 = vector.load %arg9[%c7_234, %c0_235, %c0_236] : memref<9x1x128xf32, #tpu.memory_space<vmem>>, vector<1x1x128xf32>
    %476 = vector.shape_cast %475 : vector<1x1x128xf32> to vector<1x128xf32>
    %477 = vector.broadcast %476 : vector<1x128xf32> to vector<8x128xf32>
    %478 = arith.mulf %474, %477 : vector<8x128xf32>
    %479 = arith.addf %472, %478 : vector<8x128xf32>
    %480 = vector.extract_strided_slice %425 {offsets = [64, 0], sizes = [8, 128], strides = [1, 1]} : vector<72x128xf32> to vector<8x128xf32>
    %c119_i32 = arith.constant 119 : i32
    %481 = tpu.dynamic_rotate %480 by %c119_i32 dim 1 : vector<8x128xf32>, i32 -> vector<8x128xf32>
    %c8_237 = arith.constant 8 : index
    %c0_238 = arith.constant 0 : index
    %c0_239 = arith.constant 0 : index
    %482 = vector.load %arg9[%c8_237, %c0_238, %c0_239] : memref<9x1x128xf32, #tpu.memory_space<vmem>>, vector<1x1x128xf32>
    %483 = vector.shape_cast %482 : vector<1x1x128xf32> to vector<1x128xf32>
    %484 = vector.broadcast %483 : vector<1x128xf32> to vector<8x128xf32>
    %485 = arith.mulf %481, %484 : vector<8x128xf32>
    %486 = arith.addf %479, %485 : vector<8x128xf32>
    %487 = vector.broadcast %406 : vector<8x1xf32> to vector<8x128xf32>
    %488 = arith.mulf %486, %487 : vector<8x128xf32>
    %489 = vector.broadcast %407 : vector<8x1xf32> to vector<8x128xf32>
    %490 = arith.addf %488, %489 : vector<8x128xf32>
    %cst_240 = arith.constant 0.000000e+00 : f32
    %491 = vector.broadcast %cst_240 : f32 to vector<8x128xf32>
    %492 = arith.maximumf %490, %491 : vector<8x128xf32>
    %c3_241 = arith.constant 3 : index
    %c0_242 = arith.constant 0 : index
    %c0_243 = arith.constant 0 : index
    %493 = vector.load %arg5[%c3_241, %c0_242, %c0_243] : memref<9x16x8xf32, #tpu.memory_space<vmem>>, vector<1x16x8xf32>
    %494 = vector.shape_cast %493 : vector<1x16x8xf32> to vector<16x8xf32>
    %cst_244 = arith.constant dense<0.000000e+00> : vector<16x128xf32>
    %495 = tpu.matmul %494, %492, %cst_244 {dimension_numbers = #tpu.dot_dimension_numbers<[1], [0], [0], [1], [0, 0, 1, 1], [], []>} : vector<16x8xf32>, vector<8x128xf32>, vector<16x128xf32> -> vector<16x128xf32>
    %496 = arith.addf %495, %399 : vector<16x128xf32>
    %c4_245 = arith.constant 4 : index
    %c0_246 = arith.constant 0 : index
    %c0_247 = arith.constant 0 : index
    %497 = vector.load %arg2[%c4_245, %c0_246, %c0_247] : memref<9x64x1xf32, #tpu.memory_space<vmem>>, vector<1x64x1xf32>
    %498 = vector.shape_cast %497 : vector<1x64x1xf32> to vector<64x1xf32>
    %499 = vector.extract_strided_slice %498 {offsets = [0, 0], sizes = [16, 1], strides = [1, 1]} : vector<64x1xf32> to vector<16x1xf32>
    %500 = vector.extract_strided_slice %498 {offsets = [16, 0], sizes = [16, 1], strides = [1, 1]} : vector<64x1xf32> to vector<16x1xf32>
    %501 = vector.extract_strided_slice %498 {offsets = [32, 0], sizes = [8, 1], strides = [1, 1]} : vector<64x1xf32> to vector<8x1xf32>
    %502 = vector.extract_strided_slice %498 {offsets = [40, 0], sizes = [8, 1], strides = [1, 1]} : vector<64x1xf32> to vector<8x1xf32>
    %503 = vector.extract_strided_slice %498 {offsets = [48, 0], sizes = [8, 1], strides = [1, 1]} : vector<64x1xf32> to vector<8x1xf32>
    %504 = vector.extract_strided_slice %498 {offsets = [56, 0], sizes = [8, 1], strides = [1, 1]} : vector<64x1xf32> to vector<8x1xf32>
    %505 = vector.broadcast %499 : vector<16x1xf32> to vector<16x128xf32>
    %506 = arith.mulf %496, %505 : vector<16x128xf32>
    %507 = vector.broadcast %500 : vector<16x1xf32> to vector<16x128xf32>
    %508 = arith.addf %506, %507 : vector<16x128xf32>
    %cst_248 = arith.constant 0.000000e+00 : f32
    %509 = vector.broadcast %cst_248 : f32 to vector<16x128xf32>
    %510 = arith.maximumf %508, %509 : vector<16x128xf32>
    %c4_249 = arith.constant 4 : index
    %c0_250 = arith.constant 0 : index
    %c0_251 = arith.constant 0 : index
    %511 = vector.load %arg3[%c4_249, %c0_250, %c0_251] : memref<9x8x16xf32, #tpu.memory_space<vmem>>, vector<1x8x16xf32>
    %512 = vector.shape_cast %511 : vector<1x8x16xf32> to vector<8x16xf32>
    %cst_252 = arith.constant dense<0.000000e+00> : vector<8x128xf32>
    %513 = tpu.matmul %512, %510, %cst_252 {dimension_numbers = #tpu.dot_dimension_numbers<[1], [0], [0], [1], [0, 0, 1, 1], [], []>} : vector<8x16xf32>, vector<16x128xf32>, vector<8x128xf32> -> vector<8x128xf32>
    %514 = vector.broadcast %501 : vector<8x1xf32> to vector<8x128xf32>
    %515 = arith.mulf %513, %514 : vector<8x128xf32>
    %516 = vector.broadcast %502 : vector<8x1xf32> to vector<8x128xf32>
    %517 = arith.addf %515, %516 : vector<8x128xf32>
    %cst_253 = arith.constant 0.000000e+00 : f32
    %518 = vector.broadcast %cst_253 : f32 to vector<8x128xf32>
    %519 = arith.maximumf %517, %518 : vector<8x128xf32>
    %c4_254 = arith.constant 4 : index
    %c0_255 = arith.constant 0 : index
    %c0_256 = arith.constant 0 : index
    %520 = vector.load %arg4[%c4_254, %c0_255, %c0_256] : memref<9x72x8xf32, #tpu.memory_space<vmem>>, vector<1x72x8xf32>
    %521 = vector.shape_cast %520 : vector<1x72x8xf32> to vector<72x8xf32>
    %cst_257 = arith.constant dense<0.000000e+00> : vector<72x128xf32>
    %522 = tpu.matmul %521, %519, %cst_257 {dimension_numbers = #tpu.dot_dimension_numbers<[1], [0], [0], [1], [0, 0, 1, 1], [], []>} : vector<72x8xf32>, vector<8x128xf32>, vector<72x128xf32> -> vector<72x128xf32>
    %523 = vector.extract_strided_slice %522 {offsets = [0, 0], sizes = [8, 128], strides = [1, 1]} : vector<72x128xf32> to vector<8x128xf32>
    %c9_i32_258 = arith.constant 9 : i32
    %524 = tpu.dynamic_rotate %523 by %c9_i32_258 dim 1 : vector<8x128xf32>, i32 -> vector<8x128xf32>
    %c0_259 = arith.constant 0 : index
    %c0_260 = arith.constant 0 : index
    %c0_261 = arith.constant 0 : index
    %525 = vector.load %arg9[%c0_259, %c0_260, %c0_261] : memref<9x1x128xf32, #tpu.memory_space<vmem>>, vector<1x1x128xf32>
    %526 = vector.shape_cast %525 : vector<1x1x128xf32> to vector<1x128xf32>
    %527 = vector.broadcast %526 : vector<1x128xf32> to vector<8x128xf32>
    %528 = arith.mulf %524, %527 : vector<8x128xf32>
    %529 = vector.extract_strided_slice %522 {offsets = [8, 0], sizes = [8, 128], strides = [1, 1]} : vector<72x128xf32> to vector<8x128xf32>
    %c8_i32_262 = arith.constant 8 : i32
    %530 = tpu.dynamic_rotate %529 by %c8_i32_262 dim 1 : vector<8x128xf32>, i32 -> vector<8x128xf32>
    %c1_263 = arith.constant 1 : index
    %c0_264 = arith.constant 0 : index
    %c0_265 = arith.constant 0 : index
    %531 = vector.load %arg9[%c1_263, %c0_264, %c0_265] : memref<9x1x128xf32, #tpu.memory_space<vmem>>, vector<1x1x128xf32>
    %532 = vector.shape_cast %531 : vector<1x1x128xf32> to vector<1x128xf32>
    %533 = vector.broadcast %532 : vector<1x128xf32> to vector<8x128xf32>
    %534 = arith.mulf %530, %533 : vector<8x128xf32>
    %535 = arith.addf %528, %534 : vector<8x128xf32>
    %536 = vector.extract_strided_slice %522 {offsets = [16, 0], sizes = [8, 128], strides = [1, 1]} : vector<72x128xf32> to vector<8x128xf32>
    %c7_i32_266 = arith.constant 7 : i32
    %537 = tpu.dynamic_rotate %536 by %c7_i32_266 dim 1 : vector<8x128xf32>, i32 -> vector<8x128xf32>
    %c2_267 = arith.constant 2 : index
    %c0_268 = arith.constant 0 : index
    %c0_269 = arith.constant 0 : index
    %538 = vector.load %arg9[%c2_267, %c0_268, %c0_269] : memref<9x1x128xf32, #tpu.memory_space<vmem>>, vector<1x1x128xf32>
    %539 = vector.shape_cast %538 : vector<1x1x128xf32> to vector<1x128xf32>
    %540 = vector.broadcast %539 : vector<1x128xf32> to vector<8x128xf32>
    %541 = arith.mulf %537, %540 : vector<8x128xf32>
    %542 = arith.addf %535, %541 : vector<8x128xf32>
    %543 = vector.extract_strided_slice %522 {offsets = [24, 0], sizes = [8, 128], strides = [1, 1]} : vector<72x128xf32> to vector<8x128xf32>
    %c1_i32_270 = arith.constant 1 : i32
    %544 = tpu.dynamic_rotate %543 by %c1_i32_270 dim 1 : vector<8x128xf32>, i32 -> vector<8x128xf32>
    %c3_271 = arith.constant 3 : index
    %c0_272 = arith.constant 0 : index
    %c0_273 = arith.constant 0 : index
    %545 = vector.load %arg9[%c3_271, %c0_272, %c0_273] : memref<9x1x128xf32, #tpu.memory_space<vmem>>, vector<1x1x128xf32>
    %546 = vector.shape_cast %545 : vector<1x1x128xf32> to vector<1x128xf32>
    %547 = vector.broadcast %546 : vector<1x128xf32> to vector<8x128xf32>
    %548 = arith.mulf %544, %547 : vector<8x128xf32>
    %549 = arith.addf %542, %548 : vector<8x128xf32>
    %550 = vector.extract_strided_slice %522 {offsets = [32, 0], sizes = [8, 128], strides = [1, 1]} : vector<72x128xf32> to vector<8x128xf32>
    %c4_274 = arith.constant 4 : index
    %c0_275 = arith.constant 0 : index
    %c0_276 = arith.constant 0 : index
    %551 = vector.load %arg9[%c4_274, %c0_275, %c0_276] : memref<9x1x128xf32, #tpu.memory_space<vmem>>, vector<1x1x128xf32>
    %552 = vector.shape_cast %551 : vector<1x1x128xf32> to vector<1x128xf32>
    %553 = vector.broadcast %552 : vector<1x128xf32> to vector<8x128xf32>
    %554 = arith.mulf %550, %553 : vector<8x128xf32>
    %555 = arith.addf %549, %554 : vector<8x128xf32>
    %556 = vector.extract_strided_slice %522 {offsets = [40, 0], sizes = [8, 128], strides = [1, 1]} : vector<72x128xf32> to vector<8x128xf32>
    %c127_i32_277 = arith.constant 127 : i32
    %557 = tpu.dynamic_rotate %556 by %c127_i32_277 dim 1 : vector<8x128xf32>, i32 -> vector<8x128xf32>
    %c5_278 = arith.constant 5 : index
    %c0_279 = arith.constant 0 : index
    %c0_280 = arith.constant 0 : index
    %558 = vector.load %arg9[%c5_278, %c0_279, %c0_280] : memref<9x1x128xf32, #tpu.memory_space<vmem>>, vector<1x1x128xf32>
    %559 = vector.shape_cast %558 : vector<1x1x128xf32> to vector<1x128xf32>
    %560 = vector.broadcast %559 : vector<1x128xf32> to vector<8x128xf32>
    %561 = arith.mulf %557, %560 : vector<8x128xf32>
    %562 = arith.addf %555, %561 : vector<8x128xf32>
    %563 = vector.extract_strided_slice %522 {offsets = [48, 0], sizes = [8, 128], strides = [1, 1]} : vector<72x128xf32> to vector<8x128xf32>
    %c121_i32_281 = arith.constant 121 : i32
    %564 = tpu.dynamic_rotate %563 by %c121_i32_281 dim 1 : vector<8x128xf32>, i32 -> vector<8x128xf32>
    %c6_282 = arith.constant 6 : index
    %c0_283 = arith.constant 0 : index
    %c0_284 = arith.constant 0 : index
    %565 = vector.load %arg9[%c6_282, %c0_283, %c0_284] : memref<9x1x128xf32, #tpu.memory_space<vmem>>, vector<1x1x128xf32>
    %566 = vector.shape_cast %565 : vector<1x1x128xf32> to vector<1x128xf32>
    %567 = vector.broadcast %566 : vector<1x128xf32> to vector<8x128xf32>
    %568 = arith.mulf %564, %567 : vector<8x128xf32>
    %569 = arith.addf %562, %568 : vector<8x128xf32>
    %570 = vector.extract_strided_slice %522 {offsets = [56, 0], sizes = [8, 128], strides = [1, 1]} : vector<72x128xf32> to vector<8x128xf32>
    %c120_i32_285 = arith.constant 120 : i32
    %571 = tpu.dynamic_rotate %570 by %c120_i32_285 dim 1 : vector<8x128xf32>, i32 -> vector<8x128xf32>
    %c7_286 = arith.constant 7 : index
    %c0_287 = arith.constant 0 : index
    %c0_288 = arith.constant 0 : index
    %572 = vector.load %arg9[%c7_286, %c0_287, %c0_288] : memref<9x1x128xf32, #tpu.memory_space<vmem>>, vector<1x1x128xf32>
    %573 = vector.shape_cast %572 : vector<1x1x128xf32> to vector<1x128xf32>
    %574 = vector.broadcast %573 : vector<1x128xf32> to vector<8x128xf32>
    %575 = arith.mulf %571, %574 : vector<8x128xf32>
    %576 = arith.addf %569, %575 : vector<8x128xf32>
    %577 = vector.extract_strided_slice %522 {offsets = [64, 0], sizes = [8, 128], strides = [1, 1]} : vector<72x128xf32> to vector<8x128xf32>
    %c119_i32_289 = arith.constant 119 : i32
    %578 = tpu.dynamic_rotate %577 by %c119_i32_289 dim 1 : vector<8x128xf32>, i32 -> vector<8x128xf32>
    %c8_290 = arith.constant 8 : index
    %c0_291 = arith.constant 0 : index
    %c0_292 = arith.constant 0 : index
    %579 = vector.load %arg9[%c8_290, %c0_291, %c0_292] : memref<9x1x128xf32, #tpu.memory_space<vmem>>, vector<1x1x128xf32>
    %580 = vector.shape_cast %579 : vector<1x1x128xf32> to vector<1x128xf32>
    %581 = vector.broadcast %580 : vector<1x128xf32> to vector<8x128xf32>
    %582 = arith.mulf %578, %581 : vector<8x128xf32>
    %583 = arith.addf %576, %582 : vector<8x128xf32>
    %584 = vector.broadcast %503 : vector<8x1xf32> to vector<8x128xf32>
    %585 = arith.mulf %583, %584 : vector<8x128xf32>
    %586 = vector.broadcast %504 : vector<8x1xf32> to vector<8x128xf32>
    %587 = arith.addf %585, %586 : vector<8x128xf32>
    %cst_293 = arith.constant 0.000000e+00 : f32
    %588 = vector.broadcast %cst_293 : f32 to vector<8x128xf32>
    %589 = arith.maximumf %587, %588 : vector<8x128xf32>
    %c4_294 = arith.constant 4 : index
    %c0_295 = arith.constant 0 : index
    %c0_296 = arith.constant 0 : index
    %590 = vector.load %arg5[%c4_294, %c0_295, %c0_296] : memref<9x16x8xf32, #tpu.memory_space<vmem>>, vector<1x16x8xf32>
    %591 = vector.shape_cast %590 : vector<1x16x8xf32> to vector<16x8xf32>
    %cst_297 = arith.constant dense<0.000000e+00> : vector<16x128xf32>
    %592 = tpu.matmul %591, %589, %cst_297 {dimension_numbers = #tpu.dot_dimension_numbers<[1], [0], [0], [1], [0, 0, 1, 1], [], []>} : vector<16x8xf32>, vector<8x128xf32>, vector<16x128xf32> -> vector<16x128xf32>
    %593 = arith.addf %592, %496 : vector<16x128xf32>
    %c9_i32_298 = arith.constant 9 : i32
    %594 = tpu.dynamic_rotate %496 by %c9_i32_298 dim 1 : vector<16x128xf32>, i32 -> vector<16x128xf32>
    %c0_299 = arith.constant 0 : index
    %c0_300 = arith.constant 0 : index
    %c0_301 = arith.constant 0 : index
    %595 = vector.load %arg9[%c0_299, %c0_300, %c0_301] : memref<9x1x128xf32, #tpu.memory_space<vmem>>, vector<1x1x128xf32>
    %596 = vector.shape_cast %595 : vector<1x1x128xf32> to vector<1x128xf32>
    %597 = vector.broadcast %596 : vector<1x128xf32> to vector<16x128xf32>
    %598 = arith.mulf %594, %597 : vector<16x128xf32>
    %cst_302 = arith.constant 1.000000e+00 : f32
    %599 = vector.broadcast %cst_302 : f32 to vector<1x128xf32>
    %600 = arith.subf %596, %599 : vector<1x128xf32>
    %cst_303 = arith.constant 1.000000e+30 : f32
    %601 = vector.broadcast %cst_303 : f32 to vector<1x128xf32>
    %602 = arith.mulf %600, %601 : vector<1x128xf32>
    %603 = vector.broadcast %602 : vector<1x128xf32> to vector<16x128xf32>
    %604 = arith.addf %598, %603 : vector<16x128xf32>
    %c8_i32_304 = arith.constant 8 : i32
    %605 = tpu.dynamic_rotate %496 by %c8_i32_304 dim 1 : vector<16x128xf32>, i32 -> vector<16x128xf32>
    %c1_305 = arith.constant 1 : index
    %c0_306 = arith.constant 0 : index
    %c0_307 = arith.constant 0 : index
    %606 = vector.load %arg9[%c1_305, %c0_306, %c0_307] : memref<9x1x128xf32, #tpu.memory_space<vmem>>, vector<1x1x128xf32>
    %607 = vector.shape_cast %606 : vector<1x1x128xf32> to vector<1x128xf32>
    %608 = vector.broadcast %607 : vector<1x128xf32> to vector<16x128xf32>
    %609 = arith.mulf %605, %608 : vector<16x128xf32>
    %cst_308 = arith.constant 1.000000e+00 : f32
    %610 = vector.broadcast %cst_308 : f32 to vector<1x128xf32>
    %611 = arith.subf %607, %610 : vector<1x128xf32>
    %cst_309 = arith.constant 1.000000e+30 : f32
    %612 = vector.broadcast %cst_309 : f32 to vector<1x128xf32>
    %613 = arith.mulf %611, %612 : vector<1x128xf32>
    %614 = vector.broadcast %613 : vector<1x128xf32> to vector<16x128xf32>
    %615 = arith.addf %609, %614 : vector<16x128xf32>
    %616 = arith.maximumf %604, %615 : vector<16x128xf32>
    %c7_i32_310 = arith.constant 7 : i32
    %617 = tpu.dynamic_rotate %496 by %c7_i32_310 dim 1 : vector<16x128xf32>, i32 -> vector<16x128xf32>
    %c2_311 = arith.constant 2 : index
    %c0_312 = arith.constant 0 : index
    %c0_313 = arith.constant 0 : index
    %618 = vector.load %arg9[%c2_311, %c0_312, %c0_313] : memref<9x1x128xf32, #tpu.memory_space<vmem>>, vector<1x1x128xf32>
    %619 = vector.shape_cast %618 : vector<1x1x128xf32> to vector<1x128xf32>
    %620 = vector.broadcast %619 : vector<1x128xf32> to vector<16x128xf32>
    %621 = arith.mulf %617, %620 : vector<16x128xf32>
    %cst_314 = arith.constant 1.000000e+00 : f32
    %622 = vector.broadcast %cst_314 : f32 to vector<1x128xf32>
    %623 = arith.subf %619, %622 : vector<1x128xf32>
    %cst_315 = arith.constant 1.000000e+30 : f32
    %624 = vector.broadcast %cst_315 : f32 to vector<1x128xf32>
    %625 = arith.mulf %623, %624 : vector<1x128xf32>
    %626 = vector.broadcast %625 : vector<1x128xf32> to vector<16x128xf32>
    %627 = arith.addf %621, %626 : vector<16x128xf32>
    %628 = arith.maximumf %616, %627 : vector<16x128xf32>
    %c1_i32_316 = arith.constant 1 : i32
    %629 = tpu.dynamic_rotate %496 by %c1_i32_316 dim 1 : vector<16x128xf32>, i32 -> vector<16x128xf32>
    %c3_317 = arith.constant 3 : index
    %c0_318 = arith.constant 0 : index
    %c0_319 = arith.constant 0 : index
    %630 = vector.load %arg9[%c3_317, %c0_318, %c0_319] : memref<9x1x128xf32, #tpu.memory_space<vmem>>, vector<1x1x128xf32>
    %631 = vector.shape_cast %630 : vector<1x1x128xf32> to vector<1x128xf32>
    %632 = vector.broadcast %631 : vector<1x128xf32> to vector<16x128xf32>
    %633 = arith.mulf %629, %632 : vector<16x128xf32>
    %cst_320 = arith.constant 1.000000e+00 : f32
    %634 = vector.broadcast %cst_320 : f32 to vector<1x128xf32>
    %635 = arith.subf %631, %634 : vector<1x128xf32>
    %cst_321 = arith.constant 1.000000e+30 : f32
    %636 = vector.broadcast %cst_321 : f32 to vector<1x128xf32>
    %637 = arith.mulf %635, %636 : vector<1x128xf32>
    %638 = vector.broadcast %637 : vector<1x128xf32> to vector<16x128xf32>
    %639 = arith.addf %633, %638 : vector<16x128xf32>
    %640 = arith.maximumf %628, %639 : vector<16x128xf32>
    %c4_322 = arith.constant 4 : index
    %c0_323 = arith.constant 0 : index
    %c0_324 = arith.constant 0 : index
    %641 = vector.load %arg9[%c4_322, %c0_323, %c0_324] : memref<9x1x128xf32, #tpu.memory_space<vmem>>, vector<1x1x128xf32>
    %642 = vector.shape_cast %641 : vector<1x1x128xf32> to vector<1x128xf32>
    %643 = vector.broadcast %642 : vector<1x128xf32> to vector<16x128xf32>
    %644 = arith.mulf %496, %643 : vector<16x128xf32>
    %cst_325 = arith.constant 1.000000e+00 : f32
    %645 = vector.broadcast %cst_325 : f32 to vector<1x128xf32>
    %646 = arith.subf %642, %645 : vector<1x128xf32>
    %cst_326 = arith.constant 1.000000e+30 : f32
    %647 = vector.broadcast %cst_326 : f32 to vector<1x128xf32>
    %648 = arith.mulf %646, %647 : vector<1x128xf32>
    %649 = vector.broadcast %648 : vector<1x128xf32> to vector<16x128xf32>
    %650 = arith.addf %644, %649 : vector<16x128xf32>
    %651 = arith.maximumf %640, %650 : vector<16x128xf32>
    %c127_i32_327 = arith.constant 127 : i32
    %652 = tpu.dynamic_rotate %496 by %c127_i32_327 dim 1 : vector<16x128xf32>, i32 -> vector<16x128xf32>
    %c5_328 = arith.constant 5 : index
    %c0_329 = arith.constant 0 : index
    %c0_330 = arith.constant 0 : index
    %653 = vector.load %arg9[%c5_328, %c0_329, %c0_330] : memref<9x1x128xf32, #tpu.memory_space<vmem>>, vector<1x1x128xf32>
    %654 = vector.shape_cast %653 : vector<1x1x128xf32> to vector<1x128xf32>
    %655 = vector.broadcast %654 : vector<1x128xf32> to vector<16x128xf32>
    %656 = arith.mulf %652, %655 : vector<16x128xf32>
    %cst_331 = arith.constant 1.000000e+00 : f32
    %657 = vector.broadcast %cst_331 : f32 to vector<1x128xf32>
    %658 = arith.subf %654, %657 : vector<1x128xf32>
    %cst_332 = arith.constant 1.000000e+30 : f32
    %659 = vector.broadcast %cst_332 : f32 to vector<1x128xf32>
    %660 = arith.mulf %658, %659 : vector<1x128xf32>
    %661 = vector.broadcast %660 : vector<1x128xf32> to vector<16x128xf32>
    %662 = arith.addf %656, %661 : vector<16x128xf32>
    %663 = arith.maximumf %651, %662 : vector<16x128xf32>
    %c121_i32_333 = arith.constant 121 : i32
    %664 = tpu.dynamic_rotate %496 by %c121_i32_333 dim 1 : vector<16x128xf32>, i32 -> vector<16x128xf32>
    %c6_334 = arith.constant 6 : index
    %c0_335 = arith.constant 0 : index
    %c0_336 = arith.constant 0 : index
    %665 = vector.load %arg9[%c6_334, %c0_335, %c0_336] : memref<9x1x128xf32, #tpu.memory_space<vmem>>, vector<1x1x128xf32>
    %666 = vector.shape_cast %665 : vector<1x1x128xf32> to vector<1x128xf32>
    %667 = vector.broadcast %666 : vector<1x128xf32> to vector<16x128xf32>
    %668 = arith.mulf %664, %667 : vector<16x128xf32>
    %cst_337 = arith.constant 1.000000e+00 : f32
    %669 = vector.broadcast %cst_337 : f32 to vector<1x128xf32>
    %670 = arith.subf %666, %669 : vector<1x128xf32>
    %cst_338 = arith.constant 1.000000e+30 : f32
    %671 = vector.broadcast %cst_338 : f32 to vector<1x128xf32>
    %672 = arith.mulf %670, %671 : vector<1x128xf32>
    %673 = vector.broadcast %672 : vector<1x128xf32> to vector<16x128xf32>
    %674 = arith.addf %668, %673 : vector<16x128xf32>
    %675 = arith.maximumf %663, %674 : vector<16x128xf32>
    %c120_i32_339 = arith.constant 120 : i32
    %676 = tpu.dynamic_rotate %496 by %c120_i32_339 dim 1 : vector<16x128xf32>, i32 -> vector<16x128xf32>
    %c7_340 = arith.constant 7 : index
    %c0_341 = arith.constant 0 : index
    %c0_342 = arith.constant 0 : index
    %677 = vector.load %arg9[%c7_340, %c0_341, %c0_342] : memref<9x1x128xf32, #tpu.memory_space<vmem>>, vector<1x1x128xf32>
    %678 = vector.shape_cast %677 : vector<1x1x128xf32> to vector<1x128xf32>
    %679 = vector.broadcast %678 : vector<1x128xf32> to vector<16x128xf32>
    %680 = arith.mulf %676, %679 : vector<16x128xf32>
    %cst_343 = arith.constant 1.000000e+00 : f32
    %681 = vector.broadcast %cst_343 : f32 to vector<1x128xf32>
    %682 = arith.subf %678, %681 : vector<1x128xf32>
    %cst_344 = arith.constant 1.000000e+30 : f32
    %683 = vector.broadcast %cst_344 : f32 to vector<1x128xf32>
    %684 = arith.mulf %682, %683 : vector<1x128xf32>
    %685 = vector.broadcast %684 : vector<1x128xf32> to vector<16x128xf32>
    %686 = arith.addf %680, %685 : vector<16x128xf32>
    %687 = arith.maximumf %675, %686 : vector<16x128xf32>
    %c119_i32_345 = arith.constant 119 : i32
    %688 = tpu.dynamic_rotate %496 by %c119_i32_345 dim 1 : vector<16x128xf32>, i32 -> vector<16x128xf32>
    %c8_346 = arith.constant 8 : index
    %c0_347 = arith.constant 0 : index
    %c0_348 = arith.constant 0 : index
    %689 = vector.load %arg9[%c8_346, %c0_347, %c0_348] : memref<9x1x128xf32, #tpu.memory_space<vmem>>, vector<1x1x128xf32>
    %690 = vector.shape_cast %689 : vector<1x1x128xf32> to vector<1x128xf32>
    %691 = vector.broadcast %690 : vector<1x128xf32> to vector<16x128xf32>
    %692 = arith.mulf %688, %691 : vector<16x128xf32>
    %cst_349 = arith.constant 1.000000e+00 : f32
    %693 = vector.broadcast %cst_349 : f32 to vector<1x128xf32>
    %694 = arith.subf %690, %693 : vector<1x128xf32>
    %cst_350 = arith.constant 1.000000e+30 : f32
    %695 = vector.broadcast %cst_350 : f32 to vector<1x128xf32>
    %696 = arith.mulf %694, %695 : vector<1x128xf32>
    %697 = vector.broadcast %696 : vector<1x128xf32> to vector<16x128xf32>
    %698 = arith.addf %692, %697 : vector<16x128xf32>
    %699 = arith.maximumf %687, %698 : vector<16x128xf32>
    %c0_351 = arith.constant 0 : index
    %c0_352 = arith.constant 0 : index
    %700 = vector.load %arg12[%c0_351, %c0_352] : memref<128x128xf32, #tpu.memory_space<vmem>>, vector<128x128xf32>
    %cst_353 = arith.constant dense<0.000000e+00> : vector<16x128xf32>
    %701 = tpu.matmul %699, %700, %cst_353 {dimension_numbers = #tpu.dot_dimension_numbers<[1], [0], [0], [1], [0, 0, 1, 1], [], []>} : vector<16x128xf32>, vector<128x128xf32>, vector<16x128xf32> -> vector<16x128xf32>
    %c5_354 = arith.constant 5 : index
    %c0_355 = arith.constant 0 : index
    %c0_356 = arith.constant 0 : index
    %702 = vector.load %arg2[%c5_354, %c0_355, %c0_356] : memref<9x64x1xf32, #tpu.memory_space<vmem>>, vector<1x64x1xf32>
    %703 = vector.shape_cast %702 : vector<1x64x1xf32> to vector<64x1xf32>
    %704 = vector.extract_strided_slice %703 {offsets = [0, 0], sizes = [16, 1], strides = [1, 1]} : vector<64x1xf32> to vector<16x1xf32>
    %705 = vector.extract_strided_slice %703 {offsets = [16, 0], sizes = [16, 1], strides = [1, 1]} : vector<64x1xf32> to vector<16x1xf32>
    %706 = vector.extract_strided_slice %703 {offsets = [32, 0], sizes = [8, 1], strides = [1, 1]} : vector<64x1xf32> to vector<8x1xf32>
    %707 = vector.extract_strided_slice %703 {offsets = [40, 0], sizes = [8, 1], strides = [1, 1]} : vector<64x1xf32> to vector<8x1xf32>
    %708 = vector.extract_strided_slice %703 {offsets = [48, 0], sizes = [8, 1], strides = [1, 1]} : vector<64x1xf32> to vector<8x1xf32>
    %709 = vector.extract_strided_slice %703 {offsets = [56, 0], sizes = [8, 1], strides = [1, 1]} : vector<64x1xf32> to vector<8x1xf32>
    %710 = vector.broadcast %704 : vector<16x1xf32> to vector<16x128xf32>
    %711 = arith.mulf %701, %710 : vector<16x128xf32>
    %712 = vector.broadcast %705 : vector<16x1xf32> to vector<16x128xf32>
    %713 = arith.addf %711, %712 : vector<16x128xf32>
    %cst_357 = arith.constant 0.000000e+00 : f32
    %714 = vector.broadcast %cst_357 : f32 to vector<16x128xf32>
    %715 = arith.maximumf %713, %714 : vector<16x128xf32>
    %c5_358 = arith.constant 5 : index
    %c0_359 = arith.constant 0 : index
    %c0_360 = arith.constant 0 : index
    %716 = vector.load %arg3[%c5_358, %c0_359, %c0_360] : memref<9x8x16xf32, #tpu.memory_space<vmem>>, vector<1x8x16xf32>
    %717 = vector.shape_cast %716 : vector<1x8x16xf32> to vector<8x16xf32>
    %cst_361 = arith.constant dense<0.000000e+00> : vector<8x128xf32>
    %718 = tpu.matmul %717, %715, %cst_361 {dimension_numbers = #tpu.dot_dimension_numbers<[1], [0], [0], [1], [0, 0, 1, 1], [], []>} : vector<8x16xf32>, vector<16x128xf32>, vector<8x128xf32> -> vector<8x128xf32>
    %719 = vector.broadcast %706 : vector<8x1xf32> to vector<8x128xf32>
    %720 = arith.mulf %718, %719 : vector<8x128xf32>
    %721 = vector.broadcast %707 : vector<8x1xf32> to vector<8x128xf32>
    %722 = arith.addf %720, %721 : vector<8x128xf32>
    %cst_362 = arith.constant 0.000000e+00 : f32
    %723 = vector.broadcast %cst_362 : f32 to vector<8x128xf32>
    %724 = arith.maximumf %722, %723 : vector<8x128xf32>
    %c5_363 = arith.constant 5 : index
    %c0_364 = arith.constant 0 : index
    %c0_365 = arith.constant 0 : index
    %725 = vector.load %arg4[%c5_363, %c0_364, %c0_365] : memref<9x72x8xf32, #tpu.memory_space<vmem>>, vector<1x72x8xf32>
    %726 = vector.shape_cast %725 : vector<1x72x8xf32> to vector<72x8xf32>
    %cst_366 = arith.constant dense<0.000000e+00> : vector<72x128xf32>
    %727 = tpu.matmul %726, %724, %cst_366 {dimension_numbers = #tpu.dot_dimension_numbers<[1], [0], [0], [1], [0, 0, 1, 1], [], []>} : vector<72x8xf32>, vector<8x128xf32>, vector<72x128xf32> -> vector<72x128xf32>
    %728 = vector.extract_strided_slice %727 {offsets = [0, 0], sizes = [8, 128], strides = [1, 1]} : vector<72x128xf32> to vector<8x128xf32>
    %c5_i32 = arith.constant 5 : i32
    %729 = tpu.dynamic_rotate %728 by %c5_i32 dim 1 : vector<8x128xf32>, i32 -> vector<8x128xf32>
    %c0_367 = arith.constant 0 : index
    %c0_368 = arith.constant 0 : index
    %c0_369 = arith.constant 0 : index
    %730 = vector.load %arg10[%c0_367, %c0_368, %c0_369] : memref<9x1x128xf32, #tpu.memory_space<vmem>>, vector<1x1x128xf32>
    %731 = vector.shape_cast %730 : vector<1x1x128xf32> to vector<1x128xf32>
    %732 = vector.broadcast %731 : vector<1x128xf32> to vector<8x128xf32>
    %733 = arith.mulf %729, %732 : vector<8x128xf32>
    %734 = vector.extract_strided_slice %727 {offsets = [8, 0], sizes = [8, 128], strides = [1, 1]} : vector<72x128xf32> to vector<8x128xf32>
    %c4_i32 = arith.constant 4 : i32
    %735 = tpu.dynamic_rotate %734 by %c4_i32 dim 1 : vector<8x128xf32>, i32 -> vector<8x128xf32>
    %c1_370 = arith.constant 1 : index
    %c0_371 = arith.constant 0 : index
    %c0_372 = arith.constant 0 : index
    %736 = vector.load %arg10[%c1_370, %c0_371, %c0_372] : memref<9x1x128xf32, #tpu.memory_space<vmem>>, vector<1x1x128xf32>
    %737 = vector.shape_cast %736 : vector<1x1x128xf32> to vector<1x128xf32>
    %738 = vector.broadcast %737 : vector<1x128xf32> to vector<8x128xf32>
    %739 = arith.mulf %735, %738 : vector<8x128xf32>
    %740 = arith.addf %733, %739 : vector<8x128xf32>
    %741 = vector.extract_strided_slice %727 {offsets = [16, 0], sizes = [8, 128], strides = [1, 1]} : vector<72x128xf32> to vector<8x128xf32>
    %c3_i32 = arith.constant 3 : i32
    %742 = tpu.dynamic_rotate %741 by %c3_i32 dim 1 : vector<8x128xf32>, i32 -> vector<8x128xf32>
    %c2_373 = arith.constant 2 : index
    %c0_374 = arith.constant 0 : index
    %c0_375 = arith.constant 0 : index
    %743 = vector.load %arg10[%c2_373, %c0_374, %c0_375] : memref<9x1x128xf32, #tpu.memory_space<vmem>>, vector<1x1x128xf32>
    %744 = vector.shape_cast %743 : vector<1x1x128xf32> to vector<1x128xf32>
    %745 = vector.broadcast %744 : vector<1x128xf32> to vector<8x128xf32>
    %746 = arith.mulf %742, %745 : vector<8x128xf32>
    %747 = arith.addf %740, %746 : vector<8x128xf32>
    %748 = vector.extract_strided_slice %727 {offsets = [24, 0], sizes = [8, 128], strides = [1, 1]} : vector<72x128xf32> to vector<8x128xf32>
    %c1_i32_376 = arith.constant 1 : i32
    %749 = tpu.dynamic_rotate %748 by %c1_i32_376 dim 1 : vector<8x128xf32>, i32 -> vector<8x128xf32>
    %c3_377 = arith.constant 3 : index
    %c0_378 = arith.constant 0 : index
    %c0_379 = arith.constant 0 : index
    %750 = vector.load %arg10[%c3_377, %c0_378, %c0_379] : memref<9x1x128xf32, #tpu.memory_space<vmem>>, vector<1x1x128xf32>
    %751 = vector.shape_cast %750 : vector<1x1x128xf32> to vector<1x128xf32>
    %752 = vector.broadcast %751 : vector<1x128xf32> to vector<8x128xf32>
    %753 = arith.mulf %749, %752 : vector<8x128xf32>
    %754 = arith.addf %747, %753 : vector<8x128xf32>
    %755 = vector.extract_strided_slice %727 {offsets = [32, 0], sizes = [8, 128], strides = [1, 1]} : vector<72x128xf32> to vector<8x128xf32>
    %c4_380 = arith.constant 4 : index
    %c0_381 = arith.constant 0 : index
    %c0_382 = arith.constant 0 : index
    %756 = vector.load %arg10[%c4_380, %c0_381, %c0_382] : memref<9x1x128xf32, #tpu.memory_space<vmem>>, vector<1x1x128xf32>
    %757 = vector.shape_cast %756 : vector<1x1x128xf32> to vector<1x128xf32>
    %758 = vector.broadcast %757 : vector<1x128xf32> to vector<8x128xf32>
    %759 = arith.mulf %755, %758 : vector<8x128xf32>
    %760 = arith.addf %754, %759 : vector<8x128xf32>
    %761 = vector.extract_strided_slice %727 {offsets = [40, 0], sizes = [8, 128], strides = [1, 1]} : vector<72x128xf32> to vector<8x128xf32>
    %c127_i32_383 = arith.constant 127 : i32
    %762 = tpu.dynamic_rotate %761 by %c127_i32_383 dim 1 : vector<8x128xf32>, i32 -> vector<8x128xf32>
    %c5_384 = arith.constant 5 : index
    %c0_385 = arith.constant 0 : index
    %c0_386 = arith.constant 0 : index
    %763 = vector.load %arg10[%c5_384, %c0_385, %c0_386] : memref<9x1x128xf32, #tpu.memory_space<vmem>>, vector<1x1x128xf32>
    %764 = vector.shape_cast %763 : vector<1x1x128xf32> to vector<1x128xf32>
    %765 = vector.broadcast %764 : vector<1x128xf32> to vector<8x128xf32>
    %766 = arith.mulf %762, %765 : vector<8x128xf32>
    %767 = arith.addf %760, %766 : vector<8x128xf32>
    %768 = vector.extract_strided_slice %727 {offsets = [48, 0], sizes = [8, 128], strides = [1, 1]} : vector<72x128xf32> to vector<8x128xf32>
    %c125_i32 = arith.constant 125 : i32
    %769 = tpu.dynamic_rotate %768 by %c125_i32 dim 1 : vector<8x128xf32>, i32 -> vector<8x128xf32>
    %c6_387 = arith.constant 6 : index
    %c0_388 = arith.constant 0 : index
    %c0_389 = arith.constant 0 : index
    %770 = vector.load %arg10[%c6_387, %c0_388, %c0_389] : memref<9x1x128xf32, #tpu.memory_space<vmem>>, vector<1x1x128xf32>
    %771 = vector.shape_cast %770 : vector<1x1x128xf32> to vector<1x128xf32>
    %772 = vector.broadcast %771 : vector<1x128xf32> to vector<8x128xf32>
    %773 = arith.mulf %769, %772 : vector<8x128xf32>
    %774 = arith.addf %767, %773 : vector<8x128xf32>
    %775 = vector.extract_strided_slice %727 {offsets = [56, 0], sizes = [8, 128], strides = [1, 1]} : vector<72x128xf32> to vector<8x128xf32>
    %c124_i32 = arith.constant 124 : i32
    %776 = tpu.dynamic_rotate %775 by %c124_i32 dim 1 : vector<8x128xf32>, i32 -> vector<8x128xf32>
    %c7_390 = arith.constant 7 : index
    %c0_391 = arith.constant 0 : index
    %c0_392 = arith.constant 0 : index
    %777 = vector.load %arg10[%c7_390, %c0_391, %c0_392] : memref<9x1x128xf32, #tpu.memory_space<vmem>>, vector<1x1x128xf32>
    %778 = vector.shape_cast %777 : vector<1x1x128xf32> to vector<1x128xf32>
    %779 = vector.broadcast %778 : vector<1x128xf32> to vector<8x128xf32>
    %780 = arith.mulf %776, %779 : vector<8x128xf32>
    %781 = arith.addf %774, %780 : vector<8x128xf32>
    %782 = vector.extract_strided_slice %727 {offsets = [64, 0], sizes = [8, 128], strides = [1, 1]} : vector<72x128xf32> to vector<8x128xf32>
    %c123_i32 = arith.constant 123 : i32
    %783 = tpu.dynamic_rotate %782 by %c123_i32 dim 1 : vector<8x128xf32>, i32 -> vector<8x128xf32>
    %c8_393 = arith.constant 8 : index
    %c0_394 = arith.constant 0 : index
    %c0_395 = arith.constant 0 : index
    %784 = vector.load %arg10[%c8_393, %c0_394, %c0_395] : memref<9x1x128xf32, #tpu.memory_space<vmem>>, vector<1x1x128xf32>
    %785 = vector.shape_cast %784 : vector<1x1x128xf32> to vector<1x128xf32>
    %786 = vector.broadcast %785 : vector<1x128xf32> to vector<8x128xf32>
    %787 = arith.mulf %783, %786 : vector<8x128xf32>
    %788 = arith.addf %781, %787 : vector<8x128xf32>
    %789 = vector.broadcast %708 : vector<8x1xf32> to vector<8x128xf32>
    %790 = arith.mulf %788, %789 : vector<8x128xf32>
    %791 = vector.broadcast %709 : vector<8x1xf32> to vector<8x128xf32>
    %792 = arith.addf %790, %791 : vector<8x128xf32>
    %cst_396 = arith.constant 0.000000e+00 : f32
    %793 = vector.broadcast %cst_396 : f32 to vector<8x128xf32>
    %794 = arith.maximumf %792, %793 : vector<8x128xf32>
    %c5_397 = arith.constant 5 : index
    %c0_398 = arith.constant 0 : index
    %c0_399 = arith.constant 0 : index
    %795 = vector.load %arg5[%c5_397, %c0_398, %c0_399] : memref<9x16x8xf32, #tpu.memory_space<vmem>>, vector<1x16x8xf32>
    %796 = vector.shape_cast %795 : vector<1x16x8xf32> to vector<16x8xf32>
    %cst_400 = arith.constant dense<0.000000e+00> : vector<16x128xf32>
    %797 = tpu.matmul %796, %794, %cst_400 {dimension_numbers = #tpu.dot_dimension_numbers<[1], [0], [0], [1], [0, 0, 1, 1], [], []>} : vector<16x8xf32>, vector<8x128xf32>, vector<16x128xf32> -> vector<16x128xf32>
    %798 = arith.addf %797, %701 : vector<16x128xf32>
    %c6_401 = arith.constant 6 : index
    %c0_402 = arith.constant 0 : index
    %c0_403 = arith.constant 0 : index
    %799 = vector.load %arg2[%c6_401, %c0_402, %c0_403] : memref<9x64x1xf32, #tpu.memory_space<vmem>>, vector<1x64x1xf32>
    %800 = vector.shape_cast %799 : vector<1x64x1xf32> to vector<64x1xf32>
    %801 = vector.extract_strided_slice %800 {offsets = [0, 0], sizes = [16, 1], strides = [1, 1]} : vector<64x1xf32> to vector<16x1xf32>
    %802 = vector.extract_strided_slice %800 {offsets = [16, 0], sizes = [16, 1], strides = [1, 1]} : vector<64x1xf32> to vector<16x1xf32>
    %803 = vector.extract_strided_slice %800 {offsets = [32, 0], sizes = [8, 1], strides = [1, 1]} : vector<64x1xf32> to vector<8x1xf32>
    %804 = vector.extract_strided_slice %800 {offsets = [40, 0], sizes = [8, 1], strides = [1, 1]} : vector<64x1xf32> to vector<8x1xf32>
    %805 = vector.extract_strided_slice %800 {offsets = [48, 0], sizes = [8, 1], strides = [1, 1]} : vector<64x1xf32> to vector<8x1xf32>
    %806 = vector.extract_strided_slice %800 {offsets = [56, 0], sizes = [8, 1], strides = [1, 1]} : vector<64x1xf32> to vector<8x1xf32>
    %807 = vector.broadcast %801 : vector<16x1xf32> to vector<16x128xf32>
    %808 = arith.mulf %798, %807 : vector<16x128xf32>
    %809 = vector.broadcast %802 : vector<16x1xf32> to vector<16x128xf32>
    %810 = arith.addf %808, %809 : vector<16x128xf32>
    %cst_404 = arith.constant 0.000000e+00 : f32
    %811 = vector.broadcast %cst_404 : f32 to vector<16x128xf32>
    %812 = arith.maximumf %810, %811 : vector<16x128xf32>
    %c6_405 = arith.constant 6 : index
    %c0_406 = arith.constant 0 : index
    %c0_407 = arith.constant 0 : index
    %813 = vector.load %arg3[%c6_405, %c0_406, %c0_407] : memref<9x8x16xf32, #tpu.memory_space<vmem>>, vector<1x8x16xf32>
    %814 = vector.shape_cast %813 : vector<1x8x16xf32> to vector<8x16xf32>
    %cst_408 = arith.constant dense<0.000000e+00> : vector<8x128xf32>
    %815 = tpu.matmul %814, %812, %cst_408 {dimension_numbers = #tpu.dot_dimension_numbers<[1], [0], [0], [1], [0, 0, 1, 1], [], []>} : vector<8x16xf32>, vector<16x128xf32>, vector<8x128xf32> -> vector<8x128xf32>
    %816 = vector.broadcast %803 : vector<8x1xf32> to vector<8x128xf32>
    %817 = arith.mulf %815, %816 : vector<8x128xf32>
    %818 = vector.broadcast %804 : vector<8x1xf32> to vector<8x128xf32>
    %819 = arith.addf %817, %818 : vector<8x128xf32>
    %cst_409 = arith.constant 0.000000e+00 : f32
    %820 = vector.broadcast %cst_409 : f32 to vector<8x128xf32>
    %821 = arith.maximumf %819, %820 : vector<8x128xf32>
    %c6_410 = arith.constant 6 : index
    %c0_411 = arith.constant 0 : index
    %c0_412 = arith.constant 0 : index
    %822 = vector.load %arg4[%c6_410, %c0_411, %c0_412] : memref<9x72x8xf32, #tpu.memory_space<vmem>>, vector<1x72x8xf32>
    %823 = vector.shape_cast %822 : vector<1x72x8xf32> to vector<72x8xf32>
    %cst_413 = arith.constant dense<0.000000e+00> : vector<72x128xf32>
    %824 = tpu.matmul %823, %821, %cst_413 {dimension_numbers = #tpu.dot_dimension_numbers<[1], [0], [0], [1], [0, 0, 1, 1], [], []>} : vector<72x8xf32>, vector<8x128xf32>, vector<72x128xf32> -> vector<72x128xf32>
    %825 = vector.extract_strided_slice %824 {offsets = [0, 0], sizes = [8, 128], strides = [1, 1]} : vector<72x128xf32> to vector<8x128xf32>
    %c5_i32_414 = arith.constant 5 : i32
    %826 = tpu.dynamic_rotate %825 by %c5_i32_414 dim 1 : vector<8x128xf32>, i32 -> vector<8x128xf32>
    %c0_415 = arith.constant 0 : index
    %c0_416 = arith.constant 0 : index
    %c0_417 = arith.constant 0 : index
    %827 = vector.load %arg10[%c0_415, %c0_416, %c0_417] : memref<9x1x128xf32, #tpu.memory_space<vmem>>, vector<1x1x128xf32>
    %828 = vector.shape_cast %827 : vector<1x1x128xf32> to vector<1x128xf32>
    %829 = vector.broadcast %828 : vector<1x128xf32> to vector<8x128xf32>
    %830 = arith.mulf %826, %829 : vector<8x128xf32>
    %831 = vector.extract_strided_slice %824 {offsets = [8, 0], sizes = [8, 128], strides = [1, 1]} : vector<72x128xf32> to vector<8x128xf32>
    %c4_i32_418 = arith.constant 4 : i32
    %832 = tpu.dynamic_rotate %831 by %c4_i32_418 dim 1 : vector<8x128xf32>, i32 -> vector<8x128xf32>
    %c1_419 = arith.constant 1 : index
    %c0_420 = arith.constant 0 : index
    %c0_421 = arith.constant 0 : index
    %833 = vector.load %arg10[%c1_419, %c0_420, %c0_421] : memref<9x1x128xf32, #tpu.memory_space<vmem>>, vector<1x1x128xf32>
    %834 = vector.shape_cast %833 : vector<1x1x128xf32> to vector<1x128xf32>
    %835 = vector.broadcast %834 : vector<1x128xf32> to vector<8x128xf32>
    %836 = arith.mulf %832, %835 : vector<8x128xf32>
    %837 = arith.addf %830, %836 : vector<8x128xf32>
    %838 = vector.extract_strided_slice %824 {offsets = [16, 0], sizes = [8, 128], strides = [1, 1]} : vector<72x128xf32> to vector<8x128xf32>
    %c3_i32_422 = arith.constant 3 : i32
    %839 = tpu.dynamic_rotate %838 by %c3_i32_422 dim 1 : vector<8x128xf32>, i32 -> vector<8x128xf32>
    %c2_423 = arith.constant 2 : index
    %c0_424 = arith.constant 0 : index
    %c0_425 = arith.constant 0 : index
    %840 = vector.load %arg10[%c2_423, %c0_424, %c0_425] : memref<9x1x128xf32, #tpu.memory_space<vmem>>, vector<1x1x128xf32>
    %841 = vector.shape_cast %840 : vector<1x1x128xf32> to vector<1x128xf32>
    %842 = vector.broadcast %841 : vector<1x128xf32> to vector<8x128xf32>
    %843 = arith.mulf %839, %842 : vector<8x128xf32>
    %844 = arith.addf %837, %843 : vector<8x128xf32>
    %845 = vector.extract_strided_slice %824 {offsets = [24, 0], sizes = [8, 128], strides = [1, 1]} : vector<72x128xf32> to vector<8x128xf32>
    %c1_i32_426 = arith.constant 1 : i32
    %846 = tpu.dynamic_rotate %845 by %c1_i32_426 dim 1 : vector<8x128xf32>, i32 -> vector<8x128xf32>
    %c3_427 = arith.constant 3 : index
    %c0_428 = arith.constant 0 : index
    %c0_429 = arith.constant 0 : index
    %847 = vector.load %arg10[%c3_427, %c0_428, %c0_429] : memref<9x1x128xf32, #tpu.memory_space<vmem>>, vector<1x1x128xf32>
    %848 = vector.shape_cast %847 : vector<1x1x128xf32> to vector<1x128xf32>
    %849 = vector.broadcast %848 : vector<1x128xf32> to vector<8x128xf32>
    %850 = arith.mulf %846, %849 : vector<8x128xf32>
    %851 = arith.addf %844, %850 : vector<8x128xf32>
    %852 = vector.extract_strided_slice %824 {offsets = [32, 0], sizes = [8, 128], strides = [1, 1]} : vector<72x128xf32> to vector<8x128xf32>
    %c4_430 = arith.constant 4 : index
    %c0_431 = arith.constant 0 : index
    %c0_432 = arith.constant 0 : index
    %853 = vector.load %arg10[%c4_430, %c0_431, %c0_432] : memref<9x1x128xf32, #tpu.memory_space<vmem>>, vector<1x1x128xf32>
    %854 = vector.shape_cast %853 : vector<1x1x128xf32> to vector<1x128xf32>
    %855 = vector.broadcast %854 : vector<1x128xf32> to vector<8x128xf32>
    %856 = arith.mulf %852, %855 : vector<8x128xf32>
    %857 = arith.addf %851, %856 : vector<8x128xf32>
    %858 = vector.extract_strided_slice %824 {offsets = [40, 0], sizes = [8, 128], strides = [1, 1]} : vector<72x128xf32> to vector<8x128xf32>
    %c127_i32_433 = arith.constant 127 : i32
    %859 = tpu.dynamic_rotate %858 by %c127_i32_433 dim 1 : vector<8x128xf32>, i32 -> vector<8x128xf32>
    %c5_434 = arith.constant 5 : index
    %c0_435 = arith.constant 0 : index
    %c0_436 = arith.constant 0 : index
    %860 = vector.load %arg10[%c5_434, %c0_435, %c0_436] : memref<9x1x128xf32, #tpu.memory_space<vmem>>, vector<1x1x128xf32>
    %861 = vector.shape_cast %860 : vector<1x1x128xf32> to vector<1x128xf32>
    %862 = vector.broadcast %861 : vector<1x128xf32> to vector<8x128xf32>
    %863 = arith.mulf %859, %862 : vector<8x128xf32>
    %864 = arith.addf %857, %863 : vector<8x128xf32>
    %865 = vector.extract_strided_slice %824 {offsets = [48, 0], sizes = [8, 128], strides = [1, 1]} : vector<72x128xf32> to vector<8x128xf32>
    %c125_i32_437 = arith.constant 125 : i32
    %866 = tpu.dynamic_rotate %865 by %c125_i32_437 dim 1 : vector<8x128xf32>, i32 -> vector<8x128xf32>
    %c6_438 = arith.constant 6 : index
    %c0_439 = arith.constant 0 : index
    %c0_440 = arith.constant 0 : index
    %867 = vector.load %arg10[%c6_438, %c0_439, %c0_440] : memref<9x1x128xf32, #tpu.memory_space<vmem>>, vector<1x1x128xf32>
    %868 = vector.shape_cast %867 : vector<1x1x128xf32> to vector<1x128xf32>
    %869 = vector.broadcast %868 : vector<1x128xf32> to vector<8x128xf32>
    %870 = arith.mulf %866, %869 : vector<8x128xf32>
    %871 = arith.addf %864, %870 : vector<8x128xf32>
    %872 = vector.extract_strided_slice %824 {offsets = [56, 0], sizes = [8, 128], strides = [1, 1]} : vector<72x128xf32> to vector<8x128xf32>
    %c124_i32_441 = arith.constant 124 : i32
    %873 = tpu.dynamic_rotate %872 by %c124_i32_441 dim 1 : vector<8x128xf32>, i32 -> vector<8x128xf32>
    %c7_442 = arith.constant 7 : index
    %c0_443 = arith.constant 0 : index
    %c0_444 = arith.constant 0 : index
    %874 = vector.load %arg10[%c7_442, %c0_443, %c0_444] : memref<9x1x128xf32, #tpu.memory_space<vmem>>, vector<1x1x128xf32>
    %875 = vector.shape_cast %874 : vector<1x1x128xf32> to vector<1x128xf32>
    %876 = vector.broadcast %875 : vector<1x128xf32> to vector<8x128xf32>
    %877 = arith.mulf %873, %876 : vector<8x128xf32>
    %878 = arith.addf %871, %877 : vector<8x128xf32>
    %879 = vector.extract_strided_slice %824 {offsets = [64, 0], sizes = [8, 128], strides = [1, 1]} : vector<72x128xf32> to vector<8x128xf32>
    %c123_i32_445 = arith.constant 123 : i32
    %880 = tpu.dynamic_rotate %879 by %c123_i32_445 dim 1 : vector<8x128xf32>, i32 -> vector<8x128xf32>
    %c8_446 = arith.constant 8 : index
    %c0_447 = arith.constant 0 : index
    %c0_448 = arith.constant 0 : index
    %881 = vector.load %arg10[%c8_446, %c0_447, %c0_448] : memref<9x1x128xf32, #tpu.memory_space<vmem>>, vector<1x1x128xf32>
    %882 = vector.shape_cast %881 : vector<1x1x128xf32> to vector<1x128xf32>
    %883 = vector.broadcast %882 : vector<1x128xf32> to vector<8x128xf32>
    %884 = arith.mulf %880, %883 : vector<8x128xf32>
    %885 = arith.addf %878, %884 : vector<8x128xf32>
    %886 = vector.broadcast %805 : vector<8x1xf32> to vector<8x128xf32>
    %887 = arith.mulf %885, %886 : vector<8x128xf32>
    %888 = vector.broadcast %806 : vector<8x1xf32> to vector<8x128xf32>
    %889 = arith.addf %887, %888 : vector<8x128xf32>
    %cst_449 = arith.constant 0.000000e+00 : f32
    %890 = vector.broadcast %cst_449 : f32 to vector<8x128xf32>
    %891 = arith.maximumf %889, %890 : vector<8x128xf32>
    %c6_450 = arith.constant 6 : index
    %c0_451 = arith.constant 0 : index
    %c0_452 = arith.constant 0 : index
    %892 = vector.load %arg5[%c6_450, %c0_451, %c0_452] : memref<9x16x8xf32, #tpu.memory_space<vmem>>, vector<1x16x8xf32>
    %893 = vector.shape_cast %892 : vector<1x16x8xf32> to vector<16x8xf32>
    %cst_453 = arith.constant dense<0.000000e+00> : vector<16x128xf32>
    %894 = tpu.matmul %893, %891, %cst_453 {dimension_numbers = #tpu.dot_dimension_numbers<[1], [0], [0], [1], [0, 0, 1, 1], [], []>} : vector<16x8xf32>, vector<8x128xf32>, vector<16x128xf32> -> vector<16x128xf32>
    %895 = arith.addf %894, %798 : vector<16x128xf32>
    %c0_454 = arith.constant 0 : index
    %c0_455 = arith.constant 0 : index
    %896 = vector.load %arg13[%c0_454, %c0_455] : memref<128x128xf32, #tpu.memory_space<vmem>>, vector<128x128xf32>
    %cst_456 = arith.constant dense<0.000000e+00> : vector<16x128xf32>
    %897 = tpu.matmul %895, %896, %cst_456 {dimension_numbers = #tpu.dot_dimension_numbers<[1], [0], [0], [1], [0, 0, 1, 1], [], []>} : vector<16x128xf32>, vector<128x128xf32>, vector<16x128xf32> -> vector<16x128xf32>
    %898 = arith.addf %897, %496 : vector<16x128xf32>
    %899 = arith.addf %898, %593 : vector<16x128xf32>
    %c7_457 = arith.constant 7 : index
    %c0_458 = arith.constant 0 : index
    %c0_459 = arith.constant 0 : index
    %900 = vector.load %arg2[%c7_457, %c0_458, %c0_459] : memref<9x64x1xf32, #tpu.memory_space<vmem>>, vector<1x64x1xf32>
    %901 = vector.shape_cast %900 : vector<1x64x1xf32> to vector<64x1xf32>
    %902 = vector.extract_strided_slice %901 {offsets = [0, 0], sizes = [16, 1], strides = [1, 1]} : vector<64x1xf32> to vector<16x1xf32>
    %903 = vector.extract_strided_slice %901 {offsets = [16, 0], sizes = [16, 1], strides = [1, 1]} : vector<64x1xf32> to vector<16x1xf32>
    %904 = vector.extract_strided_slice %901 {offsets = [32, 0], sizes = [8, 1], strides = [1, 1]} : vector<64x1xf32> to vector<8x1xf32>
    %905 = vector.extract_strided_slice %901 {offsets = [40, 0], sizes = [8, 1], strides = [1, 1]} : vector<64x1xf32> to vector<8x1xf32>
    %906 = vector.extract_strided_slice %901 {offsets = [48, 0], sizes = [8, 1], strides = [1, 1]} : vector<64x1xf32> to vector<8x1xf32>
    %907 = vector.extract_strided_slice %901 {offsets = [56, 0], sizes = [8, 1], strides = [1, 1]} : vector<64x1xf32> to vector<8x1xf32>
    %908 = vector.broadcast %902 : vector<16x1xf32> to vector<16x128xf32>
    %909 = arith.mulf %899, %908 : vector<16x128xf32>
    %910 = vector.broadcast %903 : vector<16x1xf32> to vector<16x128xf32>
    %911 = arith.addf %909, %910 : vector<16x128xf32>
    %cst_460 = arith.constant 0.000000e+00 : f32
    %912 = vector.broadcast %cst_460 : f32 to vector<16x128xf32>
    %913 = arith.maximumf %911, %912 : vector<16x128xf32>
    %c7_461 = arith.constant 7 : index
    %c0_462 = arith.constant 0 : index
    %c0_463 = arith.constant 0 : index
    %914 = vector.load %arg3[%c7_461, %c0_462, %c0_463] : memref<9x8x16xf32, #tpu.memory_space<vmem>>, vector<1x8x16xf32>
    %915 = vector.shape_cast %914 : vector<1x8x16xf32> to vector<8x16xf32>
    %cst_464 = arith.constant dense<0.000000e+00> : vector<8x128xf32>
    %916 = tpu.matmul %915, %913, %cst_464 {dimension_numbers = #tpu.dot_dimension_numbers<[1], [0], [0], [1], [0, 0, 1, 1], [], []>} : vector<8x16xf32>, vector<16x128xf32>, vector<8x128xf32> -> vector<8x128xf32>
    %917 = vector.broadcast %904 : vector<8x1xf32> to vector<8x128xf32>
    %918 = arith.mulf %916, %917 : vector<8x128xf32>
    %919 = vector.broadcast %905 : vector<8x1xf32> to vector<8x128xf32>
    %920 = arith.addf %918, %919 : vector<8x128xf32>
    %cst_465 = arith.constant 0.000000e+00 : f32
    %921 = vector.broadcast %cst_465 : f32 to vector<8x128xf32>
    %922 = arith.maximumf %920, %921 : vector<8x128xf32>
    %c7_466 = arith.constant 7 : index
    %c0_467 = arith.constant 0 : index
    %c0_468 = arith.constant 0 : index
    %923 = vector.load %arg4[%c7_466, %c0_467, %c0_468] : memref<9x72x8xf32, #tpu.memory_space<vmem>>, vector<1x72x8xf32>
    %924 = vector.shape_cast %923 : vector<1x72x8xf32> to vector<72x8xf32>
    %cst_469 = arith.constant dense<0.000000e+00> : vector<72x128xf32>
    %925 = tpu.matmul %924, %922, %cst_469 {dimension_numbers = #tpu.dot_dimension_numbers<[1], [0], [0], [1], [0, 0, 1, 1], [], []>} : vector<72x8xf32>, vector<8x128xf32>, vector<72x128xf32> -> vector<72x128xf32>
    %926 = vector.extract_strided_slice %925 {offsets = [0, 0], sizes = [8, 128], strides = [1, 1]} : vector<72x128xf32> to vector<8x128xf32>
    %c9_i32_470 = arith.constant 9 : i32
    %927 = tpu.dynamic_rotate %926 by %c9_i32_470 dim 1 : vector<8x128xf32>, i32 -> vector<8x128xf32>
    %c0_471 = arith.constant 0 : index
    %c0_472 = arith.constant 0 : index
    %c0_473 = arith.constant 0 : index
    %928 = vector.load %arg9[%c0_471, %c0_472, %c0_473] : memref<9x1x128xf32, #tpu.memory_space<vmem>>, vector<1x1x128xf32>
    %929 = vector.shape_cast %928 : vector<1x1x128xf32> to vector<1x128xf32>
    %930 = vector.broadcast %929 : vector<1x128xf32> to vector<8x128xf32>
    %931 = arith.mulf %927, %930 : vector<8x128xf32>
    %932 = vector.extract_strided_slice %925 {offsets = [8, 0], sizes = [8, 128], strides = [1, 1]} : vector<72x128xf32> to vector<8x128xf32>
    %c8_i32_474 = arith.constant 8 : i32
    %933 = tpu.dynamic_rotate %932 by %c8_i32_474 dim 1 : vector<8x128xf32>, i32 -> vector<8x128xf32>
    %c1_475 = arith.constant 1 : index
    %c0_476 = arith.constant 0 : index
    %c0_477 = arith.constant 0 : index
    %934 = vector.load %arg9[%c1_475, %c0_476, %c0_477] : memref<9x1x128xf32, #tpu.memory_space<vmem>>, vector<1x1x128xf32>
    %935 = vector.shape_cast %934 : vector<1x1x128xf32> to vector<1x128xf32>
    %936 = vector.broadcast %935 : vector<1x128xf32> to vector<8x128xf32>
    %937 = arith.mulf %933, %936 : vector<8x128xf32>
    %938 = arith.addf %931, %937 : vector<8x128xf32>
    %939 = vector.extract_strided_slice %925 {offsets = [16, 0], sizes = [8, 128], strides = [1, 1]} : vector<72x128xf32> to vector<8x128xf32>
    %c7_i32_478 = arith.constant 7 : i32
    %940 = tpu.dynamic_rotate %939 by %c7_i32_478 dim 1 : vector<8x128xf32>, i32 -> vector<8x128xf32>
    %c2_479 = arith.constant 2 : index
    %c0_480 = arith.constant 0 : index
    %c0_481 = arith.constant 0 : index
    %941 = vector.load %arg9[%c2_479, %c0_480, %c0_481] : memref<9x1x128xf32, #tpu.memory_space<vmem>>, vector<1x1x128xf32>
    %942 = vector.shape_cast %941 : vector<1x1x128xf32> to vector<1x128xf32>
    %943 = vector.broadcast %942 : vector<1x128xf32> to vector<8x128xf32>
    %944 = arith.mulf %940, %943 : vector<8x128xf32>
    %945 = arith.addf %938, %944 : vector<8x128xf32>
    %946 = vector.extract_strided_slice %925 {offsets = [24, 0], sizes = [8, 128], strides = [1, 1]} : vector<72x128xf32> to vector<8x128xf32>
    %c1_i32_482 = arith.constant 1 : i32
    %947 = tpu.dynamic_rotate %946 by %c1_i32_482 dim 1 : vector<8x128xf32>, i32 -> vector<8x128xf32>
    %c3_483 = arith.constant 3 : index
    %c0_484 = arith.constant 0 : index
    %c0_485 = arith.constant 0 : index
    %948 = vector.load %arg9[%c3_483, %c0_484, %c0_485] : memref<9x1x128xf32, #tpu.memory_space<vmem>>, vector<1x1x128xf32>
    %949 = vector.shape_cast %948 : vector<1x1x128xf32> to vector<1x128xf32>
    %950 = vector.broadcast %949 : vector<1x128xf32> to vector<8x128xf32>
    %951 = arith.mulf %947, %950 : vector<8x128xf32>
    %952 = arith.addf %945, %951 : vector<8x128xf32>
    %953 = vector.extract_strided_slice %925 {offsets = [32, 0], sizes = [8, 128], strides = [1, 1]} : vector<72x128xf32> to vector<8x128xf32>
    %c4_486 = arith.constant 4 : index
    %c0_487 = arith.constant 0 : index
    %c0_488 = arith.constant 0 : index
    %954 = vector.load %arg9[%c4_486, %c0_487, %c0_488] : memref<9x1x128xf32, #tpu.memory_space<vmem>>, vector<1x1x128xf32>
    %955 = vector.shape_cast %954 : vector<1x1x128xf32> to vector<1x128xf32>
    %956 = vector.broadcast %955 : vector<1x128xf32> to vector<8x128xf32>
    %957 = arith.mulf %953, %956 : vector<8x128xf32>
    %958 = arith.addf %952, %957 : vector<8x128xf32>
    %959 = vector.extract_strided_slice %925 {offsets = [40, 0], sizes = [8, 128], strides = [1, 1]} : vector<72x128xf32> to vector<8x128xf32>
    %c127_i32_489 = arith.constant 127 : i32
    %960 = tpu.dynamic_rotate %959 by %c127_i32_489 dim 1 : vector<8x128xf32>, i32 -> vector<8x128xf32>
    %c5_490 = arith.constant 5 : index
    %c0_491 = arith.constant 0 : index
    %c0_492 = arith.constant 0 : index
    %961 = vector.load %arg9[%c5_490, %c0_491, %c0_492] : memref<9x1x128xf32, #tpu.memory_space<vmem>>, vector<1x1x128xf32>
    %962 = vector.shape_cast %961 : vector<1x1x128xf32> to vector<1x128xf32>
    %963 = vector.broadcast %962 : vector<1x128xf32> to vector<8x128xf32>
    %964 = arith.mulf %960, %963 : vector<8x128xf32>
    %965 = arith.addf %958, %964 : vector<8x128xf32>
    %966 = vector.extract_strided_slice %925 {offsets = [48, 0], sizes = [8, 128], strides = [1, 1]} : vector<72x128xf32> to vector<8x128xf32>
    %c121_i32_493 = arith.constant 121 : i32
    %967 = tpu.dynamic_rotate %966 by %c121_i32_493 dim 1 : vector<8x128xf32>, i32 -> vector<8x128xf32>
    %c6_494 = arith.constant 6 : index
    %c0_495 = arith.constant 0 : index
    %c0_496 = arith.constant 0 : index
    %968 = vector.load %arg9[%c6_494, %c0_495, %c0_496] : memref<9x1x128xf32, #tpu.memory_space<vmem>>, vector<1x1x128xf32>
    %969 = vector.shape_cast %968 : vector<1x1x128xf32> to vector<1x128xf32>
    %970 = vector.broadcast %969 : vector<1x128xf32> to vector<8x128xf32>
    %971 = arith.mulf %967, %970 : vector<8x128xf32>
    %972 = arith.addf %965, %971 : vector<8x128xf32>
    %973 = vector.extract_strided_slice %925 {offsets = [56, 0], sizes = [8, 128], strides = [1, 1]} : vector<72x128xf32> to vector<8x128xf32>
    %c120_i32_497 = arith.constant 120 : i32
    %974 = tpu.dynamic_rotate %973 by %c120_i32_497 dim 1 : vector<8x128xf32>, i32 -> vector<8x128xf32>
    %c7_498 = arith.constant 7 : index
    %c0_499 = arith.constant 0 : index
    %c0_500 = arith.constant 0 : index
    %975 = vector.load %arg9[%c7_498, %c0_499, %c0_500] : memref<9x1x128xf32, #tpu.memory_space<vmem>>, vector<1x1x128xf32>
    %976 = vector.shape_cast %975 : vector<1x1x128xf32> to vector<1x128xf32>
    %977 = vector.broadcast %976 : vector<1x128xf32> to vector<8x128xf32>
    %978 = arith.mulf %974, %977 : vector<8x128xf32>
    %979 = arith.addf %972, %978 : vector<8x128xf32>
    %980 = vector.extract_strided_slice %925 {offsets = [64, 0], sizes = [8, 128], strides = [1, 1]} : vector<72x128xf32> to vector<8x128xf32>
    %c119_i32_501 = arith.constant 119 : i32
    %981 = tpu.dynamic_rotate %980 by %c119_i32_501 dim 1 : vector<8x128xf32>, i32 -> vector<8x128xf32>
    %c8_502 = arith.constant 8 : index
    %c0_503 = arith.constant 0 : index
    %c0_504 = arith.constant 0 : index
    %982 = vector.load %arg9[%c8_502, %c0_503, %c0_504] : memref<9x1x128xf32, #tpu.memory_space<vmem>>, vector<1x1x128xf32>
    %983 = vector.shape_cast %982 : vector<1x1x128xf32> to vector<1x128xf32>
    %984 = vector.broadcast %983 : vector<1x128xf32> to vector<8x128xf32>
    %985 = arith.mulf %981, %984 : vector<8x128xf32>
    %986 = arith.addf %979, %985 : vector<8x128xf32>
    %987 = vector.broadcast %906 : vector<8x1xf32> to vector<8x128xf32>
    %988 = arith.mulf %986, %987 : vector<8x128xf32>
    %989 = vector.broadcast %907 : vector<8x1xf32> to vector<8x128xf32>
    %990 = arith.addf %988, %989 : vector<8x128xf32>
    %cst_505 = arith.constant 0.000000e+00 : f32
    %991 = vector.broadcast %cst_505 : f32 to vector<8x128xf32>
    %992 = arith.maximumf %990, %991 : vector<8x128xf32>
    %c7_506 = arith.constant 7 : index
    %c0_507 = arith.constant 0 : index
    %c0_508 = arith.constant 0 : index
    %993 = vector.load %arg5[%c7_506, %c0_507, %c0_508] : memref<9x16x8xf32, #tpu.memory_space<vmem>>, vector<1x16x8xf32>
    %994 = vector.shape_cast %993 : vector<1x16x8xf32> to vector<16x8xf32>
    %cst_509 = arith.constant dense<0.000000e+00> : vector<16x128xf32>
    %995 = tpu.matmul %994, %992, %cst_509 {dimension_numbers = #tpu.dot_dimension_numbers<[1], [0], [0], [1], [0, 0, 1, 1], [], []>} : vector<16x8xf32>, vector<8x128xf32>, vector<16x128xf32> -> vector<16x128xf32>
    %996 = arith.addf %995, %899 : vector<16x128xf32>
    %c0_510 = arith.constant 0 : index
    %c0_511 = arith.constant 0 : index
    %997 = vector.load %arg14[%c0_510, %c0_511] : memref<128x256xf32, #tpu.memory_space<vmem>>, vector<128x256xf32>
    %cst_512 = arith.constant dense<0.000000e+00> : vector<16x256xf32>
    %998 = tpu.matmul %996, %997, %cst_512 {dimension_numbers = #tpu.dot_dimension_numbers<[1], [0], [0], [1], [0, 0, 1, 1], [], []>} : vector<16x128xf32>, vector<128x256xf32>, vector<16x256xf32> -> vector<16x256xf32>
    %999 = arith.addf %998, %291 : vector<16x256xf32>
    %c0_513 = arith.constant 0 : index
    %c0_514 = arith.constant 0 : index
    %1000 = vector.load %arg6[%c0_513, %c0_514] : memref<64x1xf32, #tpu.memory_space<vmem>>, vector<64x1xf32>
    %1001 = vector.extract_strided_slice %1000 {offsets = [0, 0], sizes = [16, 1], strides = [1, 1]} : vector<64x1xf32> to vector<16x1xf32>
    %1002 = vector.broadcast %1001 : vector<16x1xf32> to vector<16x256xf32>
    %1003 = arith.mulf %999, %1002 : vector<16x256xf32>
    %1004 = vector.extract_strided_slice %1000 {offsets = [16, 0], sizes = [16, 1], strides = [1, 1]} : vector<64x1xf32> to vector<16x1xf32>
    %1005 = vector.broadcast %1004 : vector<16x1xf32> to vector<16x256xf32>
    %1006 = arith.addf %1003, %1005 : vector<16x256xf32>
    %cst_515 = arith.constant 0.000000e+00 : f32
    %1007 = vector.broadcast %cst_515 : f32 to vector<16x256xf32>
    %1008 = arith.maximumf %1006, %1007 : vector<16x256xf32>
    %c0_516 = arith.constant 0 : index
    %c0_517 = arith.constant 0 : index
    %c0_518 = arith.constant 0 : index
    %1009 = vector.load %arg7[%c0_516, %c0_517, %c0_518] : memref<2x16x16xf32, #tpu.memory_space<vmem>>, vector<1x16x16xf32>
    %1010 = vector.shape_cast %1009 : vector<1x16x16xf32> to vector<16x16xf32>
    %cst_519 = arith.constant dense<0.000000e+00> : vector<16x256xf32>
    %1011 = tpu.matmul %1010, %1008, %cst_519 {dimension_numbers = #tpu.dot_dimension_numbers<[1], [0], [0], [1], [0, 0, 1, 1], [], []>} : vector<16x16xf32>, vector<16x256xf32>, vector<16x256xf32> -> vector<16x256xf32>
    %1012 = vector.extract_strided_slice %1000 {offsets = [32, 0], sizes = [16, 1], strides = [1, 1]} : vector<64x1xf32> to vector<16x1xf32>
    %1013 = vector.broadcast %1012 : vector<16x1xf32> to vector<16x256xf32>
    %1014 = arith.mulf %1011, %1013 : vector<16x256xf32>
    %1015 = vector.extract_strided_slice %1000 {offsets = [48, 0], sizes = [16, 1], strides = [1, 1]} : vector<64x1xf32> to vector<16x1xf32>
    %1016 = vector.broadcast %1015 : vector<16x1xf32> to vector<16x256xf32>
    %1017 = arith.addf %1014, %1016 : vector<16x256xf32>
    %cst_520 = arith.constant 0.000000e+00 : f32
    %1018 = vector.broadcast %cst_520 : f32 to vector<16x256xf32>
    %1019 = arith.maximumf %1017, %1018 : vector<16x256xf32>
    %c1_521 = arith.constant 1 : index
    %c0_522 = arith.constant 0 : index
    %c0_523 = arith.constant 0 : index
    %1020 = vector.load %arg7[%c1_521, %c0_522, %c0_523] : memref<2x16x16xf32, #tpu.memory_space<vmem>>, vector<1x16x16xf32>
    %1021 = vector.shape_cast %1020 : vector<1x16x16xf32> to vector<16x16xf32>
    %cst_524 = arith.constant dense<0.000000e+00> : vector<16x256xf32>
    %1022 = tpu.matmul %1021, %1019, %cst_524 {dimension_numbers = #tpu.dot_dimension_numbers<[1], [0], [0], [1], [0, 0, 1, 1], [], []>} : vector<16x16xf32>, vector<16x256xf32>, vector<16x256xf32> -> vector<16x256xf32>
    %cst_525 = arith.constant 0.000000e+00 : f32
    %1023 = vector.broadcast %cst_525 : f32 to vector<16x256xf32>
    %1024 = arith.subf %1023, %1022 : vector<16x256xf32>
    %cst_526 = arith.constant 8.000000e+01 : f32
    %1025 = vector.broadcast %cst_526 : f32 to vector<16x256xf32>
    %1026 = arith.minimumf %1024, %1025 : vector<16x256xf32>
    %1027 = math.exp %1026 : vector<16x256xf32>
    %cst_527 = arith.constant 1.000000e+00 : f32
    %1028 = vector.broadcast %cst_527 : f32 to vector<16x256xf32>
    %1029 = arith.addf %1028, %1027 : vector<16x256xf32>
    %1030 = tpu.reciprocal %1029 {approx = true} : vector<16x256xf32> -> vector<16x256xf32>
    %cst_528 = arith.constant 1.000000e+00 : f32
    %1031 = vector.broadcast %cst_528 : f32 to vector<16x256xf32>
    %1032 = arith.addf %1031, %1030 : vector<16x256xf32>
    %1033 = arith.mulf %1032, %291 : vector<16x256xf32>
    %c8_529 = arith.constant 8 : index
    %c0_530 = arith.constant 0 : index
    %c0_531 = arith.constant 0 : index
    %1034 = vector.load %arg2[%c8_529, %c0_530, %c0_531] : memref<9x64x1xf32, #tpu.memory_space<vmem>>, vector<1x64x1xf32>
    %1035 = vector.shape_cast %1034 : vector<1x64x1xf32> to vector<64x1xf32>
    %1036 = vector.extract_strided_slice %1035 {offsets = [0, 0], sizes = [16, 1], strides = [1, 1]} : vector<64x1xf32> to vector<16x1xf32>
    %1037 = vector.extract_strided_slice %1035 {offsets = [16, 0], sizes = [16, 1], strides = [1, 1]} : vector<64x1xf32> to vector<16x1xf32>
    %1038 = vector.extract_strided_slice %1035 {offsets = [32, 0], sizes = [8, 1], strides = [1, 1]} : vector<64x1xf32> to vector<8x1xf32>
    %1039 = vector.extract_strided_slice %1035 {offsets = [40, 0], sizes = [8, 1], strides = [1, 1]} : vector<64x1xf32> to vector<8x1xf32>
    %1040 = vector.extract_strided_slice %1035 {offsets = [48, 0], sizes = [8, 1], strides = [1, 1]} : vector<64x1xf32> to vector<8x1xf32>
    %1041 = vector.extract_strided_slice %1035 {offsets = [56, 0], sizes = [8, 1], strides = [1, 1]} : vector<64x1xf32> to vector<8x1xf32>
    %1042 = vector.broadcast %1036 : vector<16x1xf32> to vector<16x256xf32>
    %1043 = arith.mulf %1033, %1042 : vector<16x256xf32>
    %1044 = vector.broadcast %1037 : vector<16x1xf32> to vector<16x256xf32>
    %1045 = arith.addf %1043, %1044 : vector<16x256xf32>
    %cst_532 = arith.constant 0.000000e+00 : f32
    %1046 = vector.broadcast %cst_532 : f32 to vector<16x256xf32>
    %1047 = arith.maximumf %1045, %1046 : vector<16x256xf32>
    %c8_533 = arith.constant 8 : index
    %c0_534 = arith.constant 0 : index
    %c0_535 = arith.constant 0 : index
    %1048 = vector.load %arg3[%c8_533, %c0_534, %c0_535] : memref<9x8x16xf32, #tpu.memory_space<vmem>>, vector<1x8x16xf32>
    %1049 = vector.shape_cast %1048 : vector<1x8x16xf32> to vector<8x16xf32>
    %cst_536 = arith.constant dense<0.000000e+00> : vector<8x256xf32>
    %1050 = tpu.matmul %1049, %1047, %cst_536 {dimension_numbers = #tpu.dot_dimension_numbers<[1], [0], [0], [1], [0, 0, 1, 1], [], []>} : vector<8x16xf32>, vector<16x256xf32>, vector<8x256xf32> -> vector<8x256xf32>
    %1051 = vector.broadcast %1038 : vector<8x1xf32> to vector<8x256xf32>
    %1052 = arith.mulf %1050, %1051 : vector<8x256xf32>
    %1053 = vector.broadcast %1039 : vector<8x1xf32> to vector<8x256xf32>
    %1054 = arith.addf %1052, %1053 : vector<8x256xf32>
    %cst_537 = arith.constant 0.000000e+00 : f32
    %1055 = vector.broadcast %cst_537 : f32 to vector<8x256xf32>
    %1056 = arith.maximumf %1054, %1055 : vector<8x256xf32>
    %c8_538 = arith.constant 8 : index
    %c0_539 = arith.constant 0 : index
    %c0_540 = arith.constant 0 : index
    %1057 = vector.load %arg4[%c8_538, %c0_539, %c0_540] : memref<9x72x8xf32, #tpu.memory_space<vmem>>, vector<1x72x8xf32>
    %1058 = vector.shape_cast %1057 : vector<1x72x8xf32> to vector<72x8xf32>
    %cst_541 = arith.constant dense<0.000000e+00> : vector<72x256xf32>
    %1059 = tpu.matmul %1058, %1056, %cst_541 {dimension_numbers = #tpu.dot_dimension_numbers<[1], [0], [0], [1], [0, 0, 1, 1], [], []>} : vector<72x8xf32>, vector<8x256xf32>, vector<72x256xf32> -> vector<72x256xf32>
    %1060 = vector.extract_strided_slice %1059 {offsets = [0, 0], sizes = [8, 256], strides = [1, 1]} : vector<72x256xf32> to vector<8x256xf32>
    %c16_i32_542 = arith.constant 16 : i32
    %1061 = tpu.dynamic_rotate %1060 by %c16_i32_542 dim 1 : vector<8x256xf32>, i32 -> vector<8x256xf32>
    %c0_543 = arith.constant 0 : index
    %c0_544 = arith.constant 0 : index
    %c0_545 = arith.constant 0 : index
    %1062 = vector.load %arg8[%c0_543, %c0_544, %c0_545] : memref<9x1x256xf32, #tpu.memory_space<vmem>>, vector<1x1x256xf32>
    %1063 = vector.shape_cast %1062 : vector<1x1x256xf32> to vector<1x256xf32>
    %1064 = vector.broadcast %1063 : vector<1x256xf32> to vector<8x256xf32>
    %1065 = arith.mulf %1061, %1064 : vector<8x256xf32>
    %1066 = vector.extract_strided_slice %1059 {offsets = [8, 0], sizes = [8, 256], strides = [1, 1]} : vector<72x256xf32> to vector<8x256xf32>
    %c15_i32_546 = arith.constant 15 : i32
    %1067 = tpu.dynamic_rotate %1066 by %c15_i32_546 dim 1 : vector<8x256xf32>, i32 -> vector<8x256xf32>
    %c1_547 = arith.constant 1 : index
    %c0_548 = arith.constant 0 : index
    %c0_549 = arith.constant 0 : index
    %1068 = vector.load %arg8[%c1_547, %c0_548, %c0_549] : memref<9x1x256xf32, #tpu.memory_space<vmem>>, vector<1x1x256xf32>
    %1069 = vector.shape_cast %1068 : vector<1x1x256xf32> to vector<1x256xf32>
    %1070 = vector.broadcast %1069 : vector<1x256xf32> to vector<8x256xf32>
    %1071 = arith.mulf %1067, %1070 : vector<8x256xf32>
    %1072 = arith.addf %1065, %1071 : vector<8x256xf32>
    %1073 = vector.extract_strided_slice %1059 {offsets = [16, 0], sizes = [8, 256], strides = [1, 1]} : vector<72x256xf32> to vector<8x256xf32>
    %c14_i32_550 = arith.constant 14 : i32
    %1074 = tpu.dynamic_rotate %1073 by %c14_i32_550 dim 1 : vector<8x256xf32>, i32 -> vector<8x256xf32>
    %c2_551 = arith.constant 2 : index
    %c0_552 = arith.constant 0 : index
    %c0_553 = arith.constant 0 : index
    %1075 = vector.load %arg8[%c2_551, %c0_552, %c0_553] : memref<9x1x256xf32, #tpu.memory_space<vmem>>, vector<1x1x256xf32>
    %1076 = vector.shape_cast %1075 : vector<1x1x256xf32> to vector<1x256xf32>
    %1077 = vector.broadcast %1076 : vector<1x256xf32> to vector<8x256xf32>
    %1078 = arith.mulf %1074, %1077 : vector<8x256xf32>
    %1079 = arith.addf %1072, %1078 : vector<8x256xf32>
    %1080 = vector.extract_strided_slice %1059 {offsets = [24, 0], sizes = [8, 256], strides = [1, 1]} : vector<72x256xf32> to vector<8x256xf32>
    %c1_i32_554 = arith.constant 1 : i32
    %1081 = tpu.dynamic_rotate %1080 by %c1_i32_554 dim 1 : vector<8x256xf32>, i32 -> vector<8x256xf32>
    %c3_555 = arith.constant 3 : index
    %c0_556 = arith.constant 0 : index
    %c0_557 = arith.constant 0 : index
    %1082 = vector.load %arg8[%c3_555, %c0_556, %c0_557] : memref<9x1x256xf32, #tpu.memory_space<vmem>>, vector<1x1x256xf32>
    %1083 = vector.shape_cast %1082 : vector<1x1x256xf32> to vector<1x256xf32>
    %1084 = vector.broadcast %1083 : vector<1x256xf32> to vector<8x256xf32>
    %1085 = arith.mulf %1081, %1084 : vector<8x256xf32>
    %1086 = arith.addf %1079, %1085 : vector<8x256xf32>
    %1087 = vector.extract_strided_slice %1059 {offsets = [32, 0], sizes = [8, 256], strides = [1, 1]} : vector<72x256xf32> to vector<8x256xf32>
    %c4_558 = arith.constant 4 : index
    %c0_559 = arith.constant 0 : index
    %c0_560 = arith.constant 0 : index
    %1088 = vector.load %arg8[%c4_558, %c0_559, %c0_560] : memref<9x1x256xf32, #tpu.memory_space<vmem>>, vector<1x1x256xf32>
    %1089 = vector.shape_cast %1088 : vector<1x1x256xf32> to vector<1x256xf32>
    %1090 = vector.broadcast %1089 : vector<1x256xf32> to vector<8x256xf32>
    %1091 = arith.mulf %1087, %1090 : vector<8x256xf32>
    %1092 = arith.addf %1086, %1091 : vector<8x256xf32>
    %1093 = vector.extract_strided_slice %1059 {offsets = [40, 0], sizes = [8, 256], strides = [1, 1]} : vector<72x256xf32> to vector<8x256xf32>
    %c255_i32_561 = arith.constant 255 : i32
    %1094 = tpu.dynamic_rotate %1093 by %c255_i32_561 dim 1 : vector<8x256xf32>, i32 -> vector<8x256xf32>
    %c5_562 = arith.constant 5 : index
    %c0_563 = arith.constant 0 : index
    %c0_564 = arith.constant 0 : index
    %1095 = vector.load %arg8[%c5_562, %c0_563, %c0_564] : memref<9x1x256xf32, #tpu.memory_space<vmem>>, vector<1x1x256xf32>
    %1096 = vector.shape_cast %1095 : vector<1x1x256xf32> to vector<1x256xf32>
    %1097 = vector.broadcast %1096 : vector<1x256xf32> to vector<8x256xf32>
    %1098 = arith.mulf %1094, %1097 : vector<8x256xf32>
    %1099 = arith.addf %1092, %1098 : vector<8x256xf32>
    %1100 = vector.extract_strided_slice %1059 {offsets = [48, 0], sizes = [8, 256], strides = [1, 1]} : vector<72x256xf32> to vector<8x256xf32>
    %c242_i32_565 = arith.constant 242 : i32
    %1101 = tpu.dynamic_rotate %1100 by %c242_i32_565 dim 1 : vector<8x256xf32>, i32 -> vector<8x256xf32>
    %c6_566 = arith.constant 6 : index
    %c0_567 = arith.constant 0 : index
    %c0_568 = arith.constant 0 : index
    %1102 = vector.load %arg8[%c6_566, %c0_567, %c0_568] : memref<9x1x256xf32, #tpu.memory_space<vmem>>, vector<1x1x256xf32>
    %1103 = vector.shape_cast %1102 : vector<1x1x256xf32> to vector<1x256xf32>
    %1104 = vector.broadcast %1103 : vector<1x256xf32> to vector<8x256xf32>
    %1105 = arith.mulf %1101, %1104 : vector<8x256xf32>
    %1106 = arith.addf %1099, %1105 : vector<8x256xf32>
    %1107 = vector.extract_strided_slice %1059 {offsets = [56, 0], sizes = [8, 256], strides = [1, 1]} : vector<72x256xf32> to vector<8x256xf32>
    %c241_i32_569 = arith.constant 241 : i32
    %1108 = tpu.dynamic_rotate %1107 by %c241_i32_569 dim 1 : vector<8x256xf32>, i32 -> vector<8x256xf32>
    %c7_570 = arith.constant 7 : index
    %c0_571 = arith.constant 0 : index
    %c0_572 = arith.constant 0 : index
    %1109 = vector.load %arg8[%c7_570, %c0_571, %c0_572] : memref<9x1x256xf32, #tpu.memory_space<vmem>>, vector<1x1x256xf32>
    %1110 = vector.shape_cast %1109 : vector<1x1x256xf32> to vector<1x256xf32>
    %1111 = vector.broadcast %1110 : vector<1x256xf32> to vector<8x256xf32>
    %1112 = arith.mulf %1108, %1111 : vector<8x256xf32>
    %1113 = arith.addf %1106, %1112 : vector<8x256xf32>
    %1114 = vector.extract_strided_slice %1059 {offsets = [64, 0], sizes = [8, 256], strides = [1, 1]} : vector<72x256xf32> to vector<8x256xf32>
    %c240_i32_573 = arith.constant 240 : i32
    %1115 = tpu.dynamic_rotate %1114 by %c240_i32_573 dim 1 : vector<8x256xf32>, i32 -> vector<8x256xf32>
    %c8_574 = arith.constant 8 : index
    %c0_575 = arith.constant 0 : index
    %c0_576 = arith.constant 0 : index
    %1116 = vector.load %arg8[%c8_574, %c0_575, %c0_576] : memref<9x1x256xf32, #tpu.memory_space<vmem>>, vector<1x1x256xf32>
    %1117 = vector.shape_cast %1116 : vector<1x1x256xf32> to vector<1x256xf32>
    %1118 = vector.broadcast %1117 : vector<1x256xf32> to vector<8x256xf32>
    %1119 = arith.mulf %1115, %1118 : vector<8x256xf32>
    %1120 = arith.addf %1113, %1119 : vector<8x256xf32>
    %1121 = vector.broadcast %1040 : vector<8x1xf32> to vector<8x256xf32>
    %1122 = arith.mulf %1120, %1121 : vector<8x256xf32>
    %1123 = vector.broadcast %1041 : vector<8x1xf32> to vector<8x256xf32>
    %1124 = arith.addf %1122, %1123 : vector<8x256xf32>
    %cst_577 = arith.constant 0.000000e+00 : f32
    %1125 = vector.broadcast %cst_577 : f32 to vector<8x256xf32>
    %1126 = arith.maximumf %1124, %1125 : vector<8x256xf32>
    %c8_578 = arith.constant 8 : index
    %c0_579 = arith.constant 0 : index
    %c0_580 = arith.constant 0 : index
    %1127 = vector.load %arg5[%c8_578, %c0_579, %c0_580] : memref<9x16x8xf32, #tpu.memory_space<vmem>>, vector<1x16x8xf32>
    %1128 = vector.shape_cast %1127 : vector<1x16x8xf32> to vector<16x8xf32>
    %cst_581 = arith.constant dense<0.000000e+00> : vector<16x256xf32>
    %1129 = tpu.matmul %1128, %1126, %cst_581 {dimension_numbers = #tpu.dot_dimension_numbers<[1], [0], [0], [1], [0, 0, 1, 1], [], []>} : vector<16x8xf32>, vector<8x256xf32>, vector<16x256xf32> -> vector<16x256xf32>
    %1130 = arith.addf %1129, %1033 : vector<16x256xf32>
    %c0_582 = arith.constant 0 : index
    %c0_583 = arith.constant 0 : index
    %1131 = vector.load %arg15[%c0_582, %c0_583] : memref<16x256xf32, #tpu.memory_space<vmem>>, vector<16x256xf32>
    tpu.vector_store %arg15[%c0_582, %c0_583], %1130 {strides = array<i32>} : memref<16x256xf32, #tpu.memory_space<vmem>>, vector<16x256xf32>,
    return
  }
  func.func @transform_0(%arg0: i32) -> (i32, i32) {
    %c0_i32 = arith.constant 0 : i32
    %c0_i32_0 = arith.constant 0 : i32
    return %arg0, %c0_i32 : i32, i32
  }
  func.func @transform_1(%arg0: i32) -> (i32, i32, i32) {
    %c0_i32 = arith.constant 0 : i32
    %c0_i32_0 = arith.constant 0 : i32
    %c0_i32_1 = arith.constant 0 : i32
    %c0_i32_2 = arith.constant 0 : i32
    return %c0_i32, %c0_i32_0, %c0_i32_1 : i32, i32, i32
  }
  func.func @transform_2(%arg0: i32) -> (i32, i32, i32) {
    %c0_i32 = arith.constant 0 : i32
    %c0_i32_0 = arith.constant 0 : i32
    %c0_i32_1 = arith.constant 0 : i32
    %c0_i32_2 = arith.constant 0 : i32
    return %c0_i32, %c0_i32_0, %c0_i32_1 : i32, i32, i32
  }
  func.func @transform_3(%arg0: i32) -> (i32, i32, i32) {
    %c0_i32 = arith.constant 0 : i32
    %c0_i32_0 = arith.constant 0 : i32
    %c0_i32_1 = arith.constant 0 : i32
    %c0_i32_2 = arith.constant 0 : i32
    return %c0_i32, %c0_i32_0, %c0_i32_1 : i32, i32, i32
  }
  func.func @transform_4(%arg0: i32) -> (i32, i32, i32) {
    %c0_i32 = arith.constant 0 : i32
    %c0_i32_0 = arith.constant 0 : i32
    %c0_i32_1 = arith.constant 0 : i32
    %c0_i32_2 = arith.constant 0 : i32
    return %c0_i32, %c0_i32_0, %c0_i32_1 : i32, i32, i32
  }
  func.func @transform_5(%arg0: i32) -> (i32, i32) {
    %c0_i32 = arith.constant 0 : i32
    %c0_i32_0 = arith.constant 0 : i32
    %c0_i32_1 = arith.constant 0 : i32
    return %c0_i32, %c0_i32_0 : i32, i32
  }
  func.func @transform_6(%arg0: i32) -> (i32, i32, i32) {
    %c0_i32 = arith.constant 0 : i32
    %c0_i32_0 = arith.constant 0 : i32
    %c0_i32_1 = arith.constant 0 : i32
    %c0_i32_2 = arith.constant 0 : i32
    return %c0_i32, %c0_i32_0, %c0_i32_1 : i32, i32, i32
  }
  func.func @transform_7(%arg0: i32) -> (i32, i32, i32) {
    %c0_i32 = arith.constant 0 : i32
    %c0_i32_0 = arith.constant 0 : i32
    %c0_i32_1 = arith.constant 0 : i32
    %c0_i32_2 = arith.constant 0 : i32
    return %c0_i32, %c0_i32_0, %c0_i32_1 : i32, i32, i32
  }
  func.func @transform_8(%arg0: i32) -> (i32, i32, i32) {
    %c0_i32 = arith.constant 0 : i32
    %c0_i32_0 = arith.constant 0 : i32
    %c0_i32_1 = arith.constant 0 : i32
    %c0_i32_2 = arith.constant 0 : i32
    return %c0_i32, %c0_i32_0, %c0_i32_1 : i32, i32, i32
  }
  func.func @transform_9(%arg0: i32) -> (i32, i32, i32) {
    %c0_i32 = arith.constant 0 : i32
    %c0_i32_0 = arith.constant 0 : i32
    %c0_i32_1 = arith.constant 0 : i32
    %c0_i32_2 = arith.constant 0 : i32
    return %c0_i32, %c0_i32_0, %c0_i32_1 : i32, i32, i32
  }
  func.func @transform_10(%arg0: i32) -> (i32, i32) {
    %c0_i32 = arith.constant 0 : i32
    %c0_i32_0 = arith.constant 0 : i32
    %c0_i32_1 = arith.constant 0 : i32
    return %c0_i32, %c0_i32_0 : i32, i32
  }
  func.func @transform_11(%arg0: i32) -> (i32, i32) {
    %c0_i32 = arith.constant 0 : i32
    %c0_i32_0 = arith.constant 0 : i32
    %c0_i32_1 = arith.constant 0 : i32
    return %c0_i32, %c0_i32_0 : i32, i32
  }
  func.func @transform_12(%arg0: i32) -> (i32, i32) {
    %c0_i32 = arith.constant 0 : i32
    %c0_i32_0 = arith.constant 0 : i32
    %c0_i32_1 = arith.constant 0 : i32
    return %c0_i32, %c0_i32_0 : i32, i32
  }
  func.func @transform_13(%arg0: i32) -> (i32, i32) {
    %c0_i32 = arith.constant 0 : i32
    %c0_i32_0 = arith.constant 0 : i32
    %c0_i32_1 = arith.constant 0 : i32
    return %c0_i32, %c0_i32_0 : i32, i32
  }
  func.func @transform_14(%arg0: i32) -> (i32, i32) {
    %c0_i32 = arith.constant 0 : i32
    %c0_i32_0 = arith.constant 0 : i32
    return %arg0, %c0_i32 : i32, i32
  }
}

</mosaic_0001>

<bundles_post_ra>
// kernel: attention_module_stage2.1
= control target key start
LH: loop header
LB: loop body
LE: loop exit
PB: predicated region body
PF: predicated region fallthrough
CT: control target
= control target key end

     0   :  { %s6949_s29 = smov 0   ;;  %s9372_s0 = inlined_call_operand.vmem [shape: f32[32,256], index: 0, kind: input, shape index: {}]   ;;  %s9373_s1 = inlined_call_operand.vmem [shape: f32[9,64,1], index: 1, kind: input, shape index: {}]   ;;  %s9374_s2 = inlined_call_operand.vmem [shape: f32[9,8,16], index: 2, kind: input, shape index: {}]   ;;  %s9375_s3 = inlined_call_operand.vmem [shape: f32[9,72,8], index: 3, kind: input, shape index: {}]   ;;  %s9376_s4 = inlined_call_operand.vmem [shape: f32[9,16,8], index: 4, kind: input, shape index: {}]   ;;  %s9377_s5 = inlined_call_operand.vmem [shape: f32[64,1], index: 5, kind: input, shape index: {}]   ;;  %s9378_s6 = inlined_call_operand.vmem [shape: f32[2,16,16], index: 6, kind: input, shape index: {}]   ;;  %s9379_s7 = inlined_call_operand.vmem [shape: f32[9,1,256], index: 7, kind: input, shape index: {}]   ;;  %s9380_s8 = inlined_call_operand.vmem [shape: f32[9,1,128], index: 8, kind: input, shape index: {}]   ;;  %s9381_s9 = inlined_call_operand.vmem [shape: f32[9,1,128], index: 9, kind: input, shape index: {}]   ;;  %s9382_s10 = inlined_call_operand.vmem [shape: f32[256,128], index: 10, kind: input, shape index: {}]   ;;  %s9383_s11 = inlined_call_operand.vmem [shape: f32[128,128], index: 11, kind: input, shape index: {}]   ;;  %s9384_s12 = inlined_call_operand.vmem [shape: f32[128,128], index: 12, kind: input, shape index: {}]   ;;  %s9385_s13 = inlined_call_operand.vmem [shape: f32[128,256], index: 13, kind: input, shape index: {}]   ;;  %s9386_s14 = inlined_call_operand.vmem [shape: f32[32,256], index: 14, kind: output, shape index: {}]  }
   0x1   :  { %9461 = sst [smem:[#allocation23_spill]] %s9372_s0 }
   0x2   :  { %9462 = sst [smem:[#allocation24_spill]] %s9379_s7 }
   0x3   :  { %9463 = sst [smem:[#allocation25_spill]] %s9380_s8 }
   0x4   :  { %9464 = sst [smem:[#allocation26_spill]] %s9382_s10 }
   0x5   :  { %9465 = sst [smem:[#allocation27_spill]] %s9386_s14 }
   0x6 LB: > { %9466 = sst [smem:[#allocation2_spill]] %s6848_s29  ;;  %s5848_s30 = sadd.s32 4294967295, %s6848_s29   ;;  %s6848_s29 = sphi %s6949_s29, %s24_s29  }
   0x7   : > { %p5852_p0 = scmp.ge.s32.totalorder %s6848_s29, 1  ;;  %p414_p1 = scmp.lt.s32.totalorder %s6848_s29, 3 }
   0x9   : > { %p415_p2 = pnand %p5852_p0, %p414_p1 }
   0xb   : > { %418 = sbr.rel (%p415_p2) target bundleno = 8319 (0x207f), region = 76 }
  0x12   : > { %v482_v0 = vld [vmem:[%s9373_s1 + $0x10] sm:$0xff]  ;;  %v480_v1 = vld [vmem:[%s9373_s1] sm:$0xff]  ;;  %v6850_v2 = vmov 0   ;;  %v483_v3 = vld [vmem:[%s9373_s1 + $0x18] sm:$0xff]  ;;  %v9404_v8 = vmov 0.0   ;;  %s5853_s15 = sshll.u32 %s5848_s30, 1 }
  0x13   : > { %6825 = vset.pattern.permute.xlu1 %v6850_v2  ;;  %6824 = vset.pattern.permute.xlu0 %v6850_v2  ;;  %v481_v4 = vld [vmem:[%s9373_s1 + $0x8] sm:$0xff]  ;;  %v484_v6 = vld [vmem:[%s9373_s1 + $0x20] sm:$0xff]  ;;  %v486_v7 = vld [vmem:[%s9373_s1 + $0x30] sm:$0xff]  ;;  %p463_p3 = scmp.lt.s32.totalorder %s5853_s15, 3  ;;  %s9468_s0 = sld [smem:[#allocation23_spill]]  ;;  %vm521_vm0 = vcmask 130048  }
  0x14   : > { %504 = vperm.xlu1 %6825, %v482_v0   ;;  %490 = vperm.xlu0 %6824, %v480_v1   ;;  %v485_v5 = vld [vmem:[%s9373_s1 + $0x28] sm:$0xff]  ;;  %v520_v31 = vld [vmem:[%s9374_s2] sm:$0xff]  ;;  %vm621_vm1 = vcmask 64512   ;;  %v615_v43 = vld [vmem:[%s9375_s3 + $0x18] sm:$0xff]  ;;  %s9402_s26 = smov 16   ;;  %s9396_s27 = smov 1  }
  0x15   : > { %589 = vmatprep.mubr.f32.mxu0 %v9404_v8  ;;  %731 = vmatprep.mubr.f32.mxu1 %v9404_v8  ;;  %s9545_s15 = smov (!%p463_p3, %s5853_s15), 3  ;;  %v612_v42 = vld [vmem:[%s9375_s3] sm:$0xff]  ;;  %v613_v44 = vld [vmem:[%s9375_s3 + $0x8] sm:$0xff]  ;;  %v614_v46 = vld [vmem:[%s9375_s3 + $0x10] sm:$0xff]  ;;  %s9400_s28 = smov 15   ;;  %vm6861_vm10 = vmmov 0  }
  0x16   : > { %9467 = sst [smem:[#allocation3_spill]] %s9545_s15  ;;  %s9387_s16 = sshll.u32 %s9545_s15, 4  ;;  %v616_v45 = vld [vmem:[%s9375_s3 + $0x20] sm:$0xff]  ;;  %v617_v47 = vld [vmem:[%s9375_s3 + $0x28] sm:$0xff]  ;;  %v618_v48 = vld [vmem:[%s9375_s3 + $0x30] sm:$0xff] }
  0x17   : > { %v619_v49 = vld [vmem:[%s9375_s3 + $0x38] sm:$0xff]  ;;  %v620_v50 = vld [vmem:[%s9375_s3 + $0x40] sm:$0xff]  ;;  %s9398_s17 = smov 14   ;;  %s9394_s18 = smov 127  }
  0x18   : > { %509 = vperm.xlu1 %6825, %v483_v3   ;;  %495 = vperm.xlu0 %6824, %v481_v4   ;;  %s9388_s30 = smov 113   ;;  %s9392_s20 = smov 112  }
  0x19   : > { %s467_s19 = scalar_lea.vmem %s9468_s0, %s9387_s16  ;;  %s9469_s7 = sld [smem:[#allocation24_spill]] }
  0x1a   : > { %v6988_v9 = vld [vmem:[%s467_s19] sm:$0xff]  ;;  %v6990_v10 = vld [vmem:[%s467_s19 + $0x8] sm:$0xff]  ;;  %v6994_v15 = vld [vmem:[%s467_s19 + $0x10] sm:$0xff]  ;;  %s9481_s21 = smov 113   ;;  %s9482_s22 = smov 112  }
  0x1b   : > { %v6996_v16 = vld [vmem:[%s467_s19 + $0x18] sm:$0xff]  ;;  %s9390_s19 = smov 114   ;;  %s9496_s10 = sld [smem:[#allocation26_spill]] }
  0x1c   : > { %605 = vperm.xlu1 %6825, %v485_v5   ;;  %598 = vperm.xlu0 %6824, %v484_v6   ;;  %v5879_v5 = vld [vmem:[%s9373_s1 + $0x40] sm:$0xff]  ;;  %v487_v6 = vld [vmem:[%s9373_s1 + $0x38] sm:$0xff]  ;;  %s9435_s23 = smov 9   ;;  %s9433_s24 = smov 8  }
  0x1d   : > { %s9431_s16 = smov 7   ;;  %s9441_s25 = smov 119  }
  0x1e   : > { %s9514_s8 = sld [smem:[#allocation25_spill]]  ;;  %s9517_s0 = smov 7  }
  0x1f   : > { %s9457_s15 = smov 124   ;;  %s9459_s29 = smov 123  }
  0x20   : > { %978 = vperm.xlu0 %6824, %v486_v7   ;;  %v5881_v7 = vld [vmem:[%s9373_s1 + $0x50] sm:$0xff] }
  0x93   : > { %v505_v11 = vpop.permute.xlu1 %504  ;;  %v491_v12 = vpop.permute.xlu0 %490 }
  0x94   : > { %v498_v13 = vmul.f32 %v491_v12, %v6988_v9  ;;  %v499_v14 = vmul.f32 %v491_v12, %v6990_v10  ;;  %v5883_v12 = vld [vmem:[%s9373_s1 + $0x60] sm:$0xff] }
  0x96   : > { %v513_v20 = vadd.f32 %v505_v11, %v499_v14  ;;  %v512_v21 = vadd.f32 %v505_v11, %v498_v13  ;;  %v5880_v11 = vld [vmem:[%s9373_s1 + $0x48] sm:$0xff]  ;;  %v5882_v13 = vld [vmem:[%s9373_s1 + $0x58] sm:$0xff]  ;;  %v5885_v14 = vld [vmem:[%s9373_s1 + $0x70] sm:$0xff] }
  0x97   : > { %v496_v17 = vpop.permute.xlu0 %495  ;;  %v510_v22 = vpop.permute.xlu1 %509 }
  0x98   : > { %v500_v18 = vmul.f32 %v496_v17, %v6994_v15  ;;  %v501_v19 = vmul.f32 %v496_v17, %v6996_v16  ;;  %v517_v25 = vmax.f32 %v513_v20, 0.0  ;;  %v516_v27 = vmax.f32 %v512_v21, 0.0  ;;  %v5884_v17 = vld [vmem:[%s9373_s1 + $0x68] sm:$0xff] }
  0x99   : > { %v772_v20 = vlaneseq }
  0x9a   : > { %v515_v23 = vadd.f32 %v510_v22, %v501_v19  ;;  %v514_v24 = vadd.f32 %v510_v22, %v500_v18 }
  0x9b   : > { %v599_v32 = vpop.permute.xlu0 %598  ;;  %v606_v36 = vpop.permute.xlu1 %605 }
  0x9c   : > { %v519_v26 = vmax.f32 %v515_v23, 0.0  ;;  %v518_v28 = vmax.f32 %v514_v24, 0.0  ;;  %v780_v23 = vshrl.u32 %v772_v20, 7 }
  0x9e   : > { %v6617_v29 = vpack.c.bf16 %v519_v26, %v517_v25  ;;  %v6619_v30 = vpack.c.bf16 %v518_v28, %v516_v27  ;;  %v7096_v25 = vand.u32 127, %v772_v20  ;;  %v7101_v27 = vld [vmem:[%s9469_s7 + $0x2] sm:$0x3]  ;;  %v7103_v28 = vsub.s32 0, %v780_v23 }
  0x9f   : > { %v7094_v18 = vpop.permute.xlu0 %978 }
  0xa0   : > { %6618 = vmatprep.subr.bf16.mxu0 %v6617_v29  ;;  %v7105_v29 = vsub.s32 1, %v780_v23  ;;  %vm795_vm2 = vcmp.lt.s32.totalorder %v7096_v25, 15  ;;  %vm774_vm3 = vcmp.lt.s32.totalorder %v7096_v25, 16  ;;  %vm819_vm4 = vcmp.lt.s32.totalorder %v7096_v25, 14 }
  0xa1   : > { %6620 = vmatpush1.bf16.msra.mxu0 %v6619_v30  ;;  %vm843_vm5 = vcmp.lt.s32.totalorder %v7096_v25, 1  ;;  %vm884_vm6 = vcmp.lt.s32.totalorder %v7096_v25, 127  ;;  %vm908_vm7 = vcmp.lt.s32.totalorder %v7096_v25, 114  ;;  %vm932_vm8 = vcmp.lt.s32.totalorder %v7096_v25, 113 }
  0xa2   : > { %vm956_vm9 = vcmp.lt.s32.totalorder %v7096_v25, 112 }
  0xa4   : > { %5859 = vmatmul.mubr.msk.f32.vlgmr.msra.gmra.mrb[0].mxu0 %vm521_vm0, %v520_v31  ;;  %v7111_v31 = vld [vmem:[%s9469_s7] sm:$0x3] }
  0xa5   : > { %713 = vmatprep.mubr.f32.mxu0 %v9404_v8 }
 0x177   : > { %v591_v33 = vpop.f32.mrb[0].mxu0 }
 0x178   : > { %v601_v34 = vmul.f32 %v599_v32, %v591_v33  ;;  %v593_v35 = vpop.f32.mrb[1].mxu0  ;;  %v7121_v33 = vrot.slane %v7101_v27, %v7103_v28 }
 0x179   : > { %v602_v37 = vmul.f32 %v599_v32, %v593_v35  ;;  %v7116_v32 = vld [vmem:[%s9469_s7 + $0x4] sm:$0x3] }
 0x17a   : > { %v608_v38 = vadd.f32 %v606_v36, %v601_v34  ;;  %v7125_v34 = vrot.slane %v7101_v27, %v7105_v29 }
 0x17b   : > { %v609_v39 = vadd.f32 %v606_v36, %v602_v37 }
 0x17c   : > { %v610_v41 = vmax.f32 %v608_v38, 0.0  ;;  %v7134_v38 = vrot.slane %v7111_v31, %v7103_v28 }
 0x17d   : > { %v611_v40 = vmax.f32 %v609_v39, 0.0  ;;  %v7138_v39 = vrot.slane %v7111_v31, %v7105_v29 }
 0x17f   : > { %649 = vmatprep.subr.mxu0 %v611_v40  ;;  %6784 = vmatprep.subr.mxu1 %v611_v40  ;;  %v7142_v40 = vrot.slane %v7116_v32, %v7103_v28 }
 0x180   : > { %650 = vmatpush1.msra.mxu0 %v610_v41  ;;  %6785 = vmatpush1.msra.mxu1 %v610_v41  ;;  %v7146_v41 = vrot.slane %v7116_v32, %v7105_v29 }
 0x181   : > { %5860 = vmatmul.mubr.msk.f32.vlgmr.msra.gmra.mrb[2].mxu0 %vm621_vm1, %v612_v42  ;;  %5863 = vmatmul.mubr.msk.f32.vlgmr.msra.gmra.mrb[0].mxu1 %vm621_vm1, %v615_v43 }
 0x182   : > { %719 = vmatprep.mubr.f32.mxu0 %v9404_v8  ;;  %737 = vmatprep.mubr.f32.mxu1 %v9404_v8  ;;  %9470 = vst [vmem:[#allocation4_spill] sm:$0xff] %v7146_v41 }
 0x185   : > { %5861 = vmatmul.mubr.msk.f32.gmra.mrb[4].mxu0 %vm621_vm1, %v613_v44  ;;  %5864 = vmatmul.mubr.msk.f32.gmra.mrb[2].mxu1 %vm621_vm1, %v616_v45 }
 0x186   : > { %725 = vmatprep.mubr.f32.mxu0 %v9404_v8  ;;  %743 = vmatprep.mubr.f32.mxu1 %v9404_v8 }
 0x189   : > { %5862 = vmatmul.mubr.msk.f32.gmra.mrb[6].mxu0 %vm621_vm1, %v614_v46  ;;  %5865 = vmatmul.mubr.msk.f32.gmra.mrb[4].mxu1 %vm621_vm1, %v617_v47 }
 0x18a   : > { %749 = vmatprep.mubr.f32.mxu1 %v9404_v8  ;;  %1064 = vmatprep.mubr.f32.mxu0 %v9404_v8 }
 0x18d   : > { %5866 = vmatmul.mubr.msk.f32.gmra.mrb[6].mxu1 %vm621_vm1, %v618_v48 }
 0x18e   : > { %755 = vmatprep.mubr.f32.mxu1 %v9404_v8 }
 0x191   : > { %5867 = vmatmul.mubr.msk.f32.gmra.mrb[8].mxu1 %vm621_vm1, %v619_v49  ;;  %v7162_v49 = vld [vmem:[%s9469_s7 + $0x6] sm:$0x3] }
 0x192   : > { %761 = vmatprep.mubr.f32.mxu1 %v9404_v8 }
 0x195   : > { %5868 = vmatmul.mubr.msk.f32.gmra.mrb[10].mxu1 %vm621_vm1, %v620_v50 }
 0x196   : > { %1537 = vmatprep.mubr.f32.mxu1 %v9404_v8 }
 0x254   : > { %v715_v51 = vpop.f32.mrb[2].mxu0  ;;  %v733_v52 = vpop.f32.mrb[0].mxu1 }
 0x255   : > { %768 = vrot.lane.b32.xlu0 %v715_v51, %s9402_s26  ;;  %v717_v53 = vpop.f32.mrb[3].mxu0  ;;  %v735_v54 = vpop.f32.mrb[1].mxu1 }
 0x256   : > { %770 = vrot.lane.b32.xlu1 %v717_v53, %s9402_s26 }
 0x258   : > { %v721_v55 = vpop.f32.mrb[4].mxu0  ;;  %v7052_v56 = vpop.f32.mrb[2].mxu1 }
 0x259   : > { %839 = vrot.lane.b32.xlu0 %v733_v52, %s9396_s27  ;;  %v723_v57 = vpop.f32.mrb[5].mxu0  ;;  %v7055_v58 = vpop.f32.mrb[3].mxu1 }
 0x25a   : > { %841 = vrot.lane.b32.xlu1 %v735_v54, %s9396_s27 }
 0x25c   : > { %v727_v59 = vpop.f32.mrb[6].mxu0  ;;  %v745_v60 = vpop.f32.mrb[4].mxu1 }
 0x25d   : > { %791 = vrot.lane.b32.xlu0 %v721_v55, %s9400_s28  ;;  %v729_v61 = vpop.f32.mrb[7].mxu0  ;;  %v747_v62 = vpop.f32.mrb[5].mxu1 }
 0x25e   : > { %793 = vrot.lane.b32.xlu1 %v723_v57, %s9400_s28  ;;  %v7170_v57 = vrot.slane %v7162_v49, %v7103_v28 }
 0x260   : > { %v751_v63 = vpop.f32.mrb[6].mxu1 }
 0x261   : > { %815 = vrot.lane.b32.xlu0 %v727_v59, %s9398_s17  ;;  %v753_v0 = vpop.f32.mrb[7].mxu1  ;;  %v7174_v59 = vrot.slane %v7162_v49, %v7105_v29 }
 0x262   : > { %817 = vrot.lane.b32.xlu1 %v729_v61, %s9398_s17 }
 0x264   : > { %v757_v1 = vpop.f32.mrb[8].mxu1 }
 0x265   : > { %880 = vrot.lane.b32.xlu0 %v745_v60, %s9394_s18  ;;  %v759_v2 = vpop.f32.mrb[9].mxu1 }
 0x266   : > { %882 = vrot.lane.b32.xlu1 %v747_v62, %s9394_s18  ;;  %v7179_v62 = vld [vmem:[%s9469_s7 + $0x8] sm:$0x3]  ;;  %s9483_s18 = smov 16  }
 0x268   : > { %v763_v3 = vpop.f32.mrb[10].mxu1 }
 0x269   : > { %904 = vrot.lane.b32.xlu0 %v751_v63, %s9390_s19  ;;  %v765_v4 = vpop.f32.mrb[11].mxu1 }
 0x26a   : > { %906 = vrot.lane.b32.xlu1 %v753_v0, %s9390_s19  ;;  %s9437_s19 = smov 121  }
 0x26d   : > { %928 = vrot.lane.b32.xlu0 %v757_v1, %s9388_s30 }
 0x26e   : > { %930 = vrot.lane.b32.xlu1 %v759_v2, %s9388_s30  ;;  %s9479_s30 = smov 127  }
 0x271   : > { %954 = vrot.lane.b32.xlu0 %v765_v4, %s9392_s20 }
 0x272   : > { %952 = vrot.lane.b32.xlu1 %v763_v3, %s9392_s20  ;;  %s9480_s20 = smov 114  }
 0x275   : > { %1088 = vperm.xlu0 %6824, %v5879_v5   ;;  %v7187_v5 = vrot.slane %v7179_v62, %v7103_v28 }
 0x276   : > { %985 = vperm.xlu1 %6825, %v487_v6   ;;  %v7191_v6 = vrot.slane %v7179_v62, %v7105_v29 }
 0x277   : > { %9471 = vst [vmem:[#allocation5_spill] sm:$0xff] %v7187_v5 }
 0x278   : > { %9472 = vst [vmem:[#allocation6_spill] sm:$0xff] %v7191_v6  ;;  %v877_v23 = vmul.f32 %v7191_v6, %v7055_v58 }
 0x279   : > { %1102 = vperm.xlu0 %6824, %v5881_v7  }
 0x27a   : > { %1093 = vperm.xlu1 %6825, %v5880_v11  }
 0x27d   : > { %1196 = vperm.xlu0 %6824, %v5883_v12   ;;  %v7198_v12 = vld [vmem:[%s9469_s7 + $0xa] sm:$0x3] }
 0x27e   : > { %1107 = vperm.xlu1 %6825, %v5882_v13  }
 0x281   : > { %1450 = vperm.xlu0 %6824, %v5885_v14  }
 0x282   : > { %1203 = vperm.xlu1 %6825, %v5884_v17   ;;  %v7204_v17 = vld [vmem:[%s9469_s7 + $0xc] sm:$0x3] }
 0x283   : > { %v7230_v58 = vrot.slane %v7204_v17, %v7103_v28 }
 0x285   : > { %9473 = vst [vmem:[#allocation7_spill] sm:$0xff] %v7230_v58 }
 0x2c7   : > { %v769_v19 = vpop.permute.xlu0 %768 }
 0x2c8   : > { %v771_v21 = vpop.permute.xlu1 %770 }
 0x2c9   : > { %v775_v43 = vsel %vm774_vm3, %v769_v19, %v771_v21  ;;  %v776_v44 = vsel %vm774_vm3, %v771_v21, %v769_v19  ;;  %v7208_v21 = vrot.slane %v7198_v12, %v7103_v28 }
 0x2ca   : > { %v789_v51 = vmul.f32 %v7134_v38, %v776_v44  ;;  %v790_v52 = vmul.f32 %v7138_v39, %v775_v43 }
 0x2cb   : > { %v840_v22 = vpop.permute.xlu0 %839 }
 0x2cc   : > { %v842_v24 = vpop.permute.xlu1 %841 }
 0x2cd   : > { %v844_v63 = vsel %vm843_vm5, %v840_v22, %v842_v24  ;;  %v845_v0 = vsel %vm843_vm5, %v842_v24, %v840_v22  ;;  %v876_v22 = vmul.f32 %v7187_v5, %v7052_v56  ;;  %v7216_v24 = vrot.slane %v7198_v12, %v7105_v29 }
 0x2ce   : > { %v859_v7 = vmul.f32 %v7170_v57, %v845_v0  ;;  %v860_v11 = vmul.f32 %v7174_v59, %v844_v63 }
 0x2cf   : > { %v792_v26 = vpop.permute.xlu0 %791 }
 0x2d0   : > { %v794_v30 = vpop.permute.xlu1 %793 }
 0x2d1   : > { %v796_v35 = vsel %vm795_vm2, %v792_v26, %v794_v30  ;;  %v797_v36 = vsel %vm795_vm2, %v794_v30, %v792_v26  ;;  %v7222_v26 = vld [vmem:[%s9469_s7 + $0xe] sm:$0x3] }
 0x2d2   : > { %v811_v47 = vmul.f32 %v7121_v33, %v797_v36  ;;  %v812_v48 = vmul.f32 %v7125_v34, %v796_v35 }
 0x2d3   : > { %v816_v37 = vpop.permute.xlu0 %815 }
 0x2d4   : > { %v818_v42 = vpop.permute.xlu1 %817  ;;  %v813_v60 = vadd.f32 %v811_v47, %v789_v51  ;;  %v814_v61 = vadd.f32 %v812_v48, %v790_v52  ;;  %v7254_v48 = vrot.slane %v7222_v26, %v7105_v29 }
 0x2d5   : > { %v820_v45 = vsel %vm819_vm4, %v816_v37, %v818_v42  ;;  %v821_v46 = vsel %vm819_vm4, %v818_v42, %v816_v37  ;;  %v7234_v37 = vrot.slane %v7204_v17, %v7105_v29  ;;  %v7240_v42 = vld [vmem:[%s9469_s7 + $0x10] sm:$0x3]  ;;  %s9455_s7 = smov 3  }
 0x2d6   : > { %v835_v53 = vmul.f32 %v7142_v40, %v821_v46  ;;  %v836_v54 = vmul.f32 %v7146_v41, %v820_v45  ;;  %v7248_v45 = vrot.slane %v7222_v26, %v7103_v28  ;;  %9476 = vst [vmem:[#allocation10_spill] sm:$0xff] %v7254_v48 }
 0x2d7   : > { %v881_v50 = vpop.permute.xlu0 %880  ;;  %9474 = vst [vmem:[#allocation8_spill] sm:$0xff] %v7234_v37 }
 0x2d8   : > { %v883_v55 = vpop.permute.xlu1 %882  ;;  %v837_v2 = vadd.f32 %v835_v53, %v813_v60  ;;  %v838_v3 = vadd.f32 %v836_v54, %v814_v61  ;;  %9475 = vst [vmem:[#allocation9_spill] sm:$0xff] %v7248_v45  ;;  %v7263_v54 = vrot.slane %v7240_v42, %v7103_v28 }
 0x2d9   : > { %v885_v30 = vsel %vm884_vm6, %v881_v50, %v883_v55  ;;  %v886_v56 = vsel %vm884_vm6, %v883_v55, %v881_v50  ;;  %v7267_v55 = vrot.slane %v7240_v42, %v7105_v29 }
 0x2da   : > { %v861_v13 = vadd.f32 %v859_v7, %v837_v2  ;;  %v862_v14 = vadd.f32 %v860_v11, %v838_v3  ;;  %v900_v46 = vmul.f32 %v7208_v21, %v885_v30  ;;  %v901_v47 = vmul.f32 %v7216_v24, %v886_v56  ;;  %9477 = vst [vmem:[#allocation11_spill] sm:$0xff] %v7263_v54 }
 0x2db   : > { %v905_v1 = vpop.permute.xlu0 %904  ;;  %9478 = vst [vmem:[#allocation12_spill] sm:$0xff] %v7267_v55 }
 0x2dc   : > { %v907_v4 = vpop.permute.xlu1 %906  ;;  %v878_v35 = vadd.f32 %v876_v22, %v861_v13  ;;  %v879_v36 = vadd.f32 %v877_v23, %v862_v14 }
 0x2dd   : > { %v909_v43 = vsel %vm908_vm7, %v905_v1, %v907_v4  ;;  %v910_v44 = vsel %vm908_vm7, %v907_v4, %v905_v1 }
 0x2de   : > { %v902_v60 = vadd.f32 %v900_v46, %v878_v35  ;;  %v903_v61 = vadd.f32 %v901_v47, %v879_v36  ;;  %v924_v63 = vmul.f32 %v7230_v58, %v909_v43  ;;  %v925_v0 = vmul.f32 %v7234_v37, %v910_v44  ;;  %v992_v47 = vld [vmem:[%s9376_s4] sm:$0xff] }
 0x2df   : > { %v929_v19 = vpop.permute.xlu0 %928 }
 0x2e0   : > { %v931_v20 = vpop.permute.xlu1 %930  ;;  %v926_v7 = vadd.f32 %v924_v63, %v902_v60  ;;  %v927_v11 = vadd.f32 %v925_v0, %v903_v61 }
 0x2e1   : > { %v933_v52 = vsel %vm932_vm8, %v929_v19, %v931_v20  ;;  %v934_v53 = vsel %vm932_vm8, %v931_v20, %v929_v19 }
 0x2e2   : > { %v948_v3 = vmul.f32 %v7248_v45, %v933_v52  ;;  %v949_v4 = vmul.f32 %v7254_v48, %v934_v53 }
 0x2e3   : > { %v955_v50 = vpop.permute.xlu0 %954 }
 0x2e4   : > { %v953_v51 = vpop.permute.xlu1 %952  ;;  %v950_v19 = vadd.f32 %v948_v3, %v926_v7  ;;  %v951_v20 = vadd.f32 %v949_v4, %v927_v11 }
 0x2e5   : > { %v957_v1 = vsel %vm956_vm9, %v953_v51, %v955_v50  ;;  %v958_v2 = vsel %vm956_vm9, %v955_v50, %v953_v51  ;;  %v993_v50 = vld [vmem:[%s9376_s4 + $0x8] sm:$0xff] }
 0x2e6   : > { %v972_v13 = vmul.f32 %v7263_v54, %v957_v1  ;;  %v973_v14 = vmul.f32 %v7267_v55, %v958_v2 }
 0x2e8   : > { %v974_v22 = vadd.f32 %v972_v13, %v950_v19  ;;  %v975_v23 = vadd.f32 %v973_v14, %v951_v20 }
 0x2ea   : > { %v981_v30 = vmul.f32 %v7094_v18, %v974_v22  ;;  %v982_v56 = vmul.f32 %v7094_v18, %v975_v23 }
 0x2f4   : > { %v1089_v51 = vpop.permute.xlu0 %1088 }
 0x2f5   : > { %v986_v35 = vpop.permute.xlu1 %985 }
 0x2f6   : > { %v988_v36 = vadd.f32 %v986_v35, %v981_v30  ;;  %v989_v43 = vadd.f32 %v986_v35, %v982_v56 }
 0x2f8   : > { %v990_v44 = vmax.f32 %v988_v36, 0.0  ;;  %v991_v46 = vmax.f32 %v989_v43, 0.0  ;;  %v1103_v7 = vpop.permute.xlu0 %1102 }
 0x2f9   : > { %v1094_v60 = vpop.permute.xlu1 %1093 }
 0x2fa   : > { %1000 = vmatprep.subr.mxu0 %v991_v46 }
 0x2fb   : > { %1001 = vmatpush1.msra.mxu0 %v990_v44 }
 0x2fc   : > { %5877 = vmatmul.mubr.msk.f32.vlgmr.msra.gmra.mrb[8].mxu0 %vm621_vm1, %v992_v47  ;;  %v1197_v36 = vpop.permute.xlu0 %1196 }
 0x2fd   : > { %1070 = vmatprep.mubr.f32.mxu0 %v9404_v8  ;;  %v1108_v11 = vpop.permute.xlu1 %1107 }
 0x300   : > { %5878 = vmatmul.mubr.msk.f32.gmra.mrb[10].mxu0 %vm621_vm1, %v993_v50 }
 0x301   : > { %1187 = vmatprep.mubr.f32.mxu0 %v9404_v8  ;;  %v1204_v47 = vpop.permute.xlu1 %1203 }
 0x3cf   : > { %v1066_v18 = vpop.f32.mrb[8].mxu0 }
 0x3d0   : > { %v7292_v52 = vadd.f32 %v1066_v18, %v6988_v9  ;;  %v1068_v53 = vpop.f32.mrb[9].mxu0 }
 0x3d1   : > { %v7295_v61 = vadd.f32 %v1068_v53, %v6990_v10 }
 0x3d2   : > { %v1096_v3 = vmul.f32 %v1089_v51, %v7292_v52 }
 0x3d3   : > { %v1072_v63 = vpop.f32.mrb[10].mxu0  ;;  %v1097_v0 = vmul.f32 %v1089_v51, %v7295_v61 }
 0x3d4   : > { %v7299_v1 = vadd.f32 %v1072_v63, %v6994_v15  ;;  %v1074_v2 = vpop.f32.mrb[11].mxu0  ;;  %v1110_v14 = vadd.f32 %v1103_v7, %v1096_v3  ;;  %v5889_v63 = vld [vmem:[%s9375_s3 + $0x48] sm:$0xff]  ;;  %v5892_v3 = vld [vmem:[%s9375_s3 + $0x60] sm:$0xff] }
 0x3d5   : > { %v7303_v4 = vadd.f32 %v1074_v2, %v6996_v16  ;;  %v1111_v10 = vadd.f32 %v1103_v7, %v1097_v0  ;;  %v5887_v16 = vld [vmem:[%s9374_s2 + $0x8] sm:$0xff]  ;;  %v5890_v0 = vld [vmem:[%s9375_s3 + $0x50] sm:$0xff]  ;;  %v5891_v2 = vld [vmem:[%s9375_s3 + $0x58] sm:$0xff] }
 0x3d6   : > { %v1098_v9 = vmul.f32 %v1094_v60, %v7299_v1  ;;  %v1114_v30 = vmax.f32 %v1110_v14, 0.0  ;;  %v5893_v7 = vld [vmem:[%s9375_s3 + $0x68] sm:$0xff] }
 0x3d7   : > { %v1099_v13 = vmul.f32 %v1094_v60, %v7303_v4  ;;  %v1115_v23 = vmax.f32 %v1111_v10, 0.0  ;;  %v5897_v10 = vld [vmem:[%s9375_s3 + $0x88] sm:$0xff] }
 0x3d8   : > { %v1112_v19 = vadd.f32 %v1108_v11, %v1098_v9  ;;  %v5894_v9 = vld [vmem:[%s9375_s3 + $0x70] sm:$0xff] }
 0x3d9   : > { %v1113_v20 = vadd.f32 %v1108_v11, %v1099_v13  ;;  %v5895_v11 = vld [vmem:[%s9375_s3 + $0x78] sm:$0xff]  ;;  %v5896_v13 = vld [vmem:[%s9375_s3 + $0x80] sm:$0xff] }
 0x3da   : > { %v1116_v22 = vmax.f32 %v1112_v19, 0.0 }
 0x3db   : > { %v1117_v15 = vmax.f32 %v1113_v20, 0.0 }
 0x3dc   : > { %v6623_v35 = vpack.c.bf16 %v1116_v22, %v1114_v30 }
 0x3dd   : > { %v6621_v56 = vpack.c.bf16 %v1117_v15, %v1115_v23 }
 0x3df   : > { %6622 = vmatprep.subr.bf16.mxu0 %v6621_v56 }
 0x3e0   : > { %6624 = vmatpush1.bf16.msra.mxu0 %v6623_v35 }
 0x3e3   : > { %5888 = vmatmul.mubr.msk.f32.vlgmr.msra.gmra.mrb[12].mxu0 %vm521_vm0, %v5887_v16 }
 0x3e4   : > { %1311 = vmatprep.mubr.f32.mxu0 %v9404_v8 }
 0x4b6   : > { %v1189_v43 = vpop.f32.mrb[12].mxu0 }
 0x4b7   : > { %v1199_v44 = vmul.f32 %v1197_v36, %v1189_v43  ;;  %v1191_v46 = vpop.f32.mrb[13].mxu0 }
 0x4b8   : > { %v1200_v50 = vmul.f32 %v1197_v36, %v1191_v46 }
 0x4b9   : > { %v1206_v18 = vadd.f32 %v1204_v47, %v1199_v44 }
 0x4ba   : > { %v1207_v51 = vadd.f32 %v1204_v47, %v1200_v50 }
 0x4bb   : > { %v1208_v60 = vmax.f32 %v1206_v18, 0.0 }
 0x4bc   : > { %v1209_v53 = vmax.f32 %v1207_v51, 0.0 }
 0x4be   : > { %1247 = vmatprep.subr.mxu0 %v1209_v53  ;;  %v5886_v53 = vld [vmem:[%s9373_s1 + $0x78] sm:$0xff] }
 0x4bf   : > { %1248 = vmatpush1.msra.mxu0 %v1208_v60  ;;  %v5911_v60 = vld [vmem:[%s9373_s1 + $0x80] sm:$0xff] }
 0x4c0   : > { %5898 = vmatmul.mubr.msk.f32.vlgmr.msra.gmra.mrb[14].mxu0 %vm621_vm1, %v5889_v63  ;;  %v5912_v63 = vld [vmem:[%s9373_s1 + $0x88] sm:$0xff] }
 0x4c1   : > { %1317 = vmatprep.mubr.f32.mxu0 %v9404_v8 }
 0x4c4   : > { %5899 = vmatmul.mubr.msk.f32.gmra.mrb[16].mxu0 %vm621_vm1, %v5890_v0  ;;  %v5913_v0 = vld [vmem:[%s9373_s1 + $0x90] sm:$0xff] }
 0x4c5   : > { %1323 = vmatprep.mubr.f32.mxu0 %v9404_v8 }
 0x4c8   : > { %5900 = vmatmul.mubr.msk.f32.gmra.mrb[18].mxu0 %vm621_vm1, %v5891_v2  ;;  %v5914_v2 = vld [vmem:[%s9373_s1 + $0x98] sm:$0xff] }
 0x4c9   : > { %1329 = vmatprep.mubr.f32.mxu0 %v9404_v8 }
 0x4cc   : > { %5901 = vmatmul.mubr.msk.f32.gmra.mrb[20].mxu0 %vm621_vm1, %v5892_v3  ;;  %v5915_v3 = vld [vmem:[%s9373_s1 + $0xa0] sm:$0xff] }
 0x4cd   : > { %1335 = vmatprep.mubr.f32.mxu0 %v9404_v8 }
 0x4d0   : > { %5902 = vmatmul.mubr.msk.f32.gmra.mrb[22].mxu0 %vm621_vm1, %v5893_v7  ;;  %v5916_v7 = vld [vmem:[%s9373_s1 + $0xa8] sm:$0xff] }
 0x4d1   : > { %1341 = vmatprep.mubr.f32.mxu0 %v9404_v8 }
 0x4d4   : > { %5903 = vmatmul.mubr.msk.f32.gmra.mrb[24].mxu0 %vm621_vm1, %v5894_v9  ;;  %v7460_v9 = vpop.permute.xlu0 %1450 }
 0x4d5   : > { %1347 = vmatprep.mubr.f32.mxu0 %v9404_v8 }
 0x4d8   : > { %5904 = vmatmul.mubr.msk.f32.gmra.mrb[26].mxu0 %vm621_vm1, %v5895_v11  ;;  %v5917_v11 = vld [vmem:[%s9373_s1 + $0xb0] sm:$0xff] }
 0x4d9   : > { %1353 = vmatprep.mubr.f32.mxu0 %v9404_v8 }
 0x4dc   : > { %5905 = vmatmul.mubr.msk.f32.gmra.mrb[28].mxu0 %vm621_vm1, %v5896_v13 }
 0x4dd   : > { %1359 = vmatprep.mubr.f32.mxu0 %v9404_v8 }
 0x4e0   : > { %5906 = vmatmul.mubr.msk.f32.gmra.mrb[30].mxu0 %vm621_vm1, %v5897_v10  ;;  %v5918_v10 = vld [vmem:[%s9373_s1 + $0xb8] sm:$0xff] }
 0x4e1   : > { %2010 = vmatprep.mubr.f32.mxu0 %v9404_v8 }
 0x593   : > { %v1313_v14 = vpop.f32.mrb[14].mxu0 }
 0x594   : > { %1366 = vrot.lane.b32.xlu0 %v1313_v14, %s9402_s26  ;;  %v1315_v19 = vpop.f32.mrb[15].mxu0 }
 0x595   : > { %1368 = vrot.lane.b32.xlu1 %v1315_v19, %s9402_s26  ;;  %s9485_s26 = smov 14  }
 0x597   : > { %v1319_v20 = vpop.f32.mrb[16].mxu0 }
 0x598   : > { %1374 = vrot.lane.b32.xlu0 %v1319_v20, %s9400_s28  ;;  %v1321_v22 = vpop.f32.mrb[17].mxu0 }
 0x599   : > { %1376 = vrot.lane.b32.xlu1 %v1321_v22, %s9400_s28  ;;  %s9486_s28 = smov 1  }
 0x59b   : > { %v1325_v23 = vpop.f32.mrb[18].mxu0 }
 0x59c   : > { %1384 = vrot.lane.b32.xlu0 %v1325_v23, %s9398_s17  ;;  %v1327_v15 = vpop.f32.mrb[19].mxu0 }
 0x59d   : > { %1386 = vrot.lane.b32.xlu1 %v1327_v15, %s9398_s17  ;;  %s9520_s17 = smov 119  }
 0x59f   : > { %v1331_v30 = vpop.f32.mrb[20].mxu0 }
 0x5a0   : > { %1394 = vrot.lane.b32.xlu0 %v1331_v30, %s9396_s27  ;;  %v1333_v56 = vpop.f32.mrb[21].mxu0 }
 0x5a1   : > { %1396 = vrot.lane.b32.xlu1 %v1333_v56, %s9396_s27  ;;  %s9484_s27 = smov 15  }
 0x5a3   : > { %v7365_v35 = vpop.f32.mrb[22].mxu0 }
 0x5a4   : > { %v7367_v16 = vpop.f32.mrb[23].mxu0 }
 0x5a7   : > { %v1343_v36 = vpop.f32.mrb[24].mxu0 }
 0x5a8   : > { %1408 = vrot.lane.b32.xlu0 %v1343_v36, %s9479_s30  ;;  %v1345_v43 = vpop.f32.mrb[25].mxu0 }
 0x5a9   : > { %1410 = vrot.lane.b32.xlu1 %v1345_v43, %s9479_s30 }
 0x5ab   : > { %v1349_v44 = vpop.f32.mrb[26].mxu0 }
 0x5ac   : > { %1418 = vrot.lane.b32.xlu0 %v1349_v44, %s9480_s20  ;;  %v1351_v46 = vpop.f32.mrb[27].mxu0 }
 0x5ad   : > { %1420 = vrot.lane.b32.xlu1 %v1351_v46, %s9480_s20 }
 0x5af   : > { %v1355_v47 = vpop.f32.mrb[28].mxu0 }
 0x5b0   : > { %1428 = vrot.lane.b32.xlu0 %v1355_v47, %s9481_s21  ;;  %v1357_v50 = vpop.f32.mrb[29].mxu0 }
 0x5b1   : > { %1430 = vrot.lane.b32.xlu1 %v1357_v50, %s9481_s21 }
 0x5b3   : > { %v1361_v18 = vpop.f32.mrb[30].mxu0 }
 0x5b4   : > { %v1363_v51 = vpop.f32.mrb[31].mxu0 }
 0x5b5   : > { %1438 = vrot.lane.b32.xlu1 %v1361_v18, %s9482_s22  ;;  %1440 = vrot.lane.b32.xlu0 %v1363_v51, %s9482_s22 }
 0x5b9   : > { %1457 = vperm.xlu1 %6825, %v5886_v53   ;;  %1561 = vperm.xlu0 %6824, %v5911_v60  }
 0x5bd   : > { %1566 = vperm.xlu1 %6825, %v5912_v63   ;;  %1575 = vperm.xlu0 %6824, %v5913_v0  }
 0x5c1   : > { %1580 = vperm.xlu1 %6825, %v5914_v2   ;;  %1669 = vperm.xlu0 %6824, %v5915_v3  }
 0x5c5   : > { %1676 = vperm.xlu1 %6825, %v5916_v7   ;;  %2023 = vrot.lane.b32.xlu0 %v7292_v52, %s9483_s18 }
 0x5c9   : > { %2027 = vrot.lane.b32.xlu1 %v7295_v61, %s9483_s18  ;;  %2056 = vrot.lane.b32.xlu0 %v7292_v52, %s9484_s27 }
 0x5cd   : > { %2060 = vrot.lane.b32.xlu1 %v7295_v61, %s9484_s27  ;;  %2093 = vrot.lane.b32.xlu0 %v7292_v52, %s9485_s26 }
 0x5d1   : > { %2097 = vrot.lane.b32.xlu1 %v7295_v61, %s9485_s26  ;;  %2025 = vrot.lane.b32.xlu0 %v7299_v1, %s9483_s18 }
 0x5d5   : > { %2029 = vrot.lane.b32.xlu1 %v7303_v4, %s9483_s18  ;;  %2058 = vrot.lane.b32.xlu0 %v7299_v1, %s9484_s27 }
 0x5d9   : > { %2062 = vrot.lane.b32.xlu1 %v7303_v4, %s9484_s27  ;;  %2130 = vrot.lane.b32.xlu0 %v7292_v52, %s9486_s28 }
 0x5dd   : > { %2134 = vrot.lane.b32.xlu1 %v7295_v61, %s9486_s28  ;;  %2095 = vrot.lane.b32.xlu0 %v7299_v1, %s9485_s26 }
 0x5e1   : > { %2099 = vrot.lane.b32.xlu1 %v7303_v4, %s9485_s26  ;;  %2132 = vrot.lane.b32.xlu0 %v7299_v1, %s9486_s28 }
 0x5e5   : > { %2136 = vrot.lane.b32.xlu1 %v7303_v4, %s9486_s28  ;;  %2192 = vrot.lane.b32.xlu0 %v7292_v52, %s9479_s30 }
 0x5e9   : > { %2196 = vrot.lane.b32.xlu1 %v7295_v61, %s9479_s30  ;;  %2229 = vrot.lane.b32.xlu0 %v7292_v52, %s9480_s20 }
 0x5ed   : > { %2233 = vrot.lane.b32.xlu1 %v7295_v61, %s9480_s20  ;;  %2194 = vrot.lane.b32.xlu0 %v7299_v1, %s9479_s30 }
 0x5f1   : > { %2198 = vrot.lane.b32.xlu1 %v7303_v4, %s9479_s30  ;;  %2266 = vrot.lane.b32.xlu0 %v7292_v52, %s9481_s21 }
 0x5f5   : > { %2270 = vrot.lane.b32.xlu1 %v7295_v61, %s9481_s21  ;;  %2231 = vrot.lane.b32.xlu0 %v7299_v1, %s9480_s20 }
 0x5f9   : > { %2235 = vrot.lane.b32.xlu1 %v7303_v4, %s9480_s20  ;;  %2303 = vrot.lane.b32.xlu0 %v7292_v52, %s9482_s22 }
 0x5fd   : > { %2307 = vrot.lane.b32.xlu1 %v7295_v61, %s9482_s22  ;;  %2268 = vrot.lane.b32.xlu0 %v7299_v1, %s9481_s21 }
 0x601   : > { %2272 = vrot.lane.b32.xlu1 %v7303_v4, %s9481_s21  ;;  %2305 = vrot.lane.b32.xlu0 %v7299_v1, %s9482_s22 }
 0x605   : > { %2309 = vrot.lane.b32.xlu1 %v7303_v4, %s9482_s22  ;;  %1923 = vperm.xlu0 %6824, %v5917_v11  }
 0x606   : > { %v1367_v13 = vpop.permute.xlu0 %1366 }
 0x607   : > { %v1369_v14 = vpop.permute.xlu1 %1368 }
 0x608   : > { %v1370_v46 = vsel %vm774_vm3, %v1367_v13, %v1369_v14  ;;  %v1371_v47 = vsel %vm774_vm3, %v1369_v14, %v1367_v13 }
 0x609   : > { %1930 = vperm.xlu1 %6825, %v5918_v10   ;;  %v1372_v3 = vmul.f32 %v1371_v47, %v7134_v38  ;;  %v1373_v7 = vmul.f32 %v1370_v46, %v7138_v39 }
 0x60a   : > { %v1375_v19 = vpop.permute.xlu0 %1374 }
 0x60b   : > { %v1377_v20 = vpop.permute.xlu1 %1376 }
 0x60c   : > { %v1378_v43 = vsel %vm795_vm2, %v1375_v19, %v1377_v20  ;;  %v1379_v44 = vsel %vm795_vm2, %v1377_v20, %v1375_v19 }
 0x60d   : > { %v1380_v53 = vmul.f32 %v1379_v44, %v7121_v33  ;;  %v1381_v60 = vmul.f32 %v1378_v43, %v7125_v34 }
 0x60e   : > { %v1385_v22 = vpop.permute.xlu0 %1384 }
 0x60f   : > { %v1387_v23 = vpop.permute.xlu1 %1386  ;;  %v1382_v10 = vadd.f32 %v1380_v53, %v1372_v3  ;;  %v1383_v14 = vadd.f32 %v1381_v60, %v1373_v7  ;;  %v1404_v53 = vmul.f32 %v7365_v35, %v7187_v5  ;;  %v1405_v60 = vmul.f32 %v7367_v16, %v7191_v6 }
 0x610   : > { %v1388_v50 = vsel %vm819_vm4, %v1385_v22, %v1387_v23  ;;  %v1389_v18 = vsel %vm819_vm4, %v1387_v23, %v1385_v22 }
 0x611   : > { %v1390_v11 = vmul.f32 %v1389_v18, %v7142_v40  ;;  %v1391_v13 = vmul.f32 %v1388_v50, %v7146_v41 }
 0x612   : > { %v1395_v15 = vpop.permute.xlu0 %1394 }
 0x613   : > { %v1397_v30 = vpop.permute.xlu1 %1396  ;;  %v1392_v43 = vadd.f32 %v1390_v11, %v1382_v10  ;;  %v1393_v44 = vadd.f32 %v1391_v13, %v1383_v14 }
 0x614   : > { %v1398_v0 = vsel %vm843_vm5, %v1395_v15, %v1397_v30  ;;  %v1399_v2 = vsel %vm843_vm5, %v1397_v30, %v1395_v15 }
 0x615   : > { %v1400_v19 = vmul.f32 %v1399_v2, %v7170_v57  ;;  %v1401_v20 = vmul.f32 %v1398_v0, %v7174_v59 }
 0x617   : > { %v1402_v46 = vadd.f32 %v1400_v19, %v1392_v43  ;;  %v1403_v47 = vadd.f32 %v1401_v20, %v1393_v44 }
 0x619   : > { %v1406_v11 = vadd.f32 %v1404_v53, %v1402_v46 }
 0x61a   : > { %v1409_v56 = vpop.permute.xlu0 %1408 }
 0x61b   : > { %v1411_v36 = vpop.permute.xlu1 %1410 }
 0x61c   : > { %v1412_v15 = vsel %vm884_vm6, %v1409_v56, %v1411_v36  ;;  %v1413_v30 = vsel %vm884_vm6, %v1411_v36, %v1409_v56 }
 0x61d   : > { %v1414_v0 = vmul.f32 %v1412_v15, %v7208_v21  ;;  %v1415_v2 = vmul.f32 %v1413_v30, %v7216_v24 }
 0x61e   : > { %v1419_v51 = vpop.permute.xlu0 %1418 }
 0x61f   : > { %v1421_v63 = vpop.permute.xlu1 %1420  ;;  %v1416_v10 = vadd.f32 %v1414_v0, %v1406_v11 }
 0x620   : > { %v1422_v50 = vsel %vm908_vm7, %v1419_v51, %v1421_v63  ;;  %v1423_v18 = vsel %vm908_vm7, %v1421_v63, %v1419_v51  ;;  %v1407_v51 = vadd.f32 %v1405_v60, %v1403_v47 }
 0x621   : > { %v1424_v63 = vmul.f32 %v1422_v50, %v7230_v58  ;;  %v1425_v35 = vmul.f32 %v1423_v18, %v7234_v37 }
 0x622   : > { %v1429_v22 = vpop.permute.xlu0 %1428  ;;  %v1417_v14 = vadd.f32 %v1415_v2, %v1407_v51 }
 0x623   : > { %v1431_v23 = vpop.permute.xlu1 %1430  ;;  %v1426_v43 = vadd.f32 %v1424_v63, %v1416_v10 }
 0x624   : > { %v1432_v36 = vsel %vm932_vm8, %v1429_v22, %v1431_v23  ;;  %v1433_v7 = vsel %vm932_vm8, %v1431_v23, %v1429_v22  ;;  %v1427_v22 = vadd.f32 %v1425_v35, %v1417_v14 }
 0x625   : > { %v1434_v19 = vmul.f32 %v1432_v36, %v7248_v45  ;;  %v1435_v20 = vmul.f32 %v1433_v7, %v7254_v48  ;;  %v5908_v36 = vld [vmem:[%s9376_s4 + $0x18] sm:$0xff] }
 0x627   : > { %v1439_v3 = vpop.permute.xlu1 %1438  ;;  %v1441_v56 = vpop.permute.xlu0 %1440  ;;  %v1436_v15 = vadd.f32 %v1434_v19, %v1426_v43  ;;  %v1437_v30 = vadd.f32 %v1435_v20, %v1427_v22 }
 0x628   : > { %v1442_v16 = vsel %vm956_vm9, %v1439_v3, %v1441_v56  ;;  %v1443_v13 = vsel %vm956_vm9, %v1441_v56, %v1439_v3  ;;  %v5907_v56 = vld [vmem:[%s9376_s4 + $0x10] sm:$0xff] }
 0x629   : > { %v1444_v23 = vmul.f32 %v1442_v16, %v7263_v54  ;;  %v1445_v44 = vmul.f32 %v1443_v13, %v7267_v55  ;;  %v5948_v54 = vadd.f32 -1.0, %v7198_v12 }
 0x62b   : > { %v1446_v46 = vadd.f32 %v1444_v23, %v1436_v15  ;;  %v1447_v47 = vadd.f32 %v1445_v44, %v1437_v30 }
 0x62d   : > { %v1453_v50 = vmul.f32 %v7460_v9, %v1446_v46  ;;  %v1454_v18 = vmul.f32 %v7460_v9, %v1447_v47 }
 0x638   : > { %v1458_v53 = vpop.permute.xlu1 %1457  ;;  %v1562_v7 = vpop.permute.xlu0 %1561 }
 0x639   : > { %v1460_v60 = vadd.f32 %v1458_v53, %v1453_v50  ;;  %v1461_v0 = vadd.f32 %v1458_v53, %v1454_v18 }
 0x63b   : > { %v1462_v2 = vmax.f32 %v1460_v60, 0.0  ;;  %v1463_v3 = vmax.f32 %v1461_v0, 0.0 }
 0x63c   : > { %v1567_v63 = vpop.permute.xlu1 %1566  ;;  %v1576_v43 = vpop.permute.xlu0 %1575 }
 0x63d   : > { %1473 = vmatprep.subr.mxu1 %v1463_v3  ;;  %v5919_v3 = vld [vmem:[%s9374_s2 + $0x10] sm:$0xff] }
 0x63e   : > { %1474 = vmatpush1.msra.mxu1 %v1462_v2 }
 0x63f   : > { %5909 = vmatmul.mubr.msk.f32.vlgmr.msra.gmra.mrb[12].mxu1 %vm621_vm1, %v5907_v56 }
 0x640   : > { %1543 = vmatprep.mubr.f32.mxu1 %v9404_v8  ;;  %v1581_v23 = vpop.permute.xlu1 %1580 }
 0x643   : > { %5910 = vmatmul.mubr.msk.f32.gmra.mrb[14].mxu1 %vm621_vm1, %v5908_v36  ;;  %v1670_v36 = vpop.permute.xlu0 %1669 }
 0x644   : > { %1660 = vmatprep.mubr.f32.mxu1 %v9404_v8  ;;  %v7555_v56 = vpop.permute.xlu1 %1676 }
 0x712   : > { %v1539_v9 = vpop.f32.mrb[12].mxu1 }
 0x713   : > { %v7535_v11 = vadd.f32 %v1539_v9, %v7292_v52  ;;  %v1541_v51 = vpop.f32.mrb[13].mxu1  ;;  %v2028_v9 = vpop.permute.xlu1 %2027 }
 0x714   : > { %v7538_v35 = vadd.f32 %v1541_v51, %v7295_v61 }
 0x715   : > { %9487 = vst [vmem:[#allocation13_spill] sm:$0xff] %v7535_v11  ;;  %v1569_v10 = vmul.f32 %v1562_v7, %v7535_v11  ;;  %v2170_v11 = vmul.f32 %v7303_v4, %v7191_v6 }
 0x716   : > { %9488 = vst [vmem:[#allocation14_spill] sm:$0xff] %v7538_v35  ;;  %v1570_v16 = vmul.f32 %v1562_v7, %v7538_v35  ;;  %v1545_v13 = vpop.f32.mrb[14].mxu1  ;;  %v2024_v7 = vpop.permute.xlu0 %2023  ;;  %v5946_v35 = vadd.f32 -1.0, %v7162_v49 }
 0x717   : > { %v7543_v14 = vadd.f32 %v1545_v13, %v7299_v1  ;;  %v1547_v19 = vpop.f32.mrb[15].mxu1  ;;  %v1583_v30 = vadd.f32 %v1576_v43, %v1569_v10  ;;  %v2061_v51 = vpop.permute.xlu1 %2060  ;;  %v2033_v12 = vsel %vm774_vm3, %v2028_v9, %v2024_v7 }
 0x718   : > { %v7546_v20 = vadd.f32 %v1547_v19, %v7303_v4  ;;  %v1584_v44 = vadd.f32 %v1576_v43, %v1570_v16 }
 0x719   : > { %9489 = vst [vmem:[#allocation15_spill] sm:$0xff] %v7543_v14  ;;  %v1571_v22 = vmul.f32 %v1567_v63, %v7543_v14  ;;  %v1587_v60 = vmax.f32 %v1583_v30, 0.0  ;;  %v2168_v14 = vmul.f32 %v7295_v61, %v7191_v6  ;;  %v2209_v6 = vmul.f32 1e+30, %v5948_v54 }
 0x71a   : > { %9490 = vst [vmem:[#allocation16_spill] sm:$0xff] %v7546_v20  ;;  %v1572_v15 = vmul.f32 %v1567_v63, %v7546_v20  ;;  %v1588_v18 = vmax.f32 %v1584_v44, 0.0  ;;  %v2057_v63 = vpop.permute.xlu0 %2056  ;;  %v2167_v20 = vmul.f32 %v7292_v52, %v7187_v5 }
 0x71b   : > { %v1585_v46 = vadd.f32 %v1581_v23, %v1571_v22  ;;  %v7557_v16 = vpop.permute.xlu1 %2097  ;;  %v2066_v61 = vsel %vm795_vm2, %v2061_v51, %v2057_v63 }
 0x71c   : > { %v1586_v47 = vadd.f32 %v1581_v23, %v1572_v15 }
 0x71d   : > { %v1589_v50 = vmax.f32 %v1585_v46, 0.0 }
 0x71e   : > { %v1590_v53 = vmax.f32 %v1586_v47, 0.0  ;;  %v7559_v13 = vpop.permute.xlu0 %2093 }
 0x71f   : > { %v6627_v2 = vpack.c.bf16 %v1589_v50, %v1587_v60  ;;  %v7561_v10 = vpop.permute.xlu1 %2029  ;;  %v5947_v50 = vadd.f32 -1.0, %v7179_v62  ;;  %v5943_v60 = vadd.f32 -1.0, %v7111_v31 }
 0x720   : > { %v6625_v0 = vpack.c.bf16 %v1590_v53, %v1588_v18 }
 0x721   : > { %v2172_v18 = vmul.f32 1e+30, %v5947_v50  ;;  %v2040_v50 = vmul.f32 1e+30, %v5943_v60 }
 0x722   : > { %6626 = vmatprep.subr.bf16.mxu1 %v6625_v0  ;;  %v7563_v19 = vpop.permute.xlu0 %2025 }
 0x723   : > { %6628 = vmatpush1.bf16.msra.mxu1 %v6627_v2  ;;  %v7565_v43 = vpop.permute.xlu1 %2062  ;;  %v5944_v2 = vadd.f32 -1.0, %v7101_v27  ;;  %v2181_v62 = vrot.slane %v2172_v18, %v7105_v29  ;;  %v2169_v27 = vmul.f32 %v7299_v1, %v7187_v5  ;;  %v7612_v45 = vrot.slane %v2040_v50, %v7103_v28 }
 0x724   : > { %v2147_v1 = vmul.f32 1e+30, %v5946_v35  ;;  %v2064_v35 = vsel %vm795_vm2, %v2057_v63, %v2061_v51  ;;  %v7632_v55 = vrot.slane %v2040_v50, %v7105_v29 }
 0x725   : > { %v7609_v49 = vadd.f32 %v2181_v62, %v2168_v14  ;;  %v7616_v4 = vadd.f32 %v2181_v62, %v2170_v11  ;;  %v2031_v14 = vsel %vm774_vm3, %v2024_v7, %v2028_v9  ;;  %v2035_v9 = vmul.f32 %v2033_v12, %v7134_v38 }
 0x726   : > { %5920 = vmatmul.mubr.msk.f32.vlgmr.msra.gmra.mrb[16].mxu1 %vm521_vm0, %v5919_v3  ;;  %v7567_v22 = vpop.permute.xlu0 %2058  ;;  %v2177_v3 = vrot.slane %v2172_v18, %v7103_v28  ;;  %v7645_v51 = vrot.slane %v2147_v1, %v7103_v28 }
 0x727   : > { %1784 = vmatprep.mubr.f32.mxu1 %v9404_v8  ;;  %v7569_v23 = vpop.permute.xlu1 %2134  ;;  %v5945_v8 = vadd.f32 -1.0, %v7116_v32  ;;  %v2073_v32 = vmul.f32 1e+30, %v5944_v2  ;;  %9491 = vst [vmem:[#allocation17_spill] sm:$0xff] %v7609_v49  ;;  %9493 = vst [vmem:[#allocation19_spill] sm:$0xff] %v7616_v4  ;;  %v7671_v4 = vrot.slane %v2147_v1, %v7105_v29  ;;  %v2101_v1 = vsel %vm819_vm4, %v7559_v13, %v7557_v16 }
 0x728   : > { %v7607_v60 = vadd.f32 %v2177_v3, %v2167_v20  ;;  %v7614_v5 = vadd.f32 %v2177_v3, %v2169_v27  ;;  %v2068_v3 = vmul.f32 %v2066_v61, %v7121_v33  ;;  %v2036_v61 = vmul.f32 %v2031_v14, %v7138_v39 }
 0x729   : > { %v2110_v18 = vmul.f32 1e+30, %v5945_v8  ;;  %v7621_v2 = vrot.slane %v2073_v32, %v7103_v28  ;;  %v5949_v8 = vadd.f32 -1.0, %v7204_v17  ;;  %v7635_v54 = vrot.slane %v2073_v32, %v7105_v29  ;;  %v2356_v32 = vld [vmem:[%s9496_s10 + $0x80] sm:$0xff] }
 0x72a   : > { %v7571_v44 = vpop.permute.xlu0 %2130  ;;  %9492 = vst [vmem:[#allocation18_spill] sm:$0xff] %v7614_v5  ;;  %v7674_v14 = vrot.slane %v2209_v6, %v7103_v28  ;;  %v7694_v5 = vadd.f32 %v7612_v45, %v2035_v9  ;;  %v2067_v37 = vsel %vm795_vm2, %v7565_v43, %v7567_v22 }
 0x72b   : > { %v7573_v15 = vpop.permute.xlu1 %2099  ;;  %v7638_v17 = vrot.slane %v2110_v18, %v7103_v28  ;;  %v7642_v7 = vrot.slane %v2110_v18, %v7105_v29  ;;  %v2069_v18 = vmul.f32 %v2064_v35, %v7125_v34  ;;  %v7658_v12 = vmul.f32 1e+30, %v5949_v8 }
 0x72c   : > { %v7668_v48 = vadd.f32 %v7621_v2, %v2068_v3  ;;  %9497 = vst [vmem:[#allocation22_spill] sm:$0xff] %v7674_v14  ;;  %v7677_v8 = vrot.slane %v2209_v6, %v7105_v29  ;;  %v2103_v35 = vsel %vm819_vm4, %v7557_v16, %v7559_v13  ;;  %v7706_v16 = vadd.f32 %v7632_v55, %v2036_v61 }
 0x72d   : > { %v7709_v13 = vadd.f32 %v7635_v54, %v2069_v18  ;;  %v7713_v9 = vrot.slane %v7658_v12, %v7103_v28  ;;  %v2105_v18 = vmul.f32 %v2103_v35, %v7142_v40  ;;  %v9498_v35 = vmov 0.0  }
 0x72e   : > { %v7575_v30 = vpop.permute.xlu0 %2095  ;;  %v2089_v61 = vmax.f32 %v7694_v5, %v7668_v48  ;;  %v2361_v5 = vld [vmem:[%s9496_s10 + $0xa8] sm:$0xff]  ;;  %v2032_v48 = vsel %vm774_vm3, %v7563_v19, %v7561_v10 }
 0x72f   : > { %v7577_v46 = vpop.permute.xlu1 %2136 }
 0x732   : > { %v7579_v47 = vpop.permute.xlu0 %2132 }
 0x733   : > { %v7582_v53 = vpop.permute.xlu1 %2196 }
 0x736   : > { %v7585_v0 = vpop.permute.xlu0 %2192 }
 0x737   : > { %v7596_v31 = vpop.permute.xlu1 %2233 }
 0x73a   : > { %v7603_v52 = vpop.permute.xlu0 %2229 }
 0x73b   : > { %v7629_v11 = vpop.permute.xlu1 %2198 }
 0x73c   : > { %9494 = vst [vmem:[#allocation20_spill] sm:$0xff] %v7629_v11 }
 0x73e   : > { %v7647_v63 = vpop.permute.xlu0 %2194 }
 0x73f   : > { %9495 = vst [vmem:[#allocation21_spill] sm:$0xff] %v7647_v63  ;;  %v7700_v14 = vpop.permute.xlu1 %2270  ;;  %v5921_v63 = vld [vmem:[%s9375_s3 + $0x90] sm:$0xff] }
 0x7f9   : > { %v1662_v20 = vpop.f32.mrb[16].mxu1 }
 0x7fa   : > { %v1672_v62 = vmul.f32 %v1670_v36, %v1662_v20  ;;  %v1664_v27 = vpop.f32.mrb[17].mxu1 }
 0x7fb   : > { %v1673_v58 = vmul.f32 %v1670_v36, %v1664_v27  ;;  %v2357_v36 = vld [vmem:[%s9496_s10 + $0x88] sm:$0xff] }
 0x7fc   : > { %v1679_v50 = vadd.f32 %v7555_v56, %v1672_v62  ;;  %v2340_v62 = vld [vmem:[%s9496_s10] sm:$0xff]  ;;  %v2341_v27 = vld [vmem:[%s9496_s10 + $0x8] sm:$0xff]  ;;  %v6629_v3 = vpack.c.bf16 %v2357_v36, %v2356_v32  ;;  %v2343_v36 = vld [vmem:[%s9496_s10 + $0x18] sm:$0xff] }
 0x7fd   : > { %v1680_v20 = vadd.f32 %v7555_v56, %v1673_v58  ;;  %v2358_v58 = vld [vmem:[%s9496_s10 + $0x90] sm:$0xff]  ;;  %v2359_v56 = vld [vmem:[%s9496_s10 + $0x98] sm:$0xff]  ;;  %v6631_v49 = vpack.c.bf16 %v2341_v27, %v2340_v62  ;;  %v2065_v62 = vsel %vm795_vm2, %v7567_v22, %v7565_v43  ;;  %v7729_v27 = vpop.permute.xlu0 %2266  ;;  %v2034_v43 = vsel %vm774_vm3, %v7561_v10, %v7563_v19 }
 0x7fe   : > { %v1681_v11 = vmax.f32 %v1679_v50, 0.0  ;;  %v6633_v32 = vpack.c.bf16 %v2359_v56, %v2358_v58  ;;  %v2342_v50 = vld [vmem:[%s9496_s10 + $0x10] sm:$0xff]  ;;  %v2360_v58 = vld [vmem:[%s9496_s10 + $0xa0] sm:$0xff]  ;;  %v2070_v22 = vmul.f32 %v2067_v37, %v7121_v33  ;;  %v2140_v56 = vsel %vm843_vm5, %v7569_v23, %v7571_v44  ;;  %v5922_v37 = vld [vmem:[%s9375_s3 + $0x98] sm:$0xff] }
 0x7ff   : > { %v1682_v6 = vmax.f32 %v1680_v20, 0.0  ;;  %v2106_v20 = vmul.f32 %v2101_v1, %v7146_v41  ;;  %v5950_v1 = vadd.f32 -1.0, %v7222_v26  ;;  %v6635_v10 = vpack.c.bf16 %v2343_v36, %v2342_v50 }
 0x800   : > { %v2071_v19 = vmul.f32 %v2065_v62, %v7125_v34  ;;  %v2104_v26 = vsel %vm819_vm4, %v7573_v15, %v7575_v30  ;;  %v2037_v50 = vmul.f32 %v2034_v43, %v7134_v38  ;;  %v2038_v36 = vmul.f32 %v2032_v48, %v7138_v39 }
 0x801   : > { %1720 = vmatprep.subr.mxu1 %v1682_v6  ;;  %v2090_v6 = vmax.f32 %v7706_v16, %v7709_v13  ;;  %v2142_v62 = vmul.f32 %v2140_v56, %v7170_v57  ;;  %v2139_v13 = vsel %vm843_vm5, %v7579_v47, %v7577_v46  ;;  %v7801_v48 = vpop.permute.xlu0 %2231  ;;  %v5951_v43 = vadd.f32 -1.0, %v7240_v42  ;;  %v2346_v42 = vld [vmem:[%s9496_s10 + $0x30] sm:$0xff] }
 0x802   : > { %1721 = vmatpush1.msra.mxu1 %v1681_v11  ;;  %v2138_v11 = vsel %vm843_vm5, %v7571_v44, %v7569_v23  ;;  %v6637_v23 = vpack.c.bf16 %v2361_v5, %v2360_v58  ;;  %v2344_v44 = vld [vmem:[%s9496_s10 + $0x20] sm:$0xff]  ;;  %v2107_v58 = vmul.f32 %v2104_v26, %v7142_v40  ;;  %v2347_v26 = vld [vmem:[%s9496_s10 + $0x38] sm:$0xff] }
 0x803   : > { %5930 = vmatmul.mubr.msk.f32.vlgmr.msra.gmra.mrb[18].mxu1 %vm621_vm1, %v5921_v63  ;;  %6630 = vmatprep.subr.bf16.mxu1 %v6629_v3  ;;  %v2102_v63 = vsel %vm819_vm4, %v7575_v30, %v7573_v15  ;;  %v2122_v3 = vadd.f32 %v7638_v17, %v2105_v18  ;;  %v7780_v15 = vpop.permute.xlu1 %2235  ;;  %v2362_v30 = vld [vmem:[%s9496_s10 + $0xb0] sm:$0xff]  ;;  %v2143_v16 = vmul.f32 %v2138_v11, %v7174_v59  ;;  %v5923_v11 = vld [vmem:[%s9375_s3 + $0xa0] sm:$0xff] }
 0x804   : > { %1790 = vmatprep.mubr.f32.mxu1 %v9498_v35  ;;  %6632 = vmatpush3.bf16.msra.mxu1 %v6631_v49  ;;  %v2345_v49 = vld [vmem:[%s9496_s10 + $0x28] sm:$0xff]  ;;  %v2141_v18 = vsel %vm843_vm5, %v7577_v46, %v7579_v47  ;;  %v2108_v5 = vmul.f32 %v2102_v63, %v7146_v41  ;;  %v2123_v46 = vadd.f32 %v7642_v7, %v2106_v20 }
 0x805   : > { %6634 = vmatprep.subr.bf16.mxu1 %v6633_v32  ;;  %v2363_v32 = vld [vmem:[%s9496_s10 + $0xb8] sm:$0xff]  ;;  %v6639_v56 = vpack.c.bf16 %v2345_v49, %v2344_v44  ;;  %v2087_v47 = vadd.f32 %v7621_v2, %v2070_v22  ;;  %v2126_v41 = vmax.f32 %v2089_v61, %v2122_v3  ;;  %v2144_v44 = vmul.f32 %v2141_v18, %v7170_v57  ;;  %v2364_v2 = vld [vmem:[%s9496_s10 + $0xc0] sm:$0xff] }
 0x806   : > { %v6641_v63 = vpack.c.bf16 %v2363_v32, %v2362_v30  ;;  %v2145_v20 = vmul.f32 %v2139_v13, %v7174_v59  ;;  %v2055_v22 = vadd.f32 %v7632_v55, %v2038_v36  ;;  %v2160_v61 = vadd.f32 %v7671_v4, %v2143_v16  ;;  %v5924_v55 = vld [vmem:[%s9375_s3 + $0xa8] sm:$0xff] }
 0x807   : > { %5931 = vmatmul.mubr.msk.f32.gmra.mrb[20].mxu1 %vm621_vm1, %v5922_v37  ;;  %v2088_v37 = vadd.f32 %v7635_v54, %v2071_v19  ;;  %v2365_v54 = vld [vmem:[%s9496_s10 + $0xc8] sm:$0xff]  ;;  %v2159_v19 = vadd.f32 %v7645_v51, %v2142_v62  ;;  %v2125_v49 = vadd.f32 %v7642_v7, %v2108_v5  ;;  %v2283_v3 = vmul.f32 1e+30, %v5950_v1  ;;  %v2366_v5 = vld [vmem:[%s9496_s10 + $0xd0] sm:$0xff] }
 0x808   : > { %1796 = vmatprep.mubr.f32.mxu1 %v9498_v35  ;;  %6636 = vmatpush3.bf16.msra.mxu1 %v6635_v10  ;;  %v2054_v10 = vadd.f32 %v7612_v45, %v2037_v50  ;;  %v2202_v45 = vsel %vm884_vm6, %v7582_v53, %v7585_v0  ;;  %v7836_v50 = vpop.permute.xlu1 %2307  ;;  %v6643_v36 = vpack.c.bf16 %v2347_v26, %v2346_v42  ;;  %v2349_v7 = vld [vmem:[%s9496_s10 + $0x48] sm:$0xff]  ;;  %v2350_v42 = vld [vmem:[%s9496_s10 + $0x50] sm:$0xff]  ;;  %v2351_v26 = vld [vmem:[%s9496_s10 + $0x58] sm:$0xff] }
 0x809   : > { %6638 = vmatprep.subr.bf16.mxu1 %v6637_v23  ;;  %v2124_v23 = vadd.f32 %v7638_v17, %v2107_v58  ;;  %v2127_v30 = vmax.f32 %v2090_v6, %v2123_v46  ;;  %v2092_v62 = vmax.f32 %v2055_v22, %v2088_v37  ;;  %v6645_v16 = vpack.c.bf16 %v2365_v54, %v2364_v2  ;;  %v2348_v17 = vld [vmem:[%s9496_s10 + $0x40] sm:$0xff]  ;;  %v7855_v58 = vpop.permute.xlu0 %2303 }
 0x80a   : > { %v2091_v32 = vmax.f32 %v2054_v10, %v2087_v47  ;;  %v2161_v1 = vadd.f32 %v7645_v51, %v2144_v44  ;;  %v2162_v13 = vadd.f32 %v7671_v4, %v2145_v20  ;;  %v2200_v6 = vsel %vm884_vm6, %v7585_v0, %v7582_v53  ;;  %v5925_v47 = vld [vmem:[%s9375_s3 + $0xb0] sm:$0xff]  ;;  %v2368_v22 = vld [vmem:[%s9496_s10 + $0xe0] sm:$0xff] }
 0x80b   : > { %5932 = vmatmul.mubr.msk.f32.gmra.mrb[22].mxu1 %vm621_vm1, %v5923_v11  ;;  %v2205_v18 = vmul.f32 %v2202_v45, %v7216_v24  ;;  %v2367_v11 = vld [vmem:[%s9496_s10 + $0xd8] sm:$0xff]  ;;  %v2163_v51 = vmax.f32 %v2126_v41, %v2159_v19  ;;  %v7865_v4 = vrot.slane %v7658_v12, %v7105_v29  ;;  %v2320_v46 = vmul.f32 1e+30, %v5951_v43  ;;  %v2369_v19 = vld [vmem:[%s9496_s10 + $0xe8] sm:$0xff] }
 0x80c   : > { %1802 = vmatprep.mubr.f32.mxu1 %v9498_v35  ;;  %6640 = vmatpush3.bf16.msra.mxu1 %v6639_v56  ;;  %v2164_v56 = vmax.f32 %v2127_v30, %v2160_v61  ;;  %v2128_v53 = vmax.f32 %v2091_v32, %v2124_v23  ;;  %v2129_v0 = vmax.f32 %v2092_v62, %v2125_v49  ;;  %v2273_v54 = vpop.permute.xlu1 %2272  ;;  %v9499_v45 = vld [vmem:[#allocation17_spill] sm:$0xff]  ;;  %v5926_v62 = vld [vmem:[%s9375_s3 + $0xb8] sm:$0xff] }
 0x80d   : > { %6642 = vmatprep.subr.bf16.mxu1 %v6641_v63  ;;  %v6647_v37 = vpack.c.bf16 %v2349_v7, %v2348_v17  ;;  %v2204_v41 = vmul.f32 %v2200_v6, %v7208_v21  ;;  %v7874_v63 = vrot.slane %v2283_v3, %v7103_v28  ;;  %v7877_v12 = vrot.slane %v2283_v3, %v7105_v29  ;;  %v2269_v32 = vpop.permute.xlu0 %2268 }
 0x80e   : > { %v6649_v43 = vpack.c.bf16 %v2367_v11, %v2366_v5  ;;  %v2165_v10 = vmax.f32 %v2128_v53, %v2161_v1  ;;  %v2166_v44 = vmax.f32 %v2129_v0, %v2162_v13  ;;  %v7886_v20 = vadd.f32 %v7677_v8, %v2205_v18  ;;  %v9503_v1 = vld [vmem:[#allocation8_spill] sm:$0xff]  ;;  %v2353_v5 = vld [vmem:[%s9496_s10 + $0x68] sm:$0xff]  ;;  %v2370_v53 = vld [vmem:[%s9496_s10 + $0xf0] sm:$0xff] }
 0x80f   : > { %5933 = vmatmul.mubr.msk.f32.gmra.mrb[24].mxu1 %vm621_vm1, %v5924_v55  ;;  %v2239_v2 = vsel %vm908_vm7, %v7596_v31, %v7603_v52  ;;  %v7899_v61 = vmax.f32 %v2163_v51, %v7607_v60  ;;  %v7902_v23 = vmax.f32 %v2164_v56, %v9499_v45  ;;  %v7905_v49 = vrot.slane %v2320_v46, %v7103_v28  ;;  %v9500_v55 = vld [vmem:[#allocation21_spill] sm:$0xff]  ;;  %v2352_v18 = vld [vmem:[%s9496_s10 + $0x60] sm:$0xff]  ;;  %v9504_v51 = vld [vmem:[#allocation18_spill] sm:$0xff] }
 0x810   : > { %1808 = vmatprep.mubr.f32.mxu1 %v9498_v35  ;;  %6644 = vmatpush3.bf16.msra.mxu1 %v6643_v36  ;;  %v7909_v3 = vrot.slane %v2320_v46, %v7105_v29  ;;  %v9501_v36 = vld [vmem:[#allocation20_spill] sm:$0xff]  ;;  %v2276_v60 = vsel %vm932_vm8, %v7700_v14, %v7729_v27  ;;  %v6651_v29 = vpack.c.bf16 %v2351_v26, %v2350_v42  ;;  %v9505_v46 = vld [vmem:[#allocation19_spill] sm:$0xff] }
 0x811   : > { %6646 = vmatprep.subr.bf16.mxu1 %v6645_v16  ;;  %v2203_v30 = vsel %vm884_vm6, %v9501_v36, %v9500_v55  ;;  %v9502_v16 = vld [vmem:[#allocation22_spill] sm:$0xff]  ;;  %v2237_v7 = vsel %vm908_vm7, %v7603_v52, %v7596_v31  ;;  %v2242_v13 = vmul.f32 %v2239_v2, %v9503_v1  ;;  %v6653_v6 = vpack.c.bf16 %v2369_v19, %v2368_v22  ;;  %v2371_v0 = vld [vmem:[%s9496_s10 + $0xf8] sm:$0xff]  ;;  %v5927_v2 = vld [vmem:[%s9375_s3 + $0xc0] sm:$0xff] }
 0x812   : > { %v7924_v17 = vadd.f32 %v9502_v16, %v2204_v41  ;;  %v2226_v11 = vmax.f32 %v7902_v23, %v7886_v20  ;;  %v7940_v56 = vmax.f32 %v2165_v10, %v9504_v51  ;;  %v7943_v31 = vmax.f32 %v2166_v44, %v9505_v46  ;;  %v9507_v26 = vld [vmem:[#allocation7_spill] sm:$0xff]  ;;  %v2310_v20 = vpop.permute.xlu1 %2309 }
 0x813   : > { %5934 = vmatmul.mubr.msk.f32.gmra.mrb[26].mxu1 %vm621_vm1, %v5925_v47  ;;  %v2201_v52 = vsel %vm884_vm6, %v9500_v55, %v9501_v36  ;;  %v2207_v47 = vmul.f32 %v2203_v30, %v7216_v24  ;;  %v2313_v42 = vsel %vm956_vm9, %v7836_v50, %v7855_v58  ;;  %v2241_v10 = vmul.f32 %v2237_v7, %v9507_v26  ;;  %v2306_v7 = vpop.permute.xlu0 %2305 }
 0x814   : > { %1814 = vmatprep.mubr.f32.mxu1 %v9498_v35  ;;  %6648 = vmatpush3.bf16.msra.mxu1 %v6647_v37  ;;  %v9506_v37 = vld [vmem:[#allocation10_spill] sm:$0xff]  ;;  %v2274_v44 = vsel %vm932_vm8, %v7729_v27, %v7700_v14  ;;  %v6655_v22 = vpack.c.bf16 %v2353_v5, %v2352_v18  ;;  %v2259_v19 = vadd.f32 %v7865_v4, %v2242_v13  ;;  %v2355_v27 = vld [vmem:[%s9496_s10 + $0x78] sm:$0xff] }
 0x815   : > { %6650 = vmatprep.subr.bf16.mxu1 %v6649_v43  ;;  %v2279_v41 = vmul.f32 %v2276_v60, %v9506_v37  ;;  %v2240_v43 = vsel %vm908_vm7, %v7780_v15, %v7801_v48  ;;  %v2206_v45 = vmul.f32 %v2201_v52, %v7208_v21  ;;  %v2277_v23 = vsel %vm932_vm8, %v2273_v54, %v2269_v32  ;;  %v2354_v14 = vld [vmem:[%s9496_s10 + $0x70] sm:$0xff]  ;;  %v9510_v52 = vld [vmem:[#allocation11_spill] sm:$0xff]  ;;  %s9515_s10 = smov 9  }
 0x816   : > { %v6657_v55 = vpack.c.bf16 %v2371_v0, %v2370_v53  ;;  %v2238_v36 = vsel %vm908_vm7, %v7801_v48, %v7780_v15  ;;  %v2244_v30 = vmul.f32 %v2240_v43, %v9503_v1  ;;  %v2311_v60 = vsel %vm956_vm9, %v7855_v58, %v7836_v50 }
 0x817   : > { %5935 = vmatmul.mubr.msk.f32.gmra.mrb[28].mxu1 %vm621_vm1, %v5926_v62  ;;  %v9508_v62 = vld [vmem:[#allocation12_spill] sm:$0xff]  ;;  %v2224_v13 = vadd.f32 %v7677_v8, %v2207_v47  ;;  %v2296_v5 = vadd.f32 %v7877_v12, %v2279_v41  ;;  %v2314_v51 = vsel %vm956_vm9, %v2310_v20, %v2306_v7  ;;  %v2275_v15 = vsel %vm932_vm8, %v2269_v32, %v2273_v54  ;;  %v5928_v8 = vld [vmem:[%s9375_s3 + $0xc8] sm:$0xff] }
 0x818   : > { %1820 = vmatprep.mubr.f32.mxu1 %v9498_v35  ;;  %6652 = vmatpush3.bf16.msra.mxu1 %v6651_v29  ;;  %v2316_v29 = vmul.f32 %v2313_v42, %v9508_v62  ;;  %v2281_v48 = vmul.f32 %v2277_v23, %v9506_v37  ;;  %v6659_v50 = vpack.c.bf16 %v2355_v27, %v2354_v14 }
 0x819   : > { %6654 = vmatprep.subr.bf16.mxu1 %v6653_v6  ;;  %v9509_v6 = vld [vmem:[#allocation9_spill] sm:$0xff]  ;;  %v2258_v58 = vadd.f32 %v7713_v9, %v2241_v10  ;;  %v2243_v46 = vmul.f32 %v2238_v36, %v9507_v26  ;;  %v2315_v53 = vmul.f32 %v2311_v60, %v9510_v52  ;;  %v2263_v0 = vmax.f32 %v2226_v11, %v2259_v19 }
 0x81a   : > { %v2278_v18 = vmul.f32 %v2274_v44, %v9509_v6  ;;  %v2261_v54 = vadd.f32 %v7865_v4, %v2244_v30  ;;  %v2312_v32 = vsel %vm956_vm9, %v2306_v7, %v2310_v20  ;;  %v2318_v47 = vmul.f32 %v2314_v51, %v9508_v62  ;;  %v5929_v20 = vld [vmem:[%s9375_s3 + $0xd0] sm:$0xff] }
 0x81b   : > { %5936 = vmatmul.mubr.msk.f32.gmra.mrb[30].mxu1 %vm621_vm1, %v5927_v2  ;;  %v2333_v41 = vadd.f32 %v7909_v3, %v2316_v29  ;;  %v2225_v43 = vmax.f32 %v7899_v61, %v7924_v17  ;;  %v2223_v42 = vadd.f32 %v9502_v16, %v2206_v45  ;;  %v2280_v44 = vmul.f32 %v2275_v15, %v9509_v6 }
 0x81c   : > { %1826 = vmatprep.mubr.f32.mxu1 %v9498_v35  ;;  %6656 = vmatpush3.bf16.msra.mxu1 %v6655_v22  ;;  %v2295_v10 = vadd.f32 %v7874_v63, %v2278_v18  ;;  %v2228_v4 = vmax.f32 %v7943_v31, %v2224_v13  ;;  %v2298_v11 = vadd.f32 %v7877_v12, %v2281_v48 }
 0x81d   : > { %6658 = vmatprep.subr.bf16.mxu1 %v6657_v55  ;;  %v2300_v61 = vmax.f32 %v2263_v0, %v2296_v5  ;;  %v2262_v17 = vmax.f32 %v2225_v43, %v2258_v58  ;;  %v2260_v16 = vadd.f32 %v7713_v9, %v2243_v46  ;;  %v2332_v2 = vadd.f32 %v7905_v49, %v2315_v53 }
 0x81e   : > { %v2317_v22 = vmul.f32 %v2312_v32, %v9510_v52  ;;  %v2265_v45 = vmax.f32 %v2228_v4, %v2261_v54  ;;  %v2335_v31 = vadd.f32 %v7909_v3, %v2318_v47  ;;  %v2227_v12 = vmax.f32 %v7940_v56, %v2223_v42  ;;  %v5953_v32 = vld [vmem:[%s9373_s1 + $0xc8] sm:$0xff]  ;;  %v5952_v47 = vld [vmem:[%s9373_s1 + $0xc0] sm:$0xff] }
 0x81f   : > { %5937 = vmatmul.mubr.msk.f32.gmra.mrb[32].mxu1 %vm621_vm1, %v5928_v8  ;;  %v2337_v19 = vmax.f32 %v2300_v61, %v2333_v41  ;;  %v2299_v23 = vmax.f32 %v2262_v17, %v2295_v10  ;;  %v2297_v55 = vadd.f32 %v7874_v63, %v2280_v44  ;;  %v5955_v10 = vld [vmem:[%s9373_s1 + $0xd8] sm:$0xff]  ;;  %v5954_v44 = vld [vmem:[%s9373_s1 + $0xd0] sm:$0xff]  ;;  %v5957_v61 = vld [vmem:[%s9373_s1 + $0xe8] sm:$0xff] }
 0x820   : > { %1832 = vmatprep.mubr.f32.mxu1 %v9498_v35  ;;  %6660 = vmatpush3.bf16.msra.mxu1 %v6659_v50  ;;  %v2302_v14 = vmax.f32 %v2265_v45, %v2298_v11  ;;  %v2264_v36 = vmax.f32 %v2227_v12, %v2260_v16  ;;  %v2334_v9 = vadd.f32 %v7905_v49, %v2317_v22  ;;  %v5956_v17 = vld [vmem:[%s9373_s1 + $0xe0] sm:$0xff]  ;;  %v8078_v16 = vpop.permute.xlu0 %1923 }
 0x821   : > { %v2336_v27 = vmax.f32 %v2299_v23, %v2332_v2  ;;  %v8080_v2 = vpop.permute.xlu1 %1930 }
 0x822   : > { %v2339_v30 = vmax.f32 %v2302_v14, %v2335_v31  ;;  %v2301_v60 = vmax.f32 %v2264_v36, %v2297_v55 }
 0x823   : > { %5938 = vmatmul.mubr.msk.f32.gmra.mrb[34].mxu1 %vm621_vm1, %v5929_v20 }
 0x824   : > { %2436 = vmatprep.mubr.f32.mxu1 %v2337_v19  ;;  %v2338_v29 = vmax.f32 %v2301_v60, %v2334_v9 }
 0x827   : > { %2437 = vmatmul.mubr.f32.vlgmr.msra.gmra.mrb[36].mxu1 %v2336_v27 }
 0x828   : > { %2441 = vmatprep.mubr.f32.mxu1 %v2339_v30 }
 0x82b   : > { %2442 = vmatmul.mubr.f32.gmra.mrb[38].mxu1 %v2338_v29 }
 0x8d6   : > { %v1786_v3 = vpop.f32.mrb[18].mxu1 }
 0x8d7   : > { %1839 = vrot.lane.b32.xlu0 %v1786_v3, %s9483_s18  ;;  %v1788_v56 = vpop.f32.mrb[19].mxu1 }
 0x8d8   : > { %1841 = vrot.lane.b32.xlu1 %v1788_v56, %s9483_s18 }
 0x8da   : > { %v1792_v63 = vpop.f32.mrb[20].mxu1 }
 0x8db   : > { %1847 = vrot.lane.b32.xlu0 %v1792_v63, %s9484_s27  ;;  %v1794_v7 = vpop.f32.mrb[21].mxu1 }
 0x8dc   : > { %1849 = vrot.lane.b32.xlu1 %v1794_v7, %s9484_s27 }
 0x8de   : > { %v1798_v13 = vpop.f32.mrb[22].mxu1 }
 0x8df   : > { %1857 = vrot.lane.b32.xlu0 %v1798_v13, %s9485_s26  ;;  %v1800_v49 = vpop.f32.mrb[23].mxu1 }
 0x8e0   : > { %1859 = vrot.lane.b32.xlu1 %v1800_v49, %s9485_s26 }
 0x8e2   : > { %v1804_v18 = vpop.f32.mrb[24].mxu1 }
 0x8e3   : > { %1867 = vrot.lane.b32.xlu0 %v1804_v18, %s9486_s28  ;;  %v1806_v5 = vpop.f32.mrb[25].mxu1 }
 0x8e4   : > { %1869 = vrot.lane.b32.xlu1 %v1806_v5, %s9486_s28  ;;  %v9511_v5 = vld [vmem:[#allocation4_spill] sm:$0xff] }
 0x8e6   : > { %v8044_v51 = vpop.f32.mrb[26].mxu1 }
 0x8e7   : > { %v8046_v15 = vpop.f32.mrb[27].mxu1 }
 0x8ea   : > { %v1816_v48 = vpop.f32.mrb[28].mxu1 }
 0x8eb   : > { %1881 = vrot.lane.b32.xlu0 %v1816_v48, %s9479_s30  ;;  %v1818_v8 = vpop.f32.mrb[29].mxu1 }
 0x8ec   : > { %1883 = vrot.lane.b32.xlu1 %v1818_v8, %s9479_s30 }
 0x8ee   : > { %v1822_v50 = vpop.f32.mrb[30].mxu1 }
 0x8ef   : > { %1891 = vrot.lane.b32.xlu0 %v1822_v50, %s9480_s20  ;;  %v1824_v58 = vpop.f32.mrb[31].mxu1 }
 0x8f0   : > { %1893 = vrot.lane.b32.xlu1 %v1824_v58, %s9480_s20 }
 0x8f2   : > { %v1828_v46 = vpop.f32.mrb[32].mxu1 }
 0x8f3   : > { %1901 = vrot.lane.b32.xlu0 %v1828_v46, %s9481_s21  ;;  %v1830_v53 = vpop.f32.mrb[33].mxu1 }
 0x8f4   : > { %1903 = vrot.lane.b32.xlu1 %v1830_v53, %s9481_s21  ;;  %s9460_s21 = smov 5  }
 0x8f6   : > { %v1834_v0 = vpop.f32.mrb[34].mxu1 }
 0x8f7   : > { %v1836_v54 = vpop.f32.mrb[35].mxu1 }
 0x8f8   : > { %1911 = vrot.lane.b32.xlu1 %v1834_v0, %s9482_s22  ;;  %1913 = vrot.lane.b32.xlu0 %v1836_v54, %s9482_s22  ;;  %s9458_s22 = smov 4  }
 0x8fa   : > { %v6220_v41 = vpop.f32.mrb[36].mxu1 }
 0x8fb   : > { %v6221_v43 = vpop.f32.mrb[37].mxu1 }
 0x8fc   : > { %v8062_v42 = vadd.f32 %v6221_v43, %v6220_v41  ;;  %2463 = vperm.xlu1 %6825, %v5953_v32   ;;  %2458 = vperm.xlu0 %6824, %v5952_v47  }
 0x8fe   : > { %v6223_v4 = vpop.f32.mrb[38].mxu1 }
 0x8ff   : > { %v6224_v11 = vpop.f32.mrb[39].mxu1 }
 0x900   : > { %v8070_v20 = vadd.f32 %v6224_v11, %v6223_v4  ;;  %2475 = vperm.xlu1 %6825, %v5955_v10   ;;  %2470 = vperm.xlu0 %6824, %v5954_v44  }
 0x904   : > { %2565 = vperm.xlu1 %6825, %v5957_v61   ;;  %2559 = vperm.xlu0 %6824, %v5956_v17   ;;  %v9512_v17 = vld [vmem:[#allocation5_spill] sm:$0xff] }
 0x949   : > { %v1840_v22 = vpop.permute.xlu0 %1839 }
 0x94a   : > { %v1842_v19 = vpop.permute.xlu1 %1841 }
 0x94b   : > { %v1843_v9 = vsel %vm774_vm3, %v1840_v22, %v1842_v19  ;;  %v1844_v30 = vsel %vm774_vm3, %v1842_v19, %v1840_v22  ;;  %v1877_v22 = vmul.f32 %v8044_v51, %v9512_v17  ;;  %v9513_v19 = vld [vmem:[#allocation6_spill] sm:$0xff] }
 0x94c   : > { %v1845_v13 = vmul.f32 %v1844_v30, %v7134_v38  ;;  %v1846_v49 = vmul.f32 %v1843_v9, %v7138_v39 }
 0x94d   : > { %v1848_v45 = vpop.permute.xlu0 %1847 }
 0x94e   : > { %v1850_v31 = vpop.permute.xlu1 %1849 }
 0x94f   : > { %v1851_v55 = vsel %vm795_vm2, %v1848_v45, %v1850_v31  ;;  %v1852_v14 = vsel %vm795_vm2, %v1850_v31, %v1848_v45  ;;  %v1878_v45 = vmul.f32 %v8046_v15, %v9513_v19 }
 0x950   : > { %v1853_v3 = vmul.f32 %v1852_v14, %v7121_v33  ;;  %v1854_v56 = vmul.f32 %v1851_v55, %v7125_v34 }
 0x951   : > { %v1858_v12 = vpop.permute.xlu0 %1857 }
 0x952   : > { %v1860_v23 = vpop.permute.xlu1 %1859  ;;  %v1855_v50 = vadd.f32 %v1853_v3, %v1845_v13  ;;  %v1856_v58 = vadd.f32 %v1854_v56, %v1846_v49 }
 0x953   : > { %v1861_v60 = vsel %vm819_vm4, %v1858_v12, %v1860_v23  ;;  %v1862_v29 = vsel %vm819_vm4, %v1860_v23, %v1858_v12 }
 0x954   : > { %v1863_v18 = vmul.f32 %v1862_v29, %v7142_v40  ;;  %v1864_v48 = vmul.f32 %v1861_v60, %v9511_v5 }
 0x955   : > { %v1868_v27 = vpop.permute.xlu0 %1867 }
 0x956   : > { %v1870_v36 = vpop.permute.xlu1 %1869  ;;  %v1865_v54 = vadd.f32 %v1863_v18, %v1855_v50  ;;  %v1866_v32 = vadd.f32 %v1864_v48, %v1856_v58 }
 0x957   : > { %v1871_v63 = vsel %vm843_vm5, %v1868_v27, %v1870_v36  ;;  %v1872_v7 = vsel %vm843_vm5, %v1870_v36, %v1868_v27 }
 0x958   : > { %v1873_v46 = vmul.f32 %v1872_v7, %v7170_v57  ;;  %v1874_v53 = vmul.f32 %v1871_v63, %v7174_v59 }
 0x95a   : > { %v1875_v10 = vadd.f32 %v1873_v46, %v1865_v54  ;;  %v1876_v44 = vadd.f32 %v1874_v53, %v1866_v32 }
 0x95c   : > { %v1879_v55 = vadd.f32 %v1877_v22, %v1875_v10  ;;  %v1880_v14 = vadd.f32 %v1878_v45, %v1876_v44  ;;  %v5939_v10 = vld [vmem:[%s9376_s4 + $0x20] sm:$0xff]  ;;  %v9448_v44 = vmov 0.0|0.0  }
 0x95d   : > { %v1882_v8 = vpop.permute.xlu0 %1881 }
 0x95e   : > { %v1884_v0 = vpop.permute.xlu1 %1883 }
 0x95f   : > { %v1885_v47 = vsel %vm884_vm6, %v1882_v8, %v1884_v0  ;;  %v1886_v41 = vsel %vm884_vm6, %v1884_v0, %v1882_v8 }
 0x960   : > { %v1887_v31 = vmul.f32 %v1885_v47, %v7208_v21  ;;  %v1888_v12 = vmul.f32 %v1886_v41, %v7216_v24 }
 0x961   : > { %v1892_v43 = vpop.permute.xlu0 %1891 }
 0x962   : > { %v1894_v4 = vpop.permute.xlu1 %1893  ;;  %v1889_v60 = vadd.f32 %v1887_v31, %v1879_v55  ;;  %v1890_v15 = vadd.f32 %v1888_v12, %v1880_v14 }
 0x963   : > { %v1895_v11 = vsel %vm908_vm7, %v1892_v43, %v1894_v4  ;;  %v1896_v61 = vsel %vm908_vm7, %v1894_v4, %v1892_v43 }
 0x964   : > { %v1897_v27 = vmul.f32 %v1895_v11, %v9507_v26  ;;  %v1898_v36 = vmul.f32 %v1896_v61, %v9503_v1 }
 0x965   : > { %v1902_v23 = vpop.permute.xlu0 %1901 }
 0x966   : > { %v1904_v9 = vpop.permute.xlu1 %1903  ;;  %v1899_v56 = vadd.f32 %v1897_v27, %v1889_v60  ;;  %v1900_v63 = vadd.f32 %v1898_v36, %v1890_v15  ;;  %v5960_v27 = vld [vmem:[%s9374_s2 + $0x18] sm:$0xff] }
 0x967   : > { %v1905_v30 = vsel %vm932_vm8, %v1902_v23, %v1904_v9  ;;  %v1906_v51 = vsel %vm932_vm8, %v1904_v9, %v1902_v23 }
 0x968   : > { %v1907_v29 = vmul.f32 %v1905_v30, %v9509_v6  ;;  %v1908_v3 = vmul.f32 %v1906_v51, %v9506_v37 }
 0x96a   : > { %v1912_v7 = vpop.permute.xlu1 %1911  ;;  %v1914_v13 = vpop.permute.xlu0 %1913  ;;  %v1909_v48 = vadd.f32 %v1907_v29, %v1899_v56  ;;  %v1910_v8 = vadd.f32 %v1908_v3, %v1900_v63 }
 0x96b   : > { %v1915_v49 = vsel %vm956_vm9, %v1912_v7, %v1914_v13  ;;  %v1916_v18 = vsel %vm956_vm9, %v1914_v13, %v1912_v7  ;;  %v5962_v13 = vld [vmem:[%s9375_s3 + $0xd8] sm:$0xff] }
 0x96c   : > { %v1917_v50 = vmul.f32 %v1915_v49, %v9510_v52  ;;  %v1918_v58 = vmul.f32 %v1916_v18, %v9508_v62  ;;  %v5963_v49 = vld [vmem:[%s9375_s3 + $0xe0] sm:$0xff]  ;;  %v5964_v18 = vld [vmem:[%s9375_s3 + $0xe8] sm:$0xff] }
 0x96e   : > { %v1919_v46 = vadd.f32 %v1917_v50, %v1909_v48  ;;  %v1920_v53 = vadd.f32 %v1918_v58, %v1910_v8  ;;  %v5965_v48 = vld [vmem:[%s9375_s3 + $0xf0] sm:$0xff]  ;;  %v5966_v8 = vld [vmem:[%s9375_s3 + $0xf8] sm:$0xff]  ;;  %v5967_v50 = vld [vmem:[%s9375_s3 + $0x100] sm:$0xff] }
 0x96f   : > { %v5968_v58 = vld [vmem:[%s9375_s3 + $0x108] sm:$0xff] }
 0x970   : > { %v1926_v0 = vmul.f32 %v8078_v16, %v1919_v46  ;;  %v1927_v54 = vmul.f32 %v8078_v16, %v1920_v53  ;;  %v5940_v16 = vld [vmem:[%s9376_s4 + $0x28] sm:$0xff]  ;;  %v5969_v46 = vld [vmem:[%s9375_s3 + $0x110] sm:$0xff]  ;;  %v5970_v53 = vld [vmem:[%s9375_s3 + $0x118] sm:$0xff] }
 0x972   : > { %v1934_v32 = vadd.f32 %v8080_v2, %v1927_v54  ;;  %v1933_v47 = vadd.f32 %v8080_v2, %v1926_v0 }
 0x974   : > { %v1936_v41 = vmax.f32 %v1934_v32, 0.0  ;;  %v1935_v43 = vmax.f32 %v1933_v47, 0.0 }
 0x976   : > { %1946 = vmatprep.subr.mxu0 %v1936_v41 }
 0x977   : > { %1947 = vmatpush1.msra.mxu0 %v1935_v43 }
 0x978   : > { %5941 = vmatmul.mubr.msk.f32.vlgmr.msra.gmra.mrb[32].mxu0 %vm621_vm1, %v5939_v10  ;;  %6661 = vmatprep.subr.bf16.mxu0 %v9448_v44 }
 0x979   : > { %2016 = vmatprep.mubr.f32.mxu0 %v9498_v35 }
 0x97b   : > { %v2464_v2 = vpop.permute.xlu1 %2463  ;;  %v2459_v4 = vpop.permute.xlu0 %2458 }
 0x97c   : > { %5942 = vmatmul.mubr.msk.f32.gmra.mrb[34].mxu0 %vm621_vm1, %v5940_v16  ;;  %v2467_v11 = vmul.f32 %v8070_v20, %v2464_v2  ;;  %v2466_v61 = vmul.f32 %v8062_v42, %v2459_v4 }
 0x97d   : > { %6346 = vmatprep.mubr.msk.f32.mxu0 %vm6861_vm10, %v9498_v35 }
 0x97f   : > { %v2476_v22 = vpop.permute.xlu1 %2475  ;;  %v2471_v45 = vpop.permute.xlu0 %2470 }
 0x980   : > { %v2479_v31 = vadd.f32 %v2476_v22, %v2467_v11  ;;  %v2478_v12 = vadd.f32 %v2471_v45, %v2466_v61  ;;  %v5958_v22 = vld [vmem:[%s9373_s1 + $0xf0] sm:$0xff] }
 0x982   : > { %v2481_v23 = vmax.f32 %v2479_v31, 0.0  ;;  %v2480_v55 = vmax.f32 %v2478_v12, 0.0  ;;  %v5959_v12 = vld [vmem:[%s9373_s1 + $0xf8] sm:$0xff] }
 0x983   : > { %v2560_v60 = vpop.permute.xlu0 %2559  ;;  %v2566_v56 = vpop.permute.xlu1 %2565 }
 0x984   : > { %v6662_v14 = vpack.c.bf16 %v2481_v23, %v2480_v55 }
 0x986   : > { %6663 = vmatpush3.bf16.msra.mxu0 %v6662_v14  ;;  %v5992_v14 = vld [vmem:[%s9373_s1 + $0x100] sm:$0xff] }
 0x987   : > { %6349 = vmatprep.subr.mxu0 %v9498_v35 }
 0x989   : > { %6347 = vmatmul.mubr.msk.f32.vlgmr.msra.gmra.mrb[36].mxu0 %vm521_vm0, %v5960_v27 }
 0x98a   : > { %6351 = vmatprep.mubr.msk.f32.mxu0 %vm6861_vm10, %v9498_v35 }
 0xa4b   : > { %v8159_v36 = vpop.f32.mrb[32].mxu0 }
 0xa4c   : > { %v8161_v9 = vpop.f32.mrb[33].mxu0 }
 0xa4f   : > { %v8163_v30 = vpop.f32.mrb[34].mxu0 }
 0xa50   : > { %v8165_v51 = vpop.f32.mrb[35].mxu0 }
 0xa5c   : > { %v2553_v15 = vpop.f32.mrb[36].mxu0 }
 0xa5d   : > { %v2562_v29 = vmul.f32 %v2560_v60, %v2553_v15  ;;  %v6348_v3 = vpop.f32.mrb[37].mxu0  ;;  %v5988_v15 = vld [vmem:[%s9376_s4 + $0x30] sm:$0xff] }
 0xa5e   : > { %v5993_v3 = vld [vmem:[%s9373_s1 + $0x108] sm:$0xff]  ;;  %6380 = vmatprep.mubr.msk.f32.mxu1 %vm621_vm1, %v5988_v15 }
 0xa5f   : > { %v2568_v63 = vadd.f32 %v2566_v56, %v2562_v29  ;;  %v5994_v29 = vld [vmem:[%s9373_s1 + $0x110] sm:$0xff]  ;;  %v5996_v56 = vld [vmem:[%s9373_s1 + $0x120] sm:$0xff] }
 0xa61   : > { %v2569_v7 = vmax.f32 %v2568_v63, 0.0  ;;  %v5995_v63 = vld [vmem:[%s9373_s1 + $0x118] sm:$0xff] }
 0xa63   : > { %6350 = vmatpush3.msra.mxu0 %v2569_v7  ;;  %v5997_v7 = vld [vmem:[%s9373_s1 + $0x128] sm:$0xff] }
 0xa64   : > { %6352 = vmatmul.mubr.msk.f32.vlgmr.msra.gmra.mrb[38].mxu0 %vm621_vm1, %v5962_v13  ;;  %v8260_v13 = vld [vmem:[%s9514_s8 + $0x1] sm:$0x1] }
 0xa65   : > { %6354 = vmatprep.mubr.msk.f32.mxu0 %vm6861_vm10, %v9498_v35 }
 0xa68   : > { %6355 = vmatmul.mubr.msk.f32.gmra.mrb[40].mxu0 %vm621_vm1, %v5963_v49  ;;  %v8265_v49 = vld [vmem:[%s9514_s8] sm:$0x1] }
 0xa69   : > { %6357 = vmatprep.mubr.msk.f32.mxu0 %vm6861_vm10, %v9498_v35 }
 0xa6c   : > { %6358 = vmatmul.mubr.msk.f32.gmra.mrb[42].mxu0 %vm621_vm1, %v5964_v18 }
 0xa6d   : > { %6360 = vmatprep.mubr.msk.f32.mxu0 %vm6861_vm10, %v9498_v35 }
 0xa70   : > { %6361 = vmatmul.mubr.msk.f32.gmra.mrb[44].mxu0 %vm621_vm1, %v5965_v48  ;;  %v8270_v48 = vld [vmem:[%s9514_s8 + $0x2] sm:$0x1] }
 0xa71   : > { %6363 = vmatprep.mubr.msk.f32.mxu0 %vm6861_vm10, %v9498_v35 }
 0xa74   : > { %6364 = vmatmul.mubr.msk.f32.gmra.mrb[46].mxu0 %vm621_vm1, %v5966_v8  ;;  %v8274_v8 = vrot.slane %v8260_v13, %v7103_v28 }
 0xa75   : > { %6366 = vmatprep.mubr.msk.f32.mxu0 %vm6861_vm10, %v9498_v35 }
 0xa78   : > { %6367 = vmatmul.mubr.msk.f32.gmra.mrb[48].mxu0 %vm621_vm1, %v5967_v50 }
 0xa79   : > { %6369 = vmatprep.mubr.msk.f32.mxu0 %vm6861_vm10, %v9498_v35 }
 0xa7c   : > { %6370 = vmatmul.mubr.msk.f32.gmra.mrb[50].mxu0 %vm621_vm1, %v5968_v58  ;;  %v8279_v58 = vld [vmem:[%s9514_s8 + $0x3] sm:$0x1] }
 0xa7d   : > { %6372 = vmatprep.mubr.msk.f32.mxu0 %vm6861_vm10, %v9498_v35 }
 0xa80   : > { %6373 = vmatmul.mubr.msk.f32.gmra.mrb[52].mxu0 %vm621_vm1, %v5969_v46  ;;  %v8283_v46 = vrot.slane %v8265_v49, %v7103_v28 }
 0xa81   : > { %6375 = vmatprep.mubr.msk.f32.mxu0 %vm6861_vm10, %v9498_v35 }
 0xa84   : > { %6376 = vmatmul.mubr.msk.f32.gmra.mrb[54].mxu0 %vm621_vm1, %v5970_v53  ;;  %v8287_v53 = vrot.slane %v8270_v48, %v7103_v28 }
 0xb37   : > { %v2673_v0 = vpop.f32.mrb[38].mxu0 }
 0xb38   : > { %2717 = vrot.lane.b32.xlu0 %v2673_v0, %s9435_s23  ;;  %v6353_v54 = vpop.f32.mrb[39].mxu0 }
 0xb3b   : > { %v2678_v32 = vpop.f32.mrb[40].mxu0 }
 0xb3c   : > { %2727 = vrot.lane.b32.xlu1 %v2678_v32, %s9433_s24  ;;  %v6356_v47 = vpop.f32.mrb[41].mxu0  ;;  %v8292_v32 = vrot.slane %v8279_v58, %v7103_v28  ;;  %s9456_s24 = smov 125  }
 0xb3f   : > { %v2683_v41 = vpop.f32.mrb[42].mxu0 }
 0xb40   : > { %2739 = vrot.lane.b32.xlu0 %v2683_v41, %s9431_s16  ;;  %v6359_v43 = vpop.f32.mrb[43].mxu0  ;;  %s9439_s16 = smov 120  }
 0xb43   : > { %v2688_v10 = vpop.f32.mrb[44].mxu0 }
 0xb44   : > { %2751 = vrot.lane.b32.xlu1 %v2688_v10, %s9486_s28  ;;  %v6362_v16 = vpop.f32.mrb[45].mxu0  ;;  %v8299_v10 = vld [vmem:[%s9514_s8 + $0x4] sm:$0x1] }
 0xb45   : > { %v8304_v16 = vld [vmem:[%s9514_s8 + $0x5] sm:$0x1] }
 0xb47   : > { %v8223_v2 = vpop.f32.mrb[46].mxu0 }
 0xb48   : > { %v6365_v4 = vpop.f32.mrb[47].mxu0 }
 0xb4b   : > { %v2698_v11 = vpop.f32.mrb[48].mxu0 }
 0xb4c   : > { %2773 = vrot.lane.b32.xlu0 %v2698_v11, %s9479_s30  ;;  %v6368_v61 = vpop.f32.mrb[49].mxu0 }
 0xb4d   : > { %v8310_v61 = vld [vmem:[%s9514_s8 + $0x6] sm:$0x1] }
 0xb4f   : > { %v2703_v45 = vpop.f32.mrb[50].mxu0 }
 0xb50   : > { %2823 = vperm.xlu0 %6824, %v5958_v22   ;;  %2785 = vrot.lane.b32.xlu1 %v2703_v45, %s9437_s19  ;;  %v6371_v31 = vpop.f32.mrb[51].mxu0  ;;  %v8314_v22 = vrot.slane %v8299_v10, %v7103_v28  ;;  %s9519_s19 = smov 120  }
 0xb51   : > { %v8318_v31 = vrot.slane %v8304_v16, %v7103_v28 }
 0xb53   : > { %v2708_v23 = vpop.f32.mrb[52].mxu0 }
 0xb54   : > { %2829 = vperm.xlu0 %6824, %v5959_v12   ;;  %2797 = vrot.lane.b32.xlu1 %v2708_v23, %s9439_s16  ;;  %v6374_v55 = vpop.f32.mrb[53].mxu0  ;;  %v8323_v23 = vld [vmem:[%s9514_s8 + $0x7] sm:$0x1]  ;;  %s9516_s16 = smov 8  }
 0xb57   : > { %v2713_v27 = vpop.f32.mrb[54].mxu0 }
 0xb58   : > { %2929 = vperm.xlu0 %6824, %v5992_v14   ;;  %2809 = vrot.lane.b32.xlu1 %v2713_v27, %s9441_s25  ;;  %v6377_v60 = vpop.f32.mrb[55].mxu0  ;;  %v8327_v14 = vrot.slane %v8310_v61, %v7103_v28  ;;  %s9518_s25 = smov 121  }
 0xb59   : > { %v2771_v60 = vmul.f32 %v8314_v22, %v8223_v2 }
 0xb5c   : > { %2941 = vperm.xlu0 %6824, %v5994_v29   ;;  %2934 = vperm.xlu1 %6825, %v5993_v3   ;;  %v8334_v29 = vrot.slane %v8323_v23, %v7103_v28  ;;  %v8339_v3 = vld [vmem:[%s9514_s8 + $0x8] sm:$0x1]  ;;  %s9524_s8 = smov 3  }
 0xb60   : > { %3030 = vperm.xlu0 %6824, %v5996_v56   ;;  %2946 = vperm.xlu1 %6825, %v5995_v63  }
 0xb64   : > { %3036 = vperm.xlu1 %6825, %v5997_v7  }
 0xbaa   : > { %v2718_v18 = vpop.permute.xlu0 %2717 }
 0xbab   : > { %v2726_v41 = vmul.f32 %v8283_v46, %v2718_v18  ;;  %v8344_v18 = vrot.slane %v8339_v3, %v7103_v28 }
 0xbae   : > { %v2728_v50 = vpop.permute.xlu1 %2727 }
 0xbaf   : > { %v2737_v54 = vmul.f32 %v8274_v8, %v2728_v50 }
 0xbb1   : > { %v2738_v4 = vadd.f32 %v2737_v54, %v2726_v41 }
 0xbb2   : > { %v2740_v0 = vpop.permute.xlu0 %2739 }
 0xbb3   : > { %v2749_v43 = vmul.f32 %v8287_v53, %v2740_v0 }
 0xbb5   : > { %v2750_v45 = vadd.f32 %v2749_v43, %v2738_v4 }
 0xbb6   : > { %v2752_v47 = vpop.permute.xlu1 %2751 }
 0xbb7   : > { %v2761_v11 = vmul.f32 %v8292_v32, %v2752_v47 }
 0xbb9   : > { %v2762_v55 = vadd.f32 %v2761_v11, %v2750_v45 }
 0xbbb   : > { %v2772_v56 = vadd.f32 %v2771_v60, %v2762_v55 }
 0xbbe   : > { %v2774_v12 = vpop.permute.xlu0 %2773 }
 0xbbf   : > { %v2783_v15 = vmul.f32 %v8318_v31, %v2774_v12 }
 0xbc1   : > { %v2784_v2 = vadd.f32 %v2783_v15, %v2772_v56 }
 0xbc2   : > { %v2786_v27 = vpop.permute.xlu1 %2785 }
 0xbc3   : > { %v2795_v63 = vmul.f32 %v8327_v14, %v2786_v27  ;;  %v5989_v27 = vld [vmem:[%s9376_s4 + $0x38] sm:$0xff] }
 0xbc5   : > { %v2796_v0 = vadd.f32 %v2795_v63, %v2784_v2 }
 0xbc6   : > { %v2798_v7 = vpop.permute.xlu1 %2797 }
 0xbc7   : > { %v2807_v50 = vmul.f32 %v8334_v29, %v2798_v7 }
 0xbc9   : > { %v2808_v41 = vadd.f32 %v2807_v50, %v2796_v0 }
 0xbca   : > { %v2810_v54 = vpop.permute.xlu1 %2809 }
 0xbcb   : > { %v2819_v47 = vmul.f32 %v8344_v18, %v2810_v54 }
 0xbcd   : > { %v2820_v43 = vadd.f32 %v2819_v47, %v2808_v41 }
 0xbcf   : > { %v2824_v4 = vpop.permute.xlu0 %2823 }
 0xbd0   : > { %v2826_v11 = vmul.f32 %v2824_v4, %v2820_v43 }
 0xbd3   : > { %v2830_v45 = vpop.permute.xlu0 %2829 }
 0xbd4   : > { %v2832_v12 = vadd.f32 %v2830_v45, %v2826_v11 }
 0xbd6   : > { %v2833_v55 = vmax.f32 %v2832_v12, 0.0 }
 0xbd7   : > { %v2930_v15 = vpop.permute.xlu0 %2929 }
 0xbd8   : > { %6378 = vmatprep.subr.mxu1 %v2833_v55 }
 0xbd9   : > { %6379 = vmatpush3.msra.mxu1 %v2833_v55 }
 0xbda   : > { %6381 = vmatmul.mubr.msk.f32.vlgmr.msra.gmra.mrb[40].mxu1 %vm621_vm1, %v5989_v27  ;;  %6664 = vmatprep.subr.bf16.mxu1 %v9448_v44 }
 0xbdb   : > { %6387 = vmatprep.mubr.msk.f32.mxu1 %vm6861_vm10, %v9498_v35  ;;  %v2935_v60 = vpop.permute.xlu1 %2934  ;;  %v2942_v47 = vpop.permute.xlu0 %2941 }
 0xbdf   : > { %v2947_v0 = vpop.permute.xlu1 %2946 }
 0xcad   : > { %v6382_v56 = vpop.f32.mrb[40].mxu1 }
 0xcae   : > { %v8356_v63 = vadd.f32 %v6382_v56, %v8070_v20  ;;  %v2909_v7 = vpop.f32.mrb[41].mxu1  ;;  %v6000_v20 = vld [vmem:[%s9374_s2 + $0x20] sm:$0xff] }
 0xcaf   : > { %v8359_v2 = vadd.f32 %v8062_v42, %v2909_v7  ;;  %v3031_v42 = vpop.permute.xlu0 %3030  ;;  %v6002_v7 = vld [vmem:[%s9375_s3 + $0x120] sm:$0xff] }
 0xcb0   : > { %v2938_v50 = vmul.f32 %v2935_v60, %v8356_v63  ;;  %v3037_v60 = vpop.permute.xlu1 %3036 }
 0xcb1   : > { %v2937_v54 = vmul.f32 %v2930_v15, %v8359_v2 }
 0xcb2   : > { %v2950_v41 = vadd.f32 %v2947_v0, %v2938_v50  ;;  %v6003_v50 = vld [vmem:[%s9375_s3 + $0x128] sm:$0xff]  ;;  %v6004_v0 = vld [vmem:[%s9375_s3 + $0x130] sm:$0xff] }
 0xcb3   : > { %v2949_v43 = vadd.f32 %v2942_v47, %v2937_v54  ;;  %v6005_v54 = vld [vmem:[%s9375_s3 + $0x138] sm:$0xff]  ;;  %v6006_v47 = vld [vmem:[%s9375_s3 + $0x140] sm:$0xff] }
 0xcb4   : > { %v2952_v4 = vmax.f32 %v2950_v41, 0.0  ;;  %v6007_v41 = vld [vmem:[%s9375_s3 + $0x148] sm:$0xff] }
 0xcb5   : > { %v2951_v11 = vmax.f32 %v2949_v43, 0.0  ;;  %v6008_v43 = vld [vmem:[%s9375_s3 + $0x150] sm:$0xff] }
 0xcb7   : > { %v6665_v45 = vpack.c.bf16 %v2952_v4, %v2951_v11  ;;  %v6009_v4 = vld [vmem:[%s9375_s3 + $0x158] sm:$0xff]  ;;  %v6010_v11 = vld [vmem:[%s9375_s3 + $0x160] sm:$0xff] }
 0xcb9   : > { %6666 = vmatpush3.bf16.msra.mxu1 %v6665_v45 }
 0xcba   : > { %6390 = vmatprep.subr.mxu1 %v9498_v35 }
 0xcbc   : > { %6388 = vmatmul.mubr.msk.f32.vlgmr.msra.gmra.mrb[42].mxu1 %vm521_vm0, %v6000_v20 }
 0xcbd   : > { %6392 = vmatprep.mubr.msk.f32.mxu1 %vm6861_vm10, %v9498_v35 }
 0xd8f   : > { %v3024_v12 = vpop.f32.mrb[42].mxu1 }
 0xd90   : > { %v3033_v55 = vmul.f32 %v3031_v42, %v3024_v12  ;;  %v6389_v27 = vpop.f32.mrb[43].mxu1 }
 0xd92   : > { %v3039_v15 = vadd.f32 %v3037_v60, %v3033_v55 }
 0xd94   : > { %v3040_v56 = vmax.f32 %v3039_v15, 0.0 }
 0xd96   : > { %6391 = vmatpush3.msra.mxu1 %v3040_v56 }
 0xd97   : > { %6393 = vmatmul.mubr.msk.f32.vlgmr.msra.gmra.mrb[44].mxu1 %vm621_vm1, %v6002_v7  ;;  %6699 = vmatprep.subr.bf16.mxu1 %v9448_v44 }
 0xd98   : > { %6395 = vmatprep.mubr.msk.f32.mxu1 %vm6861_vm10, %v9498_v35 }
 0xd9b   : > { %6396 = vmatmul.mubr.msk.f32.gmra.mrb[46].mxu1 %vm621_vm1, %v6003_v50 }
 0xd9c   : > { %6398 = vmatprep.mubr.msk.f32.mxu1 %vm6861_vm10, %v9498_v35 }
 0xd9f   : > { %6399 = vmatmul.mubr.msk.f32.gmra.mrb[48].mxu1 %vm621_vm1, %v6004_v0 }
 0xda0   : > { %6401 = vmatprep.mubr.msk.f32.mxu1 %vm6861_vm10, %v9498_v35 }
 0xda3   : > { %6402 = vmatmul.mubr.msk.f32.gmra.mrb[50].mxu1 %vm621_vm1, %v6005_v54  ;;  %v5998_v54 = vld [vmem:[%s9373_s1 + $0x130] sm:$0xff] }
 0xda4   : > { %6404 = vmatprep.mubr.msk.f32.mxu1 %vm6861_vm10, %v9498_v35 }
 0xda7   : > { %6405 = vmatmul.mubr.msk.f32.gmra.mrb[52].mxu1 %vm621_vm1, %v6006_v47 }
 0xda8   : > { %6407 = vmatprep.mubr.msk.f32.mxu1 %vm6861_vm10, %v9498_v35 }
 0xdab   : > { %6408 = vmatmul.mubr.msk.f32.gmra.mrb[54].mxu1 %vm621_vm1, %v6007_v41 }
 0xdac   : > { %6410 = vmatprep.mubr.msk.f32.mxu1 %vm6861_vm10, %v9498_v35 }
 0xdaf   : > { %6411 = vmatmul.mubr.msk.f32.gmra.mrb[56].mxu1 %vm621_vm1, %v6008_v43  ;;  %v5999_v43 = vld [vmem:[%s9373_s1 + $0x138] sm:$0xff] }
 0xdb0   : > { %6413 = vmatprep.mubr.msk.f32.mxu1 %vm6861_vm10, %v9498_v35 }
 0xdb3   : > { %6414 = vmatmul.mubr.msk.f32.gmra.mrb[58].mxu1 %vm621_vm1, %v6009_v4 }
 0xdb4   : > { %6416 = vmatprep.mubr.msk.f32.mxu1 %vm6861_vm10, %v9498_v35 }
 0xdb7   : > { %6417 = vmatmul.mubr.msk.f32.gmra.mrb[60].mxu1 %vm621_vm1, %v6010_v11 }
 0xdb8   : > { %6463 = vmatprep.mubr.msk.f32.mxu1 %vm6861_vm10, %v9498_v35 }
 0xe6a   : > { %v3144_v45 = vpop.f32.mrb[44].mxu1 }
 0xe6b   : > { %3188 = vrot.lane.b32.xlu0 %v3144_v45, %s9515_s10  ;;  %v6394_v20 = vpop.f32.mrb[45].mxu1 }
 0xe6e   : > { %v3149_v42 = vpop.f32.mrb[46].mxu1 }
 0xe6f   : > { %3191 = vrot.lane.b32.xlu1 %v3149_v42, %s9516_s16  ;;  %v6397_v12 = vpop.f32.mrb[47].mxu1  ;;  %v6020_v42 = vld [vmem:[%s9376_s4 + $0x40] sm:$0xff] }
 0xe70   : > { %6421 = vmatprep.mubr.msk.f32.mxu0 %vm621_vm1, %v6020_v42  ;;  %v6033_v12 = vld [vmem:[%s9373_s1 + $0x140] sm:$0xff] }
 0xe72   : > { %v3154_v55 = vpop.f32.mrb[48].mxu1 }
 0xe73   : > { %3195 = vrot.lane.b32.xlu0 %v3154_v55, %s9517_s0  ;;  %v6400_v27 = vpop.f32.mrb[49].mxu1  ;;  %v6035_v55 = vld [vmem:[%s9373_s1 + $0x150] sm:$0xff] }
 0xe74   : > { %v6034_v27 = vld [vmem:[%s9373_s1 + $0x148] sm:$0xff] }
 0xe76   : > { %v3159_v60 = vpop.f32.mrb[50].mxu1 }
 0xe77   : > { %3199 = vrot.lane.b32.xlu1 %v3159_v60, %s9486_s28  ;;  %v6403_v15 = vpop.f32.mrb[51].mxu1  ;;  %v6037_v60 = vld [vmem:[%s9373_s1 + $0x160] sm:$0xff] }
 0xe78   : > { %v6036_v15 = vld [vmem:[%s9373_s1 + $0x158] sm:$0xff] }
 0xe7a   : > { %v3164_v56 = vpop.f32.mrb[52].mxu1 }
 0xe7b   : > { %v6406_v7 = vpop.f32.mrb[53].mxu1 }
 0xe7c   : > { %v6038_v7 = vld [vmem:[%s9373_s1 + $0x168] sm:$0xff] }
 0xe7e   : > { %v3169_v50 = vpop.f32.mrb[54].mxu1 }
 0xe7f   : > { %3205 = vrot.lane.b32.xlu0 %v3169_v50, %s9479_s30  ;;  %v6409_v0 = vpop.f32.mrb[55].mxu1 }
 0xe82   : > { %v3174_v47 = vpop.f32.mrb[56].mxu1 }
 0xe83   : > { %3223 = vperm.xlu0 %6824, %v5998_v54   ;;  %3209 = vrot.lane.b32.xlu1 %v3174_v47, %s9518_s25  ;;  %v6412_v41 = vpop.f32.mrb[57].mxu1 }
 0xe86   : > { %v3179_v4 = vpop.f32.mrb[58].mxu1 }
 0xe87   : > { %3229 = vperm.xlu0 %6824, %v5999_v43   ;;  %3213 = vrot.lane.b32.xlu1 %v3179_v4, %s9519_s19  ;;  %v6415_v11 = vpop.f32.mrb[59].mxu1 }
 0xe8a   : > { %v3184_v45 = vpop.f32.mrb[60].mxu1 }
 0xe8b   : > { %3318 = vrot.lane.b32.xlu0 %v8359_v2, %s9515_s10  ;;  %3217 = vrot.lane.b32.xlu1 %v3184_v45, %s9520_s17  ;;  %v6418_v20 = vpop.f32.mrb[61].mxu1 }
 0xe8f   : > { %3320 = vrot.lane.b32.xlu0 %v8356_v63, %s9515_s10  ;;  %3334 = vrot.lane.b32.xlu1 %v8359_v2, %s9516_s16 }
 0xe93   : > { %3352 = vrot.lane.b32.xlu0 %v8359_v2, %s9517_s0  ;;  %3336 = vrot.lane.b32.xlu1 %v8356_v63, %s9516_s16 }
 0xe97   : > { %3370 = vrot.lane.b32.xlu0 %v8359_v2, %s9486_s28  ;;  %3354 = vrot.lane.b32.xlu1 %v8356_v63, %s9517_s0 }
 0xe9b   : > { %3402 = vrot.lane.b32.xlu0 %v8359_v2, %s9479_s30  ;;  %3372 = vrot.lane.b32.xlu1 %v8356_v63, %s9486_s28 }
 0xe9f   : > { %3420 = vrot.lane.b32.xlu0 %v8359_v2, %s9518_s25  ;;  %3404 = vrot.lane.b32.xlu1 %v8356_v63, %s9479_s30 }
 0xea3   : > { %3438 = vrot.lane.b32.xlu0 %v8359_v2, %s9519_s19  ;;  %3422 = vrot.lane.b32.xlu1 %v8356_v63, %s9518_s25 }
 0xea7   : > { %3456 = vrot.lane.b32.xlu0 %v8359_v2, %s9520_s17  ;;  %3440 = vrot.lane.b32.xlu1 %v8356_v63, %s9519_s19 }
 0xeab   : > { %3576 = vperm.xlu0 %6824, %v6033_v12   ;;  %3458 = vrot.lane.b32.xlu1 %v8356_v63, %s9520_s17 }
 0xeaf   : > { %3588 = vperm.xlu0 %6824, %v6035_v55   ;;  %3581 = vperm.xlu1 %6825, %v6034_v27   ;;  %v3203_v27 = vmul.f32 %v3164_v56, %v8314_v22  ;;  %v6025_v56 = vadd.f32 -1.0, %v8260_v13  ;;  %v3477_v13 = vld [vmem:[%s9383_s11 + $0x18] sm:$0xff] }
 0xeb3   : > { %3677 = vperm.xlu0 %6824, %v6037_v60   ;;  %3593 = vperm.xlu1 %6825, %v6036_v15  }
 0xeb7   : > { %3683 = vperm.xlu1 %6825, %v6038_v7  }
 0xedd   : > { %v3189_v50 = vpop.permute.xlu0 %3188 }
 0xede   : > { %v3190_v43 = vmul.f32 %v3189_v50, %v8283_v46 }
 0xee1   : > { %v3192_v0 = vpop.permute.xlu1 %3191 }
 0xee2   : > { %v3193_v47 = vmul.f32 %v3192_v0, %v8274_v8 }
 0xee4   : > { %v3194_v11 = vadd.f32 %v3193_v47, %v3190_v43 }
 0xee5   : > { %v3196_v54 = vpop.permute.xlu0 %3195 }
 0xee6   : > { %v3197_v4 = vmul.f32 %v3196_v54, %v8287_v53 }
 0xee8   : > { %v3198_v20 = vadd.f32 %v3197_v4, %v3194_v11 }
 0xee9   : > { %v3200_v41 = vpop.permute.xlu1 %3199 }
 0xeea   : > { %v3201_v45 = vmul.f32 %v3200_v41, %v8292_v32 }
 0xeec   : > { %v3202_v12 = vadd.f32 %v3201_v45, %v3198_v20 }
 0xeee   : > { %v3204_v15 = vadd.f32 %v3203_v27, %v3202_v12  ;;  %v6026_v12 = vadd.f32 -1.0, %v8270_v48 }
 0xef1   : > { %v3206_v42 = vpop.permute.xlu0 %3205 }
 0xef2   : > { %v3207_v60 = vmul.f32 %v3206_v42, %v8318_v31 }
 0xef4   : > { %v3208_v44 = vadd.f32 %v3207_v60, %v3204_v15  ;;  %v3476_v60 = vld [vmem:[%s9383_s11 + $0x10] sm:$0xff] }
 0xef5   : > { %v3210_v55 = vpop.permute.xlu1 %3209 }
 0xef6   : > { %v3211_v7 = vmul.f32 %v3210_v55, %v8327_v14  ;;  %v3474_v55 = vld [vmem:[%s9383_s11] sm:$0xff] }
 0xef8   : > { %v3212_v62 = vadd.f32 %v3211_v7, %v3208_v44  ;;  %v3475_v44 = vld [vmem:[%s9383_s11 + $0x8] sm:$0xff] }
 0xef9   : > { %v3214_v0 = vpop.permute.xlu1 %3213  ;;  %v6667_v7 = vpack.c.bf16 %v3475_v44, %v3474_v55 }
 0xefa   : > { %v3215_v50 = vmul.f32 %v3214_v0, %v8334_v29  ;;  %v3341_v0 = vmul.f32 1e+30, %v6025_v56 }
 0xefc   : > { %v3216_v41 = vadd.f32 %v3215_v50, %v3212_v62  ;;  %v6024_v62 = vadd.f32 -1.0, %v8265_v49  ;;  %v3359_v50 = vmul.f32 1e+30, %v6026_v12  ;;  %v6021_v49 = vld [vmem:[%s9376_s4 + $0x48] sm:$0xff]  ;;  %v3346_v12 = vrot.slane %v3341_v0, %v7103_v28 }
 0xefd   : > { %v3218_v54 = vpop.permute.xlu1 %3217 }
 0xefe   : > { %v3219_v47 = vmul.f32 %v3218_v54, %v8344_v18  ;;  %v3364_v55 = vrot.slane %v3359_v50, %v7103_v28 }
 0xf00   : > { %v3220_v43 = vadd.f32 %v3219_v47, %v3216_v41  ;;  %v6027_v47 = vadd.f32 -1.0, %v8279_v58  ;;  %v3325_v41 = vmul.f32 1e+30, %v6024_v62  ;;  %v6028_v58 = vadd.f32 -1.0, %v8299_v10  ;;  %v3481_v10 = vld [vmem:[%s9383_s11 + $0x38] sm:$0xff] }
 0xf01   : > { %v3335_v4 = vpop.permute.xlu1 %3334 }
 0xf02   : > { %v3224_v11 = vpop.permute.xlu0 %3223  ;;  %v3377_v44 = vmul.f32 1e+30, %v6027_v47  ;;  %v3391_v47 = vmul.f32 1e+30, %v6028_v58  ;;  %v3338_v52 = vmul.f32 %v3335_v4, %v8274_v8  ;;  %v3389_v4 = vmul.f32 %v8356_v63, %v8314_v22 }
 0xf03   : > { %v3226_v45 = vmul.f32 %v3224_v11, %v3220_v43  ;;  %v6671_v43 = vpack.c.bf16 %v3477_v13, %v3476_v60  ;;  %v3478_v11 = vld [vmem:[%s9383_s11 + $0x20] sm:$0xff]  ;;  %v3330_v60 = vrot.slane %v3325_v41, %v7103_v28 }
 0xf05   : > { %v3337_v20 = vpop.permute.xlu1 %3336 }
 0xf06   : > { %v3230_v42 = vpop.permute.xlu0 %3229  ;;  %v3339_v56 = vmul.f32 %v3337_v20, %v8274_v8 }
 0xf07   : > { %v3232_v27 = vadd.f32 %v3230_v42, %v3226_v45  ;;  %v3479_v45 = vld [vmem:[%s9383_s11 + $0x28] sm:$0xff] }
 0xf08   : > { %v6675_v20 = vpack.c.bf16 %v3479_v45, %v3478_v11  ;;  %v3349_v0 = vadd.f32 %v3346_v12, %v3339_v56  ;;  %v6029_v11 = vadd.f32 -1.0, %v8304_v16 }
 0xf09   : > { %v3233_v48 = vmax.f32 %v3232_v27, 0.0  ;;  %v3355_v15 = vpop.permute.xlu1 %3354 }
 0xf0a   : > { %v3319_v54 = vpop.permute.xlu0 %3318  ;;  %v3357_v62 = vmul.f32 %v3355_v15, %v8287_v53 }
 0xf0b   : > { %6419 = vmatprep.subr.mxu0 %v3233_v48  ;;  %v3322_v50 = vmul.f32 %v3319_v54, %v8283_v46  ;;  %v3482_v54 = vld [vmem:[%s9383_s11 + $0x40] sm:$0xff] }
 0xf0c   : > { %6420 = vmatpush3.msra.mxu0 %v3233_v48  ;;  %v3480_v48 = vld [vmem:[%s9383_s11 + $0x30] sm:$0xff]  ;;  %v3367_v37 = vadd.f32 %v3364_v55, %v3357_v62  ;;  %v3409_v62 = vmul.f32 1e+30, %v6029_v11 }
 0xf0d   : > { %v3373_v42 = vpop.permute.xlu1 %3372  ;;  %6668 = vmatprep.subr.bf16.mxu0 %v6667_v7  ;;  %6422 = vmatmul.mubr.msk.f32.vlgmr.msra.gmra.mrb[56].mxu0 %vm621_vm1, %v6021_v49  ;;  %v3382_v49 = vrot.slane %v3377_v44, %v7103_v28  ;;  %v3332_v58 = vadd.f32 %v3330_v60, %v3322_v50  ;;  %v3485_v50 = vld [vmem:[%s9383_s11 + $0x58] sm:$0xff] }
 0xf0e   : > { %v3321_v27 = vpop.permute.xlu0 %3320  ;;  %6670 = vmatpush3.bf16.msra.mxu0 %v6667_v7  ;;  %v3375_v41 = vmul.f32 %v3373_v42, %v8292_v32  ;;  %v3483_v42 = vld [vmem:[%s9383_s11 + $0x48] sm:$0xff] }
 0xf0f   : > { %v3323_v13 = vmul.f32 %v3321_v27, %v8283_v46  ;;  %6672 = vmatprep.subr.bf16.mxu0 %v6671_v43  ;;  %v6679_v27 = vpack.c.bf16 %v3481_v10, %v3480_v48  ;;  %v6030_v48 = vadd.f32 -1.0, %v8310_v61  ;;  %v6683_v1 = vpack.c.bf16 %v3483_v42, %v3482_v54 }
 0xf11   : > { %v3333_v7 = vadd.f32 %v3330_v60, %v3323_v13  ;;  %v3405_v15 = vpop.permute.xlu1 %3404  ;;  %v3385_v13 = vadd.f32 %v3382_v49, %v3375_v41 }
 0xf12   : > { %v3353_v45 = vpop.permute.xlu0 %3352  ;;  %6674 = vmatpush3.bf16.msra.mxu0 %v6671_v43  ;;  %v3396_v43 = vrot.slane %v3391_v47, %v7103_v28 }
 0xf13   : > { %v3351_v6 = vmax.f32 %v3333_v7, %v3349_v0  ;;  %v3356_v56 = vmul.f32 %v3353_v45, %v8287_v53  ;;  %6676 = vmatprep.subr.bf16.mxu0 %v6675_v20  ;;  %v3348_v0 = vadd.f32 %v3346_v12, %v3338_v52  ;;  %v3414_v52 = vrot.slane %v3409_v62, %v7103_v28 }
 0xf14   : > { %v3407_v12 = vmul.f32 %v3405_v15, %v8318_v31  ;;  %v3487_v15 = vld [vmem:[%s9383_s11 + $0x68] sm:$0xff] }
 0xf15   : > { %v3369_v16 = vmax.f32 %v3351_v6, %v3367_v37  ;;  %v3423_v44 = vpop.permute.xlu1 %3422  ;;  %v3366_v7 = vadd.f32 %v3364_v55, %v3356_v56  ;;  %v6031_v37 = vadd.f32 -1.0, %v8323_v23  ;;  %v3484_v6 = vld [vmem:[%s9383_s11 + $0x50] sm:$0xff]  ;;  %v3350_v61 = vmax.f32 %v3332_v58, %v3348_v0 }
 0xf16   : > { %v3371_v10 = vpop.permute.xlu0 %3370  ;;  %6678 = vmatpush3.bf16.msra.mxu0 %v6675_v20  ;;  %v3399_v20 = vadd.f32 %v3396_v43, %v3389_v4  ;;  %v3427_v55 = vmul.f32 1e+30, %v6030_v48  ;;  %v3388_v56 = vmul.f32 %v8359_v2, %v8314_v22  ;;  %v6687_v54 = vpack.c.bf16 %v3485_v50, %v3484_v6  ;;  %v3488_v50 = vld [vmem:[%s9383_s11 + $0x70] sm:$0xff] }
 0xf17   : > { %v3374_v45 = vmul.f32 %v3371_v10, %v8292_v32  ;;  %6680 = vmatprep.subr.bf16.mxu0 %v6679_v27  ;;  %v3387_v60 = vmax.f32 %v3369_v16, %v3385_v13  ;;  %v3368_v11 = vmax.f32 %v3350_v61, %v3366_v7  ;;  %v3445_v16 = vmul.f32 1e+30, %v6031_v37 }
 0xf18   : > { %v6032_v58 = vadd.f32 -1.0, %v8339_v3  ;;  %v3417_v4 = vadd.f32 %v3414_v52, %v3407_v12  ;;  %v3432_v62 = vrot.slane %v3427_v55, %v7103_v28  ;;  %v3425_v48 = vmul.f32 %v3423_v44, %v8327_v14  ;;  %v3489_v44 = vld [vmem:[%s9383_s11 + $0x78] sm:$0xff] }
 0xf19   : > { %v3384_v47 = vadd.f32 %v3382_v49, %v3374_v45  ;;  %v3441_v23 = vpop.permute.xlu1 %3440  ;;  %v3401_v42 = vmax.f32 %v3387_v60, %v3399_v20  ;;  %v3486_v49 = vld [vmem:[%s9383_s11 + $0x60] sm:$0xff]  ;;  %v3398_v0 = vadd.f32 %v3396_v43, %v3388_v56  ;;  %v3450_v60 = vrot.slane %v3445_v16, %v7103_v28 }
 0xf1a   : > { %v3403_v41 = vpop.permute.xlu0 %3402  ;;  %6682 = vmatpush3.bf16.msra.mxu0 %v6679_v27  ;;  %v6691_v7 = vpack.c.bf16 %v3487_v15, %v3486_v49  ;;  %v3443_v37 = vmul.f32 %v3441_v23, %v8334_v29  ;;  %v3463_v6 = vmul.f32 1e+30, %v6032_v58 }
 0xf1b   : > { %6684 = vmatprep.subr.bf16.mxu0 %v6683_v1  ;;  %v3386_v27 = vmax.f32 %v3368_v11, %v3384_v47  ;;  %v3406_v13 = vmul.f32 %v3403_v41, %v8318_v31  ;;  %v3419_v45 = vmax.f32 %v3401_v42, %v3417_v4  ;;  %v3435_v47 = vadd.f32 %v3432_v62, %v3425_v48 }
 0xf1c   : > { %v6695_v41 = vpack.c.bf16 %v3489_v44, %v3488_v50  ;;  %v3453_v23 = vadd.f32 %v3450_v60, %v3443_v37  ;;  %v3468_v56 = vrot.slane %v3463_v6, %v7103_v28 }
 0xf1d   : > { %v3416_v43 = vadd.f32 %v3414_v52, %v3406_v13  ;;  %v3459_v61 = vpop.permute.xlu1 %3458  ;;  %v3437_v11 = vmax.f32 %v3419_v45, %v3435_v47 }
 0xf1e   : > { %v3421_v10 = vpop.permute.xlu0 %3420  ;;  %6686 = vmatpush3.bf16.msra.mxu0 %v6683_v1  ;;  %v3400_v1 = vmax.f32 %v3386_v27, %v3398_v0  ;;  %v3461_v42 = vmul.f32 %v3459_v61, %v8344_v18  ;;  %v6041_v61 = vld [vmem:[%s9374_s2 + $0x28] sm:$0xff] }
 0xf1f   : > { %v3424_v3 = vmul.f32 %v3421_v10, %v8327_v14  ;;  %6688 = vmatprep.subr.bf16.mxu0 %v6687_v54 }
 0xf20   : > { %v3418_v16 = vmax.f32 %v3400_v1, %v3416_v43  ;;  %v3471_v27 = vadd.f32 %v3468_v56, %v3461_v42  ;;  %v6044_v42 = vld [vmem:[%s9375_s3 + $0x170] sm:$0xff] }
 0xf21   : > { %v3434_v12 = vadd.f32 %v3432_v62, %v3424_v3 }
 0xf22   : > { %v3439_v20 = vpop.permute.xlu0 %3438  ;;  %6690 = vmatpush3.bf16.msra.mxu0 %v6687_v54  ;;  %v3455_v54 = vmax.f32 %v3437_v11, %v3453_v23 }
 0xf23   : > { %v3442_v55 = vmul.f32 %v3439_v20, %v8334_v29  ;;  %6692 = vmatprep.subr.bf16.mxu0 %v6691_v7  ;;  %v3436_v52 = vmax.f32 %v3418_v16, %v3434_v12  ;;  %v6045_v16 = vld [vmem:[%s9375_s3 + $0x178] sm:$0xff] }
 0xf24   : > { %v3473_v48 = vmax.f32 %v3455_v54, %v3471_v27  ;;  %v6050_v54 = vld [vmem:[%s9375_s3 + $0x1a0] sm:$0xff]  ;;  %v6051_v27 = vld [vmem:[%s9375_s3 + $0x1a8] sm:$0xff] }
 0xf25   : > { %v3452_v58 = vadd.f32 %v3450_v60, %v3442_v55 }
 0xf26   : > { %v3457_v49 = vpop.permute.xlu0 %3456  ;;  %6694 = vmatpush3.bf16.msra.mxu0 %v6691_v7 }
 0xf27   : > { %v3460_v15 = vmul.f32 %v3457_v49, %v8344_v18  ;;  %6696 = vmatprep.subr.bf16.mxu0 %v6695_v41  ;;  %v3454_v13 = vmax.f32 %v3436_v52, %v3452_v58  ;;  %v6046_v58 = vld [vmem:[%s9375_s3 + $0x180] sm:$0xff]  ;;  %v6047_v49 = vld [vmem:[%s9375_s3 + $0x188] sm:$0xff]  ;;  %v6048_v52 = vld [vmem:[%s9375_s3 + $0x190] sm:$0xff] }
 0xf29   : > { %v3470_v4 = vadd.f32 %v3468_v56, %v3460_v15  ;;  %v6043_v56 = vld [vmem:[%s9375_s3 + $0x168] sm:$0xff]  ;;  %v6049_v15 = vld [vmem:[%s9375_s3 + $0x198] sm:$0xff] }
 0xf2a   : > { %6698 = vmatpush3.bf16.msra.mxu0 %v6695_v41  ;;  %v3577_v10 = vpop.permute.xlu0 %3576 }
 0xf2b   : > { %v3472_v62 = vmax.f32 %v3454_v13, %v3470_v4  ;;  %6466 = vmatprep.subr.mxu0 %v9498_v35 }
 0xf2d   : > { %6456 = vmatprep.mubr.f32.mxu0 %v3472_v62 }
 0xf2e   : > { %6457 = vmatmul.mubr.f32.vlgmr.msra.gmra.mrb[58].mxu0 %v3473_v48  ;;  %v3582_v28 = vpop.permute.xlu1 %3581  ;;  %v3589_v37 = vpop.permute.xlu0 %3588 }
 0xf2f   : > { %6468 = vmatprep.mubr.msk.f32.mxu0 %vm6861_vm10, %v9498_v35 }
 0xf32   : > { %v3594_v45 = vpop.permute.xlu1 %3593  ;;  %v3678_v47 = vpop.permute.xlu0 %3677 }
 0xf36   : > { %v3684_v41 = vpop.permute.xlu1 %3683 }
0x1001   : > { %v8595_v0 = vpop.f32.mrb[58].mxu0 }
0x1002   : > { %v3585_v3 = vmul.f32 %v8595_v0, %v3582_v28  ;;  %v8598_v7 = vpop.f32.mrb[59].mxu0 }
0x1003   : > { %v3584_v60 = vmul.f32 %v3577_v10, %v8598_v7 }
0x1004   : > { %v3597_v6 = vadd.f32 %v3594_v45, %v3585_v3 }
0x1005   : > { %v3596_v50 = vadd.f32 %v3589_v37, %v3584_v60 }
0x1006   : > { %v3599_v44 = vmax.f32 %v3597_v6, 0.0 }
0x1007   : > { %v3598_v1 = vmax.f32 %v3596_v50, 0.0 }
0x1009   : > { %v6700_v43 = vpack.c.bf16 %v3599_v44, %v3598_v1  ;;  %v6039_v44 = vld [vmem:[%s9373_s1 + $0x170] sm:$0xff] }
0x100b   : > { %6701 = vmatpush3.bf16.msra.mxu1 %v6700_v43 }
0x100e   : > { %6464 = vmatmul.mubr.msk.f32.vlgmr.msra.gmra.mrb[62].mxu1 %vm521_vm0, %v6041_v61  ;;  %v6040_v61 = vld [vmem:[%s9373_s1 + $0x178] sm:$0xff] }
0x10e1   : > { %v3671_v20 = vpop.f32.mrb[62].mxu1 }
0x10e2   : > { %v3680_v12 = vmul.f32 %v3678_v47, %v3671_v20  ;;  %v6465_v55 = vpop.f32.mrb[63].mxu1 }
0x10e4   : > { %v3686_v11 = vadd.f32 %v3684_v41, %v3680_v12  ;;  %v6082_v12 = vld [vmem:[%s9373_s1 + $0x180] sm:$0xff] }
0x10e6   : > { %v3687_v23 = vmax.f32 %v3686_v11, 0.0  ;;  %v6078_v11 = vld [vmem:[%s9376_s4 + $0x50] sm:$0xff] }
0x10e7   : > { %6497 = vmatprep.mubr.msk.f32.mxu1 %vm621_vm1, %v6078_v11 }
0x10e8   : > { %6467 = vmatpush3.msra.mxu0 %v3687_v23  ;;  %v6084_v23 = vld [vmem:[%s9373_s1 + $0x190] sm:$0xff] }
0x10e9   : > { %6469 = vmatmul.mubr.msk.f32.vlgmr.msra.gmra.mrb[60].mxu0 %vm621_vm1, %v6043_v56  ;;  %v6083_v56 = vld [vmem:[%s9373_s1 + $0x188] sm:$0xff] }
0x10ea   : > { %6471 = vmatprep.mubr.msk.f32.mxu0 %vm6861_vm10, %v9498_v35 }
0x10ed   : > { %6472 = vmatmul.mubr.msk.f32.gmra.mrb[62].mxu0 %vm621_vm1, %v6044_v42  ;;  %v6086_v42 = vld [vmem:[%s9373_s1 + $0x1a0] sm:$0xff] }
0x10ee   : > { %6474 = vmatprep.mubr.msk.f32.mxu0 %vm6861_vm10, %v9498_v35 }
0x10f1   : > { %6475 = vmatmul.mubr.msk.f32.gmra.mrb[64].mxu0 %vm621_vm1, %v6045_v16  ;;  %v6085_v16 = vld [vmem:[%s9373_s1 + $0x198] sm:$0xff] }
0x10f2   : > { %6477 = vmatprep.mubr.msk.f32.mxu0 %vm6861_vm10, %v9498_v35 }
0x10f5   : > { %6478 = vmatmul.mubr.msk.f32.gmra.mrb[66].mxu0 %vm621_vm1, %v6046_v58  ;;  %v6087_v58 = vld [vmem:[%s9373_s1 + $0x1a8] sm:$0xff] }
0x10f6   : > { %6480 = vmatprep.mubr.msk.f32.mxu0 %vm6861_vm10, %v9498_v35 }
0x10f9   : > { %6481 = vmatmul.mubr.msk.f32.gmra.mrb[68].mxu0 %vm621_vm1, %v6047_v49 }
0x10fa   : > { %6483 = vmatprep.mubr.msk.f32.mxu0 %vm6861_vm10, %v9498_v35 }
0x10fd   : > { %6484 = vmatmul.mubr.msk.f32.gmra.mrb[70].mxu0 %vm621_vm1, %v6048_v52  ;;  %v8696_v52 = vld [vmem:[%s9381_s9 + $0x1] ss:$0 sm:$0xff] }
0x10fe   : > { %6486 = vmatprep.mubr.msk.f32.mxu0 %vm6861_vm10, %v9498_v35 }
0x1101   : > { %6487 = vmatmul.mubr.msk.f32.gmra.mrb[72].mxu0 %vm621_vm1, %v6049_v15 }
0x1102   : > { %6489 = vmatprep.mubr.msk.f32.mxu0 %vm6861_vm10, %v9498_v35 }
0x1105   : > { %6490 = vmatmul.mubr.msk.f32.gmra.mrb[74].mxu0 %vm621_vm1, %v6050_v54  ;;  %v8701_v54 = vld [vmem:[%s9381_s9] ss:$0 sm:$0xff] }
0x1106   : > { %6492 = vmatprep.mubr.msk.f32.mxu0 %vm6861_vm10, %v9498_v35 }
0x1109   : > { %6493 = vmatmul.mubr.msk.f32.gmra.mrb[76].mxu0 %vm621_vm1, %v6051_v27  ;;  %v8706_v27 = vld [vmem:[%s9381_s9 + $0x2] ss:$0 sm:$0xff] }
0x11bc   : > { %v3791_v13 = vpop.f32.mrb[60].mxu0 }
0x11bd   : > { %3835 = vrot.lane.b32.xlu0 %v3791_v13, %s9460_s21  ;;  %v6470_v4 = vpop.f32.mrb[61].mxu0  ;;  %s9542_s21 = sld [smem:[#allocation27_spill]] }
0x11c0   : > { %v3796_v62 = vpop.f32.mrb[62].mxu0 }
0x11c1   : > { %3845 = vrot.lane.b32.xlu1 %v3796_v62, %s9458_s22  ;;  %v6473_v48 = vpop.f32.mrb[63].mxu0  ;;  %v8712_v62 = vld [vmem:[%s9381_s9 + $0x3] ss:$0 sm:$0xff]  ;;  %s9522_s22 = smov 5  }
0x11c4   : > { %v3801_v28 = vpop.f32.mrb[64].mxu0 }
0x11c5   : > { %3857 = vrot.lane.b32.xlu0 %v3801_v28, %s9455_s7  ;;  %v6476_v10 = vpop.f32.mrb[65].mxu0 }
0x11c8   : > { %v3806_v3 = vpop.f32.mrb[66].mxu0 }
0x11c9   : > { %3869 = vrot.lane.b32.xlu1 %v3806_v3, %s9486_s28  ;;  %v6479_v45 = vpop.f32.mrb[67].mxu0 }
0x11cc   : > { %v3811_v60 = vpop.f32.mrb[68].mxu0 }
0x11cd   : > { %v6482_v37 = vpop.f32.mrb[69].mxu0 }
0x11d0   : > { %v3816_v6 = vpop.f32.mrb[70].mxu0 }
0x11d1   : > { %3891 = vrot.lane.b32.xlu0 %v3816_v6, %s9479_s30  ;;  %v6485_v50 = vpop.f32.mrb[71].mxu0  ;;  %v8720_v6 = vld [vmem:[%s9381_s9 + $0x4] ss:$0 sm:$0xff] }
0x11d2   : > { %v8725_v50 = vld [vmem:[%s9381_s9 + $0x5] ss:$0 sm:$0xff] }
0x11d4   : > { %v3821_v1 = vpop.f32.mrb[72].mxu0 }
0x11d5   : > { %3941 = vperm.xlu0 %6824, %v6039_v44   ;;  %3903 = vrot.lane.b32.xlu1 %v3821_v1, %s9456_s24  ;;  %v6488_v43 = vpop.f32.mrb[73].mxu0  ;;  %s9526_s24 = smov 124  }
0x11d8   : > { %v3826_v47 = vpop.f32.mrb[74].mxu0 }
0x11d9   : > { %3947 = vperm.xlu0 %6824, %v6040_v61   ;;  %3915 = vrot.lane.b32.xlu1 %v3826_v47, %s9457_s15  ;;  %v6491_v20 = vpop.f32.mrb[75].mxu0  ;;  %v8730_v61 = vld [vmem:[%s9381_s9 + $0x6] ss:$0 sm:$0xff]  ;;  %v3889_v47 = vmul.f32 %v8720_v6, %v3811_v60  ;;  %s9523_s15 = smov 4  }
0x11dc   : > { %v3831_v55 = vpop.f32.mrb[76].mxu0 }
0x11dd   : > { %4047 = vperm.xlu0 %6824, %v6082_v12   ;;  %3927 = vrot.lane.b32.xlu1 %v3831_v55, %s9459_s29  ;;  %v6494_v41 = vpop.f32.mrb[77].mxu0  ;;  %v8737_v12 = vld [vmem:[%s9381_s9 + $0x7] ss:$0 sm:$0xff]  ;;  %s9525_s29 = smov 125  }
0x11e1   : > { %4059 = vperm.xlu0 %6824, %v6084_v23   ;;  %4052 = vperm.xlu1 %6825, %v6083_v56  }
0x11e5   : > { %4148 = vperm.xlu0 %6824, %v6086_v42   ;;  %4064 = vperm.xlu1 %6825, %v6085_v16   ;;  %v8744_v42 = vld [vmem:[%s9381_s9 + $0x8] ss:$0 sm:$0xff] }
0x11e9   : > { %4154 = vperm.xlu1 %6825, %v6087_v58  }
0x122f   : > { %v3836_v49 = vpop.permute.xlu0 %3835 }
0x1230   : > { %v3844_v28 = vmul.f32 %v8701_v54, %v3836_v49 }
0x1233   : > { %v3846_v15 = vpop.permute.xlu1 %3845 }
0x1234   : > { %v3855_v4 = vmul.f32 %v8696_v52, %v3846_v15 }
0x1236   : > { %v3856_v3 = vadd.f32 %v3855_v4, %v3844_v28 }
0x1237   : > { %v3858_v13 = vpop.permute.xlu0 %3857 }
0x1238   : > { %v3867_v10 = vmul.f32 %v8706_v27, %v3858_v13 }
0x123a   : > { %v3868_v37 = vadd.f32 %v3867_v10, %v3856_v3  ;;  %v6079_v3 = vld [vmem:[%s9376_s4 + $0x58] sm:$0xff] }
0x123b   : > { %v3870_v48 = vpop.permute.xlu1 %3869 }
0x123c   : > { %v3879_v45 = vmul.f32 %v8712_v62, %v3870_v48 }
0x123e   : > { %v3880_v1 = vadd.f32 %v3879_v45, %v3868_v37  ;;  %v9521_v45 = vmov 0.0|0.0  }
0x1240   : > { %v3890_v55 = vadd.f32 %v3889_v47, %v3880_v1 }
0x1243   : > { %v3892_v44 = vpop.permute.xlu0 %3891 }
0x1244   : > { %v3901_v20 = vmul.f32 %v8725_v50, %v3892_v44 }
0x1246   : > { %v3902_v23 = vadd.f32 %v3901_v20, %v3890_v55 }
0x1247   : > { %v3904_v43 = vpop.permute.xlu1 %3903 }
0x1248   : > { %v3913_v41 = vmul.f32 %v8730_v61, %v3904_v43 }
0x124a   : > { %v3914_v60 = vadd.f32 %v3913_v41, %v3902_v23 }
0x124b   : > { %v3916_v11 = vpop.permute.xlu1 %3915 }
0x124c   : > { %v3925_v56 = vmul.f32 %v8737_v12, %v3916_v11 }
0x124e   : > { %v3926_v49 = vadd.f32 %v3925_v56, %v3914_v60 }
0x124f   : > { %v3928_v16 = vpop.permute.xlu1 %3927 }
0x1250   : > { %v3937_v58 = vmul.f32 %v8744_v42, %v3928_v16 }
0x1252   : > { %v3938_v15 = vadd.f32 %v3937_v58, %v3926_v49 }
0x1254   : > { %v3942_v13 = vpop.permute.xlu0 %3941 }
0x1255   : > { %v3944_v4 = vmul.f32 %v3942_v13, %v3938_v15 }
0x1258   : > { %v3948_v48 = vpop.permute.xlu0 %3947 }
0x1259   : > { %v3950_v28 = vadd.f32 %v3948_v48, %v3944_v4 }
0x125b   : > { %v3951_v10 = vmax.f32 %v3950_v28, 0.0 }
0x125c   : > { %v4048_v44 = vpop.permute.xlu0 %4047 }
0x125d   : > { %6495 = vmatprep.subr.mxu1 %v3951_v10 }
0x125e   : > { %6496 = vmatpush3.msra.mxu1 %v3951_v10 }
0x125f   : > { %6498 = vmatmul.mubr.msk.f32.vlgmr.msra.gmra.mrb[64].mxu1 %vm621_vm1, %v6079_v3  ;;  %6702 = vmatprep.subr.bf16.mxu1 %v9521_v45  ;;  %v6092_v3 = vld [vmem:[%s9375_s3 + $0x1b0] sm:$0xff] }
0x1260   : > { %6504 = vmatprep.mubr.msk.f32.mxu1 %vm6861_vm10, %v9498_v35  ;;  %v4053_v37 = vpop.permute.xlu1 %4052  ;;  %v4060_v23 = vpop.permute.xlu0 %4059 }
0x1264   : > { %v4065_v41 = vpop.permute.xlu1 %4064 }
0x1268   : > { %v4155_v48 = vpop.permute.xlu1 %4154 }
0x1332   : > { %v6499_v1 = vpop.f32.mrb[64].mxu1 }
0x1333   : > { %v8755_v43 = vadd.f32 %v6499_v1, %v8595_v0  ;;  %v4027_v47 = vpop.f32.mrb[65].mxu1  ;;  %v6090_v0 = vld [vmem:[%s9374_s2 + $0x30] sm:$0xff] }
0x1334   : > { %v8758_v20 = vadd.f32 %v4027_v47, %v8598_v7  ;;  %v4149_v7 = vpop.permute.xlu0 %4148  ;;  %v6096_v1 = vld [vmem:[%s9375_s3 + $0x1d0] sm:$0xff]  ;;  %v6097_v47 = vld [vmem:[%s9375_s3 + $0x1d8] sm:$0xff] }
0x1335   : > { %v4056_v55 = vmul.f32 %v4053_v37, %v8755_v43  ;;  %v6093_v37 = vld [vmem:[%s9375_s3 + $0x1b8] sm:$0xff] }
0x1336   : > { %v4055_v11 = vmul.f32 %v4048_v44, %v8758_v20  ;;  %v6094_v44 = vld [vmem:[%s9375_s3 + $0x1c0] sm:$0xff] }
0x1337   : > { %v4068_v56 = vadd.f32 %v4065_v41, %v4056_v55  ;;  %v6098_v55 = vld [vmem:[%s9375_s3 + $0x1e0] sm:$0xff]  ;;  %v6099_v41 = vld [vmem:[%s9375_s3 + $0x1e8] sm:$0xff] }
0x1338   : > { %v4067_v60 = vadd.f32 %v4060_v23, %v4055_v11  ;;  %v6100_v11 = vld [vmem:[%s9375_s3 + $0x1f0] sm:$0xff] }
0x1339   : > { %v4070_v16 = vmax.f32 %v4068_v56, 0.0 }
0x133a   : > { %v4069_v58 = vmax.f32 %v4067_v60, 0.0 }
0x133c   : > { %v6703_v49 = vpack.c.bf16 %v4070_v16, %v4069_v58 }
0x133e   : > { %6704 = vmatpush3.bf16.msra.mxu1 %v6703_v49 }
0x133f   : > { %6507 = vmatprep.subr.mxu1 %v9498_v35 }
0x1341   : > { %6505 = vmatmul.mubr.msk.f32.vlgmr.msra.gmra.mrb[66].mxu1 %vm521_vm0, %v6090_v0 }
0x1342   : > { %6509 = vmatprep.mubr.msk.f32.mxu1 %vm6861_vm10, %v9498_v35 }
0x1414   : > { %v4142_v15 = vpop.f32.mrb[66].mxu1 }
0x1415   : > { %v4151_v13 = vmul.f32 %v4149_v7, %v4142_v15  ;;  %v6506_v4 = vpop.f32.mrb[67].mxu1 }
0x1417   : > { %v4157_v28 = vadd.f32 %v4155_v48, %v4151_v13 }
0x1419   : > { %v4158_v10 = vmax.f32 %v4157_v28, 0.0  ;;  %v6088_v28 = vld [vmem:[%s9373_s1 + $0x1b0] sm:$0xff] }
0x141b   : > { %6508 = vmatpush3.msra.mxu1 %v4158_v10 }
0x141c   : > { %6510 = vmatmul.mubr.msk.f32.vlgmr.msra.gmra.mrb[68].mxu1 %vm621_vm1, %v6092_v3  ;;  %6737 = vmatprep.subr.bf16.mxu1 %v9521_v45  ;;  %v6095_v45 = vld [vmem:[%s9375_s3 + $0x1c8] sm:$0xff] }
0x141d   : > { %6512 = vmatprep.mubr.msk.f32.mxu1 %vm6861_vm10, %v9498_v35 }
0x1420   : > { %6513 = vmatmul.mubr.msk.f32.gmra.mrb[70].mxu1 %vm621_vm1, %v6093_v37  ;;  %v6089_v37 = vld [vmem:[%s9373_s1 + $0x1b8] sm:$0xff] }
0x1421   : > { %6515 = vmatprep.mubr.msk.f32.mxu1 %vm6861_vm10, %v9498_v35 }
0x1424   : > { %6516 = vmatmul.mubr.msk.f32.gmra.mrb[72].mxu1 %vm621_vm1, %v6094_v44 }
0x1425   : > { %6518 = vmatprep.mubr.msk.f32.mxu1 %vm6861_vm10, %v9498_v35 }
0x1428   : > { %6519 = vmatmul.mubr.msk.f32.gmra.mrb[74].mxu1 %vm621_vm1, %v6095_v45 }
0x1429   : > { %6521 = vmatprep.mubr.msk.f32.mxu1 %vm6861_vm10, %v9498_v35 }
0x142c   : > { %6522 = vmatmul.mubr.msk.f32.gmra.mrb[76].mxu1 %vm621_vm1, %v6096_v1  ;;  %v6114_v1 = vld [vmem:[%s9373_s1 + $0x1c0] sm:$0xff] }
0x142d   : > { %6524 = vmatprep.mubr.msk.f32.mxu1 %vm6861_vm10, %v9498_v35 }
0x1430   : > { %6525 = vmatmul.mubr.msk.f32.gmra.mrb[78].mxu1 %vm621_vm1, %v6097_v47 }
0x1431   : > { %6527 = vmatprep.mubr.msk.f32.mxu1 %vm6861_vm10, %v9498_v35 }
0x1434   : > { %6528 = vmatmul.mubr.msk.f32.gmra.mrb[80].mxu1 %vm621_vm1, %v6098_v55 }
0x1435   : > { %6530 = vmatprep.mubr.msk.f32.mxu1 %vm6861_vm10, %v9498_v35 }
0x1438   : > { %6531 = vmatmul.mubr.msk.f32.gmra.mrb[82].mxu1 %vm621_vm1, %v6099_v41  ;;  %v6110_v41 = vld [vmem:[%s9376_s4 + $0x60] sm:$0xff] }
0x1439   : > { %6533 = vmatprep.mubr.msk.f32.mxu1 %vm6861_vm10, %v9498_v35  ;;  %6538 = vmatprep.mubr.msk.f32.mxu0 %vm621_vm1, %v6110_v41 }
0x143c   : > { %6534 = vmatmul.mubr.msk.f32.gmra.mrb[84].mxu1 %vm621_vm1, %v6100_v11  ;;  %v6116_v11 = vld [vmem:[%s9373_s1 + $0x1d0] sm:$0xff] }
0x143d   : > { %6580 = vmatprep.mubr.msk.f32.mxu1 %vm6861_vm10, %v9498_v35 }
0x14ef   : > { %v4262_v23 = vpop.f32.mrb[68].mxu1 }
0x14f0   : > { %4306 = vrot.lane.b32.xlu0 %v4262_v23, %s9522_s22  ;;  %v6511_v56 = vpop.f32.mrb[69].mxu1  ;;  %v6115_v23 = vld [vmem:[%s9373_s1 + $0x1c8] sm:$0xff] }
0x14f1   : > { %v6118_v56 = vld [vmem:[%s9373_s1 + $0x1e0] sm:$0xff] }
0x14f3   : > { %v4267_v60 = vpop.f32.mrb[70].mxu1 }
0x14f4   : > { %4309 = vrot.lane.b32.xlu1 %v4267_v60, %s9523_s15  ;;  %v6514_v16 = vpop.f32.mrb[71].mxu1  ;;  %s9527_s15 = smov 123   ;;  %v6117_v60 = vld [vmem:[%s9373_s1 + $0x1d8] sm:$0xff] }
0x14f5   : > { %v6119_v16 = vld [vmem:[%s9373_s1 + $0x1e8] sm:$0xff] }
0x14f7   : > { %v4272_v58 = vpop.f32.mrb[72].mxu1 }
0x14f8   : > { %4313 = vrot.lane.b32.xlu0 %v4272_v58, %s9524_s8  ;;  %v6517_v49 = vpop.f32.mrb[73].mxu1 }
0x14fb   : > { %v4277_v0 = vpop.f32.mrb[74].mxu1 }
0x14fc   : > { %4317 = vrot.lane.b32.xlu1 %v4277_v0, %s9486_s28  ;;  %v6520_v7 = vpop.f32.mrb[75].mxu1 }
0x14ff   : > { %v4282_v15 = vpop.f32.mrb[76].mxu1 }
0x1500   : > { %v6523_v13 = vpop.f32.mrb[77].mxu1 }
0x1503   : > { %v4287_v4 = vpop.f32.mrb[78].mxu1 }
0x1504   : > { %4323 = vrot.lane.b32.xlu0 %v4287_v4, %s9479_s30  ;;  %v6526_v48 = vpop.f32.mrb[79].mxu1 }
0x1507   : > { %v4292_v10 = vpop.f32.mrb[80].mxu1 }
0x1508   : > { %4341 = vperm.xlu0 %6824, %v6088_v28   ;;  %4327 = vrot.lane.b32.xlu1 %v4292_v10, %s9525_s29  ;;  %v6529_v3 = vpop.f32.mrb[81].mxu1 }
0x150b   : > { %v4297_v44 = vpop.f32.mrb[82].mxu1 }
0x150c   : > { %4347 = vperm.xlu0 %6824, %v6089_v37   ;;  %4331 = vrot.lane.b32.xlu1 %v4297_v44, %s9526_s24  ;;  %v6532_v45 = vpop.f32.mrb[83].mxu1 }
0x150f   : > { %v4302_v47 = vpop.f32.mrb[84].mxu1 }
0x1510   : > { %4540 = vperm.xlu0 %6824, %v6114_v1   ;;  %4335 = vrot.lane.b32.xlu1 %v4302_v47, %s9527_s15  ;;  %v6535_v55 = vpop.f32.mrb[85].mxu1  ;;  %v4321_v1 = vmul.f32 %v8720_v6, %v4282_v15  ;;  %v4436_v6 = vld [vmem:[%s9384_s12] sm:$0xff] }
0x1514   : > { %4552 = vperm.xlu0 %6824, %v6116_v11   ;;  %4545 = vperm.xlu1 %6825, %v6115_v23  }
0x1518   : > { %4641 = vperm.xlu0 %6824, %v6118_v56   ;;  %4557 = vperm.xlu1 %6825, %v6117_v60  }
0x151c   : > { %4647 = vperm.xlu1 %6825, %v6119_v16  }
0x1562   : > { %v4307_v58 = vpop.permute.xlu0 %4306 }
0x1563   : > { %v4308_v4 = vmul.f32 %v8701_v54, %v4307_v58 }
0x1566   : > { %v4310_v49 = vpop.permute.xlu1 %4309 }
0x1567   : > { %v4311_v7 = vmul.f32 %v8696_v52, %v4310_v49 }
0x1569   : > { %v4312_v28 = vadd.f32 %v4311_v7, %v4308_v4  ;;  %v6111_v7 = vld [vmem:[%s9376_s4 + $0x68] sm:$0xff]  ;;  %v4440_v4 = vld [vmem:[%s9384_s12 + $0x20] sm:$0xff] }
0x156a   : > { %v4314_v0 = vpop.permute.xlu0 %4313 }
0x156b   : > { %v4315_v48 = vmul.f32 %v8706_v27, %v4314_v0 }
0x156d   : > { %v4316_v3 = vadd.f32 %v4315_v48, %v4312_v28  ;;  %v4441_v48 = vld [vmem:[%s9384_s12 + $0x28] sm:$0xff] }
0x156e   : > { %v4318_v13 = vpop.permute.xlu1 %4317  ;;  %v6713_v28 = vpack.c.bf16 %v4441_v48, %v4440_v4 }
0x156f   : > { %v4319_v10 = vmul.f32 %v8712_v62, %v4318_v13 }
0x1571   : > { %v4320_v44 = vadd.f32 %v4319_v10, %v4316_v3  ;;  %v4442_v10 = vld [vmem:[%s9384_s12 + $0x30] sm:$0xff]  ;;  %v4443_v3 = vld [vmem:[%s9384_s12 + $0x38] sm:$0xff] }
0x1573   : > { %v4322_v55 = vadd.f32 %v4321_v1, %v4320_v44  ;;  %v4444_v44 = vld [vmem:[%s9384_s12 + $0x40] sm:$0xff] }
0x1576   : > { %v4324_v37 = vpop.permute.xlu0 %4323 }
0x1577   : > { %v4325_v47 = vmul.f32 %v8725_v50, %v4324_v37  ;;  %v4437_v50 = vld [vmem:[%s9384_s12 + $0x8] sm:$0xff]  ;;  %v6717_v37 = vpack.c.bf16 %v4443_v3, %v4442_v10 }
0x1578   : > { %v6705_v0 = vpack.c.bf16 %v4437_v50, %v4436_v6  ;;  %v6786_v50 = vadd.f32 %v8356_v63, %v8356_v63 }
0x1579   : > { %v4326_v11 = vadd.f32 %v4325_v47, %v4322_v55  ;;  %v4446_v47 = vld [vmem:[%s9384_s12 + $0x50] sm:$0xff]  ;;  %v4447_v55 = vld [vmem:[%s9384_s12 + $0x58] sm:$0xff] }
0x157a   : > { %v4328_v45 = vpop.permute.xlu1 %4327 }
0x157b   : > { %v4329_v41 = vmul.f32 %v8730_v61, %v4328_v45  ;;  %v4445_v45 = vld [vmem:[%s9384_s12 + $0x48] sm:$0xff] }
0x157c   : > { %v6721_v1 = vpack.c.bf16 %v4445_v45, %v4444_v44 }
0x157d   : > { %v4330_v23 = vadd.f32 %v4329_v41, %v4326_v11  ;;  %v6725_v41 = vpack.c.bf16 %v4447_v55, %v4446_v47  ;;  %v4449_v11 = vld [vmem:[%s9384_s12 + $0x68] sm:$0xff] }
0x157e   : > { %v4332_v52 = vpop.permute.xlu1 %4331 }
0x157f   : > { %v4333_v54 = vmul.f32 %v8737_v12, %v4332_v52  ;;  %v4438_v12 = vld [vmem:[%s9384_s12 + $0x10] sm:$0xff]  ;;  %v4448_v52 = vld [vmem:[%s9384_s12 + $0x60] sm:$0xff] }
0x1581   : > { %v4334_v62 = vadd.f32 %v4333_v54, %v4330_v23  ;;  %v6729_v54 = vpack.c.bf16 %v4449_v11, %v4448_v52  ;;  %v4450_v23 = vld [vmem:[%s9384_s12 + $0x70] sm:$0xff]  ;;  %v6125_v52 = vld [vmem:[%s9375_s3 + $0x200] sm:$0xff]  ;;  %v6126_v11 = vld [vmem:[%s9375_s3 + $0x208] sm:$0xff] }
0x1582   : > { %v4336_v27 = vpop.permute.xlu1 %4335 }
0x1583   : > { %v4337_v56 = vmul.f32 %v8744_v42, %v4336_v27  ;;  %v4439_v42 = vld [vmem:[%s9384_s12 + $0x18] sm:$0xff] }
0x1584   : > { %v6709_v13 = vpack.c.bf16 %v4439_v42, %v4438_v12  ;;  %v4451_v27 = vld [vmem:[%s9384_s12 + $0x78] sm:$0xff]  ;;  %v6788_v12 = vadd.f32 %v8359_v2, %v8359_v2 }
0x1585   : > { %v4338_v60 = vadd.f32 %v4337_v56, %v4334_v62  ;;  %v6733_v56 = vpack.c.bf16 %v4451_v27, %v4450_v23  ;;  %v6122_v2 = vld [vmem:[%s9374_s2 + $0x38] sm:$0xff]  ;;  %v6129_v27 = vld [vmem:[%s9375_s3 + $0x220] sm:$0xff] }
0x1586   : > { %v6128_v23 = vld [vmem:[%s9375_s3 + $0x218] sm:$0xff] }
0x1587   : > { %v4342_v16 = vpop.permute.xlu0 %4341 }
0x1588   : > { %v4344_v58 = vmul.f32 %v4342_v16, %v4338_v60 }
0x158b   : > { %v4348_v49 = vpop.permute.xlu0 %4347 }
0x158c   : > { %v4350_v61 = vadd.f32 %v4348_v49, %v4344_v58 }
0x158e   : > { %v4351_v15 = vmax.f32 %v4350_v61, 0.0 }
0x158f   : > { %v4541_v6 = vpop.permute.xlu0 %4540 }
0x1590   : > { %6536 = vmatprep.subr.mxu0 %v4351_v15 }
0x1591   : > { %6537 = vmatpush3.msra.mxu0 %v4351_v15 }
0x1592   : > { %6539 = vmatmul.mubr.msk.f32.vlgmr.msra.gmra.mrb[78].mxu0 %vm621_vm1, %v6111_v7  ;;  %6706 = vmatprep.subr.bf16.mxu0 %v6705_v0 }
0x1593   : > { %6708 = vmatpush3.bf16.msra.mxu0 %v6705_v0  ;;  %v4546_v49 = vpop.permute.xlu1 %4545 }
0x1594   : > { %6710 = vmatprep.subr.bf16.mxu0 %v6709_v13 }
0x1597   : > { %6712 = vmatpush3.bf16.msra.mxu0 %v6709_v13  ;;  %v4558_v7 = vpop.permute.xlu1 %4557  ;;  %v4553_v13 = vpop.permute.xlu0 %4552 }
0x1598   : > { %6714 = vmatprep.subr.bf16.mxu0 %v6713_v28 }
0x159b   : > { %6716 = vmatpush3.bf16.msra.mxu0 %v6713_v28  ;;  %v4642_v3 = vpop.permute.xlu0 %4641 }
0x159c   : > { %6718 = vmatprep.subr.bf16.mxu0 %v6717_v37 }
0x159f   : > { %6720 = vmatpush3.bf16.msra.mxu0 %v6717_v37 }
0x15a0   : > { %6722 = vmatprep.subr.bf16.mxu0 %v6721_v1 }
0x15a3   : > { %6724 = vmatpush3.bf16.msra.mxu0 %v6721_v1  ;;  %v4648_v1 = vpop.permute.xlu1 %4647 }
0x15a4   : > { %6726 = vmatprep.subr.bf16.mxu0 %v6725_v41 }
0x15a7   : > { %6728 = vmatpush3.bf16.msra.mxu0 %v6725_v41  ;;  %v6124_v41 = vld [vmem:[%s9375_s3 + $0x1f8] sm:$0xff] }
0x15a8   : > { %6730 = vmatprep.subr.bf16.mxu0 %v6729_v54 }
0x15ab   : > { %6732 = vmatpush3.bf16.msra.mxu0 %v6729_v54  ;;  %v6127_v54 = vld [vmem:[%s9375_s3 + $0x210] sm:$0xff] }
0x15ac   : > { %6734 = vmatprep.subr.bf16.mxu0 %v6733_v56 }
0x15af   : > { %6736 = vmatpush3.bf16.msra.mxu0 %v6733_v56  ;;  %v6130_v56 = vld [vmem:[%s9375_s3 + $0x228] sm:$0xff] }
0x1665   : > { %v6540_v62 = vpop.f32.mrb[78].mxu0 }
0x1666   : > { %v4427_v60 = vpop.f32.mrb[79].mxu0  ;;  %v4433_v58 = vadd.f32 %v6540_v62, %v8755_v43  ;;  %v6131_v62 = vld [vmem:[%s9375_s3 + $0x230] sm:$0xff] }
0x1667   : > { %v4428_v16 = vadd.f32 %v4427_v60, %v8758_v20  ;;  %v6132_v60 = vld [vmem:[%s9375_s3 + $0x238] sm:$0xff] }
0x1669   : > { %6573 = vmatprep.mubr.f32.mxu0 %v4428_v16 }
0x166a   : > { %6574 = vmatmul.mubr.f32.vlgmr.msra.gmra.mrb[56].mxu0 %v4433_v58 }
0x173d   : > { %v6575_v61 = vpop.f32.mrb[56].mxu0 }
0x173e   : > { %v8927_v42 = vadd.f32 %v6786_v50, %v6575_v61  ;;  %v4518_v15 = vpop.f32.mrb[57].mxu0 }
0x173f   : > { %v8929_v0 = vadd.f32 %v6788_v12, %v4518_v15 }
0x1740   : > { %v4549_v20 = vmul.f32 %v8927_v42, %v4546_v49 }
0x1741   : > { %v4548_v43 = vmul.f32 %v8929_v0, %v4541_v6 }
0x1742   : > { %v4561_v4 = vadd.f32 %v4558_v7, %v4549_v20 }
0x1743   : > { %v4560_v48 = vadd.f32 %v4553_v13, %v4548_v43 }
0x1744   : > { %v4563_v28 = vmax.f32 %v4561_v4, 0.0  ;;  %v6120_v4 = vld [vmem:[%s9373_s1 + $0x1f0] sm:$0xff] }
0x1745   : > { %v4562_v10 = vmax.f32 %v4560_v48, 0.0 }
0x1747   : > { %v6738_v63 = vpack.c.bf16 %v4563_v28, %v4562_v10  ;;  %v6121_v10 = vld [vmem:[%s9373_s1 + $0x1f8] sm:$0xff] }
0x1749   : > { %6739 = vmatpush3.bf16.msra.mxu1 %v6738_v63 }
0x174a   : > { %6583 = vmatprep.subr.mxu1 %v9498_v35 }
0x174c   : > { %6581 = vmatmul.mubr.msk.f32.vlgmr.msra.gmra.mrb[86].mxu1 %vm521_vm0, %v6122_v2 }
0x174d   : > { %6585 = vmatprep.mubr.msk.f32.mxu1 %vm6861_vm10, %v9498_v35 }
0x181f   : > { %v4635_v37 = vpop.f32.mrb[86].mxu1 }
0x1820   : > { %v4644_v44 = vmul.f32 %v4642_v3, %v4635_v37  ;;  %v6582_v45 = vpop.f32.mrb[87].mxu1  ;;  %v5038_v3 = vld [vmem:[%s9377_s5] sm:$0xff] }
0x1821   : > { %v6142_v45 = vld [vmem:[%s9376_s4 + $0x70] sm:$0xff] }
0x1822   : > { %v4650_v47 = vadd.f32 %v4648_v1, %v4644_v44  ;;  %v5040_v1 = vld [vmem:[%s9377_s5 + $0x10] sm:$0xff]  ;;  %6614 = vmatprep.mubr.msk.f32.mxu0 %vm621_vm1, %v6142_v45  ;;  %v4944_v45 = vld [vmem:[%s9385_s13 + $0x78] sm:$0xff] }
0x1824   : > { %v4651_v55 = vmax.f32 %v4650_v47, 0.0  ;;  %v5039_v47 = vld [vmem:[%s9377_s5 + $0x8] sm:$0xff] }
0x1826   : > { %6584 = vmatpush3.msra.mxu1 %v4651_v55  ;;  %v5042_v55 = vld [vmem:[%s9377_s5 + $0x20] sm:$0xff] }
0x1827   : > { %6586 = vmatmul.mubr.msk.f32.vlgmr.msra.gmra.mrb[88].mxu1 %vm621_vm1, %v6124_v41  ;;  %v5041_v41 = vld [vmem:[%s9377_s5 + $0x18] sm:$0xff] }
0x1828   : > { %6588 = vmatprep.mubr.msk.f32.mxu1 %vm6861_vm10, %v9498_v35 }
0x182b   : > { %6589 = vmatmul.mubr.msk.f32.gmra.mrb[90].mxu1 %vm621_vm1, %v6125_v52  ;;  %v5044_v52 = vld [vmem:[%s9377_s5 + $0x30] sm:$0xff] }
0x182c   : > { %6591 = vmatprep.mubr.msk.f32.mxu1 %vm6861_vm10, %v9498_v35 }
0x182f   : > { %6592 = vmatmul.mubr.msk.f32.gmra.mrb[92].mxu1 %vm621_vm1, %v6126_v11  ;;  %v5043_v11 = vld [vmem:[%s9377_s5 + $0x28] sm:$0xff] }
0x1830   : > { %6594 = vmatprep.mubr.msk.f32.mxu1 %vm6861_vm10, %v9498_v35 }
0x1833   : > { %6595 = vmatmul.mubr.msk.f32.gmra.mrb[94].mxu1 %vm621_vm1, %v6127_v54  ;;  %v6152_v54 = vld [vmem:[%s9373_s1 + $0x200] sm:$0xff] }
0x1834   : > { %6597 = vmatprep.mubr.msk.f32.mxu1 %vm6861_vm10, %v9498_v35 }
0x1837   : > { %6598 = vmatmul.mubr.msk.f32.gmra.mrb[96].mxu1 %vm621_vm1, %v6128_v23  ;;  %v5045_v23 = vld [vmem:[%s9377_s5 + $0x38] sm:$0xff] }
0x1838   : > { %6600 = vmatprep.mubr.msk.f32.mxu1 %vm6861_vm10, %v9498_v35 }
0x183b   : > { %6601 = vmatmul.mubr.msk.f32.gmra.mrb[98].mxu1 %vm621_vm1, %v6129_v27  ;;  %v6154_v27 = vld [vmem:[%s9373_s1 + $0x210] sm:$0xff] }
0x183c   : > { %6603 = vmatprep.mubr.msk.f32.mxu1 %vm6861_vm10, %v9498_v35 }
0x183f   : > { %6604 = vmatmul.mubr.msk.f32.gmra.mrb[100].mxu1 %vm621_vm1, %v6130_v56  ;;  %v6153_v56 = vld [vmem:[%s9373_s1 + $0x208] sm:$0xff] }
0x1840   : > { %6606 = vmatprep.mubr.msk.f32.mxu1 %vm6861_vm10, %v9498_v35 }
0x1843   : > { %6607 = vmatmul.mubr.msk.f32.gmra.mrb[102].mxu1 %vm621_vm1, %v6131_v62  ;;  %v6156_v62 = vld [vmem:[%s9373_s1 + $0x220] sm:$0xff] }
0x1844   : > { %6609 = vmatprep.mubr.msk.f32.mxu1 %vm6861_vm10, %v9498_v35 }
0x1847   : > { %6610 = vmatmul.mubr.msk.f32.gmra.mrb[104].mxu1 %vm621_vm1, %v6132_v60  ;;  %v6155_v60 = vld [vmem:[%s9373_s1 + $0x218] sm:$0xff] }
0x1848   : > { %5025 = vmatprep.mubr.f32.mxu1 %v9498_v35 }
0x18fa   : > { %v4755_v16 = vpop.f32.mrb[88].mxu1 }
0x18fb   : > { %4799 = vrot.lane.b32.xlu0 %v4755_v16, %s9515_s10  ;;  %v6587_v58 = vpop.f32.mrb[89].mxu1  ;;  %v6158_v16 = vld [vmem:[%s9373_s1 + $0x230] sm:$0xff] }
0x18fc   : > { %v6157_v58 = vld [vmem:[%s9373_s1 + $0x228] sm:$0xff] }
0x18fe   : > { %v4760_v49 = vpop.f32.mrb[90].mxu1 }
0x18ff   : > { %4802 = vrot.lane.b32.xlu1 %v4760_v49, %s9516_s16  ;;  %v6590_v6 = vpop.f32.mrb[91].mxu1  ;;  %v4930_v49 = vld [vmem:[%s9385_s13 + $0x8] sm:$0xff]  ;;  %s9540_s16 = sld [smem:[#allocation3_spill]] }
0x1900   : > { %v4932_v6 = vld [vmem:[%s9385_s13 + $0x18] sm:$0xff] }
0x1902   : > { %v4765_v50 = vpop.f32.mrb[92].mxu1 }
0x1903   : > { %4806 = vrot.lane.b32.xlu0 %v4765_v50, %s9517_s0  ;;  %v6593_v61 = vpop.f32.mrb[93].mxu1  ;;  %v4929_v50 = vld [vmem:[%s9385_s13] sm:$0xff] }
0x1904   : > { %v6740_v61 = vpack.c.bf16 %v4932_v6, %v4930_v49  ;;  %v4949_v49 = vld [vmem:[%s9385_s13 + $0xa0] sm:$0xff]  ;;  %v4951_v6 = vld [vmem:[%s9385_s13 + $0xb0] sm:$0xff] }
0x1905   : > { %s9541_s15 = sshll.u32 %s9540_s16, 4 }
0x1906   : > { %v4770_v12 = vpop.f32.mrb[94].mxu1  ;;  %6741 = vmatprep.subr.bf16.mxu1 %v6740_v61  ;;  %v4956_v61 = vld [vmem:[%s9385_s13 + $0xd8] sm:$0xff] }
0x1907   : > { %4810 = vrot.lane.b32.xlu1 %v4770_v12, %s9486_s28  ;;  %v6596_v15 = vpop.f32.mrb[95].mxu1  ;;  %v4931_v12 = vld [vmem:[%s9385_s13 + $0x10] sm:$0xff] }
0x1908   : > { %v4934_v15 = vld [vmem:[%s9385_s13 + $0x28] sm:$0xff] }
0x190a   : > { %v8997_v20 = vpop.f32.mrb[96].mxu1 }
0x190b   : > { %v6599_v7 = vpop.f32.mrb[97].mxu1 }
0x190c   : > { %v4936_v7 = vld [vmem:[%s9385_s13 + $0x38] sm:$0xff] }
0x190e   : > { %v4780_v43 = vpop.f32.mrb[98].mxu1 }
0x190f   : > { %4816 = vrot.lane.b32.xlu0 %v4780_v43, %s9479_s30  ;;  %v6602_v13 = vpop.f32.mrb[99].mxu1  ;;  %v6742_v43 = vpack.c.bf16 %v4931_v12, %v4929_v50  ;;  %v4954_v50 = vld [vmem:[%s9385_s13 + $0xc8] sm:$0xff]  ;;  %v6762_v12 = vpack.c.bf16 %v4951_v6, %v4949_v49  ;;  %v4959_v6 = vld [vmem:[%s9385_s13 + $0xf0] sm:$0xff] }
0x1910   : > { %v6744_v13 = vpack.c.bf16 %v4936_v7, %v4934_v15  ;;  %v6764_v15 = vpack.c.bf16 %v4956_v61, %v4954_v50  ;;  %v4953_v7 = vld [vmem:[%s9385_s13 + $0xc0] sm:$0xff] }
0x1911   : > { %6743 = vmatpush1.bf16.msra.mxu1 %v6742_v43  ;;  %v4955_v43 = vld [vmem:[%s9385_s13 + $0xd0] sm:$0xff] }
0x1912   : > { %v4785_v48 = vpop.f32.mrb[100].mxu1  ;;  %6745 = vmatprep.subr.bf16.mxu1 %v6744_v13  ;;  %v6766_v13 = vpack.c.bf16 %v4955_v43, %v4953_v7  ;;  %v9528_v43 = vld [vmem:[#allocation13_spill] sm:$0xff] }
0x1913   : > { %4834 = vperm.xlu0 %6824, %v6120_v4   ;;  %4820 = vrot.lane.b32.xlu1 %v4785_v48, %s9518_s25  ;;  %v6605_v28 = vpop.f32.mrb[101].mxu1  ;;  %v4933_v4 = vld [vmem:[%s9385_s13 + $0x20] sm:$0xff]  ;;  %v4935_v48 = vld [vmem:[%s9385_s13 + $0x30] sm:$0xff] }
0x1914   : > { %v4938_v28 = vld [vmem:[%s9385_s13 + $0x48] sm:$0xff] }
0x1916   : > { %v4790_v63 = vpop.f32.mrb[102].mxu1 }
0x1917   : > { %4840 = vperm.xlu0 %6824, %v6121_v10   ;;  %4824 = vrot.lane.b32.xlu1 %v4790_v63, %s9519_s19  ;;  %v6608_v2 = vpop.f32.mrb[103].mxu1  ;;  %v4940_v10 = vld [vmem:[%s9385_s13 + $0x58] sm:$0xff]  ;;  %v6746_v63 = vpack.c.bf16 %v4935_v48, %v4933_v4  ;;  %s474_s19 = scalar_lea.vmem %s9542_s21, %s9541_s15 }
0x1918   : > { %v6748_v2 = vpack.c.bf16 %v4940_v10, %v4938_v28 }
0x1919   : > { %6747 = vmatpush1.bf16.msra.mxu1 %v6746_v63 }
0x191a   : > { %v4795_v37 = vpop.f32.mrb[104].mxu1  ;;  %6749 = vmatprep.subr.bf16.mxu1 %v6748_v2 }
0x191b   : > { %5048 = vperm.xlu0 %6824, %v5038_v3   ;;  %4828 = vrot.lane.b32.xlu1 %v4795_v37, %s9520_s17  ;;  %v6611_v44 = vpop.f32.mrb[105].mxu1  ;;  %v4937_v3 = vld [vmem:[%s9385_s13 + $0x40] sm:$0xff]  ;;  %v4939_v37 = vld [vmem:[%s9385_s13 + $0x50] sm:$0xff] }
0x191c   : > { %v4942_v44 = vld [vmem:[%s9385_s13 + $0x68] sm:$0xff] }
0x191f   : > { %5062 = vperm.xlu0 %6824, %v5040_v1   ;;  %5053 = vperm.xlu1 %6825, %v5039_v47   ;;  %v6750_v1 = vpack.c.bf16 %v4939_v37, %v4937_v3  ;;  %v6752_v47 = vpack.c.bf16 %v4944_v45, %v4942_v44 }
0x1921   : > { %6751 = vmatpush1.bf16.msra.mxu1 %v6750_v1 }
0x1922   : > { %6753 = vmatprep.subr.bf16.mxu1 %v6752_v47 }
0x1923   : > { %5165 = vperm.xlu0 %6824, %v5042_v55   ;;  %5067 = vperm.xlu1 %6825, %v5041_v41   ;;  %v4941_v55 = vld [vmem:[%s9385_s13 + $0x60] sm:$0xff]  ;;  %v4943_v41 = vld [vmem:[%s9385_s13 + $0x70] sm:$0xff] }
0x1927   : > { %5179 = vperm.xlu0 %6824, %v5044_v52   ;;  %5170 = vperm.xlu1 %6825, %v5043_v11   ;;  %v4946_v52 = vld [vmem:[%s9385_s13 + $0x88] sm:$0xff]  ;;  %v4948_v11 = vld [vmem:[%s9385_s13 + $0x98] sm:$0xff] }
0x192b   : > { %5324 = vperm.xlu0 %6824, %v6152_v54   ;;  %5184 = vperm.xlu1 %6825, %v5045_v23   ;;  %v6754_v54 = vpack.c.bf16 %v4943_v41, %v4941_v55  ;;  %v6756_v23 = vpack.c.bf16 %v4948_v11, %v4946_v52  ;;  %v4814_v41 = vmul.f32 %v8997_v20, %v8314_v22  ;;  %v4957_v20 = vld [vmem:[%s9385_s13 + $0xe0] sm:$0xff] }
0x192c   : > { %v6770_v50 = vpack.c.bf16 %v4959_v6, %v4957_v20 }
0x192d   : > { %6755 = vmatpush1.bf16.msra.mxu1 %v6754_v54 }
0x192e   : > { %6757 = vmatprep.subr.bf16.mxu1 %v6756_v23 }
0x192f   : > { %5338 = vperm.xlu0 %6824, %v6154_v27   ;;  %5329 = vperm.xlu1 %6825, %v6153_v56   ;;  %v4945_v27 = vld [vmem:[%s9385_s13 + $0x80] sm:$0xff]  ;;  %v4947_v56 = vld [vmem:[%s9385_s13 + $0x90] sm:$0xff] }
0x1933   : > { %5432 = vperm.xlu0 %6824, %v6156_v62   ;;  %5343 = vperm.xlu1 %6825, %v6155_v60   ;;  %v4950_v62 = vld [vmem:[%s9385_s13 + $0xa8] sm:$0xff]  ;;  %v4952_v60 = vld [vmem:[%s9385_s13 + $0xb8] sm:$0xff] }
0x1937   : > { %5686 = vperm.xlu0 %6824, %v6158_v16   ;;  %5439 = vperm.xlu1 %6825, %v6157_v58   ;;  %v6758_v16 = vpack.c.bf16 %v4947_v56, %v4945_v27  ;;  %v6760_v58 = vpack.c.bf16 %v4952_v60, %v4950_v62 }
0x1939   : > { %6759 = vmatpush1.bf16.msra.mxu1 %v6758_v16 }
0x193a   : > { %6761 = vmatprep.subr.bf16.mxu1 %v6760_v58 }
0x193d   : > { %6763 = vmatpush1.bf16.msra.mxu1 %v6762_v12 }
0x193e   : > { %6765 = vmatprep.subr.bf16.mxu1 %v6764_v15 }
0x1941   : > { %6767 = vmatpush1.bf16.msra.mxu1 %v6766_v13  ;;  %v9175_v13 = vadd.f32 %v8159_v36, %v9528_v43 }
0x196d   : > { %v4800_v4 = vpop.permute.xlu0 %4799 }
0x196e   : > { %v4801_v2 = vmul.f32 %v4800_v4, %v8283_v46  ;;  %v9529_v4 = vld [vmem:[#allocation14_spill] sm:$0xff] }
0x1971   : > { %v4803_v48 = vpop.permute.xlu1 %4802 }
0x1972   : > { %v4804_v10 = vmul.f32 %v4803_v48, %v8274_v8  ;;  %v9179_v48 = vadd.f32 %v8161_v9, %v9529_v4 }
0x1974   : > { %v4805_v37 = vadd.f32 %v4804_v10, %v4801_v2 }
0x1975   : > { %v4807_v28 = vpop.permute.xlu0 %4806 }
0x1976   : > { %v4808_v3 = vmul.f32 %v4807_v28, %v8287_v53 }
0x1978   : > { %v4809_v45 = vadd.f32 %v4808_v3, %v4805_v37 }
0x1979   : > { %v4811_v63 = vpop.permute.xlu1 %4810 }
0x197a   : > { %v4812_v44 = vmul.f32 %v4811_v63, %v8292_v32 }
0x197c   : > { %v4813_v47 = vadd.f32 %v4812_v44, %v4809_v45  ;;  %v9531_v45 = vld [vmem:[#allocation16_spill] sm:$0xff] }
0x197d   : > { %v9189_v36 = vadd.f32 %v8165_v51, %v9531_v45  ;;  %v6149_v45 = vld [vmem:[%s9378_s6 + $0x18] sm:$0xff] }
0x197e   : > { %v4815_v11 = vadd.f32 %v4814_v41, %v4813_v47 }
0x1981   : > { %v4817_v1 = vpop.permute.xlu0 %4816 }
0x1982   : > { %v4818_v52 = vmul.f32 %v4817_v1, %v8318_v31  ;;  %v6143_v31 = vld [vmem:[%s9376_s4 + $0x78] sm:$0xff] }
0x1984   : > { %v4819_v23 = vadd.f32 %v4818_v52, %v4815_v11 }
0x1985   : > { %v4821_v55 = vpop.permute.xlu1 %4820 }
0x1986   : > { %v4822_v8 = vmul.f32 %v4821_v55, %v8327_v14  ;;  %v4958_v14 = vld [vmem:[%s9385_s13 + $0xe8] sm:$0xff] }
0x1988   : > { %v4823_v53 = vadd.f32 %v4822_v8, %v4819_v23 }
0x1989   : > { %v4825_v54 = vpop.permute.xlu1 %4824 }
0x198a   : > { %v4826_v46 = vmul.f32 %v4825_v54, %v8334_v29  ;;  %v4960_v29 = vld [vmem:[%s9385_s13 + $0xf8] sm:$0xff] }
0x198c   : > { %v4827_v56 = vadd.f32 %v4826_v46, %v4823_v53 }
0x198d   : > { %v4829_v27 = vpop.permute.xlu1 %4828 }
0x198e   : > { %v4830_v32 = vmul.f32 %v4829_v27, %v8344_v18  ;;  %v6768_v18 = vpack.c.bf16 %v4960_v29, %v4958_v14 }
0x1990   : > { %v4831_v62 = vadd.f32 %v4830_v32, %v4827_v56  ;;  %6769 = vmatprep.subr.bf16.mxu1 %v6768_v18 }
0x1991   : > { %6771 = vmatpush1.bf16.msra.mxu1 %v6770_v50 }
0x1992   : > { %v4835_v60 = vpop.permute.xlu0 %4834 }
0x1993   : > { %v4837_v16 = vmul.f32 %v4835_v60, %v4831_v62 }
0x1996   : > { %v4841_v58 = vpop.permute.xlu0 %4840 }
0x1997   : > { %v4843_v49 = vadd.f32 %v4841_v58, %v4837_v16  ;;  %v5078_v16 = vld [vmem:[%s9378_s6] sm:$0xff]  ;;  %v5079_v58 = vld [vmem:[%s9378_s6 + $0x8] sm:$0xff] }
0x1999   : > { %v4844_v22 = vmax.f32 %v4843_v49, 0.0 }
0x199a   : > { %v5049_v28 = vpop.permute.xlu0 %5048 }
0x199b   : > { %6612 = vmatprep.subr.mxu0 %v4844_v22 }
0x199c   : > { %6613 = vmatpush3.msra.mxu0 %v4844_v22 }
0x199d   : > { %6615 = vmatmul.mubr.msk.f32.vlgmr.msra.gmra.mrb[80].mxu0 %vm621_vm1, %v6143_v31 }
0x199e   : > { %5150 = vmatprep.mubr.f32.mxu0 %v9498_v35  ;;  %v5054_v2 = vpop.permute.xlu1 %5053  ;;  %v5063_v41 = vpop.permute.xlu0 %5062 }
0x19a2   : > { %v5068_v54 = vpop.permute.xlu1 %5067  ;;  %v5166_v49 = vpop.permute.xlu0 %5165 }
0x19a6   : > { %v5171_v22 = vpop.permute.xlu1 %5170  ;;  %v5180_v20 = vpop.permute.xlu0 %5179 }
0x1a70   : > { %v6616_v61 = vpop.f32.mrb[80].mxu0 }
0x1a71   : > { %v4920_v12 = vpop.f32.mrb[81].mxu0  ;;  %v4926_v7 = vadd.f32 %v8927_v42, %v6616_v61  ;;  %v9530_v42 = vld [vmem:[#allocation15_spill] sm:$0xff] }
0x1a72   : > { %v4921_v15 = vadd.f32 %v8929_v0, %v4920_v12  ;;  %v9185_v37 = vadd.f32 %v8163_v30, %v9530_v42 }
0x1a74   : > { %5026 = vmatmul.mubr.f32.vlgmr.msra.gmra.mrb[106].mxu1 %v4921_v15  ;;  %v5185_v15 = vpop.permute.xlu1 %5184 }
0x1a75   : > { %5031 = vmatprep.mubr.f32.mxu1 %v9498_v35 }
0x1a78   : > { %5032 = vmatmul.mubr.f32.gmra.mrb[108].mxu1 %v4926_v7 }
0x1a79   : > { %5547 = vmatprep.mubr.f32.mxu1 %v9498_v35 }
0x1b47   : > { %v5027_v10 = vpop.f32.mrb[106].mxu1 }
0x1b48   : > { %v5028_v0 = vadd.f32 %v5027_v10, %v9175_v13  ;;  %v5029_v63 = vpop.f32.mrb[107].mxu1 }
0x1b49   : > { %v5030_v3 = vadd.f32 %v5029_v63, %v9179_v48 }
0x1b4a   : > { %v5056_v44 = vmul.f32 %v5049_v28, %v5028_v0 }
0x1b4b   : > { %v5057_v1 = vmul.f32 %v5049_v28, %v5030_v3  ;;  %v5033_v9 = vpop.f32.mrb[108].mxu1 }
0x1b4c   : > { %v5034_v47 = vadd.f32 %v5033_v9, %v9185_v37  ;;  %v5035_v55 = vpop.f32.mrb[109].mxu1  ;;  %v5070_v11 = vadd.f32 %v5063_v41, %v5056_v44  ;;  %v6148_v44 = vld [vmem:[%s9378_s6 + $0x10] sm:$0xff] }
0x1b4d   : > { %v5036_v52 = vadd.f32 %v5035_v55, %v9189_v36  ;;  %v5071_v23 = vadd.f32 %v5063_v41, %v5057_v1 }
0x1b4e   : > { %v5058_v8 = vmul.f32 %v5054_v2, %v5034_v47  ;;  %v5074_v27 = vmax.f32 %v5070_v11, 0.0 }
0x1b4f   : > { %v5059_v46 = vmul.f32 %v5054_v2, %v5036_v52  ;;  %v5075_v56 = vmax.f32 %v5071_v23, 0.0 }
0x1b50   : > { %v5072_v30 = vadd.f32 %v5068_v54, %v5058_v8 }
0x1b51   : > { %v5073_v53 = vadd.f32 %v5068_v54, %v5059_v46 }
0x1b52   : > { %v5076_v32 = vmax.f32 %v5072_v30, 0.0 }
0x1b53   : > { %v5077_v51 = vmax.f32 %v5073_v53, 0.0 }
0x1b54   : > { %v6774_v62 = vpack.c.bf16 %v5076_v32, %v5074_v27 }
0x1b55   : > { %v6772_v60 = vpack.c.bf16 %v5077_v51, %v5075_v56 }
0x1b57   : > { %6773 = vmatprep.subr.bf16.mxu0 %v6772_v60 }
0x1b58   : > { %6775 = vmatpush1.bf16.msra.mxu0 %v6774_v62 }
0x1b5b   : > { %6146 = vmatmul.mubr.msk.f32.vlgmr.msra.gmra.mrb[82].mxu0 %vm521_vm0, %v5078_v16 }
0x1b5c   : > { %5156 = vmatprep.mubr.f32.mxu0 %v9498_v35 }
0x1b5f   : > { %6147 = vmatmul.mubr.msk.f32.gmra.mrb[84].mxu0 %vm521_vm0, %v5079_v58 }
0x1b60   : > { %5268 = vmatprep.mubr.f32.mxu0 %v9498_v35 }
0x1c2e   : > { %v5152_v31 = vpop.f32.mrb[82].mxu0 }
0x1c2f   : > { %v5173_v14 = vmul.f32 %v5166_v49, %v5152_v31  ;;  %v5154_v29 = vpop.f32.mrb[83].mxu0 }
0x1c30   : > { %v5174_v18 = vmul.f32 %v5166_v49, %v5154_v29 }
0x1c31   : > { %v5187_v50 = vadd.f32 %v5180_v20, %v5173_v14 }
0x1c32   : > { %v5158_v6 = vpop.f32.mrb[84].mxu0  ;;  %v5188_v7 = vadd.f32 %v5180_v20, %v5174_v18 }
0x1c33   : > { %v5175_v61 = vmul.f32 %v5171_v22, %v5158_v6  ;;  %v5160_v12 = vpop.f32.mrb[85].mxu0  ;;  %v5191_v10 = vmax.f32 %v5187_v50, 0.0  ;;  %v5325_v6 = vpop.permute.xlu0 %5324 }
0x1c34   : > { %v5176_v43 = vmul.f32 %v5171_v22, %v5160_v12  ;;  %v5192_v63 = vmax.f32 %v5188_v7, 0.0  ;;  %v5330_v12 = vpop.permute.xlu1 %5329 }
0x1c35   : > { %v5189_v4 = vadd.f32 %v5185_v15, %v5175_v61 }
0x1c36   : > { %v5190_v28 = vadd.f32 %v5185_v15, %v5176_v43 }
0x1c37   : > { %v5193_v0 = vmax.f32 %v5189_v4, 0.0 }
0x1c38   : > { %v5194_v2 = vmax.f32 %v5190_v28, 0.0 }
0x1c39   : > { %v6778_v3 = vpack.c.bf16 %v5193_v0, %v5191_v10 }
0x1c3a   : > { %v6776_v42 = vpack.c.bf16 %v5194_v2, %v5192_v63 }
0x1c3c   : > { %6777 = vmatprep.subr.bf16.mxu0 %v6776_v42 }
0x1c3d   : > { %6779 = vmatpush1.bf16.msra.mxu0 %v6778_v3  ;;  %v5344_v3 = vpop.permute.xlu1 %5343 }
0x1c40   : > { %6150 = vmatmul.mubr.msk.f32.vlgmr.msra.gmra.mrb[86].mxu0 %vm521_vm0, %v6148_v44 }
0x1c41   : > { %5274 = vmatprep.mubr.f32.mxu0 %v9498_v35 }
0x1c44   : > { %6151 = vmatmul.mubr.msk.f32.gmra.mrb[88].mxu0 %vm521_vm0, %v6149_v45 }
0x1c45   : > { %5423 = vmatprep.mubr.f32.mxu0 %v9498_v35 }
0x1d13   : > { %v5270_v1 = vpop.f32.mrb[86].mxu0 }
0x1d14   : > { %v5281_v9 = vsub.f32 0.0, %v5270_v1  ;;  %v5272_v47 = vpop.f32.mrb[87].mxu0 }
0x1d15   : > { %v5282_v55 = vsub.f32 0.0, %v5272_v47 }
0x1d16   : > { %v5285_v41 = vmin.f32 %v5281_v9, 80.0 }
0x1d17   : > { %v5286_v52 = vmin.f32 %v5282_v55, 80.0  ;;  %v5276_v11 = vpop.f32.mrb[88].mxu0 }
0x1d18   : > { %v5289_v8 = vmul.f32 1.442695, %v5285_v41  ;;  %v5283_v54 = vsub.f32 0.0, %v5276_v11  ;;  %v5278_v23 = vpop.f32.mrb[89].mxu0 }
0x1d19   : > { %v5291_v46 = vmul.f32 1.442695, %v5286_v52  ;;  %v5284_v30 = vsub.f32 0.0, %v5278_v23 }
0x1d1a   : > { %6826 = vpow2.f32 %v5289_v8  ;;  %v5287_v53 = vmin.f32 %v5283_v54, 80.0 }
0x1d1b   : > { %6828 = vpow2.f32 %v5291_v46  ;;  %v5288_v27 = vmin.f32 %v5284_v30, 80.0  ;;  %v5440_v46 = vpop.permute.xlu1 %5439 }
0x1d1c   : > { %v5293_v32 = vmul.f32 1.442695, %v5287_v53 }
0x1d1d   : > { %v5295_v56 = vmul.f32 1.442695, %v5288_v27 }
0x1d1e   : > { %6830 = vpow2.f32 %v5293_v32 }
0x1d1f   : > { %6832 = vpow2.f32 %v5295_v56 }
0x1d24   : > { %v6827_v51 = vpop.eup %6826 }
0x1d25   : > { %v6829_v62 = vpop.eup %6828  ;;  %v5297_v60 = vadd.f32 1.0, %v6827_v51  ;;  %v6162_v51 = vld [vmem:[%s9375_s3 + $0x240] sm:$0xff] }
0x1d26   : > { %v5298_v16 = vadd.f32 1.0, %v6829_v62  ;;  %v6163_v62 = vld [vmem:[%s9375_s3 + $0x248] sm:$0xff] }
0x1d27   : > { %6834 = vrcp.f32 %v5297_v60  ;;  %v6164_v60 = vld [vmem:[%s9375_s3 + $0x250] sm:$0xff] }
0x1d28   : > { %v6831_v58 = vpop.eup %6830  ;;  %6836 = vrcp.f32 %v5298_v16  ;;  %v6165_v16 = vld [vmem:[%s9375_s3 + $0x258] sm:$0xff] }
0x1d29   : > { %v6833_v49 = vpop.eup %6832  ;;  %v5299_v22 = vadd.f32 1.0, %v6831_v58  ;;  %v6166_v58 = vld [vmem:[%s9375_s3 + $0x260] sm:$0xff] }
0x1d2a   : > { %v5300_v31 = vadd.f32 1.0, %v6833_v49  ;;  %v6167_v49 = vld [vmem:[%s9375_s3 + $0x268] sm:$0xff] }
0x1d2b   : > { %6838 = vrcp.f32 %v5299_v22  ;;  %v6168_v22 = vld [vmem:[%s9375_s3 + $0x270] sm:$0xff] }
0x1d2c   : > { %6840 = vrcp.f32 %v5300_v31  ;;  %v6169_v31 = vld [vmem:[%s9375_s3 + $0x278] sm:$0xff] }
0x1d31   : > { %v6835_v14 = vpop.eup %6834 }
0x1d32   : > { %v6837_v29 = vpop.eup %6836  ;;  %v5305_v18 = vadd.f32 1.0, %v6835_v14  ;;  %v6170_v14 = vld [vmem:[%s9375_s3 + $0x280] sm:$0xff] }
0x1d33   : > { %v5306_v20 = vadd.f32 1.0, %v6837_v29 }
0x1d34   : > { %v9214_v50 = vmul.f32 %v5305_v18, %v9175_v13  ;;  %v5339_v13 = vpop.permute.xlu0 %5338 }
0x1d35   : > { %v6839_v61 = vpop.eup %6838  ;;  %v9217_v15 = vmul.f32 %v5306_v20, %v9179_v48 }
0x1d36   : > { %v6841_v7 = vpop.eup %6840  ;;  %v5307_v43 = vadd.f32 1.0, %v6839_v61  ;;  %v5332_v0 = vmul.f32 %v5325_v6, %v9214_v50 }
0x1d37   : > { %v5308_v4 = vadd.f32 1.0, %v6841_v7  ;;  %v5333_v28 = vmul.f32 %v5325_v6, %v9217_v15 }
0x1d38   : > { %v9221_v10 = vmul.f32 %v5307_v43, %v9185_v37  ;;  %v5346_v44 = vadd.f32 %v5339_v13, %v5332_v0  ;;  %v5433_v11 = vpop.permute.xlu0 %5432 }
0x1d39   : > { %v9225_v63 = vmul.f32 %v5308_v4, %v9189_v36  ;;  %v5347_v42 = vadd.f32 %v5339_v13, %v5333_v28  ;;  %v6160_v36 = vld [vmem:[%s9374_s2 + $0x40] sm:$0xff] }
0x1d3a   : > { %v5334_v2 = vmul.f32 %v5330_v12, %v9221_v10  ;;  %v5350_v37 = vmax.f32 %v5346_v44, 0.0 }
0x1d3b   : > { %v5335_v48 = vmul.f32 %v5330_v12, %v9225_v63  ;;  %v5351_v47 = vmax.f32 %v5347_v42, 0.0 }
0x1d3c   : > { %v5348_v45 = vadd.f32 %v5344_v3, %v5334_v2 }
0x1d3d   : > { %v5349_v1 = vadd.f32 %v5344_v3, %v5335_v48 }
0x1d3e   : > { %v5352_v9 = vmax.f32 %v5348_v45, 0.0 }
0x1d3f   : > { %v5353_v55 = vmax.f32 %v5349_v1, 0.0  ;;  %v6159_v1 = vld [vmem:[%s9373_s1 + $0x238] sm:$0xff] }
0x1d40   : > { %v6782_v52 = vpack.c.bf16 %v5352_v9, %v5350_v37  ;;  %v9297_v9 = vpop.permute.xlu0 %5686 }
0x1d41   : > { %v6780_v41 = vpack.c.bf16 %v5353_v55, %v5351_v47 }
0x1d43   : > { %6781 = vmatprep.subr.bf16.mxu0 %v6780_v41 }
0x1d44   : > { %6783 = vmatpush1.bf16.msra.mxu0 %v6782_v52 }
0x1d47   : > { %6161 = vmatmul.mubr.msk.f32.vlgmr.msra.gmra.mrb[90].mxu0 %vm521_vm0, %v6160_v36 }
0x1d48   : > { %5773 = vmatprep.mubr.f32.mxu0 %v9498_v35 }
0x1e1a   : > { %v5425_v8 = vpop.f32.mrb[90].mxu0 }
0x1e1b   : > { %v5435_v54 = vmul.f32 %v5433_v11, %v5425_v8  ;;  %v5427_v23 = vpop.f32.mrb[91].mxu0 }
0x1e1c   : > { %v5436_v30 = vmul.f32 %v5433_v11, %v5427_v23 }
0x1e1d   : > { %v5442_v53 = vadd.f32 %v5440_v46, %v5435_v54 }
0x1e1e   : > { %v5443_v27 = vadd.f32 %v5440_v46, %v5436_v30 }
0x1e1f   : > { %v5444_v56 = vmax.f32 %v5442_v53, 0.0 }
0x1e20   : > { %v5445_v32 = vmax.f32 %v5443_v27, 0.0 }
0x1e22   : > { %5483 = vmatprep.subr.mxu1 %v5445_v32 }
0x1e23   : > { %5484 = vmatpush1.msra.mxu1 %v5444_v56 }
0x1e24   : > { %6171 = vmatmul.mubr.msk.f32.vlgmr.msra.gmra.mrb[110].mxu1 %vm621_vm1, %v6162_v51 }
0x1e25   : > { %5553 = vmatprep.mubr.f32.mxu1 %v9498_v35 }
0x1e28   : > { %6172 = vmatmul.mubr.msk.f32.gmra.mrb[112].mxu1 %vm621_vm1, %v6163_v62 }
0x1e29   : > { %5559 = vmatprep.mubr.f32.mxu1 %v9498_v35 }
0x1e2c   : > { %6173 = vmatmul.mubr.msk.f32.gmra.mrb[114].mxu1 %vm621_vm1, %v6164_v60 }
0x1e2d   : > { %5565 = vmatprep.mubr.f32.mxu1 %v9498_v35 }
0x1e30   : > { %6174 = vmatmul.mubr.msk.f32.gmra.mrb[116].mxu1 %vm621_vm1, %v6165_v16 }
0x1e31   : > { %5571 = vmatprep.mubr.f32.mxu1 %v9498_v35 }
0x1e34   : > { %6175 = vmatmul.mubr.msk.f32.gmra.mrb[118].mxu1 %vm621_vm1, %v6166_v58 }
0x1e35   : > { %5577 = vmatprep.mubr.f32.mxu1 %v9498_v35 }
0x1e38   : > { %6176 = vmatmul.mubr.msk.f32.gmra.mrb[120].mxu1 %vm621_vm1, %v6167_v49 }
0x1e39   : > { %5583 = vmatprep.mubr.f32.mxu1 %v9498_v35 }
0x1e3c   : > { %6177 = vmatmul.mubr.msk.f32.gmra.mrb[122].mxu1 %vm621_vm1, %v6168_v22 }
0x1e3d   : > { %5589 = vmatprep.mubr.f32.mxu1 %v9498_v35 }
0x1e40   : > { %6178 = vmatmul.mubr.msk.f32.gmra.mrb[124].mxu1 %vm621_vm1, %v6169_v31 }
0x1e41   : > { %5595 = vmatprep.mubr.f32.mxu1 %v9498_v35 }
0x1e44   : > { %6179 = vmatmul.mubr.msk.f32.gmra.mrb[126].mxu1 %vm621_vm1, %v6170_v14 }
0x1ef7   : > { %v5549_v29 = vpop.f32.mrb[110].mxu1 }
0x1ef8   : > { %v5551_v18 = vpop.f32.mrb[111].mxu1  ;;  %5602 = vrot.lane.b32.xlu0 %v5549_v29, %s9483_s18 }
0x1ef9   : > { %5604 = vrot.lane.b32.xlu1 %v5551_v18, %s9483_s18  ;;  %s9532_s18 = smov 114  }
0x1efb   : > { %v5555_v20 = vpop.f32.mrb[112].mxu1 }
0x1efc   : > { %v5557_v6 = vpop.f32.mrb[113].mxu1  ;;  %5610 = vrot.lane.b32.xlu0 %v5555_v20, %s9484_s27 }
0x1efd   : > { %5612 = vrot.lane.b32.xlu1 %v5557_v6, %s9484_s27  ;;  %s9533_s27 = smov 113  }
0x1eff   : > { %v5561_v61 = vpop.f32.mrb[114].mxu1 }
0x1f00   : > { %v5563_v12 = vpop.f32.mrb[115].mxu1  ;;  %5620 = vrot.lane.b32.xlu0 %v5561_v61, %s9485_s26 }
0x1f01   : > { %5622 = vrot.lane.b32.xlu1 %v5563_v12, %s9485_s26  ;;  %s9534_s26 = smov 112  }
0x1f03   : > { %v5567_v7 = vpop.f32.mrb[116].mxu1 }
0x1f04   : > { %v5569_v43 = vpop.f32.mrb[117].mxu1  ;;  %5630 = vrot.lane.b32.xlu0 %v5567_v7, %s9486_s28 }
0x1f05   : > { %5632 = vrot.lane.b32.xlu1 %v5569_v43, %s9486_s28 }
0x1f07   : > { %v5573_v4 = vpop.f32.mrb[118].mxu1 }
0x1f08   : > { %v5575_v28 = vpop.f32.mrb[119].mxu1 }
0x1f0b   : > { %v5579_v0 = vpop.f32.mrb[120].mxu1 }
0x1f0c   : > { %v5581_v13 = vpop.f32.mrb[121].mxu1  ;;  %5644 = vrot.lane.b32.xlu0 %v5579_v0, %s9479_s30  ;;  %v5641_v0 = vmul.f32 %v5575_v28, %v9513_v19  ;;  %v9536_v28 = vld [vmem:[#allocation9_spill] sm:$0xff] }
0x1f0d   : > { %5646 = vrot.lane.b32.xlu1 %v5581_v13, %s9479_s30 }
0x1f0f   : > { %v5585_v2 = vpop.f32.mrb[122].mxu1 }
0x1f10   : > { %v5587_v3 = vpop.f32.mrb[123].mxu1  ;;  %5654 = vrot.lane.b32.xlu0 %v5585_v2, %s9532_s18 }
0x1f11   : > { %5656 = vrot.lane.b32.xlu1 %v5587_v3, %s9532_s18 }
0x1f13   : > { %v5591_v48 = vpop.f32.mrb[124].mxu1 }
0x1f14   : > { %v5593_v42 = vpop.f32.mrb[125].mxu1  ;;  %5664 = vrot.lane.b32.xlu0 %v5591_v48, %s9533_s27 }
0x1f15   : > { %5666 = vrot.lane.b32.xlu1 %v5593_v42, %s9533_s27 }
0x1f17   : > { %v5597_v44 = vpop.f32.mrb[126].mxu1 }
0x1f18   : > { %v5599_v45 = vpop.f32.mrb[127].mxu1 }
0x1f19   : > { %5674 = vrot.lane.b32.xlu1 %v5597_v44, %s9534_s26  ;;  %5676 = vrot.lane.b32.xlu0 %v5599_v45, %s9534_s26 }
0x1f1d   : > { %5693 = vperm.xlu1 %6825, %v6159_v1  }
0x1f6a   : > { %v5603_v47 = vpop.permute.xlu0 %5602 }
0x1f6b   : > { %v5605_v55 = vpop.permute.xlu1 %5604 }
0x1f6c   : > { %v5606_v53 = vsel %vm774_vm3, %v5603_v47, %v5605_v55  ;;  %v5607_v27 = vsel %vm774_vm3, %v5605_v55, %v5603_v47  ;;  %v9535_v55 = vld [vmem:[#allocation8_spill] sm:$0xff] }
0x1f6d   : > { %v5608_v22 = vmul.f32 %v5607_v27, %v7134_v38  ;;  %v5609_v31 = vmul.f32 %v5606_v53, %v7138_v39 }
0x1f6e   : > { %v5611_v37 = vpop.permute.xlu0 %5610 }
0x1f6f   : > { %v5613_v41 = vpop.permute.xlu1 %5612 }
0x1f70   : > { %v5614_v46 = vsel %vm795_vm2, %v5611_v37, %v5613_v41  ;;  %v5615_v30 = vsel %vm795_vm2, %v5613_v41, %v5611_v37  ;;  %v9537_v41 = vld [vmem:[#allocation10_spill] sm:$0xff] }
0x1f71   : > { %v5616_v62 = vmul.f32 %v5615_v30, %v7121_v33  ;;  %v5617_v60 = vmul.f32 %v5614_v46, %v7125_v34 }
0x1f72   : > { %v5621_v52 = vpop.permute.xlu0 %5620 }
0x1f73   : > { %v5623_v36 = vpop.permute.xlu1 %5622  ;;  %v5618_v18 = vadd.f32 %v5616_v62, %v5608_v22  ;;  %v5619_v20 = vadd.f32 %v5617_v60, %v5609_v31 }
0x1f74   : > { %v5624_v32 = vsel %vm819_vm4, %v5621_v52, %v5623_v36  ;;  %v5625_v56 = vsel %vm819_vm4, %v5623_v36, %v5621_v52 }
0x1f75   : > { %v5626_v14 = vmul.f32 %v5625_v56, %v7142_v40  ;;  %v5627_v29 = vmul.f32 %v5624_v32, %v9511_v5 }
0x1f76   : > { %v5631_v11 = vpop.permute.xlu0 %5630 }
0x1f77   : > { %v5633_v8 = vpop.permute.xlu1 %5632  ;;  %v5628_v12 = vadd.f32 %v5626_v14, %v5618_v18  ;;  %v5629_v7 = vadd.f32 %v5627_v29, %v5619_v20 }
0x1f78   : > { %v5634_v58 = vsel %vm843_vm5, %v5631_v11, %v5633_v8  ;;  %v5635_v49 = vsel %vm843_vm5, %v5633_v8, %v5631_v11  ;;  %v9538_v8 = vld [vmem:[#allocation11_spill] sm:$0xff] }
0x1f79   : > { %v5636_v33 = vmul.f32 %v5635_v49, %v7170_v57  ;;  %v5637_v34 = vmul.f32 %v5634_v58, %v7174_v59  ;;  %v5640_v59 = vmul.f32 %v5573_v4, %v9512_v17  ;;  %v6180_v58 = vld [vmem:[%s9376_s4 + $0x80] sm:$0xff]  ;;  %v6181_v49 = vld [vmem:[%s9376_s4 + $0x88] sm:$0xff] }
0x1f7b   : > { %v5638_v39 = vadd.f32 %v5636_v33, %v5628_v12  ;;  %v5639_v40 = vadd.f32 %v5637_v34, %v5629_v7 }
0x1f7d   : > { %v5642_v45 = vadd.f32 %v5640_v59, %v5638_v39  ;;  %v5643_v1 = vadd.f32 %v5641_v0, %v5639_v40 }
0x1f7e   : > { %v5645_v54 = vpop.permute.xlu0 %5644 }
0x1f7f   : > { %v5647_v23 = vpop.permute.xlu1 %5646 }
0x1f80   : > { %v5648_v43 = vsel %vm884_vm6, %v5645_v54, %v5647_v23  ;;  %v5649_v38 = vsel %vm884_vm6, %v5647_v23, %v5645_v54  ;;  %v9539_v23 = vld [vmem:[#allocation12_spill] sm:$0xff] }
0x1f81   : > { %v5650_v13 = vmul.f32 %v5648_v43, %v7208_v21  ;;  %v5651_v2 = vmul.f32 %v5649_v38, %v7216_v24 }
0x1f82   : > { %v5655_v51 = vpop.permute.xlu0 %5654 }
0x1f83   : > { %v5657_v16 = vpop.permute.xlu1 %5656  ;;  %v5652_v24 = vadd.f32 %v5650_v13, %v5642_v45  ;;  %v5653_v4 = vadd.f32 %v5651_v2, %v5643_v1 }
0x1f84   : > { %v5658_v5 = vsel %vm908_vm7, %v5655_v51, %v5657_v16  ;;  %v5659_v57 = vsel %vm908_vm7, %v5657_v16, %v5655_v51 }
0x1f85   : > { %v5660_v47 = vmul.f32 %v5658_v5, %v9507_v26  ;;  %v5661_v17 = vmul.f32 %v5659_v57, %v9535_v55 }
0x1f86   : > { %v5665_v6 = vpop.permute.xlu0 %5664 }
0x1f87   : > { %v5667_v61 = vpop.permute.xlu1 %5666  ;;  %v5662_v36 = vadd.f32 %v5660_v47, %v5652_v24  ;;  %v5663_v11 = vadd.f32 %v5661_v17, %v5653_v4 }
0x1f88   : > { %v5668_v42 = vsel %vm932_vm8, %v5665_v6, %v5667_v61  ;;  %v5669_v44 = vsel %vm932_vm8, %v5667_v61, %v5665_v6 }
0x1f89   : > { %v5670_v37 = vmul.f32 %v5668_v42, %v9536_v28  ;;  %v5671_v52 = vmul.f32 %v5669_v44, %v9537_v41 }
0x1f8b   : > { %v5675_v3 = vpop.permute.xlu1 %5674  ;;  %v5677_v48 = vpop.permute.xlu0 %5676  ;;  %v5672_v46 = vadd.f32 %v5670_v37, %v5662_v36  ;;  %v5673_v30 = vadd.f32 %v5671_v52, %v5663_v11 }
0x1f8c   : > { %v5678_v19 = vsel %vm956_vm9, %v5675_v3, %v5677_v48  ;;  %v5679_v21 = vsel %vm956_vm9, %v5677_v48, %v5675_v3 }
0x1f8d   : > { %v5680_v54 = vmul.f32 %v5678_v19, %v9538_v8  ;;  %v5681_v26 = vmul.f32 %v5679_v21, %v9539_v23 }
0x1f8f   : > { %v5682_v53 = vadd.f32 %v5680_v54, %v5672_v46  ;;  %v5683_v27 = vadd.f32 %v5681_v26, %v5673_v30 }
0x1f91   : > { %v5689_v25 = vmul.f32 %v9297_v9, %v5682_v53  ;;  %v5690_v32 = vmul.f32 %v9297_v9, %v5683_v27 }
0x1f9c   : > { %v5694_v56 = vpop.permute.xlu1 %5693 }
0x1f9d   : > { %v5696_v51 = vadd.f32 %v5694_v56, %v5689_v25  ;;  %v5697_v62 = vadd.f32 %v5694_v56, %v5690_v32 }
0x1f9f   : > { %v5698_v60 = vmax.f32 %v5696_v51, 0.0  ;;  %v5699_v16 = vmax.f32 %v5697_v62, 0.0 }
0x1fa1   : > { %5709 = vmatprep.subr.mxu0 %v5699_v16 }
0x1fa2   : > { %5710 = vmatpush1.msra.mxu0 %v5698_v60 }
0x1fa3   : > { %6182 = vmatmul.mubr.msk.f32.vlgmr.msra.gmra.mrb[92].mxu0 %vm621_vm1, %v6180_v58 }
0x1fa4   : > { %5779 = vmatprep.mubr.f32.mxu0 %v9498_v35 }
0x1fa7   : > { %6183 = vmatmul.mubr.msk.f32.gmra.mrb[94].mxu0 %vm621_vm1, %v6181_v49 }
0x2076   : > { %v5775_v9 = vpop.f32.mrb[92].mxu0 }
0x2077   : > { %v5776_v22 = vadd.f32 %v5775_v9, %v9214_v50  ;;  %v5777_v31 = vpop.f32.mrb[93].mxu0 }
0x2078   : > { %v5778_v14 = vadd.f32 %v5777_v31, %v9217_v15 }
0x2079   : > { %5786 = vst [vmem:[%s474_s19] sm:$0xff] %v5776_v22 }
0x207a   : > { %5787 = vst [vmem:[%s474_s19 + $0x8] sm:$0xff] %v5778_v14  ;;  %v5781_v35 = vpop.f32.mrb[94].mxu0 }
0x207b   : > { %v5782_v29 = vadd.f32 %v5781_v35, %v9221_v10  ;;  %v5783_v18 = vpop.f32.mrb[95].mxu0 }
0x207c   : > { %v5784_v20 = vadd.f32 %v5783_v18, %v9225_v63 }
0x207d   : > { %5788 = vst [vmem:[%s474_s19 + $0x10] sm:$0xff] %v5782_v29 }
0x207e   : > { %5789 = vst [vmem:[%s474_s19 + $0x18] sm:$0xff] %v5784_v20 }
0x207f PF: > { %s9543_s29 = sld [smem:[#allocation2_spill]] }
0x2085   : > { %s24_s29 = sadd.s32 1, %s9543_s29  }
0x2086   : > { %p21_p4 = scmp.ge.s32.totalorder %s24_s29, 4  }
0x2088   :  { %23 = sbr.rel (!%p21_p4) target bundleno = 6 (0x6), region = 163 }

</bundles_post_ra>
